<compile_context>
chip_gen: v7x
topology: tpu7x:2x2x1
jax: 0.10.0
libtpu: 0.0.40
codegen_flags: <defaults>
</compile_context>

<pallas_src>
import functools

import jax
import jax.numpy as jnp
from jax import lax
from jax.experimental import pallas as pl
from jax.experimental.pallas import tpu as pltpu


def _round_up(x, m):
    return ((x + m - 1) // m) * m


def _conv_bn_act_kernel(cur_ref, halo_ref, w_ref, bias_ref, out_ref, *,
                        tap_offsets, act):
    # cur_ref:  (tile_m, Cin)          bf16 -- current block of the flat padded image
    # halo_ref: (1, halo_pad, Cin)     bf16 -- first halo_pad rows of the next block
    # w_ref:    (kH*kW*Cin, Cout_pad)  bf16 -- BN scale pre-folded, tap-major rows
    # bias_ref: (1, Cout_pad)          f32
    # out_ref:  (tile_m, Cout_pad)     out_dtype
    tile_m = out_ref.shape[0]

    # Stage current block + halo rows only (not a full second tile).
    ext = jnp.concatenate([cur_ref[...], halo_ref[0]], axis=0)  # (tile_m+halo_pad, Cin)

    # One statically shifted slab per tap, concatenated along lanes -> a single
    # K = kH*kW*Cin MXU contraction (instead of kH*kW small matmuls + f32 adds).
    patch = jnp.concatenate([ext[off:off + tile_m, :] for off in tap_offsets], axis=1)

    y = jnp.dot(patch, w_ref[...], preferred_element_type=jnp.float32)
    y = y + bias_ref[...]
    if act == "relu":
        y = jnp.maximum(y, 0.0)
    elif act is not None:
        # TODO(synk): other activations from pytorchocr Activation (hard_swish, ...)
        raise NotImplementedError(f"unsupported activation: {act!r}")
    out_ref[...] = y.astype(out_ref.dtype)


def conv_bn_layer(x_nchw, weight, gamma, beta, running_mean, running_var, *,
                  stride=1, padding=1, groups=1, if_act=True, act=None,
                  eps=1e-5, tile_m=1024, compute_dtype=jnp.bfloat16,
                  out_dtype=jnp.float32):
    """Conv2d(bias=False) + BatchNorm2d(eval) + optional activation.

    x_nchw : (N, Cin, H, W)        float32 (PyTorch layout)
    weight : (Cout, Cin, kH, kW)   float32 (PyTorch layout)

    Use tile_m=512 on v7x (64 MiB VMEM); tile_m=1024 is tuned for v5e/v6e.
    """
    del if_act  # the reference module's forward() only checks `act is not None`
    if groups != 1:
        # TODO(synk): grouped convolution path
        raise NotImplementedError("groups != 1 is not supported")
    if act is not None and act != "relu":
        # TODO(synk): hard_swish / other activations
        raise NotImplementedError(f"unsupported activation: {act!r}")

    N, Cin, H, W = x_nchw.shape
    Cout, _, kH, kW = weight.shape
    s = stride
    Ho = (H + 2 * padding - kH) // s + 1
    Wo = (W + 2 * padding - kW) // s + 1
    # stride-1 "dense" output grid computed internally, subsampled at the end.
    Ho1 = H + 2 * padding - kH + 1
    Wo1 = W + 2 * padding - kW + 1
    Hp = H + 2 * padding
    Wp = W + 2 * padding

    # ---- glue: NCHW -> NHWC, zero-pad spatially, flatten spatial dims ----
    # TODO(synk): keep the surrounding network NHWC end-to-end and fold the zero-pad
    # into the kernel to remove these wrapper-side full-activation passes.
    x = jnp.transpose(x_nchw, (0, 2, 3, 1))                          # NHWC
    xp = jnp.pad(x, ((0, 0), (padding, padding), (padding, padding), (0, 0)))
    x_flat = xp.reshape(N * Hp * Wp, Cin).astype(compute_dtype)      # (M, Cin)
    M = N * Hp * Wp

    # tap offsets in the flat (row-major, width Wp) layout: tap (kh,kw) -> kh*Wp+kw
    tap_offsets = tuple(kh * Wp + kw for kh in range(kH) for kw in range(kW))
    n_taps = len(tap_offsets)
    K = n_taps * Cin
    halo = max(tap_offsets)
    halo_pad = _round_up(max(halo, 8), 16)          # bf16 sublane-packing friendly

    # Tile size: big for v5e/v6e, but never pointlessly larger than the problem.
    tile_m = max(64, min(tile_m, _round_up(M, 16)))
    tile_m = _round_up(tile_m, 16)
    num_tiles = pl.cdiv(M, tile_m)
    Mp = num_tiles * tile_m

    # Pad so every cur block and every halo row exists (tail rows are zeros; the
    # outputs they feed are sliced off below, so correctness is unaffected).
    x_flat = jnp.pad(x_flat, ((0, Mp + halo_pad - M), (0, 0)))       # (Mp+halo_pad, Cin)

    # Small per-tile halo array: rows [(i+1)*tile_m, (i+1)*tile_m + halo_pad).
    starts = (jnp.arange(num_tiles, dtype=jnp.int32) + 1) * tile_m
    row_idx = starts[:, None] + jnp.arange(halo_pad, dtype=jnp.int32)[None, :]
    halo_arr = x_flat[row_idx]                                       # (num_tiles, halo_pad, Cin)

    # ---- fold BN (inference) into weights / bias ----
    scale = gamma / jnp.sqrt(running_var + eps)                      # (Cout,)
    bias = beta - running_mean * scale                               # (Cout,)
    # Adaptive output lane padding: lane-dense 128 multiples only when Cout is big;
    # small Cout pads to a multiple of 8 to avoid 16x HBM write amplification.
    Cout_pad = _round_up(Cout, 128) if Cout >= 128 else _round_up(Cout, 8)
    # (kH, kW, Cin, Cout) -> (kH*kW*Cin, Cout): row index = tap*Cin + cin, matching
    # the lane order of the in-kernel patch concat.
    w_flat = jnp.transpose(weight, (2, 3, 1, 0)).reshape(K, Cout)
    w_flat = w_flat * scale[None, :]                                 # fold scale (f32)
    w_flat = jnp.pad(w_flat, ((0, 0), (0, Cout_pad - Cout))).astype(compute_dtype)
    bias_pad = jnp.pad(bias, (0, Cout_pad - Cout)).reshape(1, Cout_pad)
    bias_pad = bias_pad.astype(jnp.float32)

    kernel = functools.partial(_conv_bn_act_kernel,
                               tap_offsets=tap_offsets, act=act)

    itemsize = jnp.dtype(compute_dtype).itemsize
    out_itemsize = jnp.dtype(out_dtype).itemsize
    cost = pl.CostEstimate(
        flops=2 * Mp * K * Cout_pad,
        transcendentals=0,
        bytes_accessed=((Mp + num_tiles * halo_pad) * Cin * itemsize
                        + K * Cout_pad * itemsize
                        + Mp * Cout_pad * out_itemsize))

    def build(single_buffer_consts):
        # Constant-index weight/bias blocks don't need double buffering.
        pm = ({"pipeline_mode": pl.Buffered(1)} if single_buffer_consts else {})
        grid_spec = pltpu.PrefetchScalarGridSpec(
            num_scalar_prefetch=0,
            grid=(num_tiles,),
            in_specs=[
                pl.BlockSpec((tile_m, Cin), lambda i: (i, 0)),          # current block
                pl.BlockSpec((1, halo_pad, Cin), lambda i: (i, 0, 0)),  # halo rows only
                pl.BlockSpec((K, Cout_pad), lambda i: (0, 0), **pm),    # folded weights
                pl.BlockSpec((1, Cout_pad), lambda i: (0, 0), **pm),    # bias
            ],
            out_specs=pl.BlockSpec((tile_m, Cout_pad), lambda i: (i, 0)),
        )
        return pl.pallas_call(
            kernel,
            out_shape=jax.ShapeDtypeStruct((Mp, Cout_pad), out_dtype),
            grid_spec=grid_spec,
            compiler_params=pltpu.CompilerParams(
                dimension_semantics=("parallel",),
                vmem_limit_bytes=64 * 1024 * 1024),
            cost_estimate=cost,
        )

    try:
        out = build(True)(x_flat, halo_arr, w_flat, bias_pad)
    except Exception:
        # TODO(synk): drop fallback once pl.Buffered(1) is supported everywhere.
        out = build(False)(x_flat, halo_arr, w_flat, bias_pad)

    # padded-width layout -> valid stride-1 output, then subsample for stride > 1
    out = out[:M, :Cout].reshape(N, Hp, Wp, Cout)[:, :Ho1, :Wo1, :]
    if s > 1:
        # TODO(synk): true strided path (gather needed rows only) instead of
        # computing the dense stride-1 grid and subsampling (s*s extra work).
        out = out[:, ::s, ::s, :]
    out = out[:, :Ho, :Wo, :]
    return jnp.transpose(out, (0, 3, 1, 2))        # back to NCHW


if __name__ == "__main__":
    key = jax.random.PRNGKey(0)
    k_x, k_w, k_g, k_b, k_m, k_v = jax.random.split(key, 6)

    N, Cin, H, W = 2, 4, 16, 16
    Cout, kH, kW = 8, 3, 3
    stride, padding = 1, 1

    x = jax.random.normal(k_x, (N, Cin, H, W), dtype=jnp.float32)
    weight = jax.random.normal(k_w, (Cout, Cin, kH, kW), dtype=jnp.float32) * 0.1
    gamma = 1.0 + 0.1 * jax.random.normal(k_g, (Cout,), dtype=jnp.float32)
    beta = 0.1 * jax.random.normal(k_b, (Cout,), dtype=jnp.float32)
    running_mean = 0.05 * jax.random.normal(k_m, (Cout,), dtype=jnp.float32)
    running_var = 1.0 + 0.1 * jax.random.uniform(k_v, (Cout,), dtype=jnp.float32)

    y = conv_bn_layer(x, weight, gamma, beta, running_mean, running_var,
                      stride=stride, padding=padding, if_act=True, act="relu")
    y = jax.block_until_ready(y)

    # reference (same bf16-rounded operands as the kernel, f32 accumulation)
    eps = 1e-5
    scale = gamma / jnp.sqrt(running_var + eps)
    bias = beta - running_mean * scale
    w_folded = weight * scale[:, None, None, None]
    x_q = x.astype(jnp.bfloat16).astype(jnp.float32)
    w_q = w_folded.astype(jnp.bfloat16).astype(jnp.float32)
    ref = lax.conv_general_dilated(
        x_q, w_q, window_strides=(stride, stride),
        padding=[(padding, padding), (padding, padding)],
        dimension_numbers=("NCHW", "OIHW", "NCHW"),
        precision=lax.Precision.HIGHEST)
    ref = jnp.maximum(ref + bias.reshape(1, Cout, 1, 1), 0.0)

    assert y.shape == ref.shape == (N, Cout, H, W)
    assert jnp.allclose(y, ref, atol=1e-3, rtol=1e-3), "mismatch vs reference"

    print("KERNEL_OK")
</pallas_src>

<mosaic_0001>
module attributes {stable_mosaic.version = 11 : i64} {
  func.func @_conv_bn_act_kernel(%arg0: i32, %arg1: memref<656x4xbf16, #tpu.memory_space<vmem>>, %arg2: memref<1x48x4xbf16, #tpu.memory_space<vmem>>, %arg3: memref<36x8xbf16, #tpu.memory_space<vmem>>, %arg4: memref<1x8xf32, #tpu.memory_space<vmem>>, %arg5: memref<656x8xf32, #tpu.memory_space<vmem>>) attributes {dimension_semantics = [#tpu.dimension_semantics<parallel>], iteration_bounds = array<i64: 1>, scalar_prefetch = 0 : i64, scratch_operands = 0 : i64, tpu.core_type = #tpu.core_type<tc>, window_params = [{transform_indices = @transform_0, window_bounds = array<i64: 656, 4>}, {transform_indices = @transform_1, window_bounds = array<i64: 1, 48, 4>}, {pipeline_mode = #tpu.pipeline_mode<synchronous>, transform_indices = @transform_2, window_bounds = array<i64: 36, 8>}, {pipeline_mode = #tpu.pipeline_mode<synchronous>, transform_indices = @transform_3, window_bounds = array<i64: 1, 8>}, {transform_indices = @transform_4, window_bounds = array<i64: 656, 8>}]} {
    %c0 = arith.constant 0 : index
    %c0_0 = arith.constant 0 : index
    %0 = vector.load %arg1[%c0, %c0_0] : memref<656x4xbf16, #tpu.memory_space<vmem>>, vector<656x4xbf16>
    %c0_1 = arith.constant 0 : index
    %c0_2 = arith.constant 0 : index
    %c0_3 = arith.constant 0 : index
    %1 = vector.load %arg2[%c0_1, %c0_2, %c0_3] : memref<1x48x4xbf16, #tpu.memory_space<vmem>>, vector<1x48x4xbf16>
    %2 = vector.shape_cast %1 : vector<1x48x4xbf16> to vector<48x4xbf16>
    %3 = tpu.concatenate %0, %2 in 0 : vector<656x4xbf16>, vector<48x4xbf16> -> vector<704x4xbf16>
    %4 = vector.extract_strided_slice %3 {offsets = [0, 0], sizes = [656, 4], strides = [1, 1]} : vector<704x4xbf16> to vector<656x4xbf16>
    %5 = vector.extract_strided_slice %3 {offsets = [1, 0], sizes = [656, 4], strides = [1, 1]} : vector<704x4xbf16> to vector<656x4xbf16>
    %6 = vector.extract_strided_slice %3 {offsets = [2, 0], sizes = [656, 4], strides = [1, 1]} : vector<704x4xbf16> to vector<656x4xbf16>
    %7 = vector.extract_strided_slice %3 {offsets = [18, 0], sizes = [656, 4], strides = [1, 1]} : vector<704x4xbf16> to vector<656x4xbf16>
    %8 = vector.extract_strided_slice %3 {offsets = [19, 0], sizes = [656, 4], strides = [1, 1]} : vector<704x4xbf16> to vector<656x4xbf16>
    %9 = vector.extract_strided_slice %3 {offsets = [20, 0], sizes = [656, 4], strides = [1, 1]} : vector<704x4xbf16> to vector<656x4xbf16>
    %10 = vector.extract_strided_slice %3 {offsets = [36, 0], sizes = [656, 4], strides = [1, 1]} : vector<704x4xbf16> to vector<656x4xbf16>
    %11 = vector.extract_strided_slice %3 {offsets = [37, 0], sizes = [656, 4], strides = [1, 1]} : vector<704x4xbf16> to vector<656x4xbf16>
    %12 = vector.extract_strided_slice %3 {offsets = [38, 0], sizes = [656, 4], strides = [1, 1]} : vector<704x4xbf16> to vector<656x4xbf16>
    %13 = tpu.concatenate %4, %5, %6, %7, %8, %9, %10, %11, %12 in 1 : vector<656x4xbf16>, vector<656x4xbf16>, vector<656x4xbf16>, vector<656x4xbf16>, vector<656x4xbf16>, vector<656x4xbf16>, vector<656x4xbf16>, vector<656x4xbf16>, vector<656x4xbf16> -> vector<656x36xbf16>
    %c0_4 = arith.constant 0 : index
    %c0_5 = arith.constant 0 : index
    %14 = vector.load %arg3[%c0_4, %c0_5] : memref<36x8xbf16, #tpu.memory_space<vmem>>, vector<36x8xbf16>
    %cst = arith.constant dense<0.000000e+00> : vector<656x8xf32>
    %15 = tpu.matmul %13, %14, %cst {dimension_numbers = #tpu.dot_dimension_numbers<[1], [0], [0], [1], [0, 0, 1, 1], [], []>} : vector<656x36xbf16>, vector<36x8xbf16>, vector<656x8xf32> -> vector<656x8xf32>
    %c0_6 = arith.constant 0 : index
    %c0_7 = arith.constant 0 : index
    %16 = vector.load %arg4[%c0_6, %c0_7] : memref<1x8xf32, #tpu.memory_space<vmem>>, vector<1x8xf32>
    %17 = vector.broadcast %16 : vector<1x8xf32> to vector<656x8xf32>
    %18 = arith.addf %15, %17 : vector<656x8xf32>
    %cst_8 = arith.constant 0.000000e+00 : f32
    %19 = vector.broadcast %cst_8 : f32 to vector<656x8xf32>
    %20 = arith.maximumf %18, %19 : vector<656x8xf32>
    %c0_9 = arith.constant 0 : index
    %c0_10 = arith.constant 0 : index
    %21 = vector.load %arg5[%c0_9, %c0_10] : memref<656x8xf32, #tpu.memory_space<vmem>>, vector<656x8xf32>
    tpu.vector_store %arg5[%c0_9, %c0_10], %20 {strides = array<i32>} : memref<656x8xf32, #tpu.memory_space<vmem>>, vector<656x8xf32>,
    return
  }
  func.func @transform_0(%arg0: i32) -> (i32, i32) {
    %c0_i32 = arith.constant 0 : i32
    %c0_i32_0 = arith.constant 0 : i32
    return %arg0, %c0_i32 : i32, i32
  }
  func.func @transform_1(%arg0: i32) -> (i32, i32, i32) {
    %c0_i32 = arith.constant 0 : i32
    %c0_i32_0 = arith.constant 0 : i32
    %c0_i32_1 = arith.constant 0 : i32
    return %arg0, %c0_i32, %c0_i32_0 : i32, i32, i32
  }
  func.func @transform_2(%arg0: i32) -> (i32, i32) {
    %c0_i32 = arith.constant 0 : i32
    %c0_i32_0 = arith.constant 0 : i32
    %c0_i32_1 = arith.constant 0 : i32
    return %c0_i32, %c0_i32_0 : i32, i32
  }
  func.func @transform_3(%arg0: i32) -> (i32, i32) {
    %c0_i32 = arith.constant 0 : i32
    %c0_i32_0 = arith.constant 0 : i32
    %c0_i32_1 = arith.constant 0 : i32
    return %c0_i32, %c0_i32_0 : i32, i32
  }
  func.func @transform_4(%arg0: i32) -> (i32, i32) {
    %c0_i32 = arith.constant 0 : i32
    %c0_i32_0 = arith.constant 0 : i32
    return %arg0, %c0_i32 : i32, i32
  }
}

module attributes {stable_mosaic.version = 11 : i64} {
  func.func @_conv_bn_act_kernel(%arg0: i32, %arg1: memref<656x4xbf16, #tpu.memory_space<vmem>>, %arg2: memref<1x48x4xbf16, #tpu.memory_space<vmem>>, %arg3: memref<36x8xbf16, #tpu.memory_space<vmem>>, %arg4: memref<1x8xf32, #tpu.memory_space<vmem>>, %arg5: memref<656x8xf32, #tpu.memory_space<vmem>>) attributes {dimension_semantics = [#tpu.dimension_semantics<parallel>], iteration_bounds = array<i64: 1>, scalar_prefetch = 0 : i64, scratch_operands = 0 : i64, tpu.core_type = #tpu.core_type<tc>, window_params = [{transform_indices = @transform_0, window_bounds = array<i64: 656, 4>}, {transform_indices = @transform_1, window_bounds = array<i64: 1, 48, 4>}, {pipeline_mode = #tpu.pipeline_mode<synchronous>, transform_indices = @transform_2, window_bounds = array<i64: 36, 8>}, {pipeline_mode = #tpu.pipeline_mode<synchronous>, transform_indices = @transform_3, window_bounds = array<i64: 1, 8>}, {transform_indices = @transform_4, window_bounds = array<i64: 656, 8>}]} {
    %c0 = arith.constant 0 : index
    %c0_0 = arith.constant 0 : index
    %0 = vector.load %arg1[%c0, %c0_0] : memref<656x4xbf16, #tpu.memory_space<vmem>>, vector<656x4xbf16>
    %c0_1 = arith.constant 0 : index
    %c0_2 = arith.constant 0 : index
    %c0_3 = arith.constant 0 : index
    %1 = vector.load %arg2[%c0_1, %c0_2, %c0_3] : memref<1x48x4xbf16, #tpu.memory_space<vmem>>, vector<1x48x4xbf16>
    %2 = vector.shape_cast %1 : vector<1x48x4xbf16> to vector<48x4xbf16>
    %3 = tpu.concatenate %0, %2 in 0 : vector<656x4xbf16>, vector<48x4xbf16> -> vector<704x4xbf16>
    %4 = vector.extract_strided_slice %3 {offsets = [0, 0], sizes = [656, 4], strides = [1, 1]} : vector<704x4xbf16> to vector<656x4xbf16>
    %5 = vector.extract_strided_slice %3 {offsets = [1, 0], sizes = [656, 4], strides = [1, 1]} : vector<704x4xbf16> to vector<656x4xbf16>
    %6 = vector.extract_strided_slice %3 {offsets = [2, 0], sizes = [656, 4], strides = [1, 1]} : vector<704x4xbf16> to vector<656x4xbf16>
    %7 = vector.extract_strided_slice %3 {offsets = [18, 0], sizes = [656, 4], strides = [1, 1]} : vector<704x4xbf16> to vector<656x4xbf16>
    %8 = vector.extract_strided_slice %3 {offsets = [19, 0], sizes = [656, 4], strides = [1, 1]} : vector<704x4xbf16> to vector<656x4xbf16>
    %9 = vector.extract_strided_slice %3 {offsets = [20, 0], sizes = [656, 4], strides = [1, 1]} : vector<704x4xbf16> to vector<656x4xbf16>
    %10 = vector.extract_strided_slice %3 {offsets = [36, 0], sizes = [656, 4], strides = [1, 1]} : vector<704x4xbf16> to vector<656x4xbf16>
    %11 = vector.extract_strided_slice %3 {offsets = [37, 0], sizes = [656, 4], strides = [1, 1]} : vector<704x4xbf16> to vector<656x4xbf16>
    %12 = vector.extract_strided_slice %3 {offsets = [38, 0], sizes = [656, 4], strides = [1, 1]} : vector<704x4xbf16> to vector<656x4xbf16>
    %13 = tpu.concatenate %4, %5, %6, %7, %8, %9, %10, %11, %12 in 1 : vector<656x4xbf16>, vector<656x4xbf16>, vector<656x4xbf16>, vector<656x4xbf16>, vector<656x4xbf16>, vector<656x4xbf16>, vector<656x4xbf16>, vector<656x4xbf16>, vector<656x4xbf16> -> vector<656x36xbf16>
    %c0_4 = arith.constant 0 : index
    %c0_5 = arith.constant 0 : index
    %14 = vector.load %arg3[%c0_4, %c0_5] : memref<36x8xbf16, #tpu.memory_space<vmem>>, vector<36x8xbf16>
    %cst = arith.constant dense<0.000000e+00> : vector<656x8xf32>
    %15 = tpu.matmul %13, %14, %cst {dimension_numbers = #tpu.dot_dimension_numbers<[1], [0], [0], [1], [0, 0, 1, 1], [], []>} : vector<656x36xbf16>, vector<36x8xbf16>, vector<656x8xf32> -> vector<656x8xf32>
    %c0_6 = arith.constant 0 : index
    %c0_7 = arith.constant 0 : index
    %16 = vector.load %arg4[%c0_6, %c0_7] : memref<1x8xf32, #tpu.memory_space<vmem>>, vector<1x8xf32>
    %17 = vector.broadcast %16 : vector<1x8xf32> to vector<656x8xf32>
    %18 = arith.addf %15, %17 : vector<656x8xf32>
    %cst_8 = arith.constant 0.000000e+00 : f32
    %19 = vector.broadcast %cst_8 : f32 to vector<656x8xf32>
    %20 = arith.maximumf %18, %19 : vector<656x8xf32>
    %c0_9 = arith.constant 0 : index
    %c0_10 = arith.constant 0 : index
    %21 = vector.load %arg5[%c0_9, %c0_10] : memref<656x8xf32, #tpu.memory_space<vmem>>, vector<656x8xf32>
    tpu.vector_store %arg5[%c0_9, %c0_10], %20 {strides = array<i32>} : memref<656x8xf32, #tpu.memory_space<vmem>>, vector<656x8xf32>,
    return
  }
  func.func @transform_0(%arg0: i32) -> (i32, i32) {
    %c0_i32 = arith.constant 0 : i32
    %c0_i32_0 = arith.constant 0 : i32
    return %arg0, %c0_i32 : i32, i32
  }
  func.func @transform_1(%arg0: i32) -> (i32, i32, i32) {
    %c0_i32 = arith.constant 0 : i32
    %c0_i32_0 = arith.constant 0 : i32
    %c0_i32_1 = arith.constant 0 : i32
    return %arg0, %c0_i32, %c0_i32_0 : i32, i32, i32
  }
  func.func @transform_2(%arg0: i32) -> (i32, i32) {
    %c0_i32 = arith.constant 0 : i32
    %c0_i32_0 = arith.constant 0 : i32
    %c0_i32_1 = arith.constant 0 : i32
    return %c0_i32, %c0_i32_0 : i32, i32
  }
  func.func @transform_3(%arg0: i32) -> (i32, i32) {
    %c0_i32 = arith.constant 0 : i32
    %c0_i32_0 = arith.constant 0 : i32
    %c0_i32_1 = arith.constant 0 : i32
    return %c0_i32, %c0_i32_0 : i32, i32
  }
  func.func @transform_4(%arg0: i32) -> (i32, i32) {
    %c0_i32 = arith.constant 0 : i32
    %c0_i32_0 = arith.constant 0 : i32
    return %arg0, %c0_i32 : i32, i32
  }
}

</mosaic_0001>

<bundles_post_ra>
// kernel: tpu_custom_call.1
= control target key start
LH: loop header
LB: loop body
LE: loop exit
PB: predicated region body
PF: predicated region fallthrough
CT: control target
= control target key end

     0   :  { %9 = vsyncpa [#allocation3], 0  ;;  %s7077_s0 = inlined_call_operand.hbm [shape: bf16[704,4], index: 0, kind: input, shape index: {}]   ;;  %s7078_s1 = inlined_call_operand.hbm [shape: bf16[1,48,4], index: 1, kind: input, shape index: {}]   ;;  %s7079_s2 = inlined_call_operand.hbm [shape: bf16[36,8], index: 2, kind: input, shape index: {}]   ;;  %s7080_s3 = inlined_call_operand.hbm [shape: f32[1,8], index: 3, kind: input, shape index: {}]   ;;  %s7081_s4 = inlined_call_operand.hbm [shape: f32[656,8], index: 4, kind: output, shape index: {}]  }
   0x1   :  { %10 = vsyncpa [#allocation6], 0 }
   0x2   :  { %11 = vsyncpa [#allocation9], 0 }
   0x3   :  { %12 = vsyncpa [#allocation4], 0  ;;  %s3861_s15 = smov [#allocation5]   ;;  %s3862_s17 = smov [#allocation2]  }
   0x4   :  { %s30_s16 = sshll.u32 %s3861_s15, 4  ;;  %s18_s18 = sshll.u32 %s3862_s17, 4  ;;  %s31_s16 = int_to_ptr.vmem [resolvable:$true] %s30_s16  ;;  %s3903_s18 = int_to_ptr.vmem [resolvable:$true] %s18_s18 }
   0x5   :  { %s3743_s21 = scalar_lea.hbm %s7078_s1, 384 }
   0x6   :  { %p3744_p0 = scmp.ne.s32.totalorder %s7078_s1, %s3743_s21  ;;  %p3747_p1 = scmp.lt.u32.totalorder %s3743_s21, %s7078_s1 }
   0x8   :  { %p3749_p2 = pnand %p3747_p1, %p3744_p0 }
   0xa   :  { %3752 = shalt.err (!%p3749_p2)
}
   0xb   :  { %s3753_s26 = scalar_lea.vmem %s31_s16, 384  ;;  %p3758_p4 = scmp.lt.s32.totalorder %s31_s16, %s31_s16 }
   0xc   :  { %p3754_p3 = scmp.ne.s32.totalorder %s31_s16, %s3753_s26  ;;  %p3759_p5 = scmp.lt.s32.totalorder %s3753_s26, %s3753_s26 }
   0xe   :  { %p3760_p6 = por %p3759_p5, %p3758_p4 }
  0x10   :  { %p3761_p7 = pnand %p3760_p6, %p3754_p3 }
  0x12   :  { %3764 = shalt.err (!%p3761_p7)
}
  0x13   :  { %s3863_s27 = smov 64   ;;  %s3864_s28 = smov 4  }
  0x14   :  { %36 = dma.hbm_to_vmem [thread:$0]  %s7078_s1, 384, %s31_s16, [#allocation6], %s3863_s27, %s3863_s27, %s3864_s28  }
  0x15   :  { %s3765_s7 = scalar_lea.hbm %s7077_s0, 5248  ;;  %s3767_s12 = scalar_lea.hbm %s7077_s0, 5632 }
  0x16   :  { %p3766_p8 = scmp.ne.s32.totalorder %s7077_s0, %s3765_s7  ;;  %p3768_p9 = scmp.lt.u32.totalorder %s3767_s12, %s3765_s7 }
  0x17   :  { %p3769_p10 = scmp.lt.u32.totalorder %s3765_s7, %s7077_s0 }
  0x19   :  { %p3770_p11 = por %p3769_p10, %p3768_p9 }
  0x1b   :  { %p3771_p12 = pnand %p3770_p11, %p3766_p8 }
  0x1d   :  { %3774 = shalt.err (!%p3771_p12)
}
  0x1e   :  { %s3775_s1 = scalar_lea.vmem %s3903_s18, 5248  ;;  %p3780_p0 = scmp.lt.s32.totalorder %s3903_s18, %s3903_s18 }
  0x1f   :  { %p3776_p13 = scmp.ne.s32.totalorder %s3903_s18, %s3775_s1  ;;  %p3781_p1 = scmp.lt.s32.totalorder %s3775_s1, %s3775_s1 }
  0x21   :  { %p3782_p2 = por %p3781_p1, %p3780_p0 }
  0x23   :  { %p3783_p3 = pnand %p3782_p2, %p3776_p13 }
  0x25   :  { %3786 = shalt.err (!%p3783_p3)
}
  0x26   :  { %24 = dma.hbm_to_vmem [thread:$0]  %s7077_s0, 5248, %s3903_s18, [#allocation3], %s3863_s27, %s3863_s27, %s3864_s28  }
  0x27   :  { %s3865_s17 = smov [#allocation7]   ;;  %s3866_s20 = smov [#allocation8]  }
  0x28   :  { %s42_s19 = sshll.u32 %s3865_s17, 4  ;;  %s55_s21 = sshll.u32 %s3866_s20, 4  ;;  %s43_s19 = int_to_ptr.vmem [resolvable:$true] %s42_s19  ;;  %s56_s21 = int_to_ptr.vmem [resolvable:$true] %s55_s21 }
  0x29   :  { %s3787_s24 = scalar_lea.hbm %s7079_s2, 320 }
  0x2a   :  { %p3788_p4 = scmp.ne.s32.totalorder %s7079_s2, %s3787_s24  ;;  %p3791_p5 = scmp.lt.u32.totalorder %s3787_s24, %s7079_s2 }
  0x2c   :  { %p3793_p6 = pnand %p3791_p5, %p3788_p4 }
  0x2e   :  { %3796 = shalt.err (!%p3793_p6)
}
  0x2f   :  { %s3797_s0 = scalar_lea.vmem %s43_s19, 320  ;;  %p3802_p8 = scmp.lt.s32.totalorder %s43_s19, %s43_s19 }
  0x30   :  { %p3798_p7 = scmp.ne.s32.totalorder %s43_s19, %s3797_s0  ;;  %p3803_p9 = scmp.lt.s32.totalorder %s3797_s0, %s3797_s0 }
  0x32   :  { %p3804_p10 = por %p3803_p9, %p3802_p8 }
  0x34   :  { %p3805_p11 = pnand %p3804_p10, %p3798_p7 }
  0x36   :  { %3808 = shalt.err (!%p3805_p11)
}
  0x37   :  { %48 = dma.hbm_to_vmem [thread:$0]  %s7079_s2, 320, %s43_s19, [#allocation6], %s3863_s27, %s3863_s27, %s3864_s28  }
  0x38   :  { %s3809_s8 = scalar_lea.hbm %s7080_s3, 16 }
  0x39   :  { %p3810_p12 = scmp.ne.s32.totalorder %s7080_s3, %s3809_s8  ;;  %p3813_p13 = scmp.lt.u32.totalorder %s3809_s8, %s7080_s3 }
  0x3b   :  { %p3815_p0 = pnand %p3813_p13, %p3810_p12 }
  0x3d   :  { %3818 = shalt.err (!%p3815_p0)
}
  0x3e   :  { %s3819_s13 = scalar_lea.vmem %s56_s21, 16  ;;  %s3823_s14 = scalar_lea.vmem %s56_s21, 32 }
  0x3f   :  { %p3820_p1 = scmp.ne.s32.totalorder %s56_s21, %s3819_s13  ;;  %p3824_p2 = scmp.lt.s32.totalorder %s56_s21, %s56_s21 }
  0x40   :  { %p3825_p3 = scmp.lt.s32.totalorder %s3823_s14, %s3819_s13 }
  0x42   :  { %p3826_p4 = por %p3825_p3, %p3824_p2 }
  0x44   :  { %p3827_p5 = pnand %p3826_p4, %p3820_p1 }
  0x46   :  { %3830 = shalt.err (!%p3827_p5)
}
  0x47   :  { %58 = dma.hbm_to_vmem [thread:$0]  %s7080_s3, 16, %s56_s21, [#allocation9]  }
  0x48   :  { %3853 = dma.done.wait [#allocation3], 5248  }
  0x49   :  { %3854 = vsyncadd [#allocation3], 4294962048 }
  0x4a   :  { %3855 = dma.done.wait [#allocation6], 704  }
  0x4b   :  { %3856 = vsyncadd [#allocation6], 4294966592 }
  0x4c   :  { %3857 = dma.done.wait [#allocation9], 16  }
  0x4d   :  { %3858 = vsyncadd [#allocation9], 4294967280  ;;  %v3970_v0 = vld [vmem:[#allocation2 + $0x10] sm:$0xff]   ;;  %v3972_v1 = vld [vmem:[#allocation2 + $0x18] sm:$0xff]   ;;  %vm380_vm0 = vsmask.f32 7424 }
  0x4e   :  { %v3975_v2 = vshll.u32 %v3970_v0, 16  ;;  %v3978_v3 = vshrl.u32 %v3970_v0, 16  ;;  %v3981_v4 = vshll.u32 %v3972_v1, 16  ;;  %v3983_v5 = vld [vmem:[#allocation2] sm:$0xff]   ;;  %v3985_v6 = vld [vmem:[#allocation2 + $0x8] sm:$0xff]   ;;  %v3988_v7 = vshrl.u32 %v3972_v1, 16 }
  0x4f   :  { %v382_v10 = vshrl.u32 %v3983_v5, 16  ;;  %v384_v11 = vshll.u32 %v3983_v5, 16  ;;  %v3994_v12 = vld [vmem:[#allocation2 + $0x20] sm:$0xff]   ;;  %v3996_v13 = vld [vmem:[#allocation2 + $0x28] sm:$0xff]   ;;  %v7083_v14 = vshll.u32 %v3985_v6, 16  ;;  %v7082_v15 = vshrl.u32 %v3985_v6, 16 }
  0x50   :  { %7266 = vst [vmem:[#allocation15_spill] sm:$0xff] %v3981_v4  ;;  %7267 = vst [vmem:[#allocation16_spill] sm:$0xff] %v3988_v7  ;;  %v399_v8 = vrot.slane %v3975_v2, 1  ;;  %v407_v9 = vrot.slane %v3981_v4, 1  ;;  %v4003_v19 = vshll.u32 %v3994_v12, 16  ;;  %v4007_v21 = vld [vmem:[#allocation2 + $0x30] sm:$0xff]  }
  0x51   :  { %v386_v17 = vrot.slane %v384_v11, 1  ;;  %v391_v20 = vrot.slane %v7083_v14, 1  ;;  %v4010_v22 = vshll.u32 %v3996_v13, 16  ;;  %v4012_v23 = vld [vmem:[#allocation2 + $0x38] sm:$0xff]   ;;  %v4017_v27 = vshrl.u32 %v3996_v13, 16  ;;  %v4029_v32 = vld [vmem:[#allocation2 + $0x40] sm:$0xff]  }
  0x52   :  { %v403_v16 = vor.u32 %v3978_v3, %v399_v8  ;;  %v411_v18 = vor.u32 %v3988_v7, %v407_v9  ;;  %7268 = vst [vmem:[#allocation17_spill] sm:$0xff] %v4003_v19  ;;  %v415_v26 = vrot.slane %v4003_v19, 1  ;;  %v4024_v30 = vshll.u32 %v4007_v21, 16  ;;  %v4043_v40 = vld [vmem:[#allocation2 + $0x48] sm:$0xff]   ;;  %v4053_v45 = vld [vmem:[#allocation2 + $0x50] sm:$0xff]   ;;  %v4070_v53 = vld [vmem:[#allocation2 + $0x58] sm:$0xff]  }
  0x53   :  { %7269 = vst [vmem:[#allocation18_spill] sm:$0xff] %v4010_v22  ;;  %v387_v25 = vor.u32 %v386_v17, %v382_v10  ;;  %7270 = vst [vmem:[#allocation19_spill] sm:$0xff] %v4017_v27  ;;  %v395_v28 = vor.u32 %v7082_v15, %v391_v20  ;;  %v423_v29 = vrot.slane %v4010_v22, 1  ;;  %v4027_v31 = vshrl.u32 %v3994_v12, 16  ;;  %v4072_v54 = vld [vmem:[#allocation2 + $0x60] sm:$0xff]   ;;  %v4074_v55 = vld [vmem:[#allocation2 + $0x68] sm:$0xff]  }
  0x54   :  { %v408_v24 = vsel %vm380_vm0, %v403_v16, %v407_v9  ;;  %7271 = vst [vmem:[#allocation20_spill] sm:$0xff] %v4024_v30  ;;  %v416_v34 = vsel %vm380_vm0, %v411_v18, %v415_v26  ;;  %v4034_v35 = vshll.u32 %v4012_v23, 16  ;;  %v4037_v36 = vshrl.u32 %v4012_v23, 16  ;;  %v4087_v62 = vld [vmem:[#allocation2 + $0x70] sm:$0xff]   ;;  %v4099_v11 = vld [vmem:[#allocation2 + $0x78] sm:$0xff]   ;;  %v4160_v14 = vld [vmem:[#allocation2 + $0xa0] sm:$0xff]  }
  0x55   :  { %717 = vrot.lane.b32.xlu1 %v408_v24, %s3864_s28  ;;  %7272 = vst [vmem:[#allocation21_spill] sm:$0xff] %v4027_v31  ;;  %v392_v33 = vsel %vm380_vm0, %v387_v25, %v391_v20  ;;  %v400_v37 = vsel %vm380_vm0, %v395_v28, %v399_v8  ;;  %v427_v38 = vor.u32 %v4017_v27, %v423_v29  ;;  %v431_v39 = vrot.slane %v4024_v30, 1  ;;  %v4111_v25 = vld [vmem:[#allocation2 + $0x80] sm:$0xff]   ;;  %v4282_v30 = vld [vmem:[#allocation2 + $0xf8] sm:$0xff]   ;;  %s3867_s3 = smov 8   ;;  %s3871_s1 = smov 16  }
  0x56   :  { %7273 = vst [vmem:[#allocation22_spill] sm:$0xff] %v4034_v35  ;;  %7274 = vst [vmem:[#allocation23_spill] sm:$0xff] %v4037_v36  ;;  %713 = vrot.lane.b32.xlu0 %v392_v33, %s3864_s28  ;;  %v419_v41 = vor.u32 %v4027_v31, %v415_v26  ;;  %v439_v42 = vrot.slane %v4034_v35, 1  ;;  %v4048_v43 = vshll.u32 %v4029_v32, 16  ;;  %v4051_v44 = vshrl.u32 %v4007_v21, 16  ;;  %v4332_v31 = vld [vmem:[#allocation2 + $0x110] sm:$0xff]  }
  0x57   :  { %v4057_v46 = vshll.u32 %v4043_v40, 16  ;;  %v4060_v47 = vshrl.u32 %v4043_v40, 16  ;;  %v432_v48 = vsel %vm380_vm0, %v427_v38, %v431_v39  ;;  %v4066_v51 = vshll.u32 %v4053_v45, 16  ;;  %s3872_s15 = smov 24   ;;  %s3873_s16 = smov 20  }
  0x58   :  { %7275 = vst [vmem:[#allocation24_spill] sm:$0xff] %v4048_v43  ;;  %7276 = vst [vmem:[#allocation25_spill] sm:$0xff] %v4051_v44  ;;  %v443_v49 = vor.u32 %v4037_v36, %v439_v42  ;;  %v447_v50 = vrot.slane %v4048_v43, 1  ;;  %v424_v56 = vsel %vm380_vm0, %v419_v41, %v423_v29  ;;  %v435_v57 = vor.u32 %v4051_v44, %v431_v39  ;;  %v4129_v41 = vld [vmem:[#allocation2 + $0x88] sm:$0xff]   ;;  %s3874_s17 = smov 32   ;;  %s3875_s19 = smov 28  }
  0x59   :  { %719 = vrot.lane.b32.xlu1 %v416_v34, %s3864_s28  ;;  %7277 = vst [vmem:[#allocation26_spill] sm:$0xff] %v4057_v46  ;;  %7278 = vst [vmem:[#allocation27_spill] sm:$0xff] %v4060_v47  ;;  %v455_v52 = vrot.slane %v4057_v46, 1  ;;  %v463_v58 = vrot.slane %v4066_v51, 1  ;;  %v4080_v59 = vshrl.u32 %v4029_v32, 16  ;;  %v4085_v61 = vshll.u32 %v4070_v53, 16 }
  0x5a   :  { %7279 = vst [vmem:[#allocation28_spill] sm:$0xff] %v4066_v51  ;;  %715 = vrot.lane.b32.xlu0 %v400_v37, %s3864_s28  ;;  %v448_v60 = vsel %vm380_vm0, %v443_v49, %v447_v50  ;;  %v4091_v8 = vshrl.u32 %v4070_v53, 16  ;;  %v4094_v9 = vshll.u32 %v4072_v54, 16  ;;  %v4097_v10 = vshll.u32 %v4074_v55, 16  ;;  %v4135_v49 = vld [vmem:[#allocation2 + $0x90] sm:$0xff]   ;;  %s3876_s20 = smov [#allocation10]  }
  0x5b   :  { %7280 = vst [vmem:[#allocation29_spill] sm:$0xff] %v4080_v59  ;;  %7281 = vst [vmem:[#allocation30_spill] sm:$0xff] %v4085_v61  ;;  %v459_v63 = vor.u32 %v4060_v47, %v455_v52  ;;  %v471_v16 = vrot.slane %v4085_v61, 1  ;;  %v4104_v17 = vshrl.u32 %v4053_v45, 16  ;;  %v440_v18 = vsel %vm380_vm0, %v435_v57, %v439_v42  ;;  %v4140_v57 = vld [vmem:[#allocation2 + $0x98] sm:$0xff]   ;;  %v4215_v61 = vld [vmem:[#allocation2 + $0xc8] sm:$0xff]  }
  0x5c   :  { %7282 = vst [vmem:[#allocation31_spill] sm:$0xff] %v4091_v8  ;;  %7283 = vst [vmem:[#allocation32_spill] sm:$0xff] %v4094_v9  ;;  %v451_v20 = vor.u32 %v4080_v59, %v447_v50  ;;  %v4109_v24 = vshrl.u32 %v4074_v55, 16  ;;  %v487_v26 = vrot.slane %v4097_v10, 1  ;;  %v4116_v28 = vshll.u32 %v4087_v62, 16  ;;  %s3281_s21 = sshll.u32 %s3876_s20, 4  ;;  %s3282_s21 = int_to_ptr.vmem [resolvable:$true] %s3281_s21 }
  0x5d   :  { %723 = vrot.lane.b32.xlu1 %v432_v48, %s3864_s28  ;;  %7284 = vst [vmem:[#allocation33_spill] sm:$0xff] %v4097_v10  ;;  %7285 = vst [vmem:[#allocation34_spill] sm:$0xff] %v4104_v17  ;;  %v464_v29 = vsel %vm380_vm0, %v459_v63, %v463_v58  ;;  %v475_v33 = vor.u32 %v4091_v8, %v471_v16  ;;  %v479_v34 = vrot.slane %v4094_v9, 1  ;;  %v4122_v37 = vshll.u32 %v4099_v11, 16  ;;  %v4231_v8 = vld [vmem:[#allocation2 + $0xd0] sm:$0xff]   ;;  %s3831_s22 = scalar_lea.vmem %s3282_s21, 10496  ;;  %p3836_p7 = scmp.lt.s32.totalorder %s3282_s21, %s3282_s21 }
  0x5e   :  { %721 = vrot.lane.b32.xlu0 %v424_v56, %s3864_s28  ;;  %7286 = vst [vmem:[#allocation35_spill] sm:$0xff] %v4109_v24  ;;  %7287 = vst [vmem:[#allocation36_spill] sm:$0xff] %v4116_v28  ;;  %v467_v38 = vor.u32 %v4104_v17, %v463_v58  ;;  %v4127_v39 = vshrl.u32 %v4072_v54, 16  ;;  %v456_v42 = vsel %vm380_vm0, %v451_v20, %v455_v52  ;;  %v4133_v48 = vshll.u32 %v4111_v25, 16  ;;  %p3832_p6 = scmp.ne.s32.totalorder %s3282_s21, %s3831_s22  ;;  %p3837_p8 = scmp.lt.s32.totalorder %s3831_s22, %s3831_s22 }
  0x5f   :  { %7288 = vst [vmem:[#allocation37_spill] sm:$0xff] %v4122_v37  ;;  %v491_v50 = vor.u32 %v4109_v24, %v487_v26  ;;  %v495_v56 = vrot.slane %v4116_v28, 1  ;;  %v480_v58 = vsel %vm380_vm0, %v475_v33, %v479_v34  ;;  %v4145_v63 = vshrl.u32 %v4099_v11, 16 }
  0x60   :  { %7289 = vst [vmem:[#allocation38_spill] sm:$0xff] %v4127_v39  ;;  %7290 = vst [vmem:[#allocation39_spill] sm:$0xff] %v4133_v48  ;;  %v4148_v52 = vshll.u32 %v4129_v41, 16  ;;  %v483_v20 = vor.u32 %v4127_v39, %v479_v34  ;;  %v4155_v15 = vshrl.u32 %v4087_v62, 16  ;;  %v4158_v33 = vshrl.u32 %v4129_v41, 16  ;;  %p3838_p9 = por %p3837_p8, %p3836_p7 }
  0x61   :  { %727 = vrot.lane.b32.xlu1 %v448_v60, %s3864_s28  ;;  %v503_v60 = vrot.slane %v4122_v37, 1  ;;  %7291 = vst [vmem:[#allocation40_spill] sm:$0xff] %v4145_v63  ;;  %v4164_v37 = vshll.u32 %v4135_v49, 16  ;;  %v4176_v28 = vshrl.u32 %v4111_v25, 16  ;;  %v4181_v24 = vshrl.u32 %v4140_v57, 16 }
  0x62   :  { %725 = vrot.lane.b32.xlu0 %v440_v18, %s3864_s28  ;;  %7292 = vst [vmem:[#allocation41_spill] sm:$0xff] %v4148_v52  ;;  %v472_v18 = vsel %vm380_vm0, %v467_v38, %v471_v16  ;;  %7293 = vst [vmem:[#allocation42_spill] sm:$0xff] %v4155_v15  ;;  %v496_v16 = vsel %vm380_vm0, %v491_v50, %v495_v56  ;;  %v519_v38 = vrot.slane %v4148_v52, 1  ;;  %v4184_v50 = vshll.u32 %v4160_v14, 16  ;;  %p3839_p10 = pnand %p3838_p9, %p3832_p6 }
  0x63   :  { %7294 = vst [vmem:[#allocation43_spill] sm:$0xff] %v4158_v33  ;;  %7295 = vst [vmem:[#allocation44_spill] sm:$0xff] %v4164_v37  ;;  %v507_v34 = vor.u32 %v4145_v63, %v503_v60  ;;  %v499_v10 = vor.u32 %v4155_v15, %v495_v56  ;;  %v4188_v63 = vld [vmem:[#allocation2 + $0xb0] sm:$0xff]   ;;  %v4200_v15 = vshrl.u32 %v4135_v49, 16  ;;  %v4254_v17 = vshrl.u32 %v4215_v61, 16 }
  0x64   :  { %7297 = vst [vmem:[#allocation46_spill] sm:$0xff] %v4176_v28  ;;  %7298 = vst [vmem:[#allocation47_spill] sm:$0xff] %v4181_v24  ;;  %v523_v9 = vor.u32 %v4158_v33, %v519_v38  ;;  %v4257_v46 = vshll.u32 %v4231_v8, 16  ;;  %v4298_v22 = vshrl.u32 %v4231_v8, 16  ;;  %vm795_vm1 = vcmask 1046528  }
  0x65   :  { %731 = vrot.lane.b32.xlu1 %v464_v29, %s3864_s28  ;;  %v511_v29 = vrot.slane %v4133_v48, 1  ;;  %v4172_v48 = vld [vmem:[#allocation2 + $0xa8] sm:$0xff]   ;;  %7299 = vst [vmem:[#allocation48_spill] sm:$0xff] %v4184_v50  ;;  %7300 = vst [vmem:[#allocation49_spill] sm:$0xff] %v4188_v63  ;;  %vm1045_vm2 = vsmask.f32 6400 }
  0x66   :  { %729 = vrot.lane.b32.xlu0 %v456_v42, %s3864_s28  ;;  %v4167_v42 = vshll.u32 %v4140_v57, 16  ;;  %v4194_v56 = vshll.u32 %v4172_v48, 16  ;;  %7303 = vst [vmem:[#allocation52_spill] sm:$0xff] %v4200_v15  ;;  %v4206_v33 = vshrl.u32 %v4172_v48, 16  ;;  %7312 = vst [vmem:[#allocation61_spill] sm:$0xff] %v4254_v17  ;;  %vm2747_vm3 = vcmask 1041408  }
  0x67   :  { %7313 = vst [vmem:[#allocation62_spill] sm:$0xff] %v4257_v46  ;;  %7319 = vst [vmem:[#allocation68_spill] sm:$0xff] %v4298_v22  ;;  %vm1302_vm4 = vcmask 1045504   ;;  %vm3870_vm5 = vmmov 0   ;;  %vm1807_vm6 = vcmask 1044480   ;;  %vm1973_vm8 = vcmask 31744  }
  0x68   :  { %7296 = vst [vmem:[#allocation45_spill] sm:$0xff] %v4167_v42  ;;  %v535_v52 = vrot.slane %v4167_v42, 1  ;;  %7301 = vst [vmem:[#allocation50_spill] sm:$0xff] %v4194_v56  ;;  %v515_v42 = vor.u32 %v4176_v28, %v511_v29  ;;  %vm1552_vm7 = vsmask.f32 5376  ;;  %vm2056_vm9 = vcmask 64512  }
  0x69   :  { %735 = vrot.lane.b32.xlu1 %v480_v58, %s3864_s28  ;;  %v488_v58 = vsel %vm380_vm0, %v483_v20, %v487_v26  ;;  %v527_v26 = vrot.slane %v4164_v37, 1  ;;  %v4196_v20 = vld [vmem:[#allocation2 + $0xb8] sm:$0xff]   ;;  %7304 = vst [vmem:[#allocation53_spill] sm:$0xff] %v4206_v33  ;;  %v4208_v37 = vld [vmem:[#allocation2 + $0xc0] sm:$0xff]   ;;  %vm2139_vm10 = vcmask 97280   ;;  %vm2222_vm11 = vcmask 130048  }
  0x6a   :  { %733 = vrot.lane.b32.xlu0 %v472_v18, %s3864_s28  ;;  %v512_v18 = vsel %vm380_vm0, %v507_v34, %v511_v29  ;;  %7302 = vst [vmem:[#allocation51_spill] sm:$0xff] %v4196_v20  ;;  %v543_v34 = vrot.slane %v4184_v50, 1  ;;  %v539_v39 = vor.u32 %v4181_v24, %v535_v52  ;;  %v4220_v29 = vshll.u32 %v4196_v20, 16 }
  0x6b   :  { %v531_v50 = vor.u32 %v4200_v15, %v527_v26  ;;  %v520_v24 = vsel %vm380_vm0, %v515_v42, %v519_v38  ;;  %v4229_v28 = vshll.u32 %v4208_v37, 16  ;;  %v4242_v42 = vshrl.u32 %v4196_v20, 16  ;;  %v4244_v38 = vld [vmem:[#allocation2 + $0xd8] sm:$0xff]  }
  0x6c   :  { %7306 = vst [vmem:[#allocation55_spill] sm:$0xff] %v4220_v29  ;;  %v567_v15 = vrot.slane %v4220_v29, 1  ;;  %v4275_v35 = vshrl.u32 %v4208_v37, 16  ;;  %v4375_v29 = vld [vmem:[#allocation2 + $0x130] sm:$0xff]   ;;  %vm2305_vm12 = vcmask 162816   ;;  %vm2388_vm13 = vcmask 195584  }
  0x6d   :  { %739 = vrot.lane.b32.xlu1 %v496_v16, %s3864_s28  ;;  %v504_v16 = vsel %vm380_vm0, %v499_v10, %v503_v60  ;;  %v528_v10 = vsel %vm380_vm0, %v523_v9, %v527_v26  ;;  %v551_v60 = vrot.slane %v4194_v56, 1  ;;  %7308 = vst [vmem:[#allocation57_spill] sm:$0xff] %v4229_v28  ;;  %v544_v9 = vsel %vm380_vm0, %v539_v39, %v543_v34 }
  0x6e   :  { %737 = vrot.lane.b32.xlu0 %v488_v58, %s3864_s28  ;;  %v4213_v58 = vshll.u32 %v4188_v63, 16  ;;  %v4236_v56 = vshll.u32 %v4215_v61, 16  ;;  %7310 = vst [vmem:[#allocation59_spill] sm:$0xff] %v4242_v42  ;;  %v4249_v39 = vshrl.u32 %v4188_v63, 16  ;;  %7315 = vst [vmem:[#allocation64_spill] sm:$0xff] %v4275_v35  ;;  %vm2471_vm14 = vcmask 228352  }
  0x6f   :  { %vm2554_vm15 = vcmask 261120  }
  0x70   :  { %7305 = vst [vmem:[#allocation54_spill] sm:$0xff] %v4213_v58  ;;  %7309 = vst [vmem:[#allocation58_spill] sm:$0xff] %v4236_v56  ;;  %v559_v26 = vrot.slane %v4213_v58, 1  ;;  %v583_v47 = vrot.slane %v4236_v56, 1  ;;  %v4306_v56 = vshll.u32 %v4282_v30, 16  ;;  %v4402_v58 = vshll.u32 %v4375_v29, 16 }
  0x71   :  { %743 = vrot.lane.b32.xlu1 %v512_v18, %s3864_s28  ;;  %v4225_v18 = vshrl.u32 %v4160_v14, 16  ;;  %7311 = vst [vmem:[#allocation60_spill] sm:$0xff] %v4249_v39 }
  0x72   :  { %741 = vrot.lane.b32.xlu0 %v504_v16, %s3864_s28  ;;  %v555_v16 = vor.u32 %v4206_v33, %v551_v60  ;;  %v575_v33 = vrot.slane %v4229_v28, 1  ;;  %v563_v59 = vor.u32 %v4249_v39, %v559_v26  ;;  %7320 = vst [vmem:[#allocation69_spill] sm:$0xff] %v4306_v56  ;;  %v631_v19 = vrot.slane %v4306_v56, 1  ;;  %7337 = vst [vmem:[#allocation86_spill] sm:$0xff] %v4402_v58 }
  0x73   :  { %7307 = vst [vmem:[#allocation56_spill] sm:$0xff] %v4225_v18  ;;  %v547_v51 = vor.u32 %v4225_v18, %v543_v34  ;;  %v4266_v34 = vshll.u32 %v4244_v38, 16  ;;  %v4268_v18 = vld [vmem:[#allocation2 + $0xe8] sm:$0xff]  }
  0x74   :  { %v4292_v44 = vshll.u32 %v4268_v18, 16 }
  0x75   :  { %747 = vrot.lane.b32.xlu1 %v528_v10, %s3864_s28  ;;  %v536_v10 = vsel %vm380_vm0, %v531_v50, %v535_v52  ;;  %v560_v52 = vsel %vm380_vm0, %v555_v16, %v559_v26  ;;  %v571_v50 = vor.u32 %v4242_v42, %v567_v15  ;;  %7314 = vst [vmem:[#allocation63_spill] sm:$0xff] %v4266_v34  ;;  %v4289_v26 = vld [vmem:[#allocation2 + $0xf0] sm:$0xff]  }
  0x76   :  { %745 = vrot.lane.b32.xlu0 %v520_v24, %s3864_s28  ;;  %v4261_v24 = vld [vmem:[#allocation2 + $0xe0] sm:$0xff]   ;;  %v552_v43 = vsel %vm380_vm0, %v547_v51, %v551_v60  ;;  %v587_v16 = vor.u32 %v4254_v17, %v583_v47  ;;  %v599_v51 = vrot.slane %v4266_v34, 1  ;;  %v4287_v60 = vshrl.u32 %v4244_v38, 16  ;;  %7318 = vst [vmem:[#allocation67_spill] sm:$0xff] %v4292_v44  ;;  %v4316_v17 = vld [vmem:[#allocation2 + $0x108] sm:$0xff]  }
  0x77   :  { %v4280_v36 = vshll.u32 %v4261_v24, 16  ;;  %v4346_v56 = vshrl.u32 %v4289_v26, 16 }
  0x78   :  { %7317 = vst [vmem:[#allocation66_spill] sm:$0xff] %v4287_v60 }
  0x79   :  { %751 = vrot.lane.b32.xlu1 %v544_v9, %s3864_s28  ;;  %v591_v9 = vrot.slane %v4257_v46, 1  ;;  %7316 = vst [vmem:[#allocation65_spill] sm:$0xff] %v4280_v36  ;;  %v579_v46 = vor.u32 %v4275_v35, %v575_v33  ;;  %v607_v27 = vrot.slane %v4280_v36, 1  ;;  %7327 = vst [vmem:[#allocation76_spill] sm:$0xff] %v4346_v56  ;;  %v4354_v35 = vld [vmem:[#allocation2 + $0x128] sm:$0xff]  }
  0x7a   :  { %749 = vrot.lane.b32.xlu0 %v536_v10, %s3864_s28  ;;  %v576_v10 = vsel %vm380_vm0, %v571_v50, %v575_v33  ;;  %v4300_v50 = vld [vmem:[#allocation2 + $0x100] sm:$0xff]   ;;  %v4314_v33 = vshll.u32 %v4289_v26, 16  ;;  %v4378_v42 = vshll.u32 %v4354_v35, 16 }
  0x7b   :  { %v592_v34 = vsel %vm380_vm0, %v587_v16, %v591_v9  ;;  %v4320_v16 = vshrl.u32 %v4261_v24, 16  ;;  %v595_v36 = vor.u32 %v4298_v22, %v591_v9  ;;  %v4340_v9 = vld [vmem:[#allocation2 + $0x118] sm:$0xff]  }
  0x7c   :  { %7322 = vst [vmem:[#allocation71_spill] sm:$0xff] %v4314_v33  ;;  %7332 = vst [vmem:[#allocation81_spill] sm:$0xff] %v4378_v42 }
  0x7d   :  { %755 = vrot.lane.b32.xlu1 %v560_v52, %s3864_s28  ;;  %v568_v52 = vsel %vm380_vm0, %v563_v59, %v567_v15  ;;  %v615_v15 = vrot.slane %v4292_v44, 1  ;;  %v4311_v59 = vshrl.u32 %v4268_v18, 16  ;;  %7323 = vst [vmem:[#allocation72_spill] sm:$0xff] %v4320_v16  ;;  %v4328_v44 = vshll.u32 %v4300_v50, 16 }
  0x7e   :  { %753 = vrot.lane.b32.xlu0 %v552_v43, %s3864_s28  ;;  %v603_v43 = vor.u32 %v4287_v60, %v599_v51  ;;  %v4325_v60 = vshrl.u32 %v4282_v30, 16  ;;  %v600_v22 = vsel %vm380_vm0, %v595_v36, %v599_v51  ;;  %v4361_v51 = vld [vmem:[#allocation2 + $0x120] sm:$0xff]  }
  0x7f   :  { %7321 = vst [vmem:[#allocation70_spill] sm:$0xff] %v4311_v59  ;;  %7325 = vst [vmem:[#allocation74_spill] sm:$0xff] %v4328_v44  ;;  %v619_v28 = vor.u32 %v4311_v59, %v615_v15  ;;  %v4352_v59 = vshll.u32 %v4332_v31, 16 }
  0x80   :  { %7324 = vst [vmem:[#allocation73_spill] sm:$0xff] %v4325_v60 }
  0x81   :  { %759 = vrot.lane.b32.xlu1 %v576_v10, %s3864_s28  ;;  %v584_v10 = vsel %vm380_vm0, %v579_v46, %v583_v47  ;;  %v623_v46 = vrot.slane %v4314_v33, 1  ;;  %v4338_v47 = vshll.u32 %v4316_v17, 16  ;;  %v639_v33 = vrot.slane %v4328_v44, 1  ;;  %7328 = vst [vmem:[#allocation77_spill] sm:$0xff] %v4352_v59 }
  0x82   :  { %757 = vrot.lane.b32.xlu0 %v568_v52, %s3864_s28  ;;  %v608_v52 = vsel %vm380_vm0, %v603_v43, %v607_v27  ;;  %v635_v43 = vor.u32 %v4325_v60, %v631_v19 }
  0x83   :  { %7326 = vst [vmem:[#allocation75_spill] sm:$0xff] %v4338_v47  ;;  %v647_v36 = vrot.slane %v4338_v47, 1  ;;  %v627_v60 = vor.u32 %v4346_v56, %v623_v46  ;;  %v655_v47 = vrot.slane %v4352_v59, 1  ;;  %v4394_v56 = vshrl.u32 %v4332_v31, 16 }
  0x85   :  { %763 = vrot.lane.b32.xlu1 %v592_v34, %s3864_s28  ;;  %v611_v34 = vor.u32 %v4320_v16, %v607_v27  ;;  %v4359_v27 = vshrl.u32 %v4316_v17, 16  ;;  %v4370_v16 = vshrl.u32 %v4300_v50, 16  ;;  %7335 = vst [vmem:[#allocation84_spill] sm:$0xff] %v4394_v56 }
  0x86   :  { %761 = vrot.lane.b32.xlu0 %v584_v10, %s3864_s28  ;;  %v624_v10 = vsel %vm380_vm0, %v619_v28, %v623_v46  ;;  %v640_v28 = vsel %vm380_vm0, %v635_v43, %v639_v33  ;;  %v4383_v46 = vshrl.u32 %v4340_v9, 16  ;;  %v632_v43 = vsel %vm380_vm0, %v627_v60, %v631_v19  ;;  %v4407_v60 = vld [vmem:[#allocation2 + $0x140] sm:$0xff]  }
  0x87   :  { %7329 = vst [vmem:[#allocation78_spill] sm:$0xff] %v4359_v27  ;;  %v616_v44 = vsel %vm380_vm0, %v611_v34, %v615_v15  ;;  %7331 = vst [vmem:[#allocation80_spill] sm:$0xff] %v4370_v16  ;;  %v4386_v34 = vshll.u32 %v4361_v51, 16  ;;  %v643_v59 = vor.u32 %v4370_v16, %v639_v33  ;;  %v4416_v16 = vshrl.u32 %v4361_v51, 16 }
  0x88   :  { %7333 = vst [vmem:[#allocation82_spill] sm:$0xff] %v4383_v46 }
  0x89   :  { %767 = vrot.lane.b32.xlu1 %v608_v52, %s3864_s28  ;;  %v4364_v52 = vshll.u32 %v4340_v9, 16  ;;  %7334 = vst [vmem:[#allocation83_spill] sm:$0xff] %v4386_v34  ;;  %v671_v19 = vrot.slane %v4386_v34, 1  ;;  %7339 = vst [vmem:[#allocation88_spill] sm:$0xff] %v4416_v16  ;;  %v687_v34 = vrot.slane %v4402_v58, 1 }
  0x8a   :  { %765 = vrot.lane.b32.xlu0 %v600_v22, %s3864_s28  ;;  %v651_v22 = vor.u32 %v4359_v27, %v647_v36  ;;  %v4399_v27 = vshrl.u32 %v4354_v35, 16 }
  0x8b   :  { %7330 = vst [vmem:[#allocation79_spill] sm:$0xff] %v4364_v52  ;;  %v663_v15 = vrot.slane %v4364_v52, 1  ;;  %v679_v52 = vrot.slane %v4378_v42, 1  ;;  %v659_v42 = vor.u32 %v4394_v56, %v655_v47 }
  0x8c   :  { %7336 = vst [vmem:[#allocation85_spill] sm:$0xff] %v4399_v27  ;;  %v656_v39 = vsel %vm380_vm0, %v651_v22, %v655_v47 }
  0x8d   :  { %771 = vrot.lane.b32.xlu1 %v624_v10, %s3864_s28  ;;  %v4388_v10 = vld [vmem:[#allocation2 + $0x138] sm:$0xff]   ;;  %v683_v22 = vor.u32 %v4399_v27, %v679_v52  ;;  %v664_v47 = vsel %vm380_vm0, %v659_v42, %v663_v15 }
  0x8e   :  { %769 = vrot.lane.b32.xlu0 %v616_v44, %s3864_s28  ;;  %v667_v44 = vor.u32 %v4383_v46, %v663_v15  ;;  %v4410_v33 = vshll.u32 %v4388_v10, 16  ;;  %v4424_v7 = vshrl.u32 %v4388_v10, 16  ;;  %v4445_v15 = vshrl.u32 %v4407_v60, 16 }
  0x90   :  { %7338 = vst [vmem:[#allocation87_spill] sm:$0xff] %v4410_v33  ;;  %v672_v46 = vsel %vm380_vm0, %v667_v44, %v671_v19  ;;  %v695_v4 = vrot.slane %v4410_v33, 1  ;;  %7340 = vst [vmem:[#allocation89_spill] sm:$0xff] %v4424_v7  ;;  %v688_v44 = vsel %vm380_vm0, %v683_v22, %v687_v34  ;;  %v796_v22 = vrot.slane %v3983_v5, 1 }
  0x91   :  { %775 = vrot.lane.b32.xlu1 %v640_v28, %s3864_s28  ;;  %v648_v28 = vsel %vm380_vm0, %v643_v59, %v647_v36  ;;  %v4427_v59 = vshll.u32 %v4407_v60, 16  ;;  %v4433_v36 = vshrl.u32 %v4375_v29, 16  ;;  %7344 = vst [vmem:[#allocation93_spill] sm:$0xff] %v4445_v15  ;;  %v7346_v5 = vshll.u32 %v3985_v6, 16 }
  0x92   :  { %773 = vrot.lane.b32.xlu0 %v632_v43, %s3864_s28  ;;  %v4435_v43 = vld [vmem:[#allocation5] sm:$0xff]   ;;  %v699_v33 = vor.u32 %v4424_v7, %v695_v4 }
  0x93   :  { %7341 = vst [vmem:[#allocation90_spill] sm:$0xff] %v4427_v59  ;;  %7342 = vst [vmem:[#allocation91_spill] sm:$0xff] %v4433_v36  ;;  %v703_v58 = vrot.slane %v4427_v59, 1  ;;  %v691_v42 = vor.u32 %v4433_v36, %v687_v34  ;;  %v797_v59 = vrot.slane %v3985_v6, 1 }
  0x94   :  { %7343 = vst [vmem:[#allocation92_spill] sm:$0xff] %v4435_v43 }
  0x95   :  { %779 = vrot.lane.b32.xlu1 %v656_v39, %s3864_s28  ;;  %v675_v39 = vor.u32 %v4416_v16, %v671_v19  ;;  %v4448_v19 = vshll.u32 %v4435_v43, 16  ;;  %v707_v34 = vor.u32 %v4445_v15, %v703_v58  ;;  %v847_v15 = vrot.slane %v4231_v8, 1 }
  0x96   :  { %777 = vrot.lane.b32.xlu0 %v648_v28, %s3864_s28  ;;  %v851_v8 = vrot.slane %v4261_v24, 1  ;;  %v855_v24 = vrot.slane %v4289_v26, 1  ;;  %v859_v26 = vrot.slane %v4300_v50, 1  ;;  %v863_v50 = vrot.slane %v4332_v31, 1 }
  0x97   :  { %v680_v28 = vsel %vm380_vm0, %v675_v39, %v679_v52  ;;  %7345 = vst [vmem:[#allocation94_spill] sm:$0xff] %v4448_v19  ;;  %v696_v52 = vsel %vm380_vm0, %v691_v42, %v695_v4  ;;  %v798_v39 = vsel %vm795_vm1, %v796_v22, %v797_v59  ;;  %v7347_v4 = vshrl.u32 %v3985_v6, 16 }
  0x98   :  { %v867_v31 = vrot.slane %v4361_v51, 1  ;;  %v871_v51 = vrot.slane %v4375_v29, 1  ;;  %v875_v29 = vrot.slane %v4407_v60, 1 }
  0x99   :  { %783 = vrot.lane.b32.xlu1 %v672_v46, %s3864_s28  ;;  %v704_v46 = vsel %vm380_vm0, %v699_v33, %v703_v58  ;;  %v801_v33 = vrot.slane %v3972_v1, 1  ;;  %v4469_v42 = vrot.slane %v7347_v4, 1  ;;  %v805_v1 = vrot.slane %v3996_v13, 1 }
  0x9a   :  { %781 = vrot.lane.b32.xlu0 %v664_v47, %s3864_s28  ;;  %v711_v47 = vrot.slane %v4448_v19, 1  ;;  %v821_v4 = vrot.slane %v4074_v55, 1 }
  0x9c   :  { %v712_v58 = vsel %vm380_vm0, %v707_v34, %v711_v47  ;;  %v807_v34 = vrot.slane %v4007_v21, 1  ;;  %v811_v47 = vrot.slane %v4029_v32, 1  ;;  %vm2664_vm0 = vcmask 293888  }
  0x9d   :  { %787 = vrot.lane.b32.xlu1 %v688_v44, %s3864_s28  ;;  %v799_v44 = vrot.slane %v3970_v0, 1  ;;  %v803_v0 = vrot.slane %v3994_v12, 1  ;;  %v809_v12 = vrot.slane %v4012_v23, 1 }
  0x9e   :  { %785 = vrot.lane.b32.xlu0 %v680_v28, %s3864_s28  ;;  %v4465_v28 = vrot.slane %v7346_v5, 2  ;;  %v4506_v21 = vsel %vm795_vm1, %v805_v1, %v807_v34  ;;  %v819_v5 = vrot.slane %v4072_v54, 1 }
  0x9f   :  { %v4480_v22 = vsel %vm795_vm1, %v797_v59, %v799_v44  ;;  %v4494_v13 = vsel %vm795_vm1, %v801_v33, %v803_v0  ;;  %v4499_v59 = vsel %vm795_vm1, %v807_v34, %v809_v12  ;;  %v4518_v32 = vsel %vm795_vm1, %v809_v12, %v811_v47 }
  0xa0   :  { %v829_v34 = vrot.slane %v4129_v41, 1  ;;  %v831_v12 = vrot.slane %v4135_v49, 1 }
  0xa1   :  { %791 = vrot.lane.b32.xlu1 %v704_v46, %s3864_s28  ;;  %v4474_v46 = vsel %vm795_vm1, %v799_v44, %v801_v33  ;;  %v815_v44 = vrot.slane %v4053_v45, 1  ;;  %v817_v33 = vrot.slane %v4070_v53, 1  ;;  %v4535_v53 = vsel %vm795_vm1, %v819_v5, %v821_v4 }
  0xa2   :  { %789 = vrot.lane.b32.xlu0 %v696_v52, %s3864_s28  ;;  %v4487_v52 = vsel %vm795_vm1, %v803_v0, %v805_v1  ;;  %v825_v0 = vrot.slane %v4099_v11, 1  ;;  %v827_v1 = vrot.slane %v4111_v25, 1 }
  0xa3   :  { %v4542_v54 = vsel %vm795_vm1, %v817_v33, %v819_v5 }
  0xa4   :  { %v4559_v11 = vsel %vm795_vm1, %v827_v1, %v829_v34  ;;  %v4566_v25 = vsel %vm795_vm1, %v825_v0, %v827_v1 }
  0xa5   :  { %879 = vrot.lane.b32.xlu1 %v798_v39, %s3867_s3  ;;  %v813_v39 = vrot.slane %v4043_v40, 1  ;;  %v4523_v40 = vsel %vm795_vm1, %v815_v44, %v817_v33 }
  0xa6   :  { %793 = vrot.lane.b32.xlu0 %v712_v58, %s3864_s28  ;;  %v823_v58 = vrot.slane %v4087_v62, 1  ;;  %s3868_s28 = smov 12  }
  0xa7   :  { %v4511_v23 = vsel %vm795_vm1, %v811_v47, %v813_v39  ;;  %v4530_v45 = vsel %vm795_vm1, %v813_v39, %v815_v44  ;;  %v833_v47 = vrot.slane %v4140_v57, 1  ;;  %v835_v39 = vrot.slane %v4160_v14, 1 }
  0xa8   :  { %v4547_v55 = vsel %vm795_vm1, %v823_v58, %v825_v0  ;;  %v4554_v62 = vsel %vm795_vm1, %v821_v4, %v823_v58  ;;  %v837_v44 = vrot.slane %v4172_v48, 1  ;;  %v4580_v57 = vsel %vm795_vm1, %v829_v34, %v831_v12 }
  0xa9   :  { %883 = vrot.lane.b32.xlu1 %v4474_v46, %s3867_s3  ;;  %v4571_v41 = vsel %vm795_vm1, %v831_v12, %v833_v47  ;;  %v839_v14 = vrot.slane %v4188_v63, 1  ;;  %v841_v48 = vrot.slane %v4196_v20, 1  ;;  %v4596_v58 = vsel %vm795_vm1, %v833_v47, %v835_v39 }
  0xaa   :  { %881 = vrot.lane.b32.xlu0 %v4480_v22, %s3867_s3  ;;  %v4587_v5 = vsel %vm795_vm1, %v835_v39, %v837_v44  ;;  %v843_v34 = vrot.slane %v4208_v37, 1  ;;  %v845_v12 = vrot.slane %v4215_v61, 1  ;;  %v849_v61 = vrot.slane %v4244_v38, 1 }
  0xab   :  { %v4603_v1 = vsel %vm795_vm1, %v839_v14, %v841_v48  ;;  %v4612_v47 = vsel %vm795_vm1, %v837_v44, %v839_v14  ;;  %v853_v38 = vrot.slane %v4268_v18, 1  ;;  %v857_v18 = vrot.slane %v4282_v30, 1 }
  0xac   :  { %v4619_v19 = vsel %vm795_vm1, %v843_v34, %v845_v12  ;;  %v4628_v44 = vsel %vm795_vm1, %v841_v48, %v843_v34  ;;  %v4635_v36 = vsel %vm795_vm1, %v847_v15, %v849_v61  ;;  %v4644_v48 = vsel %vm795_vm1, %v845_v12, %v847_v15 }
  0xad   :  { %887 = vrot.lane.b32.xlu1 %v4487_v52, %s3867_s3  ;;  %v4651_v16 = vsel %vm795_vm1, %v851_v8, %v853_v38  ;;  %v4660_v15 = vsel %vm795_vm1, %v849_v61, %v851_v8  ;;  %v861_v30 = vrot.slane %v4316_v17, 1  ;;  %v4676_v61 = vsel %vm795_vm1, %v853_v38, %v855_v24 }
  0xae   :  { %885 = vrot.lane.b32.xlu0 %v4494_v13, %s3867_s3  ;;  %v865_v17 = vrot.slane %v4340_v9, 1  ;;  %v4692_v38 = vsel %vm795_vm1, %v857_v18, %v859_v26  ;;  %v869_v9 = vrot.slane %v4354_v35, 1  ;;  %v873_v35 = vrot.slane %v4388_v10, 1 }
  0xaf   :  { %v7236_v10 = vrot.slane %v4435_v43, 1 }
  0xb1   :  { %891 = vrot.lane.b32.xlu1 %v4499_v59, %s3867_s3 }
  0xb2   :  { %889 = vrot.lane.b32.xlu0 %v4506_v21, %s3867_s3 }
  0xb5   :  { %895 = vrot.lane.b32.xlu1 %v4511_v23, %s3867_s3 }
  0xb6   :  { %893 = vrot.lane.b32.xlu0 %v4518_v32, %s3867_s3 }
  0xb9   :  { %899 = vrot.lane.b32.xlu1 %v4523_v40, %s3867_s3 }
  0xba   :  { %897 = vrot.lane.b32.xlu0 %v4530_v45, %s3867_s3 }
  0xbd   :  { %903 = vrot.lane.b32.xlu1 %v4535_v53, %s3867_s3 }
  0xbe   :  { %901 = vrot.lane.b32.xlu0 %v4542_v54, %s3867_s3 }
  0xc1   :  { %907 = vrot.lane.b32.xlu1 %v4547_v55, %s3867_s3 }
  0xc2   :  { %905 = vrot.lane.b32.xlu0 %v4554_v62, %s3867_s3 }
  0xc5   :  { %911 = vrot.lane.b32.xlu1 %v4559_v11, %s3867_s3 }
  0xc6   :  { %909 = vrot.lane.b32.xlu0 %v4566_v25, %s3867_s3 }
  0xc7   :  { %v4577_v49 = vpop.permute.xlu1 %717 }
  0xc8   :  { %v4582_v33 = vpop.permute.xlu0 %713 }
  0xc9   :  { %915 = vrot.lane.b32.xlu1 %v4571_v41, %s3867_s3 }
  0xca   :  { %913 = vrot.lane.b32.xlu0 %v4580_v57, %s3867_s3 }
  0xcb   :  { %v4593_v4 = vpop.permute.xlu1 %719 }
  0xcc   :  { %v4598_v0 = vpop.permute.xlu0 %715 }
  0xcd   :  { %919 = vrot.lane.b32.xlu1 %v4587_v5, %s3867_s3 }
  0xce   :  { %917 = vrot.lane.b32.xlu0 %v4596_v58, %s3867_s3 }
  0xcf   :  { %v4609_v6 = vpop.permute.xlu1 %723 }
  0xd0   :  { %v4614_v39 = vpop.permute.xlu0 %721 }
  0xd1   :  { %923 = vrot.lane.b32.xlu1 %v4603_v1, %s3867_s3 }
  0xd2   :  { %921 = vrot.lane.b32.xlu0 %v4612_v47, %s3867_s3 }
  0xd3   :  { %v4625_v7 = vpop.permute.xlu1 %727 }
  0xd4   :  { %7348 = vst [vmem:[#allocation95_spill] sm:$0xff] %v4625_v7  ;;  %v4630_v14 = vpop.permute.xlu0 %725 }
  0xd5   :  { %7349 = vst [vmem:[#allocation96_spill] sm:$0xff] %v4630_v14  ;;  %927 = vrot.lane.b32.xlu1 %v4619_v19, %s3867_s3 }
  0xd6   :  { %925 = vrot.lane.b32.xlu0 %v4628_v44, %s3867_s3 }
  0xd7   :  { %v4641_v27 = vpop.permute.xlu1 %731 }
  0xd8   :  { %7350 = vst [vmem:[#allocation97_spill] sm:$0xff] %v4641_v27  ;;  %v4646_v34 = vpop.permute.xlu0 %729  ;;  %v4667_v27 = vsel %vm795_vm1, %v855_v24, %v857_v18  ;;  %v4708_v18 = vsel %vm795_vm1, %v861_v30, %v863_v50 }
  0xd9   :  { %7351 = vst [vmem:[#allocation98_spill] sm:$0xff] %v4646_v34  ;;  %931 = vrot.lane.b32.xlu1 %v4635_v36, %s3867_s3  ;;  %7361 = vst [vmem:[#allocation108_spill] sm:$0xff] %v4708_v18 }
  0xda   :  { %929 = vrot.lane.b32.xlu0 %v4644_v48, %s3867_s3 }
  0xdb   :  { %v4657_v7 = vpop.permute.xlu1 %735 }
  0xdc   :  { %7352 = vst [vmem:[#allocation99_spill] sm:$0xff] %v4657_v7  ;;  %v4662_v12 = vpop.permute.xlu0 %733  ;;  %v4683_v7 = vsel %vm795_vm1, %v859_v26, %v861_v30  ;;  %v4724_v30 = vsel %vm795_vm1, %v865_v17, %v867_v31 }
  0xdd   :  { %7353 = vst [vmem:[#allocation100_spill] sm:$0xff] %v4662_v12  ;;  %935 = vrot.lane.b32.xlu1 %v4651_v16, %s3867_s3  ;;  %7356 = vst [vmem:[#allocation103_spill] sm:$0xff] %v4683_v7 }
  0xde   :  { %933 = vrot.lane.b32.xlu0 %v4660_v15, %s3867_s3  ;;  %7365 = vst [vmem:[#allocation112_spill] sm:$0xff] %v4724_v30 }
  0xdf   :  { %v4673_v34 = vpop.permute.xlu1 %739 }
  0xe0   :  { %7354 = vst [vmem:[#allocation101_spill] sm:$0xff] %v4673_v34  ;;  %v4678_v8 = vpop.permute.xlu0 %737  ;;  %v4699_v34 = vsel %vm795_vm1, %v863_v50, %v865_v17  ;;  %v4740_v17 = vsel %vm795_vm1, %v869_v9, %v871_v51 }
  0xe1   :  { %7355 = vst [vmem:[#allocation102_spill] sm:$0xff] %v4678_v8  ;;  %939 = vrot.lane.b32.xlu1 %v4667_v27, %s3867_s3  ;;  %7359 = vst [vmem:[#allocation106_spill] sm:$0xff] %v4699_v34 }
  0xe2   :  { %937 = vrot.lane.b32.xlu0 %v4676_v61, %s3867_s3  ;;  %7368 = vst [vmem:[#allocation115_spill] sm:$0xff] %v4740_v17 }
  0xe3   :  { %v4689_v12 = vpop.permute.xlu1 %743 }
  0xe4   :  { %7357 = vst [vmem:[#allocation104_spill] sm:$0xff] %v4689_v12  ;;  %v4694_v24 = vpop.permute.xlu0 %741  ;;  %v4715_v12 = vsel %vm795_vm1, %v867_v31, %v869_v9 }
  0xe5   :  { %7358 = vst [vmem:[#allocation105_spill] sm:$0xff] %v4694_v24  ;;  %943 = vrot.lane.b32.xlu1 %v4683_v7, %s3867_s3  ;;  %7363 = vst [vmem:[#allocation110_spill] sm:$0xff] %v4715_v12 }
  0xe6   :  { %941 = vrot.lane.b32.xlu0 %v4692_v38, %s3867_s3 }
  0xe7   :  { %v4705_v8 = vpop.permute.xlu1 %747 }
  0xe8   :  { %7360 = vst [vmem:[#allocation107_spill] sm:$0xff] %v4705_v8  ;;  %v4710_v26 = vpop.permute.xlu0 %745  ;;  %v4731_v8 = vsel %vm795_vm1, %v871_v51, %v873_v35 }
  0xe9   :  { %7362 = vst [vmem:[#allocation109_spill] sm:$0xff] %v4710_v26  ;;  %947 = vrot.lane.b32.xlu1 %v4699_v34, %s3867_s3  ;;  %7367 = vst [vmem:[#allocation114_spill] sm:$0xff] %v4731_v8 }
  0xea   :  { %945 = vrot.lane.b32.xlu0 %v4708_v18, %s3867_s3 }
  0xeb   :  { %v4721_v24 = vpop.permute.xlu1 %751 }
  0xec   :  { %7364 = vst [vmem:[#allocation111_spill] sm:$0xff] %v4721_v24  ;;  %v4726_v50 = vpop.permute.xlu0 %749  ;;  %v4749_v24 = vsel %vm795_vm1, %v875_v29, %v7236_v10 }
  0xed   :  { %7366 = vst [vmem:[#allocation113_spill] sm:$0xff] %v4726_v50  ;;  %951 = vrot.lane.b32.xlu1 %v4715_v12, %s3867_s3  ;;  %7370 = vst [vmem:[#allocation117_spill] sm:$0xff] %v4749_v24  ;;  %v4756_v50 = vsel %vm795_vm1, %v873_v35, %v875_v29 }
  0xee   :  { %949 = vrot.lane.b32.xlu0 %v4724_v30, %s3867_s3  ;;  %7371 = vst [vmem:[#allocation118_spill] sm:$0xff] %v4756_v50 }
  0xef   :  { %v4737_v26 = vpop.permute.xlu1 %755 }
  0xf0   :  { %v4742_v31 = vpop.permute.xlu0 %753 }
  0xf1   :  { %7369 = vst [vmem:[#allocation116_spill] sm:$0xff] %v4742_v31  ;;  %955 = vrot.lane.b32.xlu1 %v4731_v8, %s3867_s3 }
  0xf2   :  { %953 = vrot.lane.b32.xlu0 %v4740_v17, %s3867_s3 }
  0xf3   :  { %v4753_v60 = vpop.permute.xlu1 %759 }
  0xf4   :  { %v4758_v9 = vpop.permute.xlu0 %757 }
  0xf5   :  { %959 = vrot.lane.b32.xlu1 %v4749_v24, %s3867_s3 }
  0xf6   :  { %957 = vrot.lane.b32.xlu0 %v4756_v50, %s3867_s3 }
  0xf7   :  { %v4764_v51 = vpop.permute.xlu1 %763 }
  0xf8   :  { %7372 = vst [vmem:[#allocation119_spill] sm:$0xff] %v4764_v51  ;;  %v4766_v10 = vpop.permute.xlu0 %761 }
  0xf9   :  { %965 = vrot.lane.b32.xlu1 %v4474_v46, %s3868_s28 }
  0xfa   :  { %963 = vrot.lane.b32.xlu0 %v4480_v22, %s3868_s28 }
  0xfb   :  { %v4772_v35 = vpop.permute.xlu1 %767 }
  0xfc   :  { %7373 = vst [vmem:[#allocation120_spill] sm:$0xff] %v4772_v35  ;;  %v4774_v29 = vpop.permute.xlu0 %765 }
  0xfd   :  { %7374 = vst [vmem:[#allocation121_spill] sm:$0xff] %v4774_v29  ;;  %969 = vrot.lane.b32.xlu1 %v4487_v52, %s3868_s28 }
  0xfe   :  { %967 = vrot.lane.b32.xlu0 %v4494_v13, %s3868_s28 }
  0xff   :  { %v4780_v31 = vpop.permute.xlu1 %771 }
 0x100   :  { %7375 = vst [vmem:[#allocation122_spill] sm:$0xff] %v4780_v31  ;;  %v4782_v43 = vpop.permute.xlu0 %769  ;;  %v7400_v31 = vld [vmem:[#allocation55_spill] sm:$0xff] }
 0x101   :  { %7376 = vst [vmem:[#allocation123_spill] sm:$0xff] %v4782_v43  ;;  %973 = vrot.lane.b32.xlu1 %v4499_v59, %s3868_s28  ;;  %v1134_v30 = vrot.slane %v7400_v31, 2 }
 0x102   :  { %971 = vrot.lane.b32.xlu0 %v4506_v21, %s3868_s28 }
 0x103   :  { %v4788_v46 = vpop.permute.xlu1 %775 }
 0x104   :  { %7377 = vst [vmem:[#allocation124_spill] sm:$0xff] %v4788_v46  ;;  %v4790_v22 = vpop.permute.xlu0 %773  ;;  %v7398_v46 = vld [vmem:[#allocation54_spill] sm:$0xff] }
 0x105   :  { %7378 = vst [vmem:[#allocation125_spill] sm:$0xff] %v4790_v22  ;;  %977 = vrot.lane.b32.xlu1 %v4511_v23, %s3868_s28  ;;  %v1130_v17 = vrot.slane %v7398_v46, 2  ;;  %v7399_v22 = vld [vmem:[#allocation59_spill] sm:$0xff] }
 0x106   :  { %975 = vrot.lane.b32.xlu0 %v4518_v32, %s3868_s28  ;;  %v1133_v12 = vrot.slane %v7399_v22, 1 }
 0x107   :  { %v4796_v52 = vpop.permute.xlu1 %779 }
 0x108   :  { %7379 = vst [vmem:[#allocation126_spill] sm:$0xff] %v4796_v52  ;;  %v4798_v13 = vpop.permute.xlu0 %777 }
 0x109   :  { %7380 = vst [vmem:[#allocation127_spill] sm:$0xff] %v4798_v13  ;;  %981 = vrot.lane.b32.xlu1 %v4523_v40, %s3868_s28  ;;  %v7397_v13 = vld [vmem:[#allocation60_spill] sm:$0xff] }
 0x10a   :  { %979 = vrot.lane.b32.xlu0 %v4530_v45, %s3868_s28  ;;  %v1129_v8 = vrot.slane %v7397_v13, 1 }
 0x10b   :  { %v4804_v59 = vpop.permute.xlu1 %783 }
 0x10c   :  { %7381 = vst [vmem:[#allocation128_spill] sm:$0xff] %v4804_v59  ;;  %v4806_v21 = vpop.permute.xlu0 %781 }
 0x10d   :  { %7382 = vst [vmem:[#allocation129_spill] sm:$0xff] %v4806_v21  ;;  %985 = vrot.lane.b32.xlu1 %v4535_v53, %s3868_s28  ;;  %v1553_v21 = vrot.slane %v3978_v3, 2 }
 0x10e   :  { %983 = vrot.lane.b32.xlu0 %v4542_v54, %s3868_s28 }
 0x10f   :  { %v4812_v23 = vpop.permute.xlu1 %787 }
 0x110   :  { %7383 = vst [vmem:[#allocation130_spill] sm:$0xff] %v4812_v23  ;;  %v4814_v32 = vpop.permute.xlu0 %785  ;;  %v3665_v23 = vld [vmem:[#allocation7 + $0x10] ss:$0 sps:$4 sm:$0x33]  }
 0x111   :  { %7384 = vst [vmem:[#allocation131_spill] sm:$0xff] %v4814_v32  ;;  %989 = vrot.lane.b32.xlu1 %v4547_v55, %s3868_s28 }
 0x112   :  { %987 = vrot.lane.b32.xlu0 %v4554_v62, %s3868_s28  ;;  %v3663_v62 = vld [vmem:[#allocation7] sm:$0xff]  }
 0x113   :  { %v4820_v40 = vpop.permute.xlu1 %791 }
 0x114   :  { %7385 = vst [vmem:[#allocation132_spill] sm:$0xff] %v4820_v40  ;;  %v4822_v45 = vpop.permute.xlu0 %789  ;;  %v7238_v40 = vmov 0.0  }
 0x115   :  { %7386 = vst [vmem:[#allocation133_spill] sm:$0xff] %v4822_v45  ;;  %993 = vrot.lane.b32.xlu1 %v4559_v11, %s3868_s28  ;;  %3428 = vmatprep.subr.bf16.mxu0 %v7238_v40 }
 0x116   :  { %991 = vrot.lane.b32.xlu0 %v4566_v25, %s3868_s28  ;;  %3598 = vmatprep.subr.bf16.mxu1 %v7238_v40  ;;  %v1049_v25 = vrot.slane %v3978_v3, 1 }
 0x117   :  { %v4828_v53 = vpop.permute.xlu1 %879  ;;  %3429 = vmatpush3.bf16.msra.mxu0 %v3663_v62  ;;  %3601 = vmatpush3.bf16.msra.mxu1 %v3663_v62  ;;  %v2749_v62 = vsel %vm2747_vm3, %v3665_v23, 0 }
 0x118   :  { %v4830_v54 = vpop.permute.xlu0 %793  ;;  %3430 = vmatprep.subr.bf16.mxu0 %v7238_v40  ;;  %3599 = vmatprep.subr.bf16.mxu1 %v7238_v40 }
 0x119   :  { %7387 = vst [vmem:[#allocation134_spill] sm:$0xff] %v4830_v54  ;;  %997 = vrot.lane.b32.xlu1 %v4571_v41, %s3868_s28  ;;  %v1050_v41 = vrot.slane %v3975_v2, 2  ;;  %v3664_v54 = vld [vmem:[#allocation7 + $0x8] sm:$0xff]  }
 0x11a   :  { %995 = vrot.lane.b32.xlu0 %v4580_v57, %s3868_s28 }
 0x11b   :  { %v4836_v55 = vpop.permute.xlu1 %883  ;;  %3431 = vmatpush3.bf16.msra.mxu0 %v3664_v54  ;;  %3602 = vmatpush3.bf16.msra.mxu1 %v3664_v54  ;;  %v4871_v54 = vld [vmem:[#allocation2 + $0x18] sm:$0xff]  }
 0x11c   :  { %v4840_v11 = vpop.permute.xlu0 %881  ;;  %3432 = vmatprep.subr.bf16.mxu0 %v7238_v40  ;;  %3600 = vmatprep.subr.bf16.mxu1 %v7238_v40  ;;  %v4883_v40 = vld [vmem:[#allocation2 + $0x8] sm:$0xff]   ;;  %v7396_v52 = vrot.slane %v4871_v54, 2  ;;  %v7403_v46 = vrot.slane %v4871_v54, 3 }
 0x11d   :  { %1001 = vrot.lane.b32.xlu1 %v4587_v5, %s3868_s28  ;;  %v4856_v5 = vor.u32 %v1050_v41, %v1049_v25  ;;  %v7390_v41 = vor.u32 %v4465_v28, %v4469_v42  ;;  %v1303_v59 = vrot.slane %v4883_v40, 2  ;;  %v1554_v28 = vrot.slane %v3975_v2, 3  ;;  %v7393_v42 = vld [vmem:[#allocation16_spill] sm:$0xff] }
 0x11e   :  { %999 = vrot.lane.b32.xlu0 %v4596_v58, %s3868_s28  ;;  %v1053_v2 = vrot.slane %v7393_v42, 1 }
 0x11f   :  { %v4849_v57 = vpop.permute.xlu1 %887  ;;  %3433 = vmatpush3.bf16.msra.mxu0 %v2749_v62  ;;  %v1052_v23 = vsel %vm1045_vm2, %v7390_v41, %v4856_v5  ;;  %3603 = vmatpush3.bf16.msra.mxu1 %v2749_v62  ;;  %v1556_v41 = vrot.slane %v7393_v42, 2  ;;  %v7394_v62 = vld [vmem:[#allocation15_spill] sm:$0xff]  ;;  %v1637_v42 = vrot.slane %v7400_v31, 3  ;;  %v7413_v31 = vld [vmem:[#allocation21_spill] sm:$0xff] }
 0x120   :  { %v4852_v45 = vpop.permute.xlu0 %885  ;;  %v1557_v24 = vrot.slane %v7394_v62, 3  ;;  %v1054_v13 = vrot.slane %v7394_v62, 2 }
 0x121   :  { %1005 = vrot.lane.b32.xlu1 %v4603_v1, %s3868_s28  ;;  %v4868_v1 = vld [vmem:[#allocation2 + $0x10] sm:$0xff]  }
 0x122   :  { %1003 = vrot.lane.b32.xlu0 %v4612_v47, %s3868_s28  ;;  %v1304_v25 = vrot.slane %v4868_v1, 2  ;;  %v7392_v47 = vmov 0.0   ;;  %v1808_v3 = vrot.slane %v4868_v1, 3  ;;  %v1558_v43 = vor.u32 %v1557_v24, %v1556_v41  ;;  %v7409_v41 = vld [vmem:[#allocation64_spill] sm:$0xff] }
 0x123   :  { %v4861_v58 = vpop.permute.xlu1 %891  ;;  %3434 = vmatprep.mubr.msk.bf16.mxu0 %vm3870_vm5, %v7392_v47  ;;  %3518 = vmatprep.mubr.msk.bf16.mxu1 %vm3870_vm5, %v7392_v47  ;;  %v1640_v62 = vrot.slane %v7409_v41, 2 }
 0x124   :  { %7388 = vst [vmem:[#allocation135_spill] sm:$0xff] %v4861_v58  ;;  %v4864_v32 = vpop.permute.xlu0 %889  ;;  %v1307_v50 = vsel %vm1302_vm4, %v1304_v25, %v7396_v52  ;;  %v1555_v52 = vor.u32 %v1554_v28, %v1553_v21 }
 0x125   :  { %7389 = vst [vmem:[#allocation136_spill] sm:$0xff] %v4864_v32  ;;  %1009 = vrot.lane.b32.xlu1 %v4619_v19, %s3868_s28 }
 0x126   :  { %1007 = vrot.lane.b32.xlu0 %v4628_v44, %s3868_s28  ;;  %v1559_v21 = vsel %vm1552_vm7, %v1555_v52, %v1558_v43 }
 0x127   :  { %v4881_v19 = vpop.permute.xlu1 %895 }
 0x128   :  { %7391 = vst [vmem:[#allocation137_spill] sm:$0xff] %v4881_v19  ;;  %v4894_v44 = vpop.permute.xlu0 %893  ;;  %v1305_v19 = vsel %vm1302_vm4, %v1303_v59, %v1304_v25  ;;  %v4921_v59 = vor.u32 %v1134_v30, %v1133_v12  ;;  %v1055_v25 = vor.u32 %v1054_v13, %v1053_v2  ;;  %v7248_v12 = vrot.slane %v4188_v63, 2 }
 0x129   :  { %7395 = vst [vmem:[#allocation16_spill] sm:$0xff] %v4894_v44  ;;  %1220 = vrot.lane.b32.xlu1 %v1052_v23, %s3871_s1  ;;  %v1346_v30 = vrot.slane %v4196_v20, 2 }
 0x12a   :  { %1011 = vrot.lane.b32.xlu0 %v4644_v48, %s3868_s28  ;;  %v1810_v48 = vsel %vm1807_vm6, %v1808_v3, %v7403_v46  ;;  %v1056_v46 = vsel %vm1045_vm2, %v4856_v5, %v1055_v25  ;;  %v7410_v3 = vld [vmem:[#allocation57_spill] sm:$0xff] }
 0x12b   :  { %v4908_v23 = vpop.permute.xlu1 %899  ;;  %v1641_v2 = vrot.slane %v7410_v3, 3  ;;  %v4950_v52 = vsel %vm1302_vm4, %v7248_v12, %v1346_v30 }
 0x12c   :  { %7401 = vst [vmem:[#allocation15_spill] sm:$0xff] %v4908_v23  ;;  %v4913_v34 = vpop.permute.xlu0 %897  ;;  %v4919_v23 = vor.u32 %v1130_v17, %v1129_v8  ;;  %7411 = vst [vmem:[#allocation64_spill] sm:$0xff] %v4950_v52 }
 0x12d   :  { %7402 = vst [vmem:[#allocation59_spill] sm:$0xff] %v4913_v34  ;;  %1470 = vrot.lane.b32.xlu1 %v1307_v50, %s3872_s15  ;;  %v1642_v63 = vor.u32 %v1641_v2, %v1640_v62  ;;  %v1138_v62 = vrot.slane %v7410_v3, 2 }
 0x12e   :  { %7404 = vst [vmem:[#allocation55_spill] sm:$0xff] %v4919_v23  ;;  %1386 = vrot.lane.b32.xlu0 %v1305_v19, %s3873_s16  ;;  %v1136_v8 = vsel %vm1045_vm2, %v4919_v23, %v4921_v59  ;;  %v1636_v19 = vrot.slane %v7399_v22, 2  ;;  %v7414_v23 = vld [vmem:[#allocation17_spill] sm:$0xff] }
 0x12f   :  { %v4924_v24 = vpop.permute.xlu1 %903 }
 0x130   :  { %7405 = vst [vmem:[#allocation138_spill] sm:$0xff] %v4924_v24  ;;  %v4927_v28 = vpop.permute.xlu0 %901  ;;  %v4965_v12 = vor.u32 %v1637_v42, %v1636_v19  ;;  %v7418_v24 = vrot.slane %v4871_v54, 2  ;;  %v7250_v42 = vrot.slane %v4196_v20, 3 }
 0x131   :  { %7406 = vst [vmem:[#allocation139_spill] sm:$0xff] %v4927_v28  ;;  %1891 = vrot.lane.b32.xlu1 %v1810_v48, %s3874_s17  ;;  %v1348_v48 = vrot.slane %v4208_v37, 2 }
 0x132   :  { %1725 = vrot.lane.b32.xlu0 %v1559_v21, %s3875_s19  ;;  %v4956_v21 = vld [vmem:[#allocation2 + $0x20] sm:$0xff]   ;;  %7416 = vst [vmem:[#allocation17_spill] sm:$0xff] %v4965_v12  ;;  %v1643_v19 = vsel %vm1552_vm7, %v4965_v12, %v1642_v63 }
 0x133   :  { %v4936_v17 = vpop.permute.xlu1 %907  ;;  %v1308_v22 = vrot.slane %v4956_v21, 2  ;;  %v7429_v12 = vld [vmem:[#allocation18_spill] sm:$0xff] }
 0x134   :  { %7407 = vst [vmem:[#allocation140_spill] sm:$0xff] %v4936_v17  ;;  %v4940_v13 = vpop.permute.xlu0 %905  ;;  %v1561_v17 = vrot.slane %v7414_v23, 3 }
 0x135   :  { %7408 = vst [vmem:[#allocation141_spill] sm:$0xff] %v4940_v13  ;;  %1262 = vrot.lane.b32.xlu1 %v1136_v8, %s3871_s1  ;;  %v1560_v8 = vrot.slane %v7413_v31, 2  ;;  %v1309_v28 = vsel %vm1302_vm4, %v7418_v24, %v1308_v22 }
 0x136   :  { %1222 = vrot.lane.b32.xlu0 %v1056_v46, %s3871_s1  ;;  %v1349_v46 = vsel %vm1302_vm4, %v1346_v30, %v1348_v48  ;;  %v1851_v30 = vrot.slane %v4208_v37, 3 }
 0x137   :  { %v4954_v5 = vpop.permute.xlu1 %911  ;;  %v1562_v34 = vor.u32 %v1561_v17, %v1560_v8  ;;  %v1811_v17 = vrot.slane %v4956_v21, 3  ;;  %v1057_v8 = vrot.slane %v7413_v31, 1 }
 0x138   :  { %7412 = vst [vmem:[#allocation57_spill] sm:$0xff] %v4954_v5  ;;  %v4961_v13 = vpop.permute.xlu0 %909  ;;  %v1852_v37 = vsel %vm1807_vm6, %v7250_v42, %v1851_v30 }
 0x139   :  { %7415 = vst [vmem:[#allocation21_spill] sm:$0xff] %v4961_v13  ;;  %1428 = vrot.lane.b32.xlu1 %v4950_v52, %s3873_s16  ;;  %v1563_v24 = vsel %vm1552_vm7, %v1558_v43, %v1562_v34  ;;  %v7422_v43 = vrot.slane %v4871_v54, 3 }
 0x13a   :  { %1388 = vrot.lane.b32.xlu0 %v1307_v50, %s3873_s16  ;;  %v1137_v50 = vrot.slane %v7409_v41, 1 }
 0x13b   :  { %v4969_v5 = vpop.permute.xlu1 %915 }
 0x13c   :  { %7417 = vst [vmem:[#allocation142_spill] sm:$0xff] %v4969_v5  ;;  %v4974_v35 = vpop.permute.xlu0 %913  ;;  %v1058_v5 = vrot.slane %v7414_v23, 2  ;;  %v1139_v41 = vor.u32 %v1138_v62, %v1137_v50 }
 0x13d   :  { %7419 = vst [vmem:[#allocation143_spill] sm:$0xff] %v4974_v35  ;;  %1512 = vrot.lane.b32.xlu1 %v1349_v46, %s3872_s15 }
 0x13e   :  { %1472 = vrot.lane.b32.xlu0 %v1309_v28, %s3872_s15  ;;  %v1059_v31 = vor.u32 %v1058_v5, %v1057_v8  ;;  %v1140_v23 = vsel %vm1045_vm2, %v4921_v59, %v1139_v41  ;;  %v7424_v8 = vld [vmem:[#allocation61_spill] sm:$0xff] }
 0x13f   :  { %v4984_v2 = vpop.permute.xlu1 %919 }
 0x140   :  { %7420 = vst [vmem:[#allocation144_spill] sm:$0xff] %v4984_v2  ;;  %v4990_v35 = vpop.permute.xlu0 %917  ;;  %v1812_v2 = vsel %vm1807_vm6, %v7422_v43, %v1811_v17  ;;  %v1060_v50 = vsel %vm1045_vm2, %v1055_v25, %v1059_v31  ;;  %v1644_v43 = vrot.slane %v7424_v8, 2 }
 0x141   :  { %7421 = vst [vmem:[#allocation145_spill] sm:$0xff] %v4990_v35  ;;  %1767 = vrot.lane.b32.xlu1 %v1643_v19, %s3875_s19  ;;  %v7428_v35 = vld [vmem:[#allocation19_spill] sm:$0xff] }
 0x142   :  { %1727 = vrot.lane.b32.xlu0 %v1563_v24, %s3875_s19  ;;  %v5014_v24 = vld [vmem:[#allocation2 + $0xc8] sm:$0xff]   ;;  %v1564_v20 = vrot.slane %v7428_v35, 2 }
 0x143   :  { %v4997_v3 = vpop.permute.xlu1 %923  ;;  %7423 = vst [vmem:[#allocation146_spill] sm:$0xff] %v5014_v24  ;;  %v1350_v5 = vrot.slane %v5014_v24, 2  ;;  %v1853_v56 = vrot.slane %v5014_v24, 3 }
 0x144   :  { %v5002_v13 = vpop.permute.xlu0 %921 }
 0x145   :  { %1933 = vrot.lane.b32.xlu1 %v1852_v37, %s3874_s17  ;;  %v7425_v37 = vld [vmem:[#allocation58_spill] sm:$0xff]  ;;  %v1351_v44 = vsel %vm1302_vm4, %v1348_v48, %v1350_v5 }
 0x146   :  { %1893 = vrot.lane.b32.xlu0 %v1812_v2, %s3874_s17  ;;  %v1645_v42 = vrot.slane %v7425_v37, 3  ;;  %v5022_v2 = vld [vmem:[#allocation2 + $0x28] sm:$0xff]   ;;  %v1142_v48 = vrot.slane %v7425_v37, 2 }
 0x147   :  { %v5008_v19 = vpop.permute.xlu1 %927  ;;  %7427 = vst [vmem:[#allocation58_spill] sm:$0xff] %v5022_v2  ;;  %v1310_v25 = vrot.slane %v5022_v2, 2 }
 0x148   :  { %v5011_v62 = vpop.permute.xlu0 %925  ;;  %v1646_v18 = vor.u32 %v1645_v42, %v1644_v43  ;;  %v1062_v43 = vrot.slane %v7429_v12, 2 }
 0x149   :  { %1264 = vrot.lane.b32.xlu1 %v1140_v23, %s3871_s1  ;;  %v1565_v23 = vrot.slane %v7429_v12, 3  ;;  %v1311_v58 = vsel %vm1302_vm4, %v1308_v22, %v1310_v25  ;;  %v1061_v22 = vrot.slane %v7428_v35, 1 }
 0x14a   :  { %1224 = vrot.lane.b32.xlu0 %v1060_v50, %s3871_s1  ;;  %v1647_v29 = vsel %vm1552_vm7, %v1642_v63, %v1646_v18  ;;  %v1854_v63 = vsel %vm1807_vm6, %v1851_v30, %v1853_v56 }
 0x14b   :  { %v5020_v59 = vpop.permute.xlu1 %931  ;;  %v1566_v14 = vor.u32 %v1565_v23, %v1564_v20  ;;  %v1813_v20 = vrot.slane %v5022_v2, 3 }
 0x14c   :  { %7426 = vst [vmem:[#allocation61_spill] sm:$0xff] %v5020_v59  ;;  %v5027_v52 = vpop.permute.xlu0 %929 }
 0x14d   :  { %7430 = vst [vmem:[#allocation19_spill] sm:$0xff] %v5027_v52  ;;  %1430 = vrot.lane.b32.xlu1 %v1349_v46, %s3873_s16  ;;  %v1141_v46 = vrot.slane %v7424_v8, 1  ;;  %v1567_v42 = vsel %vm1552_vm7, %v1562_v34, %v1566_v14  ;;  %v1063_v34 = vor.u32 %v1062_v43, %v1061_v22  ;;  %v7440_v22 = vld [vmem:[#allocation62_spill] sm:$0xff] }
 0x14e   :  { %1390 = vrot.lane.b32.xlu0 %v1309_v28, %s3873_s16  ;;  %v1649_v43 = vrot.slane %v7440_v22, 3 }
 0x14f   :  { %v5032_v50 = vpop.permute.xlu1 %935  ;;  %v1143_v8 = vor.u32 %v1142_v48, %v1141_v46  ;;  %v5068_v46 = vld [vmem:[#allocation2 + $0xd0] sm:$0xff]  }
 0x150   :  { %7431 = vst [vmem:[#allocation18_spill] sm:$0xff] %v5032_v50  ;;  %v5035_v59 = vpop.permute.xlu0 %933  ;;  %v7439_v48 = vld [vmem:[#allocation68_spill] sm:$0xff] }
 0x151   :  { %7432 = vst [vmem:[#allocation147_spill] sm:$0xff] %v5035_v59  ;;  %1514 = vrot.lane.b32.xlu1 %v1351_v44, %s3872_s15  ;;  %v1144_v35 = vsel %vm1045_vm2, %v1139_v41, %v1143_v8 }
 0x152   :  { %1474 = vrot.lane.b32.xlu0 %v1311_v58, %s3872_s15 }
 0x153   :  { %v5043_v28 = vpop.permute.xlu1 %939 }
 0x154   :  { %7433 = vst [vmem:[#allocation148_spill] sm:$0xff] %v5043_v28  ;;  %v5049_v23 = vpop.permute.xlu0 %937  ;;  %v1814_v28 = vsel %vm1807_vm6, %v1811_v17, %v1813_v20  ;;  %v1352_v17 = vrot.slane %v5068_v46, 2 }
 0x155   :  { %7434 = vst [vmem:[#allocation149_spill] sm:$0xff] %v5049_v23  ;;  %1769 = vrot.lane.b32.xlu1 %v1647_v29, %s3875_s19  ;;  %v1064_v29 = vsel %vm1045_vm2, %v1059_v31, %v1063_v34 }
 0x156   :  { %1729 = vrot.lane.b32.xlu0 %v1567_v42, %s3875_s19  ;;  %v1648_v42 = vrot.slane %v7439_v48, 2 }
 0x157   :  { %v5054_v37 = vpop.permute.xlu1 %943 }
 0x158   :  { %7435 = vst [vmem:[#allocation150_spill] sm:$0xff] %v5054_v37  ;;  %v5057_v50 = vpop.permute.xlu0 %941  ;;  %v1650_v23 = vor.u32 %v1649_v43, %v1648_v42 }
 0x159   :  { %7436 = vst [vmem:[#allocation151_spill] sm:$0xff] %v5057_v50  ;;  %1935 = vrot.lane.b32.xlu1 %v1854_v63, %s3874_s17  ;;  %v7442_v63 = vld [vmem:[#allocation25_spill] sm:$0xff]  ;;  %v1353_v50 = vsel %vm1302_vm4, %v1350_v5, %v1352_v17  ;;  %v1146_v5 = vrot.slane %v7440_v22, 2 }
 0x15a   :  { %1895 = vrot.lane.b32.xlu0 %v1814_v28, %s3874_s17  ;;  %v5076_v28 = vld [vmem:[#allocation2 + $0x30] sm:$0xff]   ;;  %v1651_v52 = vsel %vm1552_vm7, %v1646_v18, %v1650_v23 }
 0x15b   :  { %v5062_v12 = vpop.permute.xlu1 %947  ;;  %v1312_v31 = vrot.slane %v5076_v28, 2 }
 0x15c   :  { %7437 = vst [vmem:[#allocation152_spill] sm:$0xff] %v5062_v12  ;;  %v5065_v30 = vpop.permute.xlu0 %945  ;;  %v1568_v12 = vrot.slane %v7442_v63, 2 }
 0x15d   :  { %7438 = vst [vmem:[#allocation153_spill] sm:$0xff] %v5065_v30  ;;  %1266 = vrot.lane.b32.xlu1 %v1144_v35, %s3871_s1  ;;  %v7443_v30 = vld [vmem:[#allocation20_spill] sm:$0xff] }
 0x15e   :  { %1226 = vrot.lane.b32.xlu0 %v1064_v29, %s3871_s1  ;;  %v1569_v35 = vrot.slane %v7443_v30, 3  ;;  %v1066_v43 = vrot.slane %v7443_v30, 2 }
 0x15f   :  { %v5074_v41 = vpop.permute.xlu1 %951 }
 0x160   :  { %7441 = vst [vmem:[#allocation68_spill] sm:$0xff] %v5074_v41  ;;  %v5081_v37 = vpop.permute.xlu0 %949  ;;  %v1313_v41 = vsel %vm1302_vm4, %v1310_v25, %v1312_v31  ;;  %v1570_v59 = vor.u32 %v1569_v35, %v1568_v12  ;;  %v1815_v25 = vrot.slane %v5076_v28, 3  ;;  %v1065_v12 = vrot.slane %v7442_v63, 1 }
 0x161   :  { %7444 = vst [vmem:[#allocation62_spill] sm:$0xff] %v5081_v37  ;;  %1432 = vrot.lane.b32.xlu1 %v1351_v44, %s3873_s16  ;;  %v1855_v37 = vrot.slane %v5068_v46, 3  ;;  %v1145_v44 = vrot.slane %v7439_v48, 1 }
 0x162   :  { %1392 = vrot.lane.b32.xlu0 %v1311_v58, %s3873_s16  ;;  %v1571_v42 = vsel %vm1552_vm7, %v1566_v14, %v1570_v59  ;;  %v1816_v14 = vsel %vm1807_vm6, %v1813_v20, %v1815_v25  ;;  %v1067_v22 = vor.u32 %v1066_v43, %v1065_v12  ;;  %v7450_v12 = vld [vmem:[#allocation63_spill] sm:$0xff] }
 0x163   :  { %v5086_v29 = vpop.permute.xlu1 %955  ;;  %v1856_v18 = vsel %vm1807_vm6, %v1853_v56, %v1855_v37  ;;  %v5107_v46 = vor.u32 %v1146_v5, %v1145_v44  ;;  %v5125_v44 = vld [vmem:[#allocation2 + $0xd8] sm:$0xff]   ;;  %v1653_v43 = vrot.slane %v7450_v12, 3 }
 0x164   :  { %7445 = vst [vmem:[#allocation25_spill] sm:$0xff] %v5086_v29  ;;  %v5089_v7 = vpop.permute.xlu0 %953  ;;  %v1068_v56 = vsel %vm1045_vm2, %v1063_v34, %v1067_v22  ;;  %v7260_v20 = vrot.slane %v5125_v44, 2  ;;  %v7449_v5 = vld [vmem:[#allocation66_spill] sm:$0xff]  ;;  %v7261_v2 = vrot.slane %v5125_v44, 3 }
 0x165   :  { %7446 = vst [vmem:[#allocation20_spill] sm:$0xff] %v5089_v7  ;;  %1516 = vrot.lane.b32.xlu1 %v1353_v50, %s3872_s15  ;;  %v1148_v30 = vsel %vm1045_vm2, %v1143_v8, %v5107_v46 }
 0x166   :  { %1476 = vrot.lane.b32.xlu0 %v1313_v41, %s3872_s15  ;;  %v1355_v7 = vsel %vm1302_vm4, %v1352_v17, %v7260_v20 }
 0x167   :  { %v5097_v58 = vpop.permute.xlu1 %959 }
 0x168   :  { %7447 = vst [vmem:[#allocation154_spill] sm:$0xff] %v5097_v58  ;;  %v5103_v35 = vpop.permute.xlu0 %957 }
 0x169   :  { %7448 = vst [vmem:[#allocation155_spill] sm:$0xff] %v5103_v35  ;;  %1771 = vrot.lane.b32.xlu1 %v1651_v52, %s3875_s19  ;;  %v7453_v35 = vld [vmem:[#allocation22_spill] sm:$0xff] }
 0x16a   :  { %1731 = vrot.lane.b32.xlu0 %v1571_v42, %s3875_s19  ;;  %v1652_v42 = vrot.slane %v7449_v5, 2 }
 0x16b   :  { %v5110_v48 = vpop.permute.xlu1 %965 }
 0x16c   :  { %v5113_v28 = vpop.permute.xlu0 %963  ;;  %v5144_v24 = vor.u32 %v1653_v43, %v1652_v42  ;;  %v1070_v42 = vrot.slane %v7453_v35, 2 }
 0x16d   :  { %1937 = vrot.lane.b32.xlu1 %v1856_v18, %s3874_s17  ;;  %v5133_v18 = vld [vmem:[#allocation2 + $0x38] sm:$0xff]  }
 0x16e   :  { %1897 = vrot.lane.b32.xlu0 %v1816_v14, %s3874_s17  ;;  %v1314_v34 = vrot.slane %v5133_v18, 2  ;;  %v7452_v14 = vld [vmem:[#allocation23_spill] sm:$0xff] }
 0x16f   :  { %v5119_v52 = vpop.permute.xlu1 %969  ;;  %v1572_v58 = vrot.slane %v7452_v14, 2  ;;  %v1069_v17 = vrot.slane %v7452_v14, 1 }
 0x170   :  { %v5122_v63 = vpop.permute.xlu0 %967  ;;  %v1315_v51 = vsel %vm1302_vm4, %v1312_v31, %v1314_v34 }
 0x171   :  { %1268 = vrot.lane.b32.xlu1 %v1148_v30, %s3871_s1  ;;  %v1573_v30 = vrot.slane %v7453_v35, 3 }
 0x172   :  { %1228 = vrot.lane.b32.xlu0 %v1068_v56, %s3871_s1 }
 0x173   :  { %v5131_v8 = vpop.permute.xlu1 %973 }
 0x174   :  { %7451 = vst [vmem:[#allocation66_spill] sm:$0xff] %v5131_v8  ;;  %v5138_v29 = vpop.permute.xlu0 %971  ;;  %v1574_v8 = vor.u32 %v1573_v30, %v1572_v58  ;;  %v1817_v58 = vrot.slane %v5133_v18, 3  ;;  %v5169_v30 = vor.u32 %v1070_v42, %v1069_v17  ;;  %v1150_v18 = vrot.slane %v7450_v12, 2  ;;  %v7461_v12 = vld [vmem:[#allocation29_spill] sm:$0xff] }
 0x175   :  { %1434 = vrot.lane.b32.xlu1 %v1353_v50, %s3873_s16  ;;  %v1655_v50 = vsel %vm1552_vm7, %v1650_v23, %v5144_v24  ;;  %v1858_v23 = vsel %vm1807_vm6, %v1855_v37, %v7261_v2  ;;  %v7462_v2 = vld [vmem:[#allocation24_spill] sm:$0xff] }
 0x176   :  { %1394 = vrot.lane.b32.xlu0 %v1313_v41, %s3873_s16  ;;  %v1575_v31 = vsel %vm1552_vm7, %v1570_v59, %v1574_v8  ;;  %v1818_v14 = vsel %vm1807_vm6, %v1815_v25, %v1817_v58  ;;  %v1149_v59 = vrot.slane %v7449_v5, 1  ;;  %v5188_v25 = vld [vmem:[#allocation2 + $0x40] sm:$0xff]  }
 0x177   :  { %v5147_v56 = vpop.permute.xlu1 %977  ;;  %v7262_v5 = vrot.slane %v5188_v25, 2 }
 0x178   :  { %7454 = vst [vmem:[#allocation63_spill] sm:$0xff] %v5147_v56  ;;  %v5150_v32 = vpop.permute.xlu0 %975  ;;  %v1151_v17 = vor.u32 %v1150_v18, %v1149_v59 }
 0x179   :  { %1518 = vrot.lane.b32.xlu1 %v1355_v7, %s3872_s15  ;;  %v5205_v18 = vsel %vm1302_vm4, %v1314_v34, %v7262_v5 }
 0x17a   :  { %1478 = vrot.lane.b32.xlu0 %v1315_v51, %s3872_s15 }
 0x17b   :  { %v5159_v41 = vpop.permute.xlu1 %981 }
 0x17c   :  { %7455 = vst [vmem:[#allocation23_spill] sm:$0xff] %v5159_v41  ;;  %v5163_v43 = vpop.permute.xlu0 %979  ;;  %v7477_v41 = vld [vmem:[#allocation26_spill] sm:$0xff] }
 0x17d   :  { %7456 = vst [vmem:[#allocation22_spill] sm:$0xff] %v5163_v43  ;;  %1773 = vrot.lane.b32.xlu1 %v1655_v50, %s3875_s19  ;;  %v1072_v50 = vsel %vm1045_vm2, %v1067_v22, %v5169_v30  ;;  %v1581_v43 = vrot.slane %v7477_v41, 3 }
 0x17e   :  { %1733 = vrot.lane.b32.xlu0 %v1575_v31, %s3875_s19  ;;  %v1576_v31 = vrot.slane %v7461_v12, 2 }
 0x17f   :  { %v5172_v35 = vpop.permute.xlu1 %985 }
 0x180   :  { %7457 = vst [vmem:[#allocation156_spill] sm:$0xff] %v5172_v35  ;;  %v5177_v20 = vpop.permute.xlu0 %983 }
 0x181   :  { %7458 = vst [vmem:[#allocation157_spill] sm:$0xff] %v5177_v20  ;;  %1939 = vrot.lane.b32.xlu1 %v1858_v23, %s3874_s17  ;;  %v1577_v23 = vrot.slane %v7462_v2, 3 }
 0x182   :  { %1899 = vrot.lane.b32.xlu0 %v1818_v14, %s3874_s17  ;;  %v1152_v14 = vsel %vm1045_vm2, %v5107_v46, %v1151_v17  ;;  %v7466_v46 = vld [vmem:[#allocation72_spill] sm:$0xff] }
 0x183   :  { %v5183_v37 = vpop.permute.xlu1 %989 }
 0x184   :  { %7459 = vst [vmem:[#allocation158_spill] sm:$0xff] %v5183_v37  ;;  %v5185_v42 = vpop.permute.xlu0 %987 }
 0x185   :  { %7460 = vst [vmem:[#allocation159_spill] sm:$0xff] %v5185_v42  ;;  %1230 = vrot.lane.b32.xlu1 %v1072_v50, %s3871_s1  ;;  %v5207_v50 = vor.u32 %v1577_v23, %v1576_v31  ;;  %v1656_v42 = vrot.slane %v7466_v46, 2  ;;  %v7264_v31 = vrot.slane %v5188_v25, 3 }
 0x186   :  { %1013 = vrot.lane.b32.xlu0 %v4635_v36, %s3868_s28  ;;  %v5212_v36 = vld [vmem:[#allocation2 + $0xe0] sm:$0xff]  }
 0x187   :  { %v5195_v22 = vpop.permute.xlu1 %993  ;;  %v1579_v34 = vsel %vm1552_vm7, %v1574_v8, %v5207_v50  ;;  %v1820_v8 = vsel %vm1807_vm6, %v1817_v58, %v7264_v31 }
 0x188   :  { %7463 = vst [vmem:[#allocation29_spill] sm:$0xff] %v5195_v22  ;;  %v5199_v59 = vpop.permute.xlu0 %991  ;;  %v7263_v22 = vrot.slane %v5212_v36, 2 }
 0x189   :  { %7464 = vst [vmem:[#allocation24_spill] sm:$0xff] %v5199_v59  ;;  %1396 = vrot.lane.b32.xlu1 %v1315_v51, %s3873_s16  ;;  %v7467_v59 = vld [vmem:[#allocation65_spill] sm:$0xff] }
 0x18a   :  { %1270 = vrot.lane.b32.xlu0 %v1152_v14, %s3871_s1  ;;  %v1657_v35 = vrot.slane %v7467_v59, 3  ;;  %v7470_v14 = vrot.slane %v5125_v44, 2 }
 0x18b   :  { %v5210_v37 = vpop.permute.xlu1 %997 }
 0x18c   :  { %7465 = vst [vmem:[#allocation160_spill] sm:$0xff] %v5210_v37  ;;  %v5217_v51 = vpop.permute.xlu0 %995  ;;  %v1357_v5 = vsel %vm1302_vm4, %v7470_v14, %v7263_v22  ;;  %v5232_v37 = vor.u32 %v1657_v35, %v1656_v42  ;;  %v7265_v42 = vrot.slane %v5212_v36, 3  ;;  %v1074_v14 = vrot.slane %v7462_v2, 2 }
 0x18d   :  { %7468 = vst [vmem:[#allocation72_spill] sm:$0xff] %v5217_v51  ;;  %1480 = vrot.lane.b32.xlu1 %v5205_v18, %s3872_s15 }
 0x18e   :  { %1436 = vrot.lane.b32.xlu0 %v1355_v7, %s3873_s16  ;;  %v1153_v7 = vrot.slane %v7466_v46, 1  ;;  %v1659_v35 = vsel %vm1552_vm7, %v5144_v24, %v5232_v37  ;;  %v7473_v24 = vrot.slane %v5125_v44, 3 }
 0x18f   :  { %v5225_v23 = vpop.permute.xlu1 %1001 }
 0x190   :  { %7469 = vst [vmem:[#allocation65_spill] sm:$0xff] %v5225_v23  ;;  %v5234_v51 = vpop.permute.xlu0 %999  ;;  %v1154_v23 = vrot.slane %v7467_v59, 2  ;;  %v1860_v46 = vsel %vm1807_vm6, %v7473_v24, %v7265_v42  ;;  %v5283_v24 = vld [vmem:[#allocation2 + $0xe8] sm:$0xff]  }
 0x191   :  { %7471 = vst [vmem:[#allocation161_spill] sm:$0xff] %v5234_v51  ;;  %1735 = vrot.lane.b32.xlu1 %v1579_v34, %s3875_s19  ;;  %v1073_v34 = vrot.slane %v7461_v12, 1 }
 0x192   :  { %1520 = vrot.lane.b32.xlu0 %v1357_v5, %s3872_s15  ;;  %v5254_v58 = vor.u32 %v1154_v23, %v1153_v7  ;;  %v7474_v7 = vld [vmem:[#allocation70_spill] sm:$0xff] }
 0x193   :  { %v5243_v20 = vpop.permute.xlu1 %1005  ;;  %v5264_v31 = vor.u32 %v1074_v14, %v1073_v34  ;;  %v3680_v14 = vld [vmem:[#allocation2] sm:$0xff]  }
 0x194   :  { %v5251_v22 = vpop.permute.xlu0 %1003  ;;  %v1156_v2 = vsel %vm1045_vm2, %v1151_v17, %v5254_v58  ;;  %v1975_v17 = vsel %vm1973_vm8, %v3680_v14, %v4582_v33  ;;  %v7476_v33 = vld [vmem:[#allocation27_spill] sm:$0xff] }
 0x195   :  { %7472 = vst [vmem:[#allocation162_spill] sm:$0xff] %v5251_v22  ;;  %1901 = vrot.lane.b32.xlu1 %v1820_v8, %s3874_s17  ;;  %v1076_v44 = vsel %vm1045_vm2, %v5169_v30, %v5264_v31  ;;  %v2058_v30 = vsel %vm2056_vm9, %v1975_v17, %v4828_v53  ;;  %v5291_v22 = vld [vmem:[#allocation2 + $0x48] sm:$0xff]   ;;  %v1580_v14 = vrot.slane %v7476_v33, 2  ;;  %v7479_v17 = vrot.slane %v5212_v36, 2 }
 0x196   :  { %1775 = vrot.lane.b32.xlu0 %v1659_v35, %s3875_s19  ;;  %v1660_v35 = vrot.slane %v7474_v7, 2 }
 0x197   :  { %v5257_v59 = vpop.permute.xlu1 %1009 }
 0x198   :  { %v5266_v12 = vpop.permute.xlu0 %1007 }
 0x199   :  { %1015 = vrot.lane.b32.xlu1 %v4660_v15, %s3868_s28  ;;  %v7475_v15 = vld [vmem:[#allocation67_spill] sm:$0xff] }
 0x19a   :  { %1941 = vrot.lane.b32.xlu0 %v1860_v46, %s3874_s17  ;;  %v1661_v34 = vrot.slane %v7475_v15, 3 }
 0x19b   :  { %v1221_v23 = vpop.permute.xlu1 %1220 }
 0x19c   :  { %v5276_v8 = vpop.permute.xlu0 %1011  ;;  %v5298_v53 = vor.u32 %v1661_v34, %v1660_v35 }
 0x19d   :  { %1272 = vrot.lane.b32.xlu1 %v1156_v2, %s3871_s1  ;;  %v2141_v2 = vsel %vm2139_vm10, %v2058_v30, %v5113_v28  ;;  %v7478_v28 = vrot.slane %v5283_v24, 2 }
 0x19e   :  { %1232 = vrot.lane.b32.xlu0 %v1076_v44, %s3871_s1  ;;  %v2224_v46 = vsel %vm2222_vm11, %v2141_v2, %v1221_v23  ;;  %v7480_v23 = vrot.slane %v5291_v22, 2 }
 0x19f   :  { %v1471_v42 = vpop.permute.xlu1 %1470  ;;  %v5306_v30 = vsel %vm1302_vm4, %v7479_v17, %v7478_v28  ;;  %v1861_v28 = vrot.slane %v5283_v24, 3  ;;  %v1077_v17 = vrot.slane %v7476_v33, 1 }
 0x1a0   :  { %v1387_v56 = vpop.permute.xlu0 %1386 }
 0x1a1   :  { %1438 = vrot.lane.b32.xlu1 %v1357_v5, %s3873_s16  ;;  %v2307_v44 = vsel %vm2305_vm12, %v2224_v46, %v1387_v56  ;;  %v7481_v5 = vrot.slane %v5188_v25, 2  ;;  %v5315_v56 = vor.u32 %v1581_v43, %v1580_v14  ;;  %v1078_v43 = vrot.slane %v7477_v41, 2 }
 0x1a2   :  { %1398 = vrot.lane.b32.xlu0 %v5205_v18, %s3873_s16  ;;  %v2390_v34 = vsel %vm2388_vm13, %v2307_v44, %v1471_v42  ;;  %v1663_v18 = vsel %vm1552_vm7, %v5232_v37, %v5298_v53  ;;  %v1821_v37 = vrot.slane %v5291_v22, 3  ;;  %v7482_v41 = vrot.slane %v5212_v36, 3 }
 0x1a3   :  { %v1892_v51 = vpop.permute.xlu1 %1891  ;;  %v1319_v35 = vsel %vm1302_vm4, %v7481_v5, %v7480_v23  ;;  %v1583_v44 = vsel %vm1552_vm7, %v5207_v50, %v5315_v56  ;;  %v5342_v33 = vor.u32 %v1078_v43, %v1077_v17  ;;  %v7483_v50 = vrot.slane %v5188_v25, 3 }
 0x1a4   :  { %v1726_v46 = vpop.permute.xlu0 %1725 }
 0x1a5   :  { %1522 = vrot.lane.b32.xlu1 %v5306_v30, %s3872_s15  ;;  %v2473_v2 = vsel %vm2471_vm14, %v2390_v34, %v1726_v46  ;;  %v1822_v34 = vsel %vm1807_vm6, %v7483_v50, %v1821_v37  ;;  %v1157_v46 = vrot.slane %v7474_v7, 1  ;;  %v1080_v36 = vsel %vm1045_vm2, %v5264_v31, %v5342_v33  ;;  %v7484_v31 = vld [vmem:[#allocation34_spill] sm:$0xff]  ;;  %v7485_v50 = vld [vmem:[#allocation28_spill] sm:$0xff] }
 0x1a6   :  { %1482 = vrot.lane.b32.xlu0 %v1319_v35, %s3872_s15  ;;  %v2556_v42 = vsel %vm2554_vm15, %v2473_v2, %v1892_v51  ;;  %v1862_v51 = vsel %vm1807_vm6, %v7482_v41, %v1861_v28 }
 0x1a7   :  { %v1263_v14 = vpop.permute.xlu1 %1262  ;;  %3435 = vmatmul.mubr.msk.bf16.vlgmr.msra.gmra.mrb[0].mxu0 %vm2664_vm0, %v2556_v42  ;;  %v3683_v42 = vld [vmem:[#allocation2 + $0xa8] sm:$0xff]  }
 0x1a8   :  { %v1223_v23 = vpop.permute.xlu0 %1222  ;;  %3438 = vmatprep.mubr.msk.bf16.mxu0 %vm3870_vm5, %v7392_v47  ;;  %v2017_v25 = vsel %vm1973_vm8, %v3683_v42, %v4737_v26 }
 0x1a9   :  { %1777 = vrot.lane.b32.xlu1 %v1663_v18, %s3875_s19  ;;  %v1158_v18 = vrot.slane %v7475_v15, 2  ;;  %v2100_v7 = vsel %vm2056_vm9, %v2017_v25, %v5002_v13  ;;  %v5364_v15 = vld [vmem:[#allocation2 + $0x50] sm:$0xff]  }
 0x1aa   :  { %1737 = vrot.lane.b32.xlu0 %v1583_v44, %s3875_s19  ;;  %v1320_v41 = vrot.slane %v5364_v15, 2  ;;  %v2183_v26 = vsel %vm2139_vm10, %v2100_v7, %v5243_v20  ;;  %v5400_v7 = vld [vmem:[#allocation2 + $0xf0] sm:$0xff]  }
 0x1ab   :  { %v1429_v5 = vpop.permute.xlu1 %1428  ;;  %v5357_v43 = vor.u32 %v1158_v18, %v1157_v46  ;;  %v1977_v46 = vsel %vm1973_vm8, %v4883_v40, %v4598_v0 }
 0x1ac   :  { %v1389_v2 = vpop.permute.xlu0 %1388  ;;  %v2060_v13 = vsel %vm2056_vm9, %v1977_v46, %v4840_v11  ;;  %v7486_v11 = vrot.slane %v5291_v22, 2 }
 0x1ad   :  { %1943 = vrot.lane.b32.xlu1 %v1862_v51, %s3874_s17  ;;  %v1584_v51 = vrot.slane %v7484_v31, 2  ;;  %v1160_v42 = vsel %vm1045_vm2, %v5254_v58, %v5357_v43  ;;  %v2143_v25 = vsel %vm2139_vm10, %v2060_v13, %v5110_v48 }
 0x1ae   :  { %1903 = vrot.lane.b32.xlu0 %v1822_v34, %s3874_s17  ;;  %v1585_v34 = vrot.slane %v7485_v50, 3 }
 0x1af   :  { %v1513_v17 = vpop.permute.xlu1 %1512 }
 0x1b0   :  { %v1473_v44 = vpop.permute.xlu0 %1472  ;;  %v5395_v58 = vor.u32 %v1585_v34, %v1584_v51 }
 0x1b1   :  { %1234 = vrot.lane.b32.xlu1 %v1080_v36, %s3871_s1  ;;  %v2266_v36 = vsel %vm2222_vm11, %v2183_v26, %v1263_v14  ;;  %v5393_v14 = vsel %vm1302_vm4, %v7486_v11, %v1320_v41  ;;  %v7487_v26 = vld [vmem:[#allocation76_spill] sm:$0xff] }
 0x1b2   :  { %1017 = vrot.lane.b32.xlu0 %v4651_v16, %s3868_s28  ;;  %v2349_v0 = vsel %vm2305_vm12, %v2266_v36, %v1429_v5  ;;  %v2226_v16 = vsel %vm2222_vm11, %v2143_v25, %v1223_v23  ;;  %v1360_v23 = vrot.slane %v5400_v7, 2  ;;  %v1664_v13 = vrot.slane %v7487_v26, 2  ;;  %v7488_v36 = vld [vmem:[#allocation71_spill] sm:$0xff] }
 0x1b3   :  { %v1768_v18 = vpop.permute.xlu1 %1767  ;;  %v2432_v20 = vsel %vm2388_vm13, %v2349_v0, %v1513_v17  ;;  %v2309_v48 = vsel %vm2305_vm12, %v2226_v16, %v1389_v2  ;;  %v1665_v51 = vrot.slane %v7488_v36, 3  ;;  %v7489_v0 = vrot.slane %v5283_v24, 2 }
 0x1b4   :  { %v1728_v40 = vpop.permute.xlu0 %1727  ;;  %v2515_v5 = vsel %vm2471_vm14, %v2432_v20, %v1768_v18  ;;  %v2392_v17 = vsel %vm2388_vm13, %v2309_v48, %v1473_v44  ;;  %v1587_v44 = vsel %vm1552_vm7, %v5315_v56, %v5395_v58  ;;  %v1161_v20 = vrot.slane %v7487_v26, 1 }
 0x1b5   :  { %1400 = vrot.lane.b32.xlu1 %v1319_v35, %s3873_s16  ;;  %v2475_v34 = vsel %vm2471_vm14, %v2392_v17, %v1728_v40  ;;  %v1361_v40 = vsel %vm1302_vm4, %v7489_v0, %v1360_v23  ;;  %v5426_v16 = vor.u32 %v1665_v51, %v1664_v13  ;;  %v1162_v11 = vrot.slane %v7488_v36, 2  ;;  %v3686_v36 = vld [vmem:[#allocation2 + $0xb0] sm:$0xff]  }
 0x1b6   :  { %1274 = vrot.lane.b32.xlu0 %v1160_v42, %s3871_s1  ;;  %v1823_v42 = vrot.slane %v5364_v15, 3  ;;  %v1081_v17 = vrot.slane %v7484_v31, 1  ;;  %v2019_v31 = vsel %vm1973_vm8, %v3686_v36, %v4758_v9  ;;  %v1979_v24 = vsel %vm1973_vm8, %v4868_v1, %v4577_v49 }
 0x1b7   :  { %v1934_v35 = vpop.permute.xlu1 %1933  ;;  %v2102_v51 = vsel %vm2056_vm9, %v2019_v31, %v4997_v3 }
 0x1b8   :  { %v2598_v46 = vsel %vm2554_vm15, %v2515_v5, %v1934_v35  ;;  %v1894_v2 = vpop.permute.xlu0 %1893  ;;  %v1667_v5 = vsel %vm1552_vm7, %v5298_v53, %v5426_v16  ;;  %v1863_v35 = vrot.slane %v5400_v7, 3 }
 0x1b9   :  { %1484 = vrot.lane.b32.xlu1 %v5393_v14, %s3872_s15  ;;  %3519 = vmatmul.mubr.msk.bf16.vlgmr.msra.gmra.mrb[0].mxu1 %vm2664_vm0, %v2598_v46  ;;  %v2558_v18 = vsel %vm2554_vm15, %v2475_v34, %v1894_v2  ;;  %v1082_v46 = vrot.slane %v7485_v50, 2 }
 0x1ba   :  { %3522 = vmatprep.mubr.msk.bf16.mxu1 %vm3870_vm5, %v7392_v47  ;;  %1440 = vrot.lane.b32.xlu0 %v5306_v30, %s3873_s16  ;;  %v1824_v30 = vsel %vm1807_vm6, %v1821_v37, %v1823_v42  ;;  %v5446_v37 = vor.u32 %v1162_v11, %v1161_v20  ;;  %v1864_v53 = vsel %vm1807_vm6, %v1861_v28, %v1863_v35 }
 0x1bb   :  { %3439 = vmatmul.mubr.msk.bf16.gmra.mrb[4].mxu0 %vm2664_vm0, %v2558_v18  ;;  %v1265_v25 = vpop.permute.xlu1 %1264  ;;  %v5454_v13 = vor.u32 %v1082_v46, %v1081_v17  ;;  %v2185_v28 = vsel %vm2139_vm10, %v2102_v51, %v5266_v12  ;;  %v5481_v12 = vld [vmem:[#allocation2 + $0xf8] sm:$0xff]   ;;  %v7492_v46 = vld [vmem:[#allocation31_spill] sm:$0xff] }
 0x1bc   :  { %3442 = vmatprep.mubr.msk.bf16.mxu0 %vm3870_vm5, %v7392_v47  ;;  %v1225_v56 = vpop.permute.xlu0 %1224  ;;  %v1164_v34 = vsel %vm1045_vm2, %v5357_v43, %v5446_v37  ;;  %v2268_v2 = vsel %vm2222_vm11, %v2185_v28, %v1265_v25  ;;  %v1362_v18 = vrot.slane %v5481_v12, 2  ;;  %v7490_v25 = vld [vmem:[#allocation73_spill] sm:$0xff] }
 0x1bd   :  { %1739 = vrot.lane.b32.xlu1 %v1587_v44, %s3875_s19  ;;  %v1084_v3 = vsel %vm1045_vm2, %v5342_v33, %v5454_v13  ;;  %v1668_v0 = vrot.slane %v7490_v25, 2 }
 0x1be   :  { %1524 = vrot.lane.b32.xlu0 %v1361_v40, %s3872_s15 }
 0x1bf   :  { %v1431_v48 = vpop.permute.xlu1 %1430 }
 0x1c0   :  { %v1391_v22 = vpop.permute.xlu0 %1390  ;;  %v2351_v49 = vsel %vm2305_vm12, %v2268_v2, %v1431_v48  ;;  %v5491_v48 = vld [vmem:[#allocation2 + $0x58] sm:$0xff]  }
 0x1c1   :  { %1905 = vrot.lane.b32.xlu1 %v1824_v30, %s3874_s17  ;;  %v7491_v30 = vld [vmem:[#allocation69_spill] sm:$0xff] }
 0x1c2   :  { %1779 = vrot.lane.b32.xlu0 %v1667_v5, %s3875_s19  ;;  %v1669_v33 = vrot.slane %v7491_v30, 3  ;;  %v1322_v5 = vrot.slane %v5491_v48, 2 }
 0x1c3   :  { %v1515_v26 = vpop.permute.xlu1 %1514 }
 0x1c4   :  { %v1475_v50 = vpop.permute.xlu0 %1474  ;;  %v2434_v44 = vsel %vm2388_vm13, %v2351_v49, %v1515_v26  ;;  %v1588_v26 = vrot.slane %v7492_v46, 2 }
 0x1c5   :  { %1019 = vrot.lane.b32.xlu1 %v4676_v61, %s3868_s28  ;;  %v2062_v61 = vsel %vm2056_vm9, %v1979_v24, %v4836_v55  ;;  %v1323_v24 = vsel %vm1302_vm4, %v1320_v41, %v1322_v5 }
 0x1c6   :  { %1945 = vrot.lane.b32.xlu0 %v1864_v53, %s3874_s17  ;;  %v2145_v43 = vsel %vm2139_vm10, %v2062_v61, %v5122_v63  ;;  %v7493_v53 = vld [vmem:[#allocation30_spill] sm:$0xff]  ;;  %v1085_v61 = vrot.slane %v7492_v46, 1 }
 0x1c7   :  { %v1770_v9 = vpop.permute.xlu1 %1769  ;;  %v2228_v55 = vsel %vm2222_vm11, %v2145_v43, %v1225_v56  ;;  %v1589_v36 = vrot.slane %v7493_v53, 3  ;;  %v1086_v2 = vrot.slane %v7493_v53, 2  ;;  %v1825_v43 = vrot.slane %v5491_v48, 3  ;;  %v3692_v48 = vld [vmem:[#allocation2 + $0xc0] sm:$0xff]  }
 0x1c8   :  { %v1730_v1 = vpop.permute.xlu0 %1729  ;;  %v2311_v20 = vsel %vm2305_vm12, %v2228_v55, %v1391_v22  ;;  %v2517_v63 = vsel %vm2471_vm14, %v2434_v44, %v1770_v9  ;;  %v1865_v9 = vrot.slane %v5481_v12, 3  ;;  %v1165_v44 = vrot.slane %v7490_v25, 1 }
 0x1c9   :  { %1276 = vrot.lane.b32.xlu1 %v1164_v34, %s3871_s1  ;;  %v2394_v17 = vsel %vm2388_vm13, %v2311_v20, %v1475_v50  ;;  %v5507_v50 = vsel %vm1302_vm4, %v1360_v23, %v1362_v18  ;;  %v5509_v34 = vor.u32 %v1669_v33, %v1668_v0  ;;  %v5521_v28 = vor.u32 %v1589_v36, %v1588_v26  ;;  %v3689_v33 = vld [vmem:[#allocation2 + $0xb8] sm:$0xff]   ;;  %v7495_v26 = vld [vmem:[#allocation32_spill] sm:$0xff] }
 0x1ca   :  { %1236 = vrot.lane.b32.xlu0 %v1084_v3, %s3871_s1  ;;  %v2477_v31 = vsel %vm2471_vm14, %v2394_v17, %v1730_v1  ;;  %v5544_v1 = vor.u32 %v1086_v2, %v1085_v61  ;;  %v1166_v0 = vrot.slane %v7491_v30, 2  ;;  %v2021_v7 = vsel %vm1973_vm8, %v3689_v33, %v4753_v60 }
 0x1cb   :  { %v1936_v11 = vpop.permute.xlu1 %1935  ;;  %v1591_v3 = vsel %vm1552_vm7, %v5395_v58, %v5521_v28  ;;  %v1826_v58 = vsel %vm1807_vm6, %v1823_v42, %v1825_v43  ;;  %v2104_v20 = vsel %vm2056_vm9, %v2021_v7, %v5011_v62  ;;  %v1981_v42 = vsel %vm1973_vm8, %v4871_v54, %v4593_v4  ;;  %v5577_v4 = vld [vmem:[#allocation2 + $0x60] sm:$0xff]  }
 0x1cc   :  { %v2600_v56 = vsel %vm2554_vm15, %v2517_v63, %v1936_v11  ;;  %v1896_v22 = vpop.permute.xlu0 %1895  ;;  %v1088_v15 = vsel %vm1045_vm2, %v5454_v13, %v5544_v1  ;;  %v2187_v25 = vsel %vm2139_vm10, %v2104_v20, %v5257_v59  ;;  %v2064_v30 = vsel %vm2056_vm9, %v1981_v42, %v4852_v45 }
 0x1cd   :  { %1442 = vrot.lane.b32.xlu1 %v1361_v40, %s3873_s16  ;;  %3523 = vmatmul.mubr.msk.bf16.gmra.mrb[4].mxu1 %vm2664_vm0, %v2600_v56  ;;  %v2560_v51 = vsel %vm2554_vm15, %v2477_v31, %v1896_v22  ;;  %v5571_v62 = vor.u32 %v1166_v0, %v1165_v44  ;;  %v2147_v13 = vsel %vm2139_vm10, %v2064_v30, %v5119_v52  ;;  %v1324_v54 = vrot.slane %v5577_v4, 2  ;;  %v7494_v56 = vld [vmem:[#allocation38_spill] sm:$0xff] }
 0x1ce   :  { %3526 = vmatprep.mubr.msk.bf16.mxu1 %vm3870_vm5, %v7392_v47  ;;  %1402 = vrot.lane.b32.xlu0 %v5393_v14, %s3873_s16  ;;  %v1671_v14 = vsel %vm1552_vm7, %v5426_v16, %v5509_v34  ;;  %v1866_v16 = vsel %vm1807_vm6, %v1863_v35, %v1865_v9  ;;  %v1592_v46 = vrot.slane %v7494_v56, 2  ;;  %v1593_v53 = vrot.slane %v7495_v26, 3 }
 0x1cf   :  { %3443 = vmatmul.mubr.msk.bf16.gmra.mrb[8].mxu0 %vm2664_vm0, %v2560_v51  ;;  %v1267_v40 = vpop.permute.xlu1 %1266  ;;  %v1827_v44 = vrot.slane %v5577_v4, 3 }
 0x1d0   :  { %3446 = vmatprep.mubr.msk.bf16.mxu0 %vm3870_vm5, %v7392_v47  ;;  %v1227_v23 = vpop.permute.xlu0 %1226  ;;  %v2270_v63 = vsel %vm2222_vm11, %v2187_v25, %v1267_v40  ;;  %v1168_v40 = vsel %vm1045_vm2, %v5446_v37, %v5571_v62  ;;  %v5604_v2 = vor.u32 %v1593_v53, %v1592_v46  ;;  %v1089_v25 = vrot.slane %v7494_v56, 1 }
 0x1d1   :  { %1526 = vrot.lane.b32.xlu1 %v5507_v50, %s3872_s15  ;;  %v2230_v59 = vsel %vm2222_vm11, %v2147_v13, %v1227_v23 }
 0x1d2   :  { %1486 = vrot.lane.b32.xlu0 %v1323_v24, %s3872_s15 }
 0x1d3   :  { %v1433_v41 = vpop.permute.xlu1 %1432 }
 0x1d4   :  { %v1393_v49 = vpop.permute.xlu0 %1392  ;;  %v2353_v11 = vsel %vm2305_vm12, %v2270_v63, %v1433_v41 }
 0x1d5   :  { %1781 = vrot.lane.b32.xlu1 %v1671_v14, %s3875_s19  ;;  %v2313_v36 = vsel %vm2305_vm12, %v2230_v59, %v1393_v49 }
 0x1d6   :  { %1741 = vrot.lane.b32.xlu0 %v1591_v3, %s3875_s19  ;;  %v7496_v3 = vld [vmem:[#allocation80_spill] sm:$0xff] }
 0x1d7   :  { %v1517_v55 = vpop.permute.xlu1 %1516  ;;  %v1672_v49 = vrot.slane %v7496_v3, 2 }
 0x1d8   :  { %v1477_v35 = vpop.permute.xlu0 %1476  ;;  %v2436_v45 = vsel %vm2388_vm13, %v2353_v11, %v1517_v55 }
 0x1d9   :  { %1947 = vrot.lane.b32.xlu1 %v1866_v16, %s3874_s17  ;;  %v2396_v22 = vsel %vm2388_vm13, %v2313_v36, %v1477_v35  ;;  %v7497_v16 = vld [vmem:[#allocation74_spill] sm:$0xff] }
 0x1da   :  { %1907 = vrot.lane.b32.xlu0 %v1826_v58, %s3874_s17  ;;  %v1673_v55 = vrot.slane %v7497_v16, 3  ;;  %v1595_v58 = vsel %vm1552_vm7, %v5521_v28, %v5604_v2  ;;  %v1828_v28 = vsel %vm1807_vm6, %v1825_v43, %v1827_v44  ;;  %v1170_v20 = vrot.slane %v7497_v16, 2  ;;  %v7501_v16 = vld [vmem:[#allocation33_spill] sm:$0xff] }
 0x1db   :  { %v1772_v60 = vpop.permute.xlu1 %1771  ;;  %v2023_v43 = vsel %vm1973_vm8, %v3692_v48, %v4766_v10 }
 0x1dc   :  { %v1732_v17 = vpop.permute.xlu0 %1731  ;;  %v2519_v52 = vsel %vm2471_vm14, %v2436_v45, %v1772_v60  ;;  %v5630_v7 = vor.u32 %v1673_v55, %v1672_v49  ;;  %v1090_v60 = vrot.slane %v7495_v26, 2  ;;  %v2106_v63 = vsel %vm2056_vm9, %v2023_v43, %v5008_v19  ;;  %v7503_v43 = vld [vmem:[#allocation136_spill] sm:$0xff] }
 0x1dd   :  { %1238 = vrot.lane.b32.xlu1 %v1088_v15, %s3871_s1  ;;  %v2479_v23 = vsel %vm2471_vm14, %v2396_v22, %v1732_v17  ;;  %v2189_v11 = vsel %vm2139_vm10, %v2106_v63, %v5276_v8  ;;  %v1597_v55 = vrot.slane %v7501_v16, 3 }
 0x1de   :  { %1021 = vrot.lane.b32.xlu0 %v4667_v27, %s3868_s28  ;;  %v5602_v27 = vsel %vm1302_vm4, %v1322_v5, %v1324_v54  ;;  %v5668_v45 = vor.u32 %v1090_v60, %v1089_v25  ;;  %v7502_v60 = vld [vmem:[#allocation58_spill] sm:$0xff] }
 0x1df   :  { %v1938_v31 = vpop.permute.xlu1 %1937  ;;  %v1985_v48 = vsel %vm1973_vm8, %v7502_v60, %v4609_v6 }
 0x1e0   :  { %v2602_v51 = vsel %vm2554_vm15, %v2519_v52, %v1938_v31  ;;  %v1898_v14 = vpop.permute.xlu0 %1897  ;;  %v5692_v31 = vld [vmem:[#allocation2 + $0x108] sm:$0xff]  }
 0x1e1   :  { %1404 = vrot.lane.b32.xlu1 %v1323_v24, %s3873_s16  ;;  %3527 = vmatmul.mubr.msk.bf16.gmra.mrb[8].mxu1 %vm2664_vm0, %v2602_v51  ;;  %v2562_v61 = vsel %vm2554_vm15, %v2479_v23, %v1898_v14  ;;  %v5610_v24 = vld [vmem:[#allocation2 + $0x100] sm:$0xff]   ;;  %v1366_v22 = vrot.slane %v5692_v31, 2 }
 0x1e2   :  { %3530 = vmatprep.mubr.msk.bf16.mxu1 %vm3870_vm5, %v7392_v47  ;;  %1278 = vrot.lane.b32.xlu0 %v1168_v40, %s3871_s1  ;;  %v1364_v41 = vrot.slane %v5610_v24, 2  ;;  %v1867_v42 = vrot.slane %v5610_v24, 3  ;;  %v7498_v51 = vld [vmem:[#allocation78_spill] sm:$0xff]  ;;  %v7499_v23 = vld [vmem:[#allocation75_spill] sm:$0xff] }
 0x1e3   :  { %3447 = vmatmul.mubr.msk.bf16.gmra.mrb[12].mxu0 %vm2664_vm0, %v2562_v61  ;;  %v1269_v37 = vpop.permute.xlu1 %1268  ;;  %v1676_v40 = vrot.slane %v7498_v51, 2  ;;  %v1677_v14 = vrot.slane %v7499_v23, 3  ;;  %v5701_v61 = vld [vmem:[#allocation2 + $0x68] sm:$0xff]   ;;  %v1173_v24 = vrot.slane %v7498_v51, 1 }
 0x1e4   :  { %3450 = vmatprep.mubr.msk.bf16.mxu0 %vm3870_vm5, %v7392_v47  ;;  %v1229_v5 = vpop.permute.xlu0 %1228  ;;  %v1365_v33 = vsel %vm1302_vm4, %v1362_v18, %v1364_v41  ;;  %v1675_v18 = vsel %vm1552_vm7, %v5509_v34, %v5630_v7  ;;  %v1983_v34 = vsel %vm1973_vm8, %v4956_v21, %v4614_v39  ;;  %v2272_v59 = vsel %vm2222_vm11, %v2189_v11, %v1269_v37  ;;  %v7509_v51 = vld [vmem:[#allocation36_spill] sm:$0xff] }
 0x1e5   :  { %1488 = vrot.lane.b32.xlu1 %v5602_v27, %s3872_s15  ;;  %v2066_v10 = vsel %vm2056_vm9, %v1983_v34, %v4849_v57  ;;  %v1868_v19 = vsel %vm1807_vm6, %v1865_v9, %v1867_v42  ;;  %v1326_v37 = vrot.slane %v5701_v61, 2  ;;  %v1829_v25 = vrot.slane %v5701_v61, 3  ;;  %v3697_v61 = vld [vmem:[#allocation2 + $0xd0] sm:$0xff]  }
 0x1e6   :  { %1444 = vrot.lane.b32.xlu0 %v5507_v50, %s3873_s16  ;;  %v1169_v50 = vrot.slane %v7496_v3, 1  ;;  %v2149_v39 = vsel %vm2139_vm10, %v2066_v10, %v5138_v29  ;;  %v7500_v3 = vld [vmem:[#allocation35_spill] sm:$0xff] }
 0x1e7   :  { %v1435_v0 = vpop.permute.xlu1 %1434  ;;  %v2232_v57 = vsel %vm2222_vm11, %v2149_v39, %v1229_v5  ;;  %v1596_v49 = vrot.slane %v7500_v3, 2  ;;  %v1830_v10 = vsel %vm1807_vm6, %v1827_v44, %v1829_v25 }
 0x1e8   :  { %v1395_v35 = vpop.permute.xlu0 %1394  ;;  %v5652_v13 = vor.u32 %v1170_v20, %v1169_v50  ;;  %v2355_v21 = vsel %vm2305_vm12, %v2272_v59, %v1435_v0  ;;  %v5716_v0 = vor.u32 %v1677_v14, %v1676_v40  ;;  %v1869_v20 = vrot.slane %v5692_v31, 3  ;;  %v7510_v14 = vld [vmem:[#allocation103_spill] sm:$0xff] }
 0x1e9   :  { %1743 = vrot.lane.b32.xlu1 %v1595_v58, %s3875_s19  ;;  %v2315_v9 = vsel %vm2305_vm12, %v2232_v57, %v1395_v35  ;;  %v5714_v58 = vsel %vm1302_vm4, %v1364_v41, %v1366_v22  ;;  %v7506_v57 = vld [vmem:[#allocation146_spill] sm:$0xff]  ;;  %v1601_v40 = vrot.slane %v7509_v51, 3 }
 0x1ea   :  { %1528 = vrot.lane.b32.xlu0 %v1365_v33, %s3872_s15  ;;  %v1172_v12 = vsel %vm1045_vm2, %v5571_v62, %v5652_v13  ;;  %v1679_v41 = vsel %vm1552_vm7, %v5630_v7, %v5716_v0  ;;  %v1870_v63 = vsel %vm1807_vm6, %v1867_v42, %v1869_v20  ;;  %v1174_v42 = vrot.slane %v7499_v23, 2 }
 0x1eb   :  { %v1519_v15 = vpop.permute.xlu1 %1518 }
 0x1ec   :  { %v1479_v30 = vpop.permute.xlu0 %1478  ;;  %v2438_v56 = vsel %vm2388_vm13, %v2355_v21, %v1519_v15  ;;  %v1094_v15 = vrot.slane %v7501_v16, 2 }
 0x1ed   :  { %1909 = vrot.lane.b32.xlu1 %v1828_v28, %s3874_s17  ;;  %v2398_v26 = vsel %vm2388_vm13, %v2315_v9, %v1479_v30  ;;  %v1327_v28 = vsel %vm1302_vm4, %v1324_v54, %v1326_v37  ;;  %v2068_v30 = vsel %vm2056_vm9, %v1985_v48, %v7503_v43 }
 0x1ee   :  { %1783 = vrot.lane.b32.xlu0 %v1675_v18, %s3875_s19 }
 0x1ef   :  { %v1774_v17 = vpop.permute.xlu1 %1773 }
 0x1f0   :  { %v1734_v8 = vpop.permute.xlu0 %1733  ;;  %v2521_v46 = vsel %vm2471_vm14, %v2438_v56, %v1774_v17 }
 0x1f1   :  { %1023 = vrot.lane.b32.xlu1 %v4692_v38, %s3868_s28  ;;  %v1092_v38 = vsel %vm1045_vm2, %v5544_v1, %v5668_v45  ;;  %v2481_v36 = vsel %vm2471_vm14, %v2398_v26, %v1734_v8  ;;  %v7505_v8 = vld [vmem:[#allocation119_spill] sm:$0xff] }
 0x1f2   :  { %1949 = vrot.lane.b32.xlu0 %v1868_v19, %s3874_s17  ;;  %v2025_v4 = vsel %vm1973_vm8, %v7506_v57, %v7505_v8 }
 0x1f3   :  { %v1940_v29 = vpop.permute.xlu1 %1939 }
 0x1f4   :  { %v2604_v53 = vsel %vm2554_vm15, %v2521_v46, %v1940_v29  ;;  %v1900_v52 = vpop.permute.xlu0 %1899  ;;  %v5778_v29 = vor.u32 %v1174_v42, %v1173_v24  ;;  %v7513_v24 = vld [vmem:[#allocation121_spill] sm:$0xff] }
 0x1f5   :  { %1280 = vrot.lane.b32.xlu1 %v1172_v12, %s3871_s1  ;;  %3531 = vmatmul.mubr.msk.bf16.gmra.mrb[12].mxu1 %vm2664_vm0, %v2604_v53  ;;  %v2564_v62 = vsel %vm2554_vm15, %v2481_v36, %v1900_v52  ;;  %v7507_v12 = vld [vmem:[#allocation19_spill] sm:$0xff]  ;;  %v7508_v52 = vld [vmem:[#allocation42_spill] sm:$0xff] }
 0x1f6   :  { %3534 = vmatprep.mubr.msk.bf16.mxu1 %vm3870_vm5, %v7392_v47  ;;  %1240 = vrot.lane.b32.xlu0 %v1092_v38, %s3871_s1  ;;  %v2108_v9 = vsel %vm2056_vm9, %v2025_v4, %v7507_v12  ;;  %v5784_v38 = vld [vmem:[#allocation2 + $0x70] sm:$0xff]  }
 0x1f7   :  { %3451 = vmatmul.mubr.msk.bf16.gmra.mrb[16].mxu0 %vm2664_vm0, %v2564_v62  ;;  %v1231_v1 = vpop.permute.xlu1 %1230  ;;  %v1328_v36 = vrot.slane %v5784_v38, 2  ;;  %v1600_v62 = vrot.slane %v7508_v52, 2  ;;  %v1831_v48 = vrot.slane %v5784_v38, 3 }
 0x1f8   :  { %3454 = vmatprep.mubr.msk.bf16.mxu0 %vm3870_vm5, %v7392_v47  ;;  %v1014_v5 = vpop.permute.xlu0 %1013 }
 0x1f9   :  { %1446 = vrot.lane.b32.xlu1 %v1365_v33, %s3873_s16  ;;  %v5725_v33 = vor.u32 %v1597_v55, %v1596_v49  ;;  %v2191_v26 = vsel %vm2139_vm10, %v2108_v9, %v1014_v5  ;;  %v1176_v49 = vsel %vm1045_vm2, %v5652_v13, %v5778_v29 }
 0x1fa   :  { %1406 = vrot.lane.b32.xlu0 %v5602_v27, %s3873_s16  ;;  %v1093_v27 = vrot.slane %v7500_v3, 1 }
 0x1fb   :  { %v1397_v35 = vpop.permute.xlu1 %1396  ;;  %v1599_v54 = vsel %vm1552_vm7, %v5604_v2, %v5725_v33  ;;  %v7504_v2 = vld [vmem:[#allocation66_spill] sm:$0xff] }
 0x1fc   :  { %v1271_v50 = vpop.permute.xlu0 %1270  ;;  %v5751_v34 = vor.u32 %v1094_v15, %v1093_v27  ;;  %v2151_v11 = vsel %vm2139_vm10, %v2068_v30, %v7504_v2  ;;  %v7511_v27 = vld [vmem:[#allocation84_spill] sm:$0xff] }
 0x1fd   :  { %1530 = vrot.lane.b32.xlu1 %v5714_v58, %s3872_s15  ;;  %v2234_v17 = vsel %vm2222_vm11, %v2151_v11, %v1231_v1  ;;  %v1680_v15 = vrot.slane %v7511_v27, 2 }
 0x1fe   :  { %1490 = vrot.lane.b32.xlu0 %v1327_v28, %s3872_s15  ;;  %v2317_v59 = vsel %vm2305_vm12, %v2234_v17, %v1397_v35  ;;  %v1096_v21 = vsel %vm1045_vm2, %v5668_v45, %v5751_v34  ;;  %v2274_v45 = vsel %vm2222_vm11, %v2191_v26, %v1271_v50  ;;  %v5806_v35 = vsel %vm1302_vm4, %v1326_v37, %v1328_v36 }
 0x1ff   :  { %v1481_v18 = vpop.permute.xlu1 %1480  ;;  %v5808_v50 = vor.u32 %v1601_v40, %v1600_v62  ;;  %v1097_v17 = vrot.slane %v7508_v52, 1  ;;  %v7517_v52 = vld [vmem:[#allocation108_spill] sm:$0xff] }
 0x200   :  { %v1437_v7 = vpop.permute.xlu0 %1436  ;;  %v2400_v39 = vsel %vm2388_vm13, %v2317_v59, %v1481_v18  ;;  %v7512_v18 = vld [vmem:[#allocation77_spill] sm:$0xff] }
 0x201   :  { %1785 = vrot.lane.b32.xlu1 %v1679_v41, %s3875_s19  ;;  %v2357_v23 = vsel %vm2305_vm12, %v2274_v45, %v1437_v7  ;;  %v5812_v41 = vld [vmem:[#allocation2 + $0x110] sm:$0xff]   ;;  %v1603_v60 = vsel %vm1552_vm7, %v5725_v33, %v5808_v50  ;;  %v1832_v33 = vsel %vm1807_vm6, %v1829_v25, %v1831_v48  ;;  %v1178_v2 = vrot.slane %v7512_v18, 2 }
 0x202   :  { %1745 = vrot.lane.b32.xlu0 %v1599_v54, %s3875_s19  ;;  %v1681_v54 = vrot.slane %v7512_v18, 3  ;;  %v2027_v25 = vsel %vm1973_vm8, %v3697_v61, %v7513_v24  ;;  %v7514_v59 = vld [vmem:[#allocation61_spill] sm:$0xff] }
 0x203   :  { %v1736_v6 = vpop.permute.xlu1 %1735  ;;  %v5901_v18 = vld [vmem:[#allocation2 + $0x78] sm:$0xff]  }
 0x204   :  { %v1521_v19 = vpop.permute.xlu0 %1520  ;;  %v2483_v44 = vsel %vm2471_vm14, %v2400_v39, %v1736_v6  ;;  %v5832_v30 = vor.u32 %v1681_v54, %v1680_v15  ;;  %v1871_v6 = vrot.slane %v5812_v41, 3  ;;  %v1330_v54 = vrot.slane %v5901_v18, 2 }
 0x205   :  { %1951 = vrot.lane.b32.xlu1 %v1870_v63, %s3874_s17  ;;  %v2440_v3 = vsel %vm2388_vm13, %v2357_v23, %v1521_v19  ;;  %v2110_v19 = vsel %vm2056_vm9, %v2027_v25, %v7514_v59  ;;  %v1833_v25 = vrot.slane %v5901_v18, 3  ;;  %v7522_v59 = vld [vmem:[#allocation95_spill] sm:$0xff] }
 0x206   :  { %1911 = vrot.lane.b32.xlu0 %v1830_v10, %s3874_s17  ;;  %v1098_v10 = vrot.slane %v7509_v51, 2  ;;  %v1872_v9 = vsel %vm1807_vm6, %v1869_v20, %v1871_v6  ;;  %v3705_v18 = vld [vmem:[#allocation2 + $0xe0] sm:$0xff]  }
 0x207   :  { %v1902_v56 = vpop.permute.xlu1 %1901 }
 0x208   :  { %v2566_v46 = vsel %vm2554_vm15, %v2483_v44, %v1902_v56  ;;  %v1776_v53 = vpop.permute.xlu0 %1775  ;;  %v7516_v44 = vld [vmem:[#allocation135_spill] sm:$0xff] }
 0x209   :  { %1242 = vrot.lane.b32.xlu1 %v1096_v21, %s3871_s1  ;;  %3455 = vmatmul.mubr.msk.bf16.gmra.mrb[20].mxu0 %vm2664_vm0, %v2566_v46  ;;  %v2523_v16 = vsel %vm2471_vm14, %v2440_v3, %v1776_v53  ;;  %v3698_v21 = vld [vmem:[#allocation2 + $0x30] sm:$0xff]   ;;  %v5868_v46 = vor.u32 %v1098_v10, %v1097_v17 }
 0x20a   :  { %3458 = vmatprep.mubr.msk.bf16.mxu0 %vm3870_vm5, %v7392_v47  ;;  %1025 = vrot.lane.b32.xlu0 %v7510_v14, %s3868_s28 }
 0x20b   :  { %v1016_v1 = vpop.permute.xlu1 %1015 }
 0x20c   :  { %v1942_v55 = vpop.permute.xlu0 %1941  ;;  %v2193_v57 = vsel %vm2139_vm10, %v2110_v19, %v1016_v1  ;;  %v1100_v1 = vsel %vm1045_vm2, %v5751_v34, %v5868_v46 }
 0x20d   :  { %1408 = vrot.lane.b32.xlu1 %v1327_v28, %s3873_s16  ;;  %v2606_v5 = vsel %vm2554_vm15, %v2523_v16, %v1942_v55  ;;  %v1368_v28 = vrot.slane %v5812_v41, 2  ;;  %v5892_v16 = vld [vmem:[#allocation2 + $0x118] sm:$0xff]  }
 0x20e   :  { %1282 = vrot.lane.b32.xlu0 %v1176_v49, %s3871_s1  ;;  %3535 = vmatmul.mubr.msk.bf16.gmra.mrb[16].mxu1 %vm2664_vm0, %v2606_v5  ;;  %v1370_v55 = vrot.slane %v5892_v16, 2  ;;  %v7518_v5 = vld [vmem:[#allocation82_spill] sm:$0xff]  ;;  %v1873_v10 = vrot.slane %v5892_v16, 3 }
 0x20f   :  { %v1273_v13 = vpop.permute.xlu1 %1272  ;;  %3538 = vmatprep.mubr.msk.bf16.mxu1 %vm3870_vm5, %v7392_v47  ;;  %v1369_v43 = vsel %vm1302_vm4, %v1366_v22, %v1368_v28  ;;  %v1683_v22 = vsel %vm1552_vm7, %v5716_v0, %v5832_v30  ;;  %v7515_v0 = vld [vmem:[#allocation96_spill] sm:$0xff]  ;;  %v1181_v41 = vrot.slane %v7518_v5, 1 }
 0x210   :  { %v1233_v37 = vpop.permute.xlu0 %1232  ;;  %v1987_v8 = vsel %vm1973_vm8, %v3698_v21, %v7515_v0  ;;  %v2276_v12 = vsel %vm2222_vm11, %v2193_v57, %v1273_v13  ;;  %v1684_v13 = vrot.slane %v7518_v5, 2  ;;  %v7523_v21 = vld [vmem:[#allocation16_spill] sm:$0xff]  ;;  %v7528_v5 = vld [vmem:[#allocation39_spill] sm:$0xff] }
 0x211   :  { %1492 = vrot.lane.b32.xlu1 %v5806_v35, %s3872_s15  ;;  %v2070_v56 = vsel %vm2056_vm9, %v1987_v8, %v7516_v44  ;;  %v1874_v8 = vsel %vm1807_vm6, %v1871_v6, %v1873_v10 }
 0x212   :  { %1448 = vrot.lane.b32.xlu0 %v5714_v58, %s3873_s16  ;;  %v1177_v58 = vrot.slane %v7511_v27, 1  ;;  %v2153_v26 = vsel %vm2139_vm10, %v2070_v56, %v5150_v32  ;;  %v7519_v27 = vld [vmem:[#allocation79_spill] sm:$0xff] }
 0x213   :  { %v1439_v7 = vpop.permute.xlu1 %1438  ;;  %v2236_v62 = vsel %vm2222_vm11, %v2153_v26, %v1233_v37  ;;  %v1685_v15 = vrot.slane %v7519_v27, 3  ;;  %v7520_v37 = vld [vmem:[#allocation40_spill] sm:$0xff]  ;;  %v1182_v6 = vrot.slane %v7519_v27, 2 }
 0x214   :  { %v1399_v63 = vpop.permute.xlu0 %1398  ;;  %v5854_v39 = vor.u32 %v1178_v2, %v1177_v58  ;;  %v2359_v53 = vsel %vm2305_vm12, %v2276_v12, %v1439_v7  ;;  %v7521_v7 = vld [vmem:[#allocation37_spill] sm:$0xff]  ;;  %v5914_v58 = vsel %vm1302_vm4, %v1368_v28, %v1370_v55  ;;  %v1834_v12 = vsel %vm1807_vm6, %v1831_v48, %v1833_v25 }
 0x215   :  { %1747 = vrot.lane.b32.xlu1 %v1603_v60, %s3875_s19  ;;  %v2319_v20 = vsel %vm2305_vm12, %v2236_v62, %v1399_v63  ;;  %v1604_v60 = vrot.slane %v7520_v37, 2  ;;  %v1605_v63 = vrot.slane %v7521_v7, 3  ;;  %v5916_v2 = vor.u32 %v1685_v15, %v1684_v13  ;;  %v7525_v62 = vld [vmem:[#allocation120_spill] sm:$0xff]  ;;  %v7529_v15 = vld [vmem:[#allocation106_spill] sm:$0xff] }
 0x216   :  { %1532 = vrot.lane.b32.xlu0 %v1369_v43, %s3872_s15  ;;  %v1180_v31 = vsel %vm1045_vm2, %v5778_v29, %v5854_v39  ;;  %v1102_v61 = vrot.slane %v7521_v7, 2  ;;  %v1609_v13 = vrot.slane %v7528_v5, 3 }
 0x217   :  { %v1523_v11 = vpop.permute.xlu1 %1522  ;;  %v1687_v28 = vsel %vm1552_vm7, %v5832_v30, %v5916_v2 }
 0x218   :  { %v1483_v42 = vpop.permute.xlu0 %1482  ;;  %v2442_v51 = vsel %vm2388_vm13, %v2359_v53, %v1523_v11 }
 0x219   :  { %1913 = vrot.lane.b32.xlu1 %v1832_v33, %s3874_s17  ;;  %v2402_v23 = vsel %vm2388_vm13, %v2319_v20, %v1483_v42  ;;  %v3701_v42 = vld [vmem:[#allocation2 + $0x38] sm:$0xff]  }
 0x21a   :  { %1787 = vrot.lane.b32.xlu0 %v1683_v22, %s3875_s19  ;;  %v1331_v22 = vsel %vm1302_vm4, %v1328_v36, %v1330_v54  ;;  %v1989_v19 = vsel %vm1973_vm8, %v3701_v42, %v7522_v59 }
 0x21b   :  { %v1778_v4 = vpop.permute.xlu1 %1777  ;;  %v2072_v0 = vsel %vm2056_vm9, %v1989_v19, %v7523_v21 }
 0x21c   :  { %v1738_v45 = vpop.permute.xlu0 %1737  ;;  %v2525_v40 = vsel %vm2471_vm14, %v2442_v51, %v1778_v4 }
 0x21d   :  { %1027 = vrot.lane.b32.xlu1 %v7517_v52, %s3868_s28  ;;  %v2485_v3 = vsel %vm2471_vm14, %v2402_v23, %v1738_v45  ;;  %v3702_v52 = vld [vmem:[#allocation2 + $0xd8] sm:$0xff]  }
 0x21e   :  { %1953 = vrot.lane.b32.xlu0 %v1872_v9, %s3874_s17  ;;  %v2029_v38 = vsel %vm1973_vm8, %v3702_v52, %v7525_v62 }
 0x21f   :  { %v1944_v32 = vpop.permute.xlu1 %1943 }
 0x220   :  { %v2608_v14 = vsel %vm2554_vm15, %v2525_v40, %v1944_v32  ;;  %v1904_v49 = vpop.permute.xlu0 %1903  ;;  %v5976_v32 = vor.u32 %v1182_v6, %v1181_v41  ;;  %v7533_v6 = vld [vmem:[#allocation18_spill] sm:$0xff] }
 0x221   :  { %1284 = vrot.lane.b32.xlu1 %v1180_v31, %s3871_s1  ;;  %3539 = vmatmul.mubr.msk.bf16.gmra.mrb[20].mxu1 %vm2664_vm0, %v2608_v14  ;;  %v2568_v29 = vsel %vm2554_vm15, %v2485_v3, %v1904_v49  ;;  %v7526_v31 = vld [vmem:[#allocation147_spill] sm:$0xff]  ;;  %v7527_v49 = vld [vmem:[#allocation46_spill] sm:$0xff] }
 0x222   :  { %3542 = vmatprep.mubr.msk.bf16.mxu1 %vm3870_vm5, %v7392_v47  ;;  %1244 = vrot.lane.b32.xlu0 %v1100_v1, %s3871_s1  ;;  %v2112_v20 = vsel %vm2056_vm9, %v2029_v38, %v7526_v31  ;;  %v5982_v1 = vld [vmem:[#allocation2 + $0x80] sm:$0xff]   ;;  %v7535_v38 = vld [vmem:[#allocation137_spill] sm:$0xff] }
 0x223   :  { %3459 = vmatmul.mubr.msk.bf16.gmra.mrb[24].mxu0 %vm2664_vm0, %v2568_v29  ;;  %v1235_v34 = vpop.permute.xlu1 %1234  ;;  %v1332_v3 = vrot.slane %v5982_v1, 2  ;;  %v1608_v29 = vrot.slane %v7527_v49, 2  ;;  %v1835_v59 = vrot.slane %v5982_v1, 3 }
 0x224   :  { %3462 = vmatprep.mubr.msk.bf16.mxu0 %vm3870_vm5, %v7392_v47  ;;  %v1018_v33 = vpop.permute.xlu0 %1017 }
 0x225   :  { %1450 = vrot.lane.b32.xlu1 %v1369_v43, %s3873_s16  ;;  %v5925_v43 = vor.u32 %v1605_v63, %v1604_v60  ;;  %v2195_v23 = vsel %vm2139_vm10, %v2112_v20, %v1018_v33  ;;  %v1184_v60 = vsel %vm1045_vm2, %v5854_v39, %v5976_v32 }
 0x226   :  { %1410 = vrot.lane.b32.xlu0 %v5806_v35, %s3873_s16  ;;  %v1101_v35 = vrot.slane %v7520_v37, 1 }
 0x227   :  { %v1401_v11 = vpop.permute.xlu1 %1400  ;;  %v1607_v36 = vsel %vm1552_vm7, %v5808_v50, %v5925_v43  ;;  %v7524_v50 = vld [vmem:[#allocation63_spill] sm:$0xff] }
 0x228   :  { %v1275_v17 = vpop.permute.xlu0 %1274  ;;  %v5950_v57 = vor.u32 %v1102_v61, %v1101_v35  ;;  %v2155_v4 = vsel %vm2139_vm10, %v2072_v0, %v7524_v50  ;;  %v7530_v35 = vld [vmem:[#allocation88_spill] sm:$0xff] }
 0x229   :  { %1534 = vrot.lane.b32.xlu1 %v5914_v58, %s3872_s15  ;;  %v2238_v56 = vsel %vm2222_vm11, %v2155_v4, %v1235_v34  ;;  %v1688_v61 = vrot.slane %v7530_v35, 2 }
 0x22a   :  { %1494 = vrot.lane.b32.xlu0 %v1331_v22, %s3872_s15  ;;  %v2321_v9 = vsel %vm2305_vm12, %v2238_v56, %v1401_v11  ;;  %v1104_v45 = vsel %vm1045_vm2, %v5868_v46, %v5950_v57  ;;  %v2278_v46 = vsel %vm2222_vm11, %v2195_v23, %v1275_v17  ;;  %v6004_v11 = vsel %vm1302_vm4, %v1330_v54, %v1332_v3 }
 0x22b   :  { %v1485_v24 = vpop.permute.xlu1 %1484  ;;  %v6006_v17 = vor.u32 %v1609_v13, %v1608_v29  ;;  %v1106_v56 = vrot.slane %v7528_v5, 2 }
 0x22c   :  { %v1441_v30 = vpop.permute.xlu0 %1440  ;;  %v2404_v53 = vsel %vm2388_vm13, %v2321_v9, %v1485_v24  ;;  %v7531_v24 = vld [vmem:[#allocation83_spill] sm:$0xff] }
 0x22d   :  { %1789 = vrot.lane.b32.xlu1 %v1687_v28, %s3875_s19  ;;  %v2361_v27 = vsel %vm2305_vm12, %v2278_v46, %v1441_v30  ;;  %v6010_v28 = vld [vmem:[#allocation2 + $0x120] sm:$0xff]   ;;  %v1611_v42 = vsel %vm1552_vm7, %v5925_v43, %v6006_v17  ;;  %v1836_v43 = vsel %vm1807_vm6, %v1833_v25, %v1835_v59 }
 0x22e   :  { %1749 = vrot.lane.b32.xlu0 %v1607_v36, %s3875_s19  ;;  %v1689_v36 = vrot.slane %v7531_v24, 3  ;;  %v1875_v4 = vrot.slane %v6010_v28, 3 }
 0x22f   :  { %v1740_v44 = vpop.permute.xlu1 %1739 }
 0x230   :  { %v1525_v26 = vpop.permute.xlu0 %1524  ;;  %v2487_v48 = vsel %vm2471_vm14, %v2404_v53, %v1740_v44  ;;  %v6030_v21 = vor.u32 %v1689_v36, %v1688_v61  ;;  %v1105_v44 = vrot.slane %v7527_v49, 1  ;;  %v3706_v53 = vld [vmem:[#allocation2 + $0x40] sm:$0xff]   ;;  %v1876_v31 = vsel %vm1807_vm6, %v1873_v10, %v1875_v4  ;;  %v7537_v49 = vld [vmem:[#allocation112_spill] sm:$0xff]  ;;  %v7539_v61 = vld [vmem:[#allocation81_spill] sm:$0xff] }
 0x231   :  { %1955 = vrot.lane.b32.xlu1 %v1874_v8, %s3874_s17  ;;  %v2444_v37 = vsel %vm2388_vm13, %v2361_v27, %v1525_v26  ;;  %v1186_v8 = vrot.slane %v7531_v24, 2  ;;  %v1693_v24 = vrot.slane %v7539_v61, 3  ;;  %v6099_v36 = vld [vmem:[#allocation2 + $0x88] sm:$0xff]  }
 0x232   :  { %1915 = vrot.lane.b32.xlu0 %v1834_v12, %s3874_s17  ;;  %v7532_v12 = vld [vmem:[#allocation123_spill] sm:$0xff]  ;;  %v6066_v20 = vor.u32 %v1106_v56, %v1105_v44 }
 0x233   :  { %v1906_v51 = vpop.permute.xlu1 %1905  ;;  %v2031_v25 = vsel %vm1973_vm8, %v3705_v18, %v7532_v12 }
 0x234   :  { %v2570_v40 = vsel %vm2554_vm15, %v2487_v48, %v1906_v51  ;;  %v1780_v14 = vpop.permute.xlu0 %1779  ;;  %v2114_v9 = vsel %vm2056_vm9, %v2031_v25, %v7533_v6  ;;  %v3709_v6 = vld [vmem:[#allocation2 + $0x48] sm:$0xff]  }
 0x235   :  { %1246 = vrot.lane.b32.xlu1 %v1104_v45, %s3871_s1  ;;  %3463 = vmatmul.mubr.msk.bf16.gmra.mrb[28].mxu0 %vm2664_vm0, %v2570_v40  ;;  %v2527_v7 = vsel %vm2471_vm14, %v2444_v37, %v1780_v14  ;;  %v7536_v40 = vld [vmem:[#allocation22_spill] sm:$0xff]  ;;  %v1108_v37 = vsel %vm1045_vm2, %v5950_v57, %v6066_v20 }
 0x236   :  { %3466 = vmatprep.mubr.msk.bf16.mxu0 %vm3870_vm5, %v7392_v47  ;;  %1029 = vrot.lane.b32.xlu0 %v7529_v15, %s3868_s28 }
 0x237   :  { %v1020_v34 = vpop.permute.xlu1 %1019 }
 0x238   :  { %v1946_v63 = vpop.permute.xlu0 %1945  ;;  %v2197_v52 = vsel %vm2139_vm10, %v2114_v9, %v1020_v34  ;;  %v7542_v9 = vld [vmem:[#allocation97_spill] sm:$0xff] }
 0x239   :  { %1412 = vrot.lane.b32.xlu1 %v1331_v22, %s3873_s16  ;;  %v2610_v33 = vsel %vm2554_vm15, %v2527_v7, %v1946_v63  ;;  %v1372_v22 = vrot.slane %v6010_v28, 2  ;;  %v6090_v63 = vld [vmem:[#allocation2 + $0x128] sm:$0xff]  }
 0x23a   :  { %1286 = vrot.lane.b32.xlu0 %v1184_v60, %s3871_s1  ;;  %3543 = vmatmul.mubr.msk.bf16.gmra.mrb[24].mxu1 %vm2664_vm0, %v2610_v33  ;;  %v1374_v33 = vrot.slane %v6090_v63, 2  ;;  %v1877_v18 = vrot.slane %v6090_v63, 3 }
 0x23b   :  { %v1277_v39 = vpop.permute.xlu1 %1276  ;;  %3546 = vmatprep.mubr.msk.bf16.mxu1 %vm3870_vm5, %v7392_v47  ;;  %v1373_v30 = vsel %vm1302_vm4, %v1370_v55, %v1372_v22  ;;  %v1691_v55 = vsel %vm1552_vm7, %v5916_v2, %v6030_v21  ;;  %v7534_v2 = vld [vmem:[#allocation98_spill] sm:$0xff] }
 0x23c   :  { %v1237_v54 = vpop.permute.xlu0 %1236  ;;  %v1991_v45 = vsel %vm1973_vm8, %v3706_v53, %v7534_v2  ;;  %v2280_v51 = vsel %vm2222_vm11, %v2197_v52, %v1277_v39  ;;  %v7538_v39 = vld [vmem:[#allocation85_spill] sm:$0xff]  ;;  %v1993_v53 = vsel %vm1973_vm8, %v3709_v6, %v7542_v9  ;;  %v7543_v2 = vld [vmem:[#allocation59_spill] sm:$0xff]  ;;  %v1878_v52 = vsel %vm1807_vm6, %v1875_v4, %v1877_v18 }
 0x23d   :  { %1496 = vrot.lane.b32.xlu1 %v6004_v11, %s3872_s15  ;;  %v2074_v48 = vsel %vm2056_vm9, %v1991_v45, %v7535_v38  ;;  %v2076_v45 = vsel %vm2056_vm9, %v1993_v53, %v7543_v2  ;;  %v1189_v28 = vrot.slane %v7538_v39, 1  ;;  %v1190_v4 = vrot.slane %v7539_v61, 2 }
 0x23e   :  { %1452 = vrot.lane.b32.xlu0 %v5914_v58, %s3873_s16  ;;  %v1185_v58 = vrot.slane %v7530_v35, 1  ;;  %v2157_v23 = vsel %vm2139_vm10, %v2074_v48, %v7536_v40  ;;  %v1692_v35 = vrot.slane %v7538_v39, 2  ;;  %v7548_v39 = vld [vmem:[#allocation44_spill] sm:$0xff] }
 0x23f   :  { %v1443_v19 = vpop.permute.xlu1 %1442  ;;  %v2240_v29 = vsel %vm2222_vm11, %v2157_v23, %v1237_v54  ;;  %v1334_v54 = vrot.slane %v6099_v36, 2 }
 0x240   :  { %v1403_v0 = vpop.permute.xlu0 %1402  ;;  %v6052_v26 = vor.u32 %v1186_v8, %v1185_v58  ;;  %v2363_v14 = vsel %vm2305_vm12, %v2280_v51, %v1443_v19  ;;  %v6112_v8 = vsel %vm1302_vm4, %v1372_v22, %v1374_v33 }
 0x241   :  { %1751 = vrot.lane.b32.xlu1 %v1611_v42, %s3875_s19  ;;  %v2323_v10 = vsel %vm2305_vm12, %v2240_v29, %v1403_v0  ;;  %v7540_v42 = vld [vmem:[#allocation43_spill] sm:$0xff]  ;;  %v7541_v0 = vld [vmem:[#allocation41_spill] sm:$0xff]  ;;  %v1335_v44 = vsel %vm1302_vm4, %v1332_v3, %v1334_v54  ;;  %v7545_v29 = vld [vmem:[#allocation122_spill] sm:$0xff] }
 0x242   :  { %1536 = vrot.lane.b32.xlu0 %v1373_v30, %s3872_s15  ;;  %v1188_v16 = vsel %vm1045_vm2, %v5976_v32, %v6052_v26  ;;  %v1612_v19 = vrot.slane %v7540_v42, 2  ;;  %v1110_v12 = vrot.slane %v7541_v0, 2 }
 0x243   :  { %v1527_v50 = vpop.permute.xlu1 %1526 }
 0x244   :  { %v1487_v41 = vpop.permute.xlu0 %1486  ;;  %v2446_v5 = vsel %vm2388_vm13, %v2363_v14, %v1527_v50  ;;  %v6114_v50 = vor.u32 %v1693_v24, %v1692_v35  ;;  %v1617_v35 = vrot.slane %v7548_v39, 3  ;;  %v7549_v24 = vld [vmem:[#allocation110_spill] sm:$0xff] }
 0x245   :  { %1917 = vrot.lane.b32.xlu1 %v1836_v43, %s3874_s17  ;;  %v2406_v15 = vsel %vm2388_vm13, %v2323_v10, %v1487_v41  ;;  %v1613_v43 = vrot.slane %v7541_v0, 3  ;;  %v1837_v41 = vrot.slane %v6099_v36, 3  ;;  %v1114_v36 = vrot.slane %v7548_v39, 2 }
 0x246   :  { %1791 = vrot.lane.b32.xlu0 %v1691_v55, %s3875_s19  ;;  %v1695_v22 = vsel %vm1552_vm7, %v6030_v21, %v6114_v50 }
 0x247   :  { %v1782_v62 = vpop.permute.xlu1 %1781 }
 0x248   :  { %v1742_v46 = vpop.permute.xlu0 %1741  ;;  %v2529_v13 = vsel %vm2471_vm14, %v2446_v5, %v1782_v62 }
 0x249   :  { %1031 = vrot.lane.b32.xlu1 %v7537_v49, %s3868_s28  ;;  %v2489_v60 = vsel %vm2471_vm14, %v2406_v15, %v1742_v46  ;;  %v3710_v49 = vld [vmem:[#allocation2 + $0xe8] sm:$0xff]  }
 0x24a   :  { %1957 = vrot.lane.b32.xlu0 %v1876_v31, %s3874_s17  ;;  %v1838_v31 = vsel %vm1807_vm6, %v1835_v59, %v1837_v41  ;;  %v2033_v1 = vsel %vm1973_vm8, %v3710_v49, %v7545_v29 }
 0x24b   :  { %v1948_v27 = vpop.permute.xlu1 %1947 }
 0x24c   :  { %v2612_v34 = vsel %vm2554_vm15, %v2529_v13, %v1948_v27  ;;  %v1908_v7 = vpop.permute.xlu0 %1907  ;;  %v6174_v27 = vor.u32 %v1190_v4, %v1189_v28  ;;  %v7553_v4 = vld [vmem:[#allocation148_spill] sm:$0xff] }
 0x24d   :  { %1288 = vrot.lane.b32.xlu1 %v1188_v16, %s3871_s1  ;;  %3547 = vmatmul.mubr.msk.bf16.gmra.mrb[28].mxu1 %vm2664_vm0, %v2612_v34  ;;  %v2572_v32 = vsel %vm2554_vm15, %v2489_v60, %v1908_v7  ;;  %v7546_v16 = vld [vmem:[#allocation149_spill] sm:$0xff]  ;;  %v7547_v7 = vld [vmem:[#allocation52_spill] sm:$0xff] }
 0x24e   :  { %3550 = vmatprep.mubr.msk.bf16.mxu1 %vm3870_vm5, %v7392_v47  ;;  %1248 = vrot.lane.b32.xlu0 %v1108_v37, %s3871_s1  ;;  %v2116_v10 = vsel %vm2056_vm9, %v2033_v1, %v7546_v16  ;;  %v6180_v37 = vld [vmem:[#allocation2 + $0x90] sm:$0xff]   ;;  %v7555_v1 = vld [vmem:[#allocation15_spill] sm:$0xff] }
 0x24f   :  { %3467 = vmatmul.mubr.msk.bf16.gmra.mrb[32].mxu0 %vm2664_vm0, %v2572_v32  ;;  %v1239_v57 = vpop.permute.xlu1 %1238  ;;  %v1336_v60 = vrot.slane %v6180_v37, 2  ;;  %v1616_v32 = vrot.slane %v7547_v7, 2  ;;  %v1839_v9 = vrot.slane %v6180_v37, 3 }
 0x250   :  { %3470 = vmatprep.mubr.msk.bf16.mxu0 %vm3870_vm5, %v7392_v47  ;;  %v1022_v58 = vpop.permute.xlu0 %1021 }
 0x251   :  { %1454 = vrot.lane.b32.xlu1 %v1373_v30, %s3873_s16  ;;  %v6123_v30 = vor.u32 %v1613_v43, %v1612_v19  ;;  %v2199_v15 = vsel %vm2139_vm10, %v2116_v10, %v1022_v58  ;;  %v1192_v19 = vsel %vm1045_vm2, %v6052_v26, %v6174_v27 }
 0x252   :  { %1414 = vrot.lane.b32.xlu0 %v6004_v11, %s3873_s16  ;;  %v1109_v11 = vrot.slane %v7540_v42, 1 }
 0x253   :  { %v1405_v55 = vpop.permute.xlu1 %1404  ;;  %v1615_v3 = vsel %vm1552_vm7, %v6006_v17, %v6123_v30  ;;  %v7544_v17 = vld [vmem:[#allocation23_spill] sm:$0xff] }
 0x254   :  { %v1279_v56 = vpop.permute.xlu0 %1278  ;;  %v6148_v62 = vor.u32 %v1110_v12, %v1109_v11  ;;  %v2159_v38 = vsel %vm2139_vm10, %v2076_v45, %v7544_v17  ;;  %v7550_v11 = vld [vmem:[#allocation91_spill] sm:$0xff] }
 0x255   :  { %1538 = vrot.lane.b32.xlu1 %v6112_v8, %s3872_s15  ;;  %v2242_v51 = vsel %vm2222_vm11, %v2159_v38, %v1239_v57  ;;  %v1696_v12 = vrot.slane %v7550_v11, 2 }
 0x256   :  { %1498 = vrot.lane.b32.xlu0 %v1335_v44, %s3872_s15  ;;  %v2325_v40 = vsel %vm2305_vm12, %v2242_v51, %v1405_v55  ;;  %v1112_v46 = vsel %vm1045_vm2, %v6066_v20, %v6148_v62  ;;  %v2282_v20 = vsel %vm2222_vm11, %v2199_v15, %v1279_v56  ;;  %v6202_v55 = vsel %vm1302_vm4, %v1334_v54, %v1336_v60  ;;  %v3713_v51 = vld [vmem:[#allocation2 + $0xf0] sm:$0xff]  }
 0x257   :  { %v1489_v25 = vpop.permute.xlu1 %1488  ;;  %v6204_v56 = vor.u32 %v1617_v35, %v1616_v32 }
 0x258   :  { %v1445_v21 = vpop.permute.xlu0 %1444  ;;  %v2408_v14 = vsel %vm2388_vm13, %v2325_v40, %v1489_v25  ;;  %v7551_v25 = vld [vmem:[#allocation86_spill] sm:$0xff] }
 0x259   :  { %1793 = vrot.lane.b32.xlu1 %v1695_v22, %s3875_s19  ;;  %v2365_v61 = vsel %vm2305_vm12, %v2282_v20, %v1445_v21  ;;  %v6208_v22 = vld [vmem:[#allocation2 + $0x130] sm:$0xff]   ;;  %v1619_v6 = vsel %vm1552_vm7, %v6123_v30, %v6204_v56  ;;  %v1840_v30 = vsel %vm1807_vm6, %v1837_v41, %v1839_v9 }
 0x25a   :  { %1753 = vrot.lane.b32.xlu0 %v1615_v3, %s3875_s19  ;;  %v1697_v3 = vrot.slane %v7551_v25, 3  ;;  %v1879_v38 = vrot.slane %v6208_v22, 3  ;;  %v7552_v41 = vld [vmem:[#allocation125_spill] sm:$0xff] }
 0x25b   :  { %v1744_v48 = vpop.permute.xlu1 %1743 }
 0x25c   :  { %v1529_v23 = vpop.permute.xlu0 %1528  ;;  %v2491_v59 = vsel %vm2471_vm14, %v2408_v14, %v1744_v48  ;;  %v6230_v2 = vor.u32 %v1697_v3, %v1696_v12  ;;  %v1113_v48 = vrot.slane %v7547_v7, 1  ;;  %v3714_v14 = vld [vmem:[#allocation2 + $0x50] sm:$0xff]   ;;  %v1880_v16 = vsel %vm1807_vm6, %v1877_v18, %v1879_v38  ;;  %v7557_v7 = vld [vmem:[#allocation115_spill] sm:$0xff] }
 0x25d   :  { %1959 = vrot.lane.b32.xlu1 %v1878_v52, %s3874_s17  ;;  %v2448_v42 = vsel %vm2388_vm13, %v2365_v61, %v1529_v23  ;;  %v1194_v52 = vrot.slane %v7551_v25, 2  ;;  %v7559_v25 = vld [vmem:[#allocation87_spill] sm:$0xff] }
 0x25e   :  { %1919 = vrot.lane.b32.xlu0 %v1838_v31, %s3874_s17  ;;  %v1699_v17 = vsel %vm1552_vm7, %v6114_v50, %v6230_v2  ;;  %v2035_v31 = vsel %vm1973_vm8, %v3713_v51, %v7552_v41  ;;  %v7554_v50 = vld [vmem:[#allocation100_spill] sm:$0xff]  ;;  %v6267_v10 = vor.u32 %v1114_v36, %v1113_v48  ;;  %v1701_v3 = vrot.slane %v7559_v25, 3 }
 0x25f   :  { %v1910_v5 = vpop.permute.xlu1 %1909  ;;  %v2118_v40 = vsel %vm2056_vm9, %v2035_v31, %v7553_v4 }
 0x260   :  { %v2574_v13 = vsel %vm2554_vm15, %v2491_v59, %v1910_v5  ;;  %v1784_v34 = vpop.permute.xlu0 %1783 }
 0x261   :  { %1250 = vrot.lane.b32.xlu1 %v1112_v46, %s3871_s1  ;;  %3471 = vmatmul.mubr.msk.bf16.gmra.mrb[36].mxu0 %vm2664_vm0, %v2574_v13  ;;  %v2531_v0 = vsel %vm2471_vm14, %v2448_v42, %v1784_v34  ;;  %v1995_v46 = vsel %vm1973_vm8, %v3714_v14, %v7554_v50  ;;  %v7556_v13 = vld [vmem:[#allocation157_spill] sm:$0xff]  ;;  %v1116_v42 = vsel %vm1045_vm2, %v6148_v62, %v6267_v10 }
 0x262   :  { %3474 = vmatprep.mubr.msk.bf16.mxu0 %vm3870_vm5, %v7392_v47  ;;  %1033 = vrot.lane.b32.xlu0 %v7549_v24, %s3868_s28  ;;  %v2078_v59 = vsel %vm2056_vm9, %v1995_v46, %v7555_v1 }
 0x263   :  { %v1024_v57 = vpop.permute.xlu1 %1023  ;;  %v2161_v15 = vsel %vm2139_vm10, %v2078_v59, %v7556_v13 }
 0x264   :  { %v1950_v43 = vpop.permute.xlu0 %1949  ;;  %v2201_v49 = vsel %vm2139_vm10, %v2118_v40, %v1024_v57 }
 0x265   :  { %1416 = vrot.lane.b32.xlu1 %v1335_v44, %s3873_s16  ;;  %v2614_v58 = vsel %vm2554_vm15, %v2531_v0, %v1950_v43  ;;  %v1376_v44 = vrot.slane %v6208_v22, 2 }
 0x266   :  { %1290 = vrot.lane.b32.xlu0 %v1192_v19, %s3871_s1  ;;  %3551 = vmatmul.mubr.msk.bf16.gmra.mrb[32].mxu1 %vm2664_vm0, %v2614_v58  ;;  %v6293_v58 = vld [vmem:[#allocation2 + $0x138] sm:$0xff]  }
 0x267   :  { %v1281_v26 = vpop.permute.xlu1 %1280  ;;  %3554 = vmatprep.mubr.msk.bf16.mxu1 %vm3870_vm5, %v7392_v47  ;;  %v6228_v21 = vsel %vm1302_vm4, %v1374_v33, %v1376_v44  ;;  %v1881_v46 = vrot.slane %v6293_v58, 3 }
 0x268   :  { %v1241_v54 = vpop.permute.xlu0 %1240  ;;  %v2284_v5 = vsel %vm2222_vm11, %v2201_v49, %v1281_v26  ;;  %v1378_v26 = vrot.slane %v6293_v58, 2 }
 0x269   :  { %1500 = vrot.lane.b32.xlu1 %v6202_v55, %s3872_s15  ;;  %v2244_v32 = vsel %vm2222_vm11, %v2161_v15, %v1241_v54  ;;  %v7563_v15 = vld [vmem:[#allocation139_spill] sm:$0xff] }
 0x26a   :  { %1456 = vrot.lane.b32.xlu0 %v6112_v8, %s3873_s16  ;;  %v1193_v8 = vrot.slane %v7550_v11, 1  ;;  %v7558_v11 = vld [vmem:[#allocation89_spill] sm:$0xff] }
 0x26b   :  { %v1447_v53 = vpop.permute.xlu1 %1446  ;;  %v1700_v12 = vrot.slane %v7558_v11, 2  ;;  %v1197_v22 = vrot.slane %v7558_v11, 1 }
 0x26c   :  { %v1407_v45 = vpop.permute.xlu0 %1406  ;;  %v6253_v23 = vor.u32 %v1194_v52, %v1193_v8  ;;  %v2367_v34 = vsel %vm2305_vm12, %v2284_v5, %v1447_v53  ;;  %v7560_v8 = vld [vmem:[#allocation47_spill] sm:$0xff]  ;;  %v3717_v5 = vld [vmem:[#allocation2 + $0x58] sm:$0xff]  }
 0x26d   :  { %1755 = vrot.lane.b32.xlu1 %v1619_v6, %s3875_s19  ;;  %v2327_v18 = vsel %vm2305_vm12, %v2244_v32, %v1407_v45  ;;  %v6303_v45 = vld [vmem:[#allocation2 + $0x98] sm:$0xff]   ;;  %v1620_v52 = vrot.slane %v7560_v8, 2  ;;  %v6320_v4 = vor.u32 %v1701_v3, %v1700_v12  ;;  %v1117_v49 = vrot.slane %v7560_v8, 1 }
 0x26e   :  { %1540 = vrot.lane.b32.xlu0 %v6228_v21, %s3872_s15  ;;  %v1196_v63 = vsel %vm1045_vm2, %v6174_v27, %v6253_v23  ;;  %v6289_v27 = vld [vmem:[#allocation8] ss:$0 sm:$0xff]  ;;  %v1841_v59 = vrot.slane %v6303_v45, 3 }
 0x26f   :  { %v1531_v33 = vpop.permute.xlu1 %1530 }
 0x270   :  { %v1491_v28 = vpop.permute.xlu0 %1490  ;;  %v2450_v39 = vsel %vm2388_vm13, %v2367_v34, %v1531_v33  ;;  %v7561_v33 = vld [vmem:[#allocation45_spill] sm:$0xff] }
 0x271   :  { %1921 = vrot.lane.b32.xlu1 %v1840_v30, %s3874_s17  ;;  %v2410_v24 = vsel %vm2388_vm13, %v2327_v18, %v1491_v28  ;;  %v1338_v30 = vrot.slane %v6303_v45, 2  ;;  %v6318_v28 = vsel %vm1302_vm4, %v1376_v44, %v1378_v26  ;;  %v1842_v18 = vsel %vm1807_vm6, %v1839_v9, %v1841_v59 }
 0x272   :  { %1795 = vrot.lane.b32.xlu0 %v1699_v17, %s3875_s19  ;;  %v1621_v17 = vrot.slane %v7561_v33, 3 }
 0x273   :  { %v1786_v29 = vpop.permute.xlu1 %1785  ;;  %v6330_v14 = vsel %vm1302_vm4, %v1336_v60, %v1338_v30 }
 0x274   :  { %v1746_v20 = vpop.permute.xlu0 %1745  ;;  %v2533_v35 = vsel %vm2471_vm14, %v2450_v39, %v1786_v29  ;;  %v6332_v50 = vor.u32 %v1621_v17, %v1620_v52  ;;  %v1118_v29 = vrot.slane %v7561_v33, 2  ;;  %v6392_v33 = vld [vmem:[#allocation2 + $0xa0] sm:$0xff]  }
 0x275   :  { %1035 = vrot.lane.b32.xlu1 %v7557_v7, %s3868_s28  ;;  %v2493_v19 = vsel %vm2471_vm14, %v2410_v24, %v1746_v20  ;;  %v1882_v20 = vsel %vm1807_vm6, %v1879_v38, %v1881_v46  ;;  %v1198_v38 = vrot.slane %v7559_v25, 2  ;;  %v1340_v17 = vrot.slane %v6392_v33, 2 }
 0x276   :  { %1961 = vrot.lane.b32.xlu0 %v1880_v16, %s3874_s17  ;;  %v1623_v1 = vsel %vm1552_vm7, %v6204_v56, %v6332_v50  ;;  %v7562_v16 = vld [vmem:[#allocation99_spill] sm:$0xff]  ;;  %v6359_v7 = vor.u32 %v1118_v29, %v1117_v49  ;;  %v7564_v56 = vld [vmem:[#allocation156_spill] sm:$0xff] }
 0x277   :  { %v1952_v61 = vpop.permute.xlu1 %1951  ;;  %v6385_v3 = vor.u32 %v1198_v38, %v1197_v22  ;;  %v7570_v38 = vld [vmem:[#allocation93_spill] sm:$0xff] }
 0x278   :  { %v2616_v57 = vsel %vm2554_vm15, %v2533_v35, %v1952_v61  ;;  %v1912_v0 = vpop.permute.xlu0 %1911 }
 0x279   :  { %1292 = vrot.lane.b32.xlu1 %v1196_v63, %s3871_s1  ;;  %3555 = vmatmul.mubr.msk.bf16.gmra.mrb[36].mxu1 %vm2664_vm0, %v2616_v57  ;;  %v2576_v43 = vsel %vm2554_vm15, %v2493_v19, %v1912_v0  ;;  %v1120_v57 = vsel %vm1045_vm2, %v6267_v10, %v6359_v7  ;;  %v7565_v19 = vld [vmem:[#allocation124_spill] sm:$0xff] }
 0x27a   :  { %3558 = vmatprep.mubr.msk.bf16.mxu1 %vm3870_vm5, %v7392_v47  ;;  %v2785_v62 = vpop.f32.mrb[0].mxu0  ;;  %1252 = vrot.lane.b32.xlu0 %v1116_v42, %s3871_s1  ;;  %v3718_v42 = vld [vmem:[#allocation2 + $0xf8] sm:$0xff]  }
 0x27b   :  { %3475 = vmatmul.mubr.msk.bf16.gmra.mrb[40].mxu0 %vm2664_vm0, %v2576_v43  ;;  %v1243_v54 = vpop.permute.xlu1 %1242  ;;  %v2786_v6 = vadd.f32 %v6289_v27, %v2785_v62  ;;  %v3436_v53 = vpop.f32.mrb[1].mxu0  ;;  %v2037_v37 = vsel %vm1973_vm8, %v3718_v42, %v7565_v19  ;;  %v7566_v43 = vld [vmem:[#allocation151_spill] sm:$0xff]  ;;  %v1843_v42 = vrot.slane %v6392_v33, 3 }
 0x27c   :  { %3478 = vmatprep.mubr.msk.bf16.mxu0 %vm3870_vm5, %v7392_v47  ;;  %v2788_v48 = vpop.f32.mrb[2].mxu0  ;;  %v1026_v36 = vpop.permute.xlu0 %1025  ;;  %v2120_v11 = vsel %vm2056_vm9, %v2037_v37, %v7566_v43 }
 0x27d   :  { %1458 = vrot.lane.b32.xlu1 %v6228_v21, %s3873_s16  ;;  %v3112_v51 = vmax.f32 %v2786_v6, 0.0  ;;  %v2789_v41 = vadd.f32 %v6289_v27, %v2788_v48  ;;  %v3437_v31 = vpop.f32.mrb[3].mxu0  ;;  %v2203_v62 = vsel %vm2139_vm10, %v2120_v11, %v1026_v36  ;;  %v7567_v48 = vld [vmem:[#allocation56_spill] sm:$0xff] }
 0x27e   :  { %1418 = vrot.lane.b32.xlu0 %v6202_v55, %s3873_s16  ;;  %v1703_v55 = vsel %vm1552_vm7, %v6230_v2, %v6320_v4  ;;  %v1997_v2 = vsel %vm1973_vm8, %v3717_v5, %v7562_v16  ;;  %v1200_v16 = vsel %vm1045_vm2, %v6253_v23, %v6385_v3  ;;  %v6419_v23 = vsel %vm1302_vm4, %v1338_v30, %v1340_v17  ;;  %v7571_v30 = vld [vmem:[#allocation90_spill] sm:$0xff] }
 0x27f   :  { %v1409_v40 = vpop.permute.xlu1 %1408  ;;  %3194 = vst.msk [vmem:[#allocation10] sm:$0xff] %vm2056_vm9, %v3112_v51  ;;  %v3113_v21 = vmax.f32 %v2789_v41, 0.0  ;;  %v2080_v34 = vsel %vm2056_vm9, %v1997_v2, %v7563_v15  ;;  %v1624_v51 = vrot.slane %v7567_v48, 2  ;;  %v7568_v41 = vld [vmem:[#allocation48_spill] sm:$0xff]  ;;  %v1202_v43 = vrot.slane %v7571_v30, 2 }
 0x280   :  { %v1283_v44 = vpop.permute.xlu0 %1282  ;;  %v2163_v32 = vsel %vm2139_vm10, %v2080_v34, %v7564_v56  ;;  %v1625_v36 = vrot.slane %v7568_v41, 3  ;;  %v1122_v45 = vrot.slane %v7568_v41, 2 }
 0x281   :  { %1542 = vrot.lane.b32.xlu1 %v6318_v28, %s3872_s15  ;;  %3195 = vst.msk [vmem:[#allocation10 + $0x8] sm:$0xff] %vm2056_vm9, %v3113_v21  ;;  %v2246_v63 = vsel %vm2222_vm11, %v2163_v32, %v1243_v54  ;;  %v2286_v53 = vsel %vm2222_vm11, %v2203_v62, %v1283_v44  ;;  %v7569_v44 = vld [vmem:[#allocation114_spill] sm:$0xff] }
 0x282   :  { %1502 = vrot.lane.b32.xlu0 %v6330_v14, %s3872_s15  ;;  %v2329_v35 = vsel %vm2305_vm12, %v2246_v63, %v1409_v40  ;;  %v3721_v62 = vld [vmem:[#allocation2 + $0x100] sm:$0xff]  }
 0x283   :  { %v1493_v60 = vpop.permute.xlu1 %1492 }
 0x284   :  { %v1449_v13 = vpop.permute.xlu0 %1448  ;;  %v2412_v24 = vsel %vm2388_vm13, %v2329_v35, %v1493_v60  ;;  %v1704_v35 = vrot.slane %v7570_v38, 2 }
 0x285   :  { %1797 = vrot.lane.b32.xlu1 %v1703_v55, %s3875_s19  ;;  %v2369_v31 = vsel %vm2305_vm12, %v2286_v53, %v1449_v13  ;;  %v7573_v53 = vld [vmem:[#allocation102_spill] sm:$0xff] }
 0x286   :  { %1757 = vrot.lane.b32.xlu0 %v1623_v1, %s3875_s19 }
 0x287   :  { %v1748_v39 = vpop.permute.xlu1 %1747 }
 0x288   :  { %v1533_v61 = vpop.permute.xlu0 %1532  ;;  %v2495_v9 = vsel %vm2471_vm14, %v2412_v24, %v1748_v39  ;;  %v6421_v39 = vor.u32 %v1625_v36, %v1624_v51  ;;  %v7575_v36 = vld [vmem:[#allocation138_spill] sm:$0xff] }
 0x289   :  { %1963 = vrot.lane.b32.xlu1 %v1882_v20, %s3874_s17  ;;  %v2452_v60 = vsel %vm2388_vm13, %v2369_v31, %v1533_v61  ;;  %v1705_v61 = vrot.slane %v7571_v30, 3 }
 0x28a   :  { %1923 = vrot.lane.b32.xlu0 %v1842_v18, %s3874_s17  ;;  %v6427_v18 = vld [vmem:[#allocation2 + $0x140] sm:$0xff]  }
 0x28b   :  { %v1914_v0 = vpop.permute.xlu1 %1913  ;;  %v1380_v22 = vrot.slane %v6427_v18, 2 }
 0x28c   :  { %v2578_v12 = vsel %vm2554_vm15, %v2495_v9, %v1914_v0  ;;  %v2953_v25 = vpop.f32.mrb[0].mxu1  ;;  %v1788_v10 = vpop.permute.xlu0 %1787  ;;  %v6450_v9 = vor.u32 %v1705_v61, %v1704_v35 }
 0x28d   :  { %v2954_v54 = vadd.f32 %v6289_v27, %v2953_v25  ;;  %1254 = vrot.lane.b32.xlu1 %v1120_v57, %s3871_s1  ;;  %v3520_v6 = vpop.f32.mrb[1].mxu1  ;;  %3479 = vmatmul.mubr.msk.bf16.gmra.mrb[44].mxu0 %vm2664_vm0, %v2578_v12  ;;  %v2535_v2 = vsel %vm2471_vm14, %v2452_v60, %v1788_v10  ;;  %v1627_v57 = vsel %vm1552_vm7, %v6332_v50, %v6421_v39  ;;  %v1883_v12 = vrot.slane %v6427_v18, 3 }
 0x28e   :  { %v2793_v8 = vpop.f32.mrb[4].mxu0  ;;  %v2956_v52 = vpop.f32.mrb[2].mxu1  ;;  %3482 = vmatprep.mubr.msk.bf16.mxu0 %vm3870_vm5, %v7392_v47  ;;  %1037 = vrot.lane.b32.xlu0 %v7569_v44, %s3868_s28  ;;  %v6448_v37 = vsel %vm1302_vm4, %v1378_v26, %v1380_v22  ;;  %v1844_v50 = vsel %vm1807_vm6, %v1841_v59, %v1843_v42  ;;  %v1707_v11 = vsel %vm1552_vm7, %v6320_v4, %v6450_v9  ;;  %v1121_v25 = vrot.slane %v7567_v48, 1  ;;  %v7572_v59 = vld [vmem:[#allocation127_spill] sm:$0xff] }
 0x28f   :  { %v2794_v40 = vadd.f32 %v6289_v27, %v2793_v8  ;;  %v3154_v21 = vmax.f32 %v2954_v54, 0.0  ;;  %v3440_v55 = vpop.f32.mrb[5].mxu0  ;;  %v2957_v49 = vadd.f32 %v6289_v27, %v2956_v52  ;;  %v1028_v29 = vpop.permute.xlu1 %1027  ;;  %v2039_v10 = vsel %vm1973_vm8, %v3721_v62, %v7572_v59  ;;  %v3722_v6 = vld [vmem:[#allocation2 + $0x60] sm:$0xff]  }
 0x290   :  { %v2796_v1 = vpop.f32.mrb[6].mxu0  ;;  %v3521_v5 = vpop.f32.mrb[3].mxu1  ;;  %v1999_v8 = vsel %vm1973_vm8, %v3722_v6, %v7573_v53  ;;  %v7574_v52 = vld [vmem:[#allocation150_spill] sm:$0xff]  ;;  %v6489_v60 = vor.u32 %v1122_v45, %v1121_v25  ;;  %v6529_v53 = vld [vmem:[#allocation2 + $0xa8] sm:$0xff]  }
 0x291   :  { %v3114_v13 = vmax.f32 %v2794_v40, 0.0  ;;  %3236 = vst.msk [vmem:[#allocation10 + $0x150] sm:$0xff] %vm2056_vm9, %v3154_v21  ;;  %v2797_v15 = vadd.f32 %v6289_v27, %v2796_v1  ;;  %v3155_v34 = vmax.f32 %v2957_v49, 0.0  ;;  %v3441_v20 = vpop.f32.mrb[7].mxu0  ;;  %v1954_v56 = vpop.permute.xlu0 %1953  ;;  %1420 = vrot.lane.b32.xlu1 %v6330_v14, %s3873_s16  ;;  %v2122_v4 = vsel %vm2056_vm9, %v2039_v10, %v7574_v52  ;;  %v7576_v40 = vld [vmem:[#allocation159_spill] sm:$0xff]  ;;  %v7578_v59 = vld [vmem:[#allocation94_spill] sm:$0xff] }
 0x292   :  { %v2618_v32 = vsel %vm2554_vm15, %v2535_v2, %v1954_v56  ;;  %1294 = vrot.lane.b32.xlu0 %v1200_v16, %s3871_s1  ;;  %v2082_v48 = vsel %vm2056_vm9, %v1999_v8, %v7575_v36  ;;  %v2205_v41 = vsel %vm2139_vm10, %v2122_v4, %v1028_v29  ;;  %v1884_v49 = vsel %vm1807_vm6, %v1881_v46, %v1883_v12  ;;  %v7577_v2 = vld [vmem:[#allocation118_spill] sm:$0xff]  ;;  %v6501_v56 = vld [vmem:[#allocation5] sm:$0xff]   ;;  %v7579_v52 = vld [vmem:[#allocation53_spill] sm:$0xff] }
 0x293   :  { %3196 = vst.msk [vmem:[#allocation10 + $0x10] sm:$0xff] %vm2056_vm9, %v3114_v13  ;;  %v3115_v63 = vmax.f32 %v2797_v15, 0.0  ;;  %3237 = vst.msk [vmem:[#allocation10 + $0x158] sm:$0xff] %vm2056_vm9, %v3155_v34  ;;  %3559 = vmatmul.mubr.msk.bf16.gmra.mrb[40].mxu1 %vm2664_vm0, %v2618_v32  ;;  %v1285_v14 = vpop.permute.xlu1 %1284  ;;  %v2165_v21 = vsel %vm2139_vm10, %v2082_v48, %v7576_v40  ;;  %v1205_v32 = vshrl.u32 %v6501_v56, 16  ;;  %v1382_v62 = vrot.slane %v6501_v56, 2  ;;  %v7580_v36 = vld [vmem:[#allocation50_spill] sm:$0xff] }
 0x294   :  { %3562 = vmatprep.mubr.msk.bf16.mxu1 %vm3870_vm5, %v7392_v47  ;;  %v2288_v55 = vsel %vm2222_vm11, %v2205_v41, %v1285_v14  ;;  %v1709_v10 = vrot.slane %v7578_v59, 3  ;;  %v1342_v8 = vrot.slane %v6529_v53, 2  ;;  %v1628_v4 = vrot.slane %v7579_v52, 2 }
 0x295   :  { %3197 = vst.msk [vmem:[#allocation10 + $0x18] sm:$0xff] %vm2056_vm9, %v3115_v63  ;;  %v1245_v24 = vpop.permute.xlu0 %1244  ;;  %1504 = vrot.lane.b32.xlu1 %v6419_v23, %s3872_s15  ;;  %v1629_v48 = vrot.slane %v7580_v36, 3  ;;  %v1207_v18 = vrot.slane %v1205_v32, 1 }
 0x296   :  { %1460 = vrot.lane.b32.xlu0 %v6318_v28, %s3873_s16  ;;  %v1201_v28 = vrot.slane %v7570_v38, 1  ;;  %v2248_v1 = vsel %vm2222_vm11, %v2165_v21, %v1245_v24 }
 0x297   :  { %v1451_v19 = vpop.permute.xlu1 %1450 }
 0x298   :  { %v6475_v51 = vor.u32 %v1202_v43, %v1201_v28  ;;  %v2371_v29 = vsel %vm2305_vm12, %v2288_v55, %v1451_v19  ;;  %v6555_v55 = vsel %vm1302_vm4, %v1340_v17, %v1342_v8 }
 0x299   :  { %v1411_v0 = vpop.permute.xlu0 %1410  ;;  %1759 = vrot.lane.b32.xlu1 %v1627_v57, %s3875_s19 }
 0x29a   :  { %1544 = vrot.lane.b32.xlu0 %v6448_v37, %s3872_s15  ;;  %v2331_v15 = vsel %vm2305_vm12, %v2248_v1, %v1411_v0  ;;  %v1204_v46 = vsel %vm1045_vm2, %v6385_v3, %v6475_v51  ;;  %v1124_v0 = vsel %vm1045_vm2, %v6359_v7, %v6489_v60  ;;  %v1708_v7 = vrot.slane %v1205_v32, 2 }
 0x29b   :  { %v1535_v26 = vpop.permute.xlu1 %1534  ;;  %v1126_v1 = vrot.slane %v7580_v36, 2 }
 0x29c   :  { %v2454_v34 = vsel %vm2388_vm13, %v2371_v29, %v1535_v26  ;;  %v6546_v40 = vor.u32 %v1709_v10, %v1708_v7  ;;  %v7585_v7 = vld [vmem:[#allocation153_spill] sm:$0xff] }
 0x29d   :  { %v1495_v54 = vpop.permute.xlu0 %1494  ;;  %1925 = vrot.lane.b32.xlu1 %v1844_v50, %s3874_s17 }
 0x29e   :  { %1799 = vrot.lane.b32.xlu0 %v1707_v11, %s3875_s19  ;;  %v2414_v24 = vsel %vm2388_vm13, %v2331_v15, %v1495_v54  ;;  %v7582_v15 = vld [vmem:[#allocation141_spill] sm:$0xff] }
 0x29f   :  { %v1790_v31 = vpop.permute.xlu1 %1789 }
 0x2a0   :  { %v2961_v44 = vpop.f32.mrb[4].mxu1  ;;  %v2537_v63 = vsel %vm2471_vm14, %v2454_v34, %v1790_v31  ;;  %v6544_v31 = vsel %vm1302_vm4, %v1380_v22, %v1382_v62  ;;  %v1711_v22 = vsel %vm1552_vm7, %v6450_v9, %v6546_v40 }
 0x2a1   :  { %v1750_v5 = vpop.permute.xlu0 %1749  ;;  %v2962_v16 = vadd.f32 %v6289_v27, %v2961_v44  ;;  %1039 = vrot.lane.b32.xlu1 %v7577_v2, %s3868_s28  ;;  %v3524_v13 = vpop.f32.mrb[5].mxu1  ;;  %v7581_v2 = vld [vmem:[#allocation101_spill] sm:$0xff] }
 0x2a2   :  { %v2801_v58 = vpop.f32.mrb[8].mxu0  ;;  %v2964_v20 = vpop.f32.mrb[6].mxu1  ;;  %1965 = vrot.lane.b32.xlu0 %v1884_v49, %s3874_s17  ;;  %v2497_v50 = vsel %vm2471_vm14, %v2414_v24, %v1750_v5  ;;  %v1125_v49 = vrot.slane %v7579_v52, 1  ;;  %v1845_v5 = vrot.slane %v6529_v53, 3 }
 0x2a3   :  { %v2802_v14 = vadd.f32 %v6289_v27, %v2801_v58  ;;  %v3156_v38 = vmax.f32 %v2962_v16, 0.0  ;;  %v3444_v35 = vpop.f32.mrb[9].mxu0  ;;  %v2965_v30 = vadd.f32 %v6289_v27, %v2964_v20  ;;  %v1956_v61 = vpop.permute.xlu1 %1955  ;;  %v3725_v16 = vld [vmem:[#allocation2 + $0x68] sm:$0xff]  }
 0x2a4   :  { %v2804_v57 = vpop.f32.mrb[10].mxu0  ;;  %v2620_v3 = vsel %vm2554_vm15, %v2537_v63, %v1956_v61  ;;  %v3525_v19 = vpop.f32.mrb[7].mxu1  ;;  %v2001_v9 = vsel %vm1973_vm8, %v3725_v16, %v7581_v2  ;;  %v6583_v20 = vor.u32 %v1126_v1, %v1125_v49  ;;  %v1846_v35 = vsel %vm1807_vm6, %v1843_v42, %v1845_v5  ;;  %v7587_v16 = vld [vmem:[#allocation54_spill] sm:$0xff] }
 0x2a5   :  { %v3116_v28 = vmax.f32 %v2802_v14, 0.0  ;;  %3238 = vst.msk [vmem:[#allocation10 + $0x160] sm:$0xff] %vm2056_vm9, %v3156_v38  ;;  %v2805_v43 = vadd.f32 %v6289_v27, %v2804_v57  ;;  %v3157_v26 = vmax.f32 %v2965_v30, 0.0  ;;  %v3445_v11 = vpop.f32.mrb[11].mxu0  ;;  %v1916_v25 = vpop.permute.xlu0 %1915  ;;  %1296 = vrot.lane.b32.xlu1 %v1204_v46, %s3871_s1  ;;  %3563 = vmatmul.mubr.msk.bf16.gmra.mrb[44].mxu1 %vm2664_vm0, %v2620_v3  ;;  %v2084_v34 = vsel %vm2056_vm9, %v2001_v9, %v7582_v15  ;;  %v3726_v3 = vld [vmem:[#allocation2 + $0x108] sm:$0xff]   ;;  %v7584_v19 = vld [vmem:[#allocation126_spill] sm:$0xff] }
 0x2a6   :  { %v2580_v45 = vsel %vm2554_vm15, %v2497_v50, %v1916_v25  ;;  %3566 = vmatprep.mubr.msk.bf16.mxu1 %vm3870_vm5, %v7392_v47  ;;  %1256 = vrot.lane.b32.xlu0 %v1124_v0, %s3871_s1  ;;  %v2041_v0 = vsel %vm1973_vm8, %v3726_v3, %v7584_v19  ;;  %v1128_v32 = vsel %vm1045_vm2, %v6489_v60, %v6583_v20  ;;  %v6615_v60 = vld [vmem:[#allocation5 + $0x8] sm:$0xff]   ;;  %v1633_v2 = vrot.slane %v7587_v16, 3 }
 0x2a7   :  { %3198 = vst.msk [vmem:[#allocation10 + $0x20] sm:$0xff] %vm2056_vm9, %v3116_v28  ;;  %v3117_v54 = vmax.f32 %v2805_v43, 0.0  ;;  %3239 = vst.msk [vmem:[#allocation10 + $0x168] sm:$0xff] %vm2056_vm9, %v3157_v26  ;;  %3483 = vmatmul.mubr.msk.bf16.gmra.mrb[48].mxu0 %vm2664_vm0, %v2580_v45  ;;  %v1247_v6 = vpop.permute.xlu1 %1246  ;;  %v7588_v15 = vld [vmem:[#allocation117_spill] sm:$0xff] }
 0x2a8   :  { %3486 = vmatprep.mubr.msk.bf16.mxu0 %vm3870_vm5, %v7392_v47 }
 0x2a9   :  { %3199 = vst.msk [vmem:[#allocation10 + $0x28] sm:$0xff] %vm2056_vm9, %v3117_v54  ;;  %v1030_v41 = vpop.permute.xlu0 %1029  ;;  %1462 = vrot.lane.b32.xlu1 %v6448_v37, %s3873_s16  ;;  %v6557_v37 = vor.u32 %v1629_v48, %v1628_v4 }
 0x2aa   :  { %1422 = vrot.lane.b32.xlu0 %v6419_v23, %s3873_s16  ;;  %v1885_v23 = vrot.slane %v6501_v56, 3 }
 0x2ab   :  { %v1413_v21 = vpop.permute.xlu1 %1412  ;;  %v1631_v29 = vsel %vm1552_vm7, %v6421_v39, %v6557_v37  ;;  %v7583_v39 = vld [vmem:[#allocation158_spill] sm:$0xff] }
 0x2ac   :  { %v1886_v58 = vsel %vm1807_vm6, %v1883_v12, %v1885_v23  ;;  %v2167_v46 = vsel %vm2139_vm10, %v2084_v34, %v7583_v39  ;;  %v1208_v12 = vrot.slane %v7578_v59, 2  ;;  %v2124_v59 = vsel %vm2056_vm9, %v2041_v0, %v7585_v7  ;;  %v3729_v7 = vld [vmem:[#allocation2 + $0x110] sm:$0xff]  }
 0x2ad   :  { %v1287_v44 = vpop.permute.xlu0 %1286  ;;  %1546 = vrot.lane.b32.xlu1 %v6544_v31, %s3872_s15  ;;  %v2250_v14 = vsel %vm2222_vm11, %v2167_v46, %v1247_v6  ;;  %v2207_v4 = vsel %vm2139_vm10, %v2124_v59, %v1030_v41  ;;  %v1212_v39 = vshrl.u32 %v6615_v60, 16  ;;  %v1215_v46 = vshll.u32 %v6615_v60, 16 }
 0x2ae   :  { %1506 = vrot.lane.b32.xlu0 %v6555_v55, %s3872_s15  ;;  %v2333_v30 = vsel %vm2305_vm12, %v2250_v14, %v1413_v21  ;;  %v6613_v52 = vor.u32 %v1208_v12, %v1207_v18  ;;  %v2290_v1 = vsel %vm2222_vm11, %v2207_v4, %v1287_v44  ;;  %v7593_v4 = vld [vmem:[#allocation140_spill] sm:$0xff] }
 0x2af   :  { %v1497_v17 = vpop.permute.xlu1 %1496 }
 0x2b0   :  { %v2416_v33 = vsel %vm2388_vm13, %v2333_v30, %v1497_v17  ;;  %v7586_v17 = vld [vmem:[#allocation60_spill] sm:$0xff]  ;;  %v1384_v30 = vrot.slane %v6615_v60, 2 }
 0x2b1   :  { %v1453_v13 = vpop.permute.xlu0 %1452  ;;  %1801 = vrot.lane.b32.xlu1 %v1711_v22, %s3875_s19 }
 0x2b2   :  { %1761 = vrot.lane.b32.xlu0 %v1631_v29, %s3875_s19  ;;  %v1632_v29 = vrot.slane %v7586_v17, 2  ;;  %v2373_v41 = vsel %vm2305_vm12, %v2290_v1, %v1453_v13  ;;  %v6672_v0 = vsel %vm1302_vm4, %v1382_v62, %v1384_v30 }
 0x2b3   :  { %v1752_v63 = vpop.permute.xlu1 %1751 }
 0x2b4   :  { %v2969_v38 = vpop.f32.mrb[8].mxu1  ;;  %v2499_v28 = vsel %vm2471_vm14, %v2416_v33, %v1752_v63  ;;  %v6650_v18 = vor.u32 %v1633_v2, %v1632_v29  ;;  %v6702_v29 = vld [vmem:[#allocation5 + $0x10] sm:$0xff]  }
 0x2b5   :  { %v1537_v61 = vpop.permute.xlu0 %1536  ;;  %v2970_v24 = vadd.f32 %v6289_v27, %v2969_v38  ;;  %1967 = vrot.lane.b32.xlu1 %v1886_v58, %s3874_s17  ;;  %v3528_v57 = vpop.f32.mrb[9].mxu1  ;;  %v1210_v58 = vsel %vm1045_vm2, %v6475_v51, %v6613_v52  ;;  %v7589_v38 = vld [vmem:[#allocation49_spill] sm:$0xff] }
 0x2b6   :  { %v2809_v42 = vpop.f32.mrb[12].mxu0  ;;  %v2972_v50 = vpop.f32.mrb[10].mxu1  ;;  %1927 = vrot.lane.b32.xlu0 %v1846_v35, %s3874_s17  ;;  %v2456_v44 = vsel %vm2388_vm13, %v2373_v41, %v1537_v61  ;;  %v7590_v35 = vrot.slane %v7589_v38, 2  ;;  %v1712_v61 = vrot.slane %v1212_v39, 2  ;;  %v6662_v57 = vld [vmem:[#allocation2 + $0xb0] sm:$0xff]  }
 0x2b7   :  { %v2810_v43 = vadd.f32 %v6289_v27, %v2809_v42  ;;  %v3158_v26 = vmax.f32 %v2970_v24, 0.0  ;;  %v3448_v11 = vpop.f32.mrb[13].mxu0  ;;  %v2973_v25 = vadd.f32 %v6289_v27, %v2972_v50  ;;  %v1918_v45 = vpop.permute.xlu1 %1917  ;;  %v1847_v3 = vrot.slane %v6662_v57, 3 }
 0x2b8   :  { %v2812_v10 = vpop.f32.mrb[14].mxu0  ;;  %v2582_v54 = vsel %vm2554_vm15, %v2499_v28, %v1918_v45  ;;  %v3529_v6 = vpop.f32.mrb[11].mxu1  ;;  %v6648_v51 = vsel %vm1302_vm4, %v1342_v8, %v7590_v35  ;;  %v1635_v8 = vsel %vm1552_vm7, %v6557_v37, %v6650_v18  ;;  %v1214_v42 = vrot.slane %v1212_v39, 1  ;;  %v7591_v45 = vld [vmem:[#allocation105_spill] sm:$0xff] }
 0x2b9   :  { %v3118_v36 = vmax.f32 %v2810_v43, 0.0  ;;  %3240 = vst.msk [vmem:[#allocation10 + $0x170] sm:$0xff] %vm2056_vm9, %v3158_v26  ;;  %v2813_v48 = vadd.f32 %v6289_v27, %v2812_v10  ;;  %v3159_v21 = vmax.f32 %v2973_v25, 0.0  ;;  %v3449_v22 = vpop.f32.mrb[15].mxu0  ;;  %v1792_v49 = vpop.permute.xlu0 %1791  ;;  %1258 = vrot.lane.b32.xlu1 %v1128_v32, %s3871_s1  ;;  %3487 = vmatmul.mubr.msk.bf16.gmra.mrb[52].mxu0 %vm2664_vm0, %v2582_v54  ;;  %v1217_v50 = vrot.slane %v1215_v46, 2  ;;  %v3728_v25 = vld [vmem:[#allocation2 + $0x70] sm:$0xff]  }
 0x2ba   :  { %3490 = vmatprep.mubr.msk.bf16.mxu0 %vm3870_vm5, %v7392_v47  ;;  %1041 = vrot.lane.b32.xlu0 %v7588_v15, %s3868_s28  ;;  %v2539_v13 = vsel %vm2471_vm14, %v2456_v44, %v1792_v49  ;;  %v961_v32 = vrot.slane %v6615_v60, 1  ;;  %v1887_v26 = vrot.slane %v6615_v60, 3  ;;  %v2003_v53 = vsel %vm1973_vm8, %v3728_v25, %v7591_v45  ;;  %v7595_v49 = vld [vmem:[#allocation92_spill] sm:$0xff] }
 0x2bb   :  { %3200 = vst.msk [vmem:[#allocation10 + $0x30] sm:$0xff] %vm2056_vm9, %v3118_v36  ;;  %v3119_v9 = vmax.f32 %v2813_v48, 0.0  ;;  %3241 = vst.msk [vmem:[#allocation10 + $0x178] sm:$0xff] %vm2056_vm9, %v3159_v21  ;;  %v1032_v34 = vpop.permute.xlu1 %1031  ;;  %v1218_v11 = vor.u32 %v1217_v50, %v1214_v42  ;;  %v7594_v36 = vld [vmem:[#allocation152_spill] sm:$0xff]  ;;  %v7596_v1 = vrot.slane %v7595_v49, 1  ;;  %v1468_v45 = vrot.slane %v6702_v29, 2 }
 0x2bd   :  { %3201 = vst.msk [vmem:[#allocation10 + $0x38] sm:$0xff] %vm2056_vm9, %v3119_v9  ;;  %v1958_v63 = vpop.permute.xlu0 %1957  ;;  %1424 = vrot.lane.b32.xlu1 %v6555_v55, %s3873_s16  ;;  %v1713_v55 = vrot.slane %v1215_v46, 3  ;;  %v962_v17 = vsel %vm795_vm1, %v7596_v1, %v961_v32 }
 0x2be   :  { %v2622_v14 = vsel %vm2554_vm15, %v2539_v13, %v1958_v63  ;;  %1298 = vrot.lane.b32.xlu0 %v1210_v58, %s3871_s1  ;;  %v7597_v58 = vld [vmem:[#allocation24_spill] sm:$0xff] }
 0x2bf   :  { %3567 = vmatmul.mubr.msk.bf16.gmra.mrb[48].mxu1 %vm2664_vm0, %v2622_v14  ;;  %v1289_v12 = vpop.permute.xlu1 %1288  ;;  %v6674_v33 = vor.u32 %v1713_v55, %v1712_v61  ;;  %v1219_v14 = vsel %vm1045_vm2, %v6613_v52, %v1218_v11  ;;  %v1720_v52 = vshll.u32 %v6702_v29, 16 }
 0x2c0   :  { %3570 = vmatprep.mubr.msk.bf16.mxu1 %vm3870_vm5, %v7392_v47 }
 0x2c1   :  { %v1249_v24 = vpop.permute.xlu0 %1248  ;;  %1508 = vrot.lane.b32.xlu1 %v6648_v51, %s3872_s15  ;;  %v1715_v43 = vsel %vm1552_vm7, %v6546_v40, %v6674_v33  ;;  %v2086_v40 = vsel %vm2056_vm9, %v2003_v53, %v7593_v4 }
 0x2c2   :  { %1464 = vrot.lane.b32.xlu0 %v6544_v31, %s3873_s16  ;;  %v1848_v31 = vsel %vm1807_vm6, %v1845_v5, %v1847_v3  ;;  %v7592_v5 = vld [vmem:[#allocation129_spill] sm:$0xff]  ;;  %v2169_v39 = vsel %vm2139_vm10, %v2086_v40, %v7597_v58  ;;  %v1889_v40 = vrot.slane %v6702_v29, 3 }
 0x2c3   :  { %v1455_v19 = vpop.permute.xlu1 %1454  ;;  %v2043_v59 = vsel %vm1973_vm8, %v3729_v7, %v7592_v5  ;;  %v2252_v42 = vsel %vm2222_vm11, %v2169_v39, %v1249_v24  ;;  %v1722_v7 = vrot.slane %v1720_v52, 3 }
 0x2c4   :  { %v2126_v48 = vsel %vm2056_vm9, %v2043_v59, %v7594_v36  ;;  %v1469_v59 = vsel %vm1302_vm4, %v1384_v30, %v1468_v45  ;;  %v7599_v36 = vld [vmem:[#allocation64_spill] sm:$0xff] }
 0x2c5   :  { %v1415_v37 = vpop.permute.xlu0 %1414  ;;  %1763 = vrot.lane.b32.xlu1 %v1635_v8, %s3875_s19  ;;  %v2209_v16 = vsel %vm2139_vm10, %v2126_v48, %v1032_v34  ;;  %v1888_v34 = vsel %vm1807_vm6, %v1885_v23, %v1887_v26  ;;  %v1717_v23 = vshrl.u32 %v6702_v29, 16  ;;  %v7602_v29 = vld [vmem:[#allocation21_spill] sm:$0xff] }
 0x2c6   :  { %1548 = vrot.lane.b32.xlu0 %v6672_v0, %s3872_s15  ;;  %v2292_v46 = vsel %vm2222_vm11, %v2209_v16, %v1289_v12 }
 0x2c7   :  { %v1539_v62 = vpop.permute.xlu1 %1538  ;;  %v2375_v38 = vsel %vm2305_vm12, %v2292_v46, %v1455_v19  ;;  %v2335_v19 = vsel %vm2305_vm12, %v2252_v42, %v1415_v37  ;;  %v1719_v53 = vrot.slane %v1717_v23, 2 }
 0x2c8   :  { %v2977_v28 = vpop.f32.mrb[12].mxu1  ;;  %v2458_v56 = vsel %vm2388_vm13, %v2375_v38, %v1539_v62 }
 0x2c9   :  { %v1499_v10 = vpop.permute.xlu0 %1498  ;;  %v2978_v54 = vadd.f32 %v6289_v27, %v2977_v28  ;;  %1929 = vrot.lane.b32.xlu1 %v1848_v31, %s3874_s17  ;;  %v3532_v6 = vpop.f32.mrb[13].mxu1  ;;  %v7598_v28 = vld [vmem:[#allocation55_spill] sm:$0xff] }
 0x2ca   :  { %v2817_v21 = vpop.f32.mrb[16].mxu0  ;;  %v2980_v22 = vpop.f32.mrb[14].mxu1  ;;  %1803 = vrot.lane.b32.xlu0 %v1715_v43, %s3875_s19  ;;  %v2418_v24 = vsel %vm2388_vm13, %v2335_v19, %v1499_v10  ;;  %v1132_v43 = vsel %vm1045_vm2, %v6583_v20, %v7598_v28  ;;  %v1723_v10 = vor.u32 %v1722_v7, %v1719_v53 }
 0x2cb   :  { %v2818_v2 = vadd.f32 %v6289_v27, %v2817_v21  ;;  %v3160_v41 = vmax.f32 %v2978_v54, 0.0  ;;  %v3452_v9 = vpop.f32.mrb[17].mxu0  ;;  %v2981_v15 = vadd.f32 %v6289_v27, %v2980_v22  ;;  %v1794_v44 = vpop.permute.xlu1 %1793  ;;  %v7600_v21 = vld [vmem:[#allocation17_spill] sm:$0xff] }
 0x2cc   :  { %v2820_v13 = vpop.f32.mrb[18].mxu0  ;;  %v3533_v63 = vpop.f32.mrb[15].mxu1  ;;  %v2541_v31 = vsel %vm2471_vm14, %v2458_v56, %v1794_v44  ;;  %v1724_v4 = vsel %vm1552_vm7, %v6674_v33, %v1723_v10  ;;  %v1639_v30 = vsel %vm1552_vm7, %v6650_v18, %v7600_v21  ;;  %v3730_v22 = vld [vmem:[#allocation2 + $0x78] sm:$0xff]  }
 0x2cd   :  { %v3120_v35 = vmax.f32 %v2818_v2, 0.0  ;;  %3242 = vst.msk [vmem:[#allocation10 + $0x180] sm:$0xff] %vm2056_vm9, %v3160_v41  ;;  %v2821_v61 = vadd.f32 %v6289_v27, %v2820_v13  ;;  %v3161_v55 = vmax.f32 %v2981_v15, 0.0  ;;  %v3453_v12 = vpop.f32.mrb[19].mxu0  ;;  %v1754_v8 = vpop.permute.xlu0 %1753  ;;  %1043 = vrot.lane.b32.xlu1 %v962_v17, %s3868_s28  ;;  %v1890_v41 = vsel %vm1807_vm6, %v1887_v26, %v1889_v40  ;;  %v7603_v9 = vld [vmem:[#allocation29_spill] sm:$0xff]  ;;  %v7604_v13 = vld [vmem:[#allocation51_spill] sm:$0xff] }
 0x2ce   :  { %1969 = vrot.lane.b32.xlu0 %v1888_v34, %s3874_s17  ;;  %v2501_v37 = vsel %vm2471_vm14, %v2418_v24, %v1754_v8  ;;  %v7605_v63 = vrot.slane %v7604_v13, 3  ;;  %v7607_v56 = vld [vmem:[#allocation62_spill] sm:$0xff]  ;;  %v7608_v40 = vld [vmem:[#allocation109_spill] sm:$0xff] }
 0x2cf   :  { %3202 = vst.msk [vmem:[#allocation10 + $0x40] sm:$0xff] %vm2056_vm9, %v3120_v35  ;;  %v3121_v50 = vmax.f32 %v2821_v61, 0.0  ;;  %3243 = vst.msk [vmem:[#allocation10 + $0x188] sm:$0xff] %vm2056_vm9, %v3161_v55  ;;  %v1960_v32 = vpop.permute.xlu1 %1959  ;;  %v3731_v61 = vld [vmem:[#allocation2 + $0x118] sm:$0xff]   ;;  %v7606_v55 = vld [vmem:[#allocation128_spill] sm:$0xff] }
 0x2d0   :  { %v2624_v62 = vsel %vm2554_vm15, %v2541_v31, %v1960_v32  ;;  %v1850_v60 = vsel %vm1807_vm6, %v1847_v3, %v7605_v63  ;;  %v2045_v12 = vsel %vm1973_vm8, %v3731_v61, %v7606_v55 }
 0x2d1   :  { %3203 = vst.msk [vmem:[#allocation10 + $0x48] sm:$0xff] %vm2056_vm9, %v3121_v50  ;;  %v1920_v11 = vpop.permute.xlu0 %1919  ;;  %1300 = vrot.lane.b32.xlu1 %v1219_v14, %s3871_s1  ;;  %3571 = vmatmul.mubr.msk.bf16.gmra.mrb[52].mxu1 %vm2664_vm0, %v2624_v62  ;;  %v2128_v23 = vsel %vm2056_vm9, %v2045_v12, %v7607_v56 }
 0x2d2   :  { %v2584_v25 = vsel %vm2554_vm15, %v2501_v37, %v1920_v11  ;;  %3574 = vmatprep.mubr.msk.bf16.mxu1 %vm3870_vm5, %v7392_v47  ;;  %1260 = vrot.lane.b32.xlu0 %v1132_v43, %s3871_s1 }
 0x2d3   :  { %3491 = vmatmul.mubr.msk.bf16.gmra.mrb[56].mxu0 %vm2664_vm0, %v2584_v25  ;;  %v1251_v20 = vpop.permute.xlu1 %1250 }
 0x2d4   :  { %3494 = vmatprep.mubr.msk.bf16.mxu0 %vm3870_vm5, %v7392_v47 }
 0x2d5   :  { %v1034_v5 = vpop.permute.xlu0 %1033  ;;  %1466 = vrot.lane.b32.xlu1 %v6672_v0, %s3873_s16 }
 0x2d6   :  { %1426 = vrot.lane.b32.xlu0 %v6648_v51, %s3873_s16  ;;  %v7601_v51 = vld [vmem:[#allocation104_spill] sm:$0xff]  ;;  %v2211_v50 = vsel %vm2139_vm10, %v2128_v23, %v1034_v5 }
 0x2d7   :  { %v1417_v54 = vpop.permute.xlu1 %1416  ;;  %v2005_v49 = vsel %vm1973_vm8, %v3730_v22, %v7601_v51 }
 0x2d8   :  { %v2088_v16 = vsel %vm2056_vm9, %v2005_v49, %v7602_v29  ;;  %v7610_v49 = vld [vmem:[#allocation57_spill] sm:$0xff] }
 0x2d9   :  { %v1291_v6 = vpop.permute.xlu0 %1290  ;;  %1550 = vrot.lane.b32.xlu1 %v1469_v59, %s3872_s15  ;;  %v2171_v18 = vsel %vm2139_vm10, %v2088_v16, %v7603_v9 }
 0x2da   :  { %1510 = vrot.lane.b32.xlu0 %v7599_v36, %s3872_s15  ;;  %v2254_v46 = vsel %vm2222_vm11, %v2171_v18, %v1251_v20  ;;  %v2294_v28 = vsel %vm2222_vm11, %v2211_v50, %v1291_v6 }
 0x2db   :  { %v1501_v0 = vpop.permute.xlu1 %1500  ;;  %v2337_v26 = vsel %vm2305_vm12, %v2254_v46, %v1417_v54 }
 0x2dc   :  { %v2825_v48 = vpop.f32.mrb[20].mxu0  ;;  %v2420_v38 = vsel %vm2388_vm13, %v2337_v26, %v1501_v0  ;;  %v3733_v0 = vld [vmem:[#allocation2 + $0x120] sm:$0xff]  }
 0x2dd   :  { %v1457_v1 = vpop.permute.xlu0 %1456  ;;  %v2826_v17 = vadd.f32 %v6289_v27, %v2825_v48  ;;  %1805 = vrot.lane.b32.xlu1 %v1724_v4, %s3875_s19  ;;  %v3456_v33 = vpop.f32.mrb[21].mxu0  ;;  %v3732_v4 = vld [vmem:[#allocation2 + $0x80] sm:$0xff]  }
 0x2de   :  { %v2828_v2 = vpop.f32.mrb[22].mxu0  ;;  %1765 = vrot.lane.b32.xlu0 %v1639_v30, %s3875_s19  ;;  %v2377_v43 = vsel %vm2305_vm12, %v2294_v28, %v1457_v1  ;;  %v2007_v36 = vsel %vm1973_vm8, %v3732_v4, %v7608_v40  ;;  %v7609_v48 = vld [vmem:[#allocation131_spill] sm:$0xff] }
 0x2df   :  { %v3122_v15 = vmax.f32 %v2826_v17, 0.0  ;;  %v2829_v44 = vadd.f32 %v6289_v27, %v2828_v2  ;;  %v1756_v58 = vpop.permute.xlu1 %1755  ;;  %v3457_v39 = vpop.f32.mrb[23].mxu0  ;;  %v2047_v21 = vsel %vm1973_vm8, %v3733_v0, %v7609_v48  ;;  %v2090_v1 = vsel %vm2056_vm9, %v2007_v36, %v7610_v49  ;;  %v7611_v17 = vld [vmem:[#allocation68_spill] sm:$0xff]  ;;  %v7616_v49 = vld [vmem:[#allocation130_spill] sm:$0xff] }
 0x2e0   :  { %v2503_v57 = vsel %vm2471_vm14, %v2420_v38, %v1756_v58  ;;  %v2130_v33 = vsel %vm2056_vm9, %v2047_v21, %v7611_v17  ;;  %v7612_v58 = vld [vmem:[#allocation72_spill] sm:$0xff] }
 0x2e1   :  { %3204 = vst.msk [vmem:[#allocation10 + $0x50] sm:$0xff] %vm2056_vm9, %v3122_v15  ;;  %v3123_v34 = vmax.f32 %v2829_v44, 0.0  ;;  %v1541_v14 = vpop.permute.xlu0 %1540  ;;  %1971 = vrot.lane.b32.xlu1 %v1890_v41, %s3874_s17  ;;  %v2985_v35 = vpop.f32.mrb[16].mxu1  ;;  %v2173_v39 = vsel %vm2139_vm10, %v2090_v1, %v7612_v58  ;;  %v6862_v17 = vld [vmem:[#allocation8] ss:$0 sm:$0xff] }
 0x2e2   :  { %v2986_v3 = vadd.f32 %v6289_v27, %v2985_v35  ;;  %v3536_v8 = vpop.f32.mrb[17].mxu1  ;;  %1931 = vrot.lane.b32.xlu0 %v1850_v60, %s3874_s17  ;;  %v2460_v25 = vsel %vm2388_vm13, %v2377_v43, %v1541_v14  ;;  %v3734_v43 = vld [vmem:[#allocation2 + $0x88] sm:$0xff]  }
 0x2e3   :  { %3205 = vst.msk [vmem:[#allocation10 + $0x58] sm:$0xff] %vm2056_vm9, %v3123_v34  ;;  %v1922_v42 = vpop.permute.xlu1 %1921  ;;  %v2988_v52 = vpop.f32.mrb[18].mxu1 }
 0x2e4   :  { %v2586_v19 = vsel %vm2554_vm15, %v2503_v57, %v1922_v42  ;;  %v3162_v31 = vmax.f32 %v2986_v3, 0.0  ;;  %v2989_v32 = vadd.f32 %v6289_v27, %v2988_v52  ;;  %v3537_v24 = vpop.f32.mrb[19].mxu1 }
 0x2e5   :  { %v1796_v62 = vpop.permute.xlu0 %1795  ;;  %3495 = vmatmul.mubr.msk.bf16.gmra.mrb[60].mxu0 %vm2664_vm0, %v2586_v19 }
 0x2e6   :  { %3498 = vmatprep.mubr.msk.bf16.mxu0 %vm3870_vm5, %v7392_v47  ;;  %3244 = vst.msk [vmem:[#allocation10 + $0x190] sm:$0xff] %vm2056_vm9, %v3162_v31  ;;  %v3163_v37 = vmax.f32 %v2989_v32, 0.0  ;;  %v2543_v45 = vsel %vm2471_vm14, %v2460_v25, %v1796_v62 }
 0x2e7   :  { %v1036_v11 = vpop.permute.xlu1 %1035 }
 0x2e8   :  { %3245 = vst.msk [vmem:[#allocation10 + $0x198] sm:$0xff] %vm2056_vm9, %v3163_v37  ;;  %v2213_v2 = vsel %vm2139_vm10, %v2130_v33, %v1036_v11  ;;  %v7613_v37 = vld [vmem:[#allocation107_spill] sm:$0xff] }
 0x2e9   :  { %v1962_v53 = vpop.permute.xlu0 %1961  ;;  %v2009_v11 = vsel %vm1973_vm8, %v3734_v43, %v7613_v37  ;;  %v7621_v43 = vld [vmem:[#allocation25_spill] sm:$0xff] }
 0x2ea   :  { %v2626_v7 = vsel %vm2554_vm15, %v2543_v45, %v1962_v53 }
 0x2eb   :  { %3575 = vmatmul.mubr.msk.bf16.gmra.mrb[56].mxu1 %vm2664_vm0, %v2626_v7  ;;  %v1293_v20 = vpop.permute.xlu1 %1292  ;;  %v7614_v7 = vld [vmem:[#allocation143_spill] sm:$0xff] }
 0x2ec   :  { %3578 = vmatprep.mubr.msk.bf16.mxu1 %vm3870_vm5, %v7392_v47  ;;  %v2296_v46 = vsel %vm2222_vm11, %v2213_v2, %v1293_v20  ;;  %v2092_v20 = vsel %vm2056_vm9, %v2009_v11, %v7614_v7  ;;  %v7617_v2 = vld [vmem:[#allocation20_spill] sm:$0xff] }
 0x2ed   :  { %v1253_v5 = vpop.permute.xlu0 %1252 }
 0x2ee   :  { %v2256_v61 = vsel %vm2222_vm11, %v2173_v39, %v1253_v5 }
 0x2ef   :  { %v1459_v59 = vpop.permute.xlu1 %1458 }
 0x2f0   :  { %v2379_v60 = vsel %vm2305_vm12, %v2296_v46, %v1459_v59  ;;  %v7615_v59 = vld [vmem:[#allocation160_spill] sm:$0xff] }
 0x2f1   :  { %v1419_v10 = vpop.permute.xlu0 %1418 }
 0x2f2   :  { %v2339_v12 = vsel %vm2305_vm12, %v2256_v61, %v1419_v10  ;;  %v2175_v10 = vsel %vm2139_vm10, %v2092_v20, %v7615_v59 }
 0x2f3   :  { %v1543_v54 = vpop.permute.xlu1 %1542 }
 0x2f4   :  { %v2993_v6 = vpop.f32.mrb[20].mxu1  ;;  %v2462_v55 = vsel %vm2388_vm13, %v2379_v60, %v1543_v54 }
 0x2f5   :  { %v1503_v30 = vpop.permute.xlu0 %1502  ;;  %v2994_v22 = vadd.f32 %v6289_v27, %v2993_v6  ;;  %v3540_v51 = vpop.f32.mrb[21].mxu1 }
 0x2f6   :  { %v2833_v29 = vpop.f32.mrb[24].mxu0  ;;  %v2996_v16 = vpop.f32.mrb[22].mxu1  ;;  %v2422_v42 = vsel %vm2388_vm13, %v2339_v12, %v1503_v30  ;;  %v3735_v51 = vld [vmem:[#allocation2 + $0x128] sm:$0xff]  }
 0x2f7   :  { %v2834_v41 = vadd.f32 %v6289_v27, %v2833_v29  ;;  %v3164_v9 = vmax.f32 %v2994_v22, 0.0  ;;  %v3460_v18 = vpop.f32.mrb[25].mxu0  ;;  %v2997_v15 = vadd.f32 %v6289_v27, %v2996_v16  ;;  %v1798_v44 = vpop.permute.xlu1 %1797  ;;  %v2049_v1 = vsel %vm1973_vm8, %v3735_v51, %v7616_v49 }
 0x2f8   :  { %v2836_v13 = vpop.f32.mrb[26].mxu0  ;;  %v3541_v63 = vpop.f32.mrb[23].mxu1  ;;  %v2545_v3 = vsel %vm2471_vm14, %v2462_v55, %v1798_v44 }
 0x2f9   :  { %v3124_v26 = vmax.f32 %v2834_v41, 0.0  ;;  %3246 = vst.msk [vmem:[#allocation10 + $0x1a0] sm:$0xff] %vm2056_vm9, %v3164_v9  ;;  %v2837_v34 = vadd.f32 %v6289_v27, %v2836_v13  ;;  %v3165_v14 = vmax.f32 %v2997_v15, 0.0  ;;  %v3461_v38 = vpop.f32.mrb[27].mxu0  ;;  %v1758_v35 = vpop.permute.xlu0 %1757  ;;  %v2132_v41 = vsel %vm2056_vm9, %v2049_v1, %v7617_v2 }
 0x2fa   :  { %v2505_v23 = vsel %vm2471_vm14, %v2422_v42, %v1758_v35  ;;  %v3737_v42 = vld [vmem:[#allocation2 + $0x90] sm:$0xff]  }
 0x2fb   :  { %3206 = vst.msk [vmem:[#allocation10 + $0x60] sm:$0xff] %vm2056_vm9, %v3124_v26  ;;  %v3125_v57 = vmax.f32 %v2837_v34, 0.0  ;;  %3247 = vst.msk [vmem:[#allocation10 + $0x1a8] sm:$0xff] %vm2056_vm9, %v3165_v14  ;;  %v1964_v8 = vpop.permute.xlu1 %1963 }
 0x2fc   :  { %v2628_v56 = vsel %vm2554_vm15, %v2545_v3, %v1964_v8 }
 0x2fd   :  { %3207 = vst.msk [vmem:[#allocation10 + $0x68] sm:$0xff] %vm2056_vm9, %v3125_v57  ;;  %v1924_v52 = vpop.permute.xlu0 %1923  ;;  %3579 = vmatmul.mubr.msk.bf16.gmra.mrb[60].mxu1 %vm2664_vm0, %v2628_v56  ;;  %v7618_v56 = vld [vmem:[#allocation113_spill] sm:$0xff] }
 0x2fe   :  { %v2588_v19 = vsel %vm2554_vm15, %v2505_v23, %v1924_v52  ;;  %3582 = vmatprep.mubr.msk.bf16.mxu1 %vm3870_vm5, %v7392_v47  ;;  %v2011_v23 = vsel %vm1973_vm8, %v3737_v42, %v7618_v56  ;;  %v3738_v52 = vld [vmem:[#allocation2 + $0x130] sm:$0xff]  }
 0x2ff   :  { %3499 = vmatmul.mubr.msk.bf16.gmra.mrb[64].mxu0 %vm2664_vm0, %v2588_v19  ;;  %v1255_v50 = vpop.permute.xlu1 %1254  ;;  %v7619_v19 = vld [vmem:[#allocation133_spill] sm:$0xff] }
 0x300   :  { %3502 = vmatprep.mubr.msk.bf16.mxu0 %vm3870_vm5, %v7392_v47  ;;  %v2258_v36 = vsel %vm2222_vm11, %v2175_v10, %v1255_v50  ;;  %v2051_v50 = vsel %vm1973_vm8, %v3738_v52, %v7619_v19  ;;  %v7622_v10 = vld [vmem:[#allocation161_spill] sm:$0xff] }
 0x301   :  { %v1038_v31 = vpop.permute.xlu0 %1037  ;;  %v2134_v37 = vsel %vm2056_vm9, %v2051_v50, %v7621_v43 }
 0x302   :  { %v2215_v15 = vsel %vm2139_vm10, %v2132_v41, %v1038_v31 }
 0x303   :  { %v1421_v32 = vpop.permute.xlu1 %1420 }
 0x304   :  { %v2341_v0 = vsel %vm2305_vm12, %v2258_v36, %v1421_v32 }
 0x305   :  { %v1295_v24 = vpop.permute.xlu0 %1294 }
 0x306   :  { %v2298_v13 = vsel %vm2222_vm11, %v2215_v15, %v1295_v24 }
 0x307   :  { %v1505_v62 = vpop.permute.xlu1 %1504 }
 0x308   :  { %v2841_v28 = vpop.f32.mrb[28].mxu0  ;;  %v2424_v30 = vsel %vm2388_vm13, %v2341_v0, %v1505_v62  ;;  %v7620_v62 = vld [vmem:[#allocation142_spill] sm:$0xff] }
 0x309   :  { %v1461_v25 = vpop.permute.xlu0 %1460  ;;  %v2842_v45 = vadd.f32 %v6289_v27, %v2841_v28  ;;  %v3464_v53 = vpop.f32.mrb[29].mxu0  ;;  %v2094_v28 = vsel %vm2056_vm9, %v2011_v23, %v7620_v62  ;;  %v7626_v62 = vld [vmem:[#allocation132_spill] sm:$0xff] }
 0x30a   :  { %v2844_v5 = vpop.f32.mrb[30].mxu0  ;;  %v2381_v63 = vsel %vm2305_vm12, %v2298_v13, %v1461_v25 }
 0x30b   :  { %v3126_v54 = vmax.f32 %v2842_v45, 0.0  ;;  %v2845_v6 = vadd.f32 %v6289_v27, %v2844_v5  ;;  %v1760_v4 = vpop.permute.xlu1 %1759  ;;  %v3465_v40 = vpop.f32.mrb[31].mxu0 }
 0x30c   :  { %v2507_v27 = vsel %vm2471_vm14, %v2424_v30, %v1760_v4 }
 0x30d   :  { %3208 = vst.msk [vmem:[#allocation10 + $0x70] sm:$0xff] %vm2056_vm9, %v3126_v54  ;;  %v3127_v48 = vmax.f32 %v2845_v6, 0.0  ;;  %v1545_v21 = vpop.permute.xlu0 %1544  ;;  %v3001_v22 = vpop.f32.mrb[24].mxu1  ;;  %v2177_v54 = vsel %vm2139_vm10, %v2094_v28, %v7622_v10 }
 0x30e   :  { %v3002_v33 = vadd.f32 %v6862_v17, %v3001_v22  ;;  %v3544_v29 = vpop.f32.mrb[25].mxu1  ;;  %v2464_v34 = vsel %vm2388_vm13, %v2381_v63, %v1545_v21  ;;  %v3739_v63 = vld [vmem:[#allocation2 + $0x98] sm:$0xff]  }
 0x30f   :  { %3209 = vst.msk [vmem:[#allocation10 + $0x78] sm:$0xff] %vm2056_vm9, %v3127_v48  ;;  %v1926_v16 = vpop.permute.xlu1 %1925  ;;  %v3004_v9 = vpop.f32.mrb[26].mxu1 }
 0x310   :  { %v2590_v18 = vsel %vm2554_vm15, %v2507_v27, %v1926_v16  ;;  %v3166_v44 = vmax.f32 %v3002_v33, 0.0  ;;  %v3005_v58 = vadd.f32 %v6862_v17, %v3004_v9  ;;  %v3545_v39 = vpop.f32.mrb[27].mxu1 }
 0x311   :  { %v1800_v46 = vpop.permute.xlu0 %1799  ;;  %3503 = vmatmul.mubr.msk.bf16.gmra.mrb[68].mxu0 %vm2664_vm0, %v2590_v18 }
 0x312   :  { %3506 = vmatprep.mubr.msk.bf16.mxu0 %vm3870_vm5, %v7392_v47  ;;  %3248 = vst.msk [vmem:[#allocation10 + $0x1b0] sm:$0xff] %vm2056_vm9, %v3166_v44  ;;  %v3167_v60 = vmax.f32 %v3005_v58, 0.0  ;;  %v2547_v14 = vsel %vm2471_vm14, %v2464_v34, %v1800_v46 }
 0x313   :  { %v1040_v26 = vpop.permute.xlu1 %1039 }
 0x314   :  { %3249 = vst.msk [vmem:[#allocation10 + $0x1b8] sm:$0xff] %vm2056_vm9, %v3167_v60  ;;  %v2217_v45 = vsel %vm2139_vm10, %v2134_v37, %v1040_v26  ;;  %v7623_v60 = vld [vmem:[#allocation111_spill] sm:$0xff] }
 0x315   :  { %v1966_v38 = vpop.permute.xlu0 %1965  ;;  %v2013_v26 = vsel %vm1973_vm8, %v3739_v63, %v7623_v60 }
 0x316   :  { %v2630_v35 = vsel %vm2554_vm15, %v2547_v14, %v1966_v38 }
 0x317   :  { %3583 = vmatmul.mubr.msk.bf16.gmra.mrb[64].mxu1 %vm2664_vm0, %v2630_v35  ;;  %v1297_v61 = vpop.permute.xlu1 %1296  ;;  %v7624_v35 = vld [vmem:[#allocation145_spill] sm:$0xff] }
 0x318   :  { %3586 = vmatprep.mubr.msk.bf16.mxu1 %vm3870_vm5, %v7392_v47  ;;  %v2300_v6 = vsel %vm2222_vm11, %v2217_v45, %v1297_v61  ;;  %v2096_v61 = vsel %vm2056_vm9, %v2013_v26, %v7624_v35  ;;  %v7627_v45 = vld [vmem:[#allocation155_spill] sm:$0xff] }
 0x319   :  { %v1257_v55 = vpop.permute.xlu0 %1256 }
 0x31a   :  { %v2260_v51 = vsel %vm2222_vm11, %v2177_v54, %v1257_v55 }
 0x31b   :  { %v1463_v12 = vpop.permute.xlu1 %1462 }
 0x31c   :  { %v2383_v36 = vsel %vm2305_vm12, %v2300_v6, %v1463_v12  ;;  %v7625_v12 = vld [vmem:[#allocation65_spill] sm:$0xff] }
 0x31d   :  { %v1423_v57 = vpop.permute.xlu0 %1422 }
 0x31e   :  { %v2343_v1 = vsel %vm2305_vm12, %v2260_v51, %v1423_v57  ;;  %v2179_v57 = vsel %vm2139_vm10, %v2096_v61, %v7625_v12  ;;  %v7632_v12 = vld [vmem:[#allocation162_spill] sm:$0xff] }
 0x31f   :  { %v1547_v3 = vpop.permute.xlu1 %1546 }
 0x320   :  { %v3009_v8 = vpop.f32.mrb[28].mxu1  ;;  %v2466_v49 = vsel %vm2388_vm13, %v2383_v36, %v1547_v3 }
 0x321   :  { %v1507_v31 = vpop.permute.xlu0 %1506  ;;  %v3010_v32 = vadd.f32 %v6862_v17, %v3009_v8  ;;  %v3548_v24 = vpop.f32.mrb[29].mxu1 }
 0x322   :  { %v2849_v11 = vpop.f32.mrb[32].mxu0  ;;  %v3012_v25 = vpop.f32.mrb[30].mxu1  ;;  %v2426_v16 = vsel %vm2388_vm13, %v2343_v1, %v1507_v31  ;;  %v3740_v24 = vld [vmem:[#allocation2 + $0x138] sm:$0xff]  }
 0x323   :  { %v2850_v53 = vadd.f32 %v6862_v17, %v2849_v11  ;;  %v3168_v7 = vmax.f32 %v3010_v32, 0.0  ;;  %v3468_v20 = vpop.f32.mrb[33].mxu0  ;;  %v3013_v5 = vadd.f32 %v6862_v17, %v3012_v25  ;;  %v1802_v59 = vpop.permute.xlu1 %1801  ;;  %v2053_v28 = vsel %vm1973_vm8, %v3740_v24, %v7626_v62 }
 0x324   :  { %v2852_v4 = vpop.f32.mrb[34].mxu0  ;;  %v3549_v40 = vpop.f32.mrb[31].mxu1  ;;  %v2549_v33 = vsel %vm2471_vm14, %v2466_v49, %v1802_v59 }
 0x325   :  { %v3128_v0 = vmax.f32 %v2850_v53, 0.0  ;;  %3250 = vst.msk [vmem:[#allocation10 + $0x1c0] sm:$0xff] %vm2056_vm9, %v3168_v7  ;;  %v2853_v48 = vadd.f32 %v6862_v17, %v2852_v4  ;;  %v3169_v21 = vmax.f32 %v3013_v5, 0.0  ;;  %v3469_v30 = vpop.f32.mrb[35].mxu0  ;;  %v1762_v22 = vpop.permute.xlu0 %1761  ;;  %v2136_v53 = vsel %vm2056_vm9, %v2053_v28, %v7627_v45 }
 0x326   :  { %v2509_v41 = vsel %vm2471_vm14, %v2426_v16, %v1762_v22  ;;  %v3741_v16 = vld [vmem:[#allocation2 + $0xa0] sm:$0xff]  }
 0x327   :  { %3210 = vst.msk [vmem:[#allocation10 + $0x80] sm:$0xff] %vm2056_vm9, %v3128_v0  ;;  %v3129_v27 = vmax.f32 %v2853_v48, 0.0  ;;  %3251 = vst.msk [vmem:[#allocation10 + $0x1c8] sm:$0xff] %vm2056_vm9, %v3169_v21  ;;  %v1968_v29 = vpop.permute.xlu1 %1967 }
 0x328   :  { %v2632_v2 = vsel %vm2554_vm15, %v2549_v33, %v1968_v29 }
 0x329   :  { %3211 = vst.msk [vmem:[#allocation10 + $0x88] sm:$0xff] %vm2056_vm9, %v3129_v27  ;;  %v1928_v9 = vpop.permute.xlu0 %1927  ;;  %3587 = vmatmul.mubr.msk.bf16.gmra.mrb[68].mxu1 %vm2664_vm0, %v2632_v2  ;;  %v7628_v2 = vld [vmem:[#allocation116_spill] sm:$0xff] }
 0x32a   :  { %v2592_v18 = vsel %vm2554_vm15, %v2509_v41, %v1928_v9  ;;  %3590 = vmatprep.mubr.msk.bf16.mxu1 %vm3870_vm5, %v7392_v47  ;;  %v2015_v41 = vsel %vm1973_vm8, %v3741_v16, %v7628_v2  ;;  %v3742_v9 = vld [vmem:[#allocation2 + $0x140] sm:$0xff]  }
 0x32b   :  { %3507 = vmatmul.mubr.msk.bf16.gmra.mrb[72].mxu0 %vm2664_vm0, %v2592_v18  ;;  %v1259_v15 = vpop.permute.xlu1 %1258  ;;  %v7629_v18 = vld [vmem:[#allocation134_spill] sm:$0xff] }
 0x32c   :  { %3510 = vmatprep.mubr.msk.bf16.mxu0 %vm3870_vm5, %v7392_v47  ;;  %v2262_v23 = vsel %vm2222_vm11, %v2179_v57, %v1259_v15  ;;  %v2055_v15 = vsel %vm1973_vm8, %v3742_v9, %v7629_v18 }
 0x32d   :  { %v1042_v44 = vpop.permute.xlu0 %1041 }
 0x32e   :  { %v2219_v5 = vsel %vm2139_vm10, %v2136_v53, %v1042_v44 }
 0x32f   :  { %v1425_v58 = vpop.permute.xlu1 %1424 }
 0x330   :  { %v2345_v52 = vsel %vm2305_vm12, %v2262_v23, %v1425_v58 }
 0x331   :  { %v1299_v39 = vpop.permute.xlu0 %1298 }
 0x332   :  { %v2302_v4 = vsel %vm2222_vm11, %v2219_v5, %v1299_v39 }
 0x333   :  { %v1509_v46 = vpop.permute.xlu1 %1508 }
 0x334   :  { %v2857_v13 = vpop.f32.mrb[36].mxu0  ;;  %v2428_v31 = vsel %vm2388_vm13, %v2345_v52, %v1509_v46  ;;  %v7630_v46 = vld [vmem:[#allocation144_spill] sm:$0xff] }
 0x335   :  { %v1465_v34 = vpop.permute.xlu0 %1464  ;;  %v2858_v14 = vadd.f32 %v6862_v17, %v2857_v13  ;;  %v3472_v38 = vpop.f32.mrb[37].mxu0  ;;  %v7631_v13 = vld [vmem:[#allocation154_spill] sm:$0xff] }
 0x336   :  { %v2860_v55 = vpop.f32.mrb[38].mxu0  ;;  %v2385_v40 = vsel %vm2305_vm12, %v2302_v4, %v1465_v34  ;;  %v2138_v63 = vsel %vm2056_vm9, %v2055_v15, %v7631_v13 }
 0x337   :  { %v3130_v3 = vmax.f32 %v2858_v14, 0.0  ;;  %v2861_v8 = vadd.f32 %v6862_v17, %v2860_v55  ;;  %v1764_v42 = vpop.permute.xlu1 %1763  ;;  %v3473_v56 = vpop.f32.mrb[39].mxu0 }
 0x338   :  { %v2511_v43 = vsel %vm2471_vm14, %v2428_v31, %v1764_v42 }
 0x339   :  { %3212 = vst.msk [vmem:[#allocation10 + $0x90] sm:$0xff] %vm2056_vm9, %v3130_v3  ;;  %v3131_v19 = vmax.f32 %v2861_v8, 0.0  ;;  %v1549_v50 = vpop.permute.xlu0 %1548  ;;  %v3017_v32 = vpop.f32.mrb[32].mxu1 }
 0x33a   :  { %v3018_v37 = vadd.f32 %v6862_v17, %v3017_v32  ;;  %v3552_v11 = vpop.f32.mrb[33].mxu1  ;;  %v2468_v48 = vsel %vm2388_vm13, %v2385_v40, %v1549_v50 }
 0x33b   :  { %3213 = vst.msk [vmem:[#allocation10 + $0x98] sm:$0xff] %vm2056_vm9, %v3131_v19  ;;  %v1930_v25 = vpop.permute.xlu1 %1929  ;;  %v3020_v7 = vpop.f32.mrb[34].mxu1 }
 0x33c   :  { %v2594_v20 = vsel %vm2554_vm15, %v2511_v43, %v1930_v25  ;;  %v3170_v59 = vmax.f32 %v3018_v37, 0.0  ;;  %v3021_v10 = vadd.f32 %v6862_v17, %v3020_v7  ;;  %v3553_v54 = vpop.f32.mrb[35].mxu1 }
 0x33d   :  { %v1804_v6 = vpop.permute.xlu0 %1803  ;;  %3511 = vmatmul.mubr.msk.bf16.gmra.mrb[76].mxu0 %vm2664_vm0, %v2594_v20 }
 0x33e   :  { %3514 = vmatprep.mubr.msk.bf16.mxu0 %vm3870_vm5, %v7392_v47  ;;  %3252 = vst.msk [vmem:[#allocation10 + $0x1d0] sm:$0xff] %vm2056_vm9, %v3170_v59  ;;  %v3171_v36 = vmax.f32 %v3021_v10, 0.0  ;;  %v2551_v21 = vsel %vm2471_vm14, %v2468_v48, %v1804_v6 }
 0x33f   :  { %v1044_v0 = vpop.permute.xlu1 %1043 }
 0x340   :  { %3253 = vst.msk [vmem:[#allocation10 + $0x1d8] sm:$0xff] %vm2056_vm9, %v3171_v36  ;;  %v2221_v34 = vsel %vm2139_vm10, %v2138_v63, %v1044_v0 }
 0x341   :  { %v1970_v30 = vpop.permute.xlu0 %1969 }
 0x342   :  { %v2634_v22 = vsel %vm2554_vm15, %v2551_v21, %v1970_v30 }
 0x343   :  { %3591 = vmatmul.mubr.msk.bf16.gmra.mrb[72].mxu1 %vm2664_vm0, %v2634_v22  ;;  %v1301_v51 = vpop.permute.xlu1 %1300 }
 0x344   :  { %3594 = vmatprep.mubr.msk.bf16.mxu1 %vm3870_vm5, %v7392_v47  ;;  %v2098_v47 = vsel %vm2056_vm9, %v2015_v41, %v7630_v46  ;;  %v2304_v3 = vsel %vm2222_vm11, %v2221_v34, %v1301_v51 }
 0x345   :  { %v1261_v49 = vpop.permute.xlu0 %1260  ;;  %v2181_v57 = vsel %vm2139_vm10, %v2098_v47, %v7632_v12 }
 0x346   :  { %v2264_v32 = vsel %vm2222_vm11, %v2181_v57, %v1261_v49 }
 0x347   :  { %v1467_v1 = vpop.permute.xlu1 %1466 }
 0x348   :  { %v2387_v56 = vsel %vm2305_vm12, %v2304_v3, %v1467_v1 }
 0x349   :  { %v1427_v27 = vpop.permute.xlu0 %1426 }
 0x34a   :  { %v2347_v62 = vsel %vm2305_vm12, %v2264_v32, %v1427_v27 }
 0x34b   :  { %v1551_v33 = vpop.permute.xlu1 %1550 }
 0x34c   :  { %v3025_v29 = vpop.f32.mrb[36].mxu1  ;;  %v2470_v24 = vsel %vm2388_vm13, %v2387_v56, %v1551_v33 }
 0x34d   :  { %v1511_v44 = vpop.permute.xlu0 %1510  ;;  %v3026_v58 = vadd.f32 %v6862_v17, %v3025_v29  ;;  %v3556_v39 = vpop.f32.mrb[37].mxu1 }
 0x34e   :  { %v2865_v60 = vpop.f32.mrb[40].mxu0  ;;  %v3028_v26 = vpop.f32.mrb[38].mxu1  ;;  %v2430_v11 = vsel %vm2388_vm13, %v2347_v62, %v1511_v44 }
 0x34f   :  { %v2866_v14 = vadd.f32 %v6862_v17, %v2865_v60  ;;  %v3172_v38 = vmax.f32 %v3026_v58, 0.0  ;;  %v3476_v35 = vpop.f32.mrb[41].mxu0  ;;  %v3029_v61 = vadd.f32 %v6862_v17, %v3028_v26  ;;  %v1806_v55 = vpop.permute.xlu1 %1805 }
 0x350   :  { %v2868_v8 = vpop.f32.mrb[42].mxu0  ;;  %v3557_v42 = vpop.f32.mrb[39].mxu1  ;;  %v2553_v43 = vsel %vm2471_vm14, %v2470_v24, %v1806_v55 }
 0x351   :  { %v3132_v23 = vmax.f32 %v2866_v14, 0.0  ;;  %3254 = vst.msk [vmem:[#allocation10 + $0x1e0] sm:$0xff] %vm2056_vm9, %v3172_v38  ;;  %v2869_v52 = vadd.f32 %v6862_v17, %v2868_v8  ;;  %v3173_v19 = vmax.f32 %v3029_v61, 0.0  ;;  %v3477_v50 = vpop.f32.mrb[43].mxu0  ;;  %v1766_v31 = vpop.permute.xlu0 %1765 }
 0x352   :  { %v2513_v45 = vsel %vm2471_vm14, %v2430_v11, %v1766_v31 }
 0x353   :  { %3214 = vst.msk [vmem:[#allocation10 + $0xa0] sm:$0xff] %vm2056_vm9, %v3132_v23  ;;  %v3133_v28 = vmax.f32 %v2869_v52, 0.0  ;;  %3255 = vst.msk [vmem:[#allocation10 + $0x1e8] sm:$0xff] %vm2056_vm9, %v3173_v19  ;;  %v1972_v37 = vpop.permute.xlu1 %1971 }
 0x354   :  { %v2636_v25 = vsel %vm2554_vm15, %v2553_v43, %v1972_v37 }
 0x355   :  { %3215 = vst.msk [vmem:[#allocation10 + $0xa8] sm:$0xff] %vm2056_vm9, %v3133_v28  ;;  %v1932_v53 = vpop.permute.xlu0 %1931  ;;  %3595 = vmatmul.mubr.msk.bf16.gmra.mrb[76].mxu1 %vm2664_vm0, %v2636_v25 }
 0x356   :  { %v2596_v7 = vsel %vm2554_vm15, %v2513_v45, %v1932_v53 }
 0x357   :  { %3515 = vmatmul.mubr.msk.bf16.gmra.mrb[80].mxu0 %vm2664_vm0, %v2596_v7 }
 0x360   :  { %v2873_v20 = vpop.f32.mrb[44].mxu0 }
 0x361   :  { %v2874_v5 = vadd.f32 %v6862_v17, %v2873_v20  ;;  %v3480_v59 = vpop.f32.mrb[45].mxu0 }
 0x362   :  { %v2876_v10 = vpop.f32.mrb[46].mxu0 }
 0x363   :  { %v3134_v54 = vmax.f32 %v2874_v5, 0.0  ;;  %v2877_v6 = vadd.f32 %v6862_v17, %v2876_v10  ;;  %v3481_v4 = vpop.f32.mrb[47].mxu0 }
 0x365   :  { %3216 = vst.msk [vmem:[#allocation10 + $0xb0] sm:$0xff] %vm2056_vm9, %v3134_v54  ;;  %v3135_v40 = vmax.f32 %v2877_v6, 0.0 }
 0x366   :  { %v3033_v36 = vpop.f32.mrb[40].mxu1 }
 0x367   :  { %3217 = vst.msk [vmem:[#allocation10 + $0xb8] sm:$0xff] %vm2056_vm9, %v3135_v40  ;;  %v3034_v0 = vadd.f32 %v6862_v17, %v3033_v36  ;;  %v3560_v48 = vpop.f32.mrb[41].mxu1 }
 0x368   :  { %v3036_v21 = vpop.f32.mrb[42].mxu1 }
 0x369   :  { %v3174_v30 = vmax.f32 %v3034_v0, 0.0  ;;  %v3037_v22 = vadd.f32 %v6862_v17, %v3036_v21  ;;  %v3561_v51 = vpop.f32.mrb[43].mxu1 }
 0x36b   :  { %3256 = vst.msk [vmem:[#allocation10 + $0x1f0] sm:$0xff] %vm2056_vm9, %v3174_v30  ;;  %v3175_v49 = vmax.f32 %v3037_v22, 0.0 }
 0x36d   :  { %3257 = vst.msk [vmem:[#allocation10 + $0x1f8] sm:$0xff] %vm2056_vm9, %v3175_v49 }
 0x378   :  { %v3041_v1 = vpop.f32.mrb[44].mxu1 }
 0x379   :  { %v3042_v27 = vadd.f32 %v6862_v17, %v3041_v1  ;;  %v3564_v33 = vpop.f32.mrb[45].mxu1 }
 0x37a   :  { %v2881_v29 = vpop.f32.mrb[48].mxu0  ;;  %v3044_v16 = vpop.f32.mrb[46].mxu1 }
 0x37b   :  { %v2882_v2 = vadd.f32 %v6862_v17, %v2881_v29  ;;  %v3176_v41 = vmax.f32 %v3042_v27, 0.0  ;;  %v3484_v9 = vpop.f32.mrb[49].mxu0  ;;  %v3045_v18 = vadd.f32 %v6862_v17, %v3044_v16  ;;  %v3565_v15 = vpop.f32.mrb[47].mxu1 }
 0x37c   :  { %v2884_v44 = vpop.f32.mrb[50].mxu0 }
 0x37d   :  { %v3136_v58 = vmax.f32 %v2882_v2, 0.0  ;;  %3258 = vst.msk [vmem:[#allocation10 + $0x200] sm:$0xff] %vm2056_vm9, %v3176_v41  ;;  %v2885_v39 = vadd.f32 %v6862_v17, %v2884_v44  ;;  %v3177_v46 = vmax.f32 %v3045_v18, 0.0  ;;  %v3485_v47 = vpop.f32.mrb[51].mxu0 }
 0x37f   :  { %3218 = vst.msk [vmem:[#allocation10 + $0xc0] sm:$0xff] %vm2056_vm9, %v3136_v58  ;;  %v3137_v13 = vmax.f32 %v2885_v39, 0.0  ;;  %3259 = vst.msk [vmem:[#allocation10 + $0x208] sm:$0xff] %vm2056_vm9, %v3177_v46 }
 0x381   :  { %3219 = vst.msk [vmem:[#allocation10 + $0xc8] sm:$0xff] %vm2056_vm9, %v3137_v13 }
 0x38c   :  { %v2889_v63 = vpop.f32.mrb[52].mxu0 }
 0x38d   :  { %v2890_v60 = vadd.f32 %v6862_v17, %v2889_v63  ;;  %v3488_v26 = vpop.f32.mrb[53].mxu0 }
 0x38e   :  { %v2892_v34 = vpop.f32.mrb[54].mxu0 }
 0x38f   :  { %v3138_v14 = vmax.f32 %v2890_v60, 0.0  ;;  %v2893_v38 = vadd.f32 %v6862_v17, %v2892_v34  ;;  %v3489_v35 = vpop.f32.mrb[55].mxu0 }
 0x391   :  { %3220 = vst.msk [vmem:[#allocation10 + $0xd0] sm:$0xff] %vm2056_vm9, %v3138_v14  ;;  %v3139_v61 = vmax.f32 %v2893_v38, 0.0 }
 0x392   :  { %v3049_v55 = vpop.f32.mrb[48].mxu1 }
 0x393   :  { %3221 = vst.msk [vmem:[#allocation10 + $0xd8] sm:$0xff] %vm2056_vm9, %v3139_v61  ;;  %v3050_v12 = vadd.f32 %v6862_v17, %v3049_v55  ;;  %v3568_v57 = vpop.f32.mrb[49].mxu1 }
 0x394   :  { %v3052_v3 = vpop.f32.mrb[50].mxu1 }
 0x395   :  { %v3178_v8 = vmax.f32 %v3050_v12, 0.0  ;;  %v3053_v42 = vadd.f32 %v6862_v17, %v3052_v3  ;;  %v3569_v56 = vpop.f32.mrb[51].mxu1 }
 0x397   :  { %3260 = vst.msk [vmem:[#allocation10 + $0x210] sm:$0xff] %vm2056_vm9, %v3178_v8  ;;  %v3179_v23 = vmax.f32 %v3053_v42, 0.0 }
 0x399   :  { %3261 = vst.msk [vmem:[#allocation10 + $0x218] sm:$0xff] %vm2056_vm9, %v3179_v23 }
 0x3a4   :  { %v3057_v52 = vpop.f32.mrb[52].mxu1 }
 0x3a5   :  { %v3058_v19 = vadd.f32 %v6862_v17, %v3057_v52  ;;  %v3572_v50 = vpop.f32.mrb[53].mxu1 }
 0x3a6   :  { %v2897_v31 = vpop.f32.mrb[56].mxu0  ;;  %v3060_v32 = vpop.f32.mrb[54].mxu1 }
 0x3a7   :  { %v2898_v24 = vadd.f32 %v6862_v17, %v2897_v31  ;;  %v3180_v62 = vmax.f32 %v3058_v19, 0.0  ;;  %v3492_v28 = vpop.f32.mrb[57].mxu0  ;;  %v3061_v43 = vadd.f32 %v6862_v17, %v3060_v32  ;;  %v3573_v37 = vpop.f32.mrb[55].mxu1 }
 0x3a8   :  { %v2900_v11 = vpop.f32.mrb[58].mxu0 }
 0x3a9   :  { %v3140_v25 = vmax.f32 %v2898_v24, 0.0  ;;  %3262 = vst.msk [vmem:[#allocation10 + $0x220] sm:$0xff] %vm2056_vm9, %v3180_v62  ;;  %v2901_v45 = vadd.f32 %v6862_v17, %v2900_v11  ;;  %v3181_v53 = vmax.f32 %v3061_v43, 0.0  ;;  %v3493_v7 = vpop.f32.mrb[59].mxu0 }
 0x3ab   :  { %3222 = vst.msk [vmem:[#allocation10 + $0xe0] sm:$0xff] %vm2056_vm9, %v3140_v25  ;;  %v3141_v20 = vmax.f32 %v2901_v45, 0.0  ;;  %3263 = vst.msk [vmem:[#allocation10 + $0x228] sm:$0xff] %vm2056_vm9, %v3181_v53 }
 0x3ad   :  { %3223 = vst.msk [vmem:[#allocation10 + $0xe8] sm:$0xff] %vm2056_vm9, %v3141_v20 }
 0x3b8   :  { %v2905_v5 = vpop.f32.mrb[60].mxu0 }
 0x3b9   :  { %v2906_v59 = vadd.f32 %v6862_v17, %v2905_v5  ;;  %v3496_v10 = vpop.f32.mrb[61].mxu0 }
 0x3ba   :  { %v2908_v54 = vpop.f32.mrb[62].mxu0 }
 0x3bb   :  { %v3142_v6 = vmax.f32 %v2906_v59, 0.0  ;;  %v2909_v4 = vadd.f32 %v6862_v17, %v2908_v54  ;;  %v3497_v40 = vpop.f32.mrb[63].mxu0 }
 0x3bd   :  { %3224 = vst.msk [vmem:[#allocation10 + $0xf0] sm:$0xff] %vm2056_vm9, %v3142_v6  ;;  %v3143_v36 = vmax.f32 %v2909_v4, 0.0 }
 0x3be   :  { %v3065_v0 = vpop.f32.mrb[56].mxu1 }
 0x3bf   :  { %3225 = vst.msk [vmem:[#allocation10 + $0xf8] sm:$0xff] %vm2056_vm9, %v3143_v36  ;;  %v3066_v48 = vadd.f32 %v6862_v17, %v3065_v0  ;;  %v3576_v21 = vpop.f32.mrb[57].mxu1 }
 0x3c0   :  { %v3068_v30 = vpop.f32.mrb[58].mxu1 }
 0x3c1   :  { %v3182_v22 = vmax.f32 %v3066_v48, 0.0  ;;  %v3069_v51 = vadd.f32 %v6862_v17, %v3068_v30  ;;  %v3577_v49 = vpop.f32.mrb[59].mxu1 }
 0x3c3   :  { %3264 = vst.msk [vmem:[#allocation10 + $0x230] sm:$0xff] %vm2056_vm9, %v3182_v22  ;;  %v3183_v1 = vmax.f32 %v3069_v51, 0.0 }
 0x3c5   :  { %3265 = vst.msk [vmem:[#allocation10 + $0x238] sm:$0xff] %vm2056_vm9, %v3183_v1 }
 0x3d0   :  { %v3073_v27 = vpop.f32.mrb[60].mxu1 }
 0x3d1   :  { %v3074_v33 = vadd.f32 %v6862_v17, %v3073_v27  ;;  %v3580_v29 = vpop.f32.mrb[61].mxu1 }
 0x3d2   :  { %v2913_v16 = vpop.f32.mrb[64].mxu0  ;;  %v3076_v2 = vpop.f32.mrb[62].mxu1 }
 0x3d3   :  { %v2914_v41 = vadd.f32 %v6862_v17, %v2913_v16  ;;  %v3184_v9 = vmax.f32 %v3074_v33, 0.0  ;;  %v3500_v18 = vpop.f32.mrb[65].mxu0  ;;  %v3077_v15 = vadd.f32 %v6862_v17, %v3076_v2  ;;  %v3581_v44 = vpop.f32.mrb[63].mxu1 }
 0x3d4   :  { %v2916_v58 = vpop.f32.mrb[66].mxu0 }
 0x3d5   :  { %v3144_v39 = vmax.f32 %v2914_v41, 0.0  ;;  %3266 = vst.msk [vmem:[#allocation10 + $0x240] sm:$0xff] %vm2056_vm9, %v3184_v9  ;;  %v2917_v46 = vadd.f32 %v6862_v17, %v2916_v58  ;;  %v3185_v47 = vmax.f32 %v3077_v15, 0.0  ;;  %v3501_v13 = vpop.f32.mrb[67].mxu0 }
 0x3d7   :  { %3226 = vst.msk [vmem:[#allocation10 + $0x100] sm:$0xff] %vm2056_vm9, %v3144_v39  ;;  %v3145_v63 = vmax.f32 %v2917_v46, 0.0  ;;  %3267 = vst.msk [vmem:[#allocation10 + $0x248] sm:$0xff] %vm2056_vm9, %v3185_v47 }
 0x3d9   :  { %3227 = vst.msk [vmem:[#allocation10 + $0x108] sm:$0xff] %vm2056_vm9, %v3145_v63 }
 0x3e4   :  { %v2921_v60 = vpop.f32.mrb[68].mxu0 }
 0x3e5   :  { %v2922_v26 = vadd.f32 %v6862_v17, %v2921_v60  ;;  %v3504_v34 = vpop.f32.mrb[69].mxu0 }
 0x3e6   :  { %v2924_v14 = vpop.f32.mrb[70].mxu0 }
 0x3e7   :  { %v3146_v38 = vmax.f32 %v2922_v26, 0.0  ;;  %v2925_v35 = vadd.f32 %v6862_v17, %v2924_v14  ;;  %v3505_v61 = vpop.f32.mrb[71].mxu0 }
 0x3e9   :  { %3228 = vst.msk [vmem:[#allocation10 + $0x110] sm:$0xff] %vm2056_vm9, %v3146_v38  ;;  %v3147_v55 = vmax.f32 %v2925_v35, 0.0 }
 0x3ea   :  { %v3081_v12 = vpop.f32.mrb[64].mxu1 }
 0x3eb   :  { %3229 = vst.msk [vmem:[#allocation10 + $0x118] sm:$0xff] %vm2056_vm9, %v3147_v55  ;;  %v3082_v57 = vadd.f32 %v6862_v17, %v3081_v12  ;;  %v3584_v3 = vpop.f32.mrb[65].mxu1 }
 0x3ec   :  { %v3084_v8 = vpop.f32.mrb[66].mxu1 }
 0x3ed   :  { %v3186_v42 = vmax.f32 %v3082_v57, 0.0  ;;  %v3085_v56 = vadd.f32 %v6862_v17, %v3084_v8  ;;  %v3585_v23 = vpop.f32.mrb[67].mxu1 }
 0x3ef   :  { %3268 = vst.msk [vmem:[#allocation10 + $0x250] sm:$0xff] %vm2056_vm9, %v3186_v42  ;;  %v3187_v52 = vmax.f32 %v3085_v56, 0.0 }
 0x3f1   :  { %3269 = vst.msk [vmem:[#allocation10 + $0x258] sm:$0xff] %vm2056_vm9, %v3187_v52 }
 0x3fc   :  { %v3089_v19 = vpop.f32.mrb[68].mxu1 }
 0x3fd   :  { %v3090_v50 = vadd.f32 %v6862_v17, %v3089_v19  ;;  %v3588_v31 = vpop.f32.mrb[69].mxu1 }
 0x3fe   :  { %v2929_v32 = vpop.f32.mrb[72].mxu0  ;;  %v3092_v24 = vpop.f32.mrb[70].mxu1 }
 0x3ff   :  { %v2930_v62 = vadd.f32 %v6862_v17, %v2929_v32  ;;  %v3188_v28 = vmax.f32 %v3090_v50, 0.0  ;;  %v3508_v43 = vpop.f32.mrb[73].mxu0  ;;  %v3093_v37 = vadd.f32 %v6862_v17, %v3092_v24  ;;  %v3589_v11 = vpop.f32.mrb[71].mxu1 }
 0x400   :  { %v2932_v25 = vpop.f32.mrb[74].mxu0 }
 0x401   :  { %v3148_v45 = vmax.f32 %v2930_v62, 0.0  ;;  %3270 = vst.msk [vmem:[#allocation10 + $0x260] sm:$0xff] %vm2056_vm9, %v3188_v28  ;;  %v2933_v53 = vadd.f32 %v6862_v17, %v2932_v25  ;;  %v3189_v7 = vmax.f32 %v3093_v37, 0.0  ;;  %v3509_v20 = vpop.f32.mrb[75].mxu0 }
 0x403   :  { %3230 = vst.msk [vmem:[#allocation10 + $0x120] sm:$0xff] %vm2056_vm9, %v3148_v45  ;;  %v3149_v5 = vmax.f32 %v2933_v53, 0.0  ;;  %3271 = vst.msk [vmem:[#allocation10 + $0x268] sm:$0xff] %vm2056_vm9, %v3189_v7 }
 0x405   :  { %3231 = vst.msk [vmem:[#allocation10 + $0x128] sm:$0xff] %vm2056_vm9, %v3149_v5 }
 0x410   :  { %v2937_v59 = vpop.f32.mrb[76].mxu0 }
 0x411   :  { %v2938_v10 = vadd.f32 %v6862_v17, %v2937_v59  ;;  %v3512_v54 = vpop.f32.mrb[77].mxu0 }
 0x412   :  { %v2940_v6 = vpop.f32.mrb[78].mxu0 }
 0x413   :  { %v3150_v4 = vmax.f32 %v2938_v10, 0.0  ;;  %v2941_v40 = vadd.f32 %v6862_v17, %v2940_v6  ;;  %v3513_v36 = vpop.f32.mrb[79].mxu0 }
 0x415   :  { %3232 = vst.msk [vmem:[#allocation10 + $0x130] sm:$0xff] %vm2056_vm9, %v3150_v4  ;;  %v3151_v0 = vmax.f32 %v2941_v40, 0.0 }
 0x416   :  { %v3097_v48 = vpop.f32.mrb[72].mxu1 }
 0x417   :  { %3233 = vst.msk [vmem:[#allocation10 + $0x138] sm:$0xff] %vm2056_vm9, %v3151_v0  ;;  %v3098_v21 = vadd.f32 %v6862_v17, %v3097_v48  ;;  %v3592_v30 = vpop.f32.mrb[73].mxu1 }
 0x418   :  { %v3100_v22 = vpop.f32.mrb[74].mxu1 }
 0x419   :  { %v3190_v51 = vmax.f32 %v3098_v21, 0.0  ;;  %v3101_v49 = vadd.f32 %v6862_v17, %v3100_v22  ;;  %v3593_v1 = vpop.f32.mrb[75].mxu1 }
 0x41b   :  { %3272 = vst.msk [vmem:[#allocation10 + $0x270] sm:$0xff] %vm2056_vm9, %v3190_v51  ;;  %v3191_v27 = vmax.f32 %v3101_v49, 0.0 }
 0x41d   :  { %3273 = vst.msk [vmem:[#allocation10 + $0x278] sm:$0xff] %vm2056_vm9, %v3191_v27 }
 0x428   :  { %v3105_v33 = vpop.f32.mrb[76].mxu1 }
 0x429   :  { %v3106_v29 = vadd.f32 %v6862_v17, %v3105_v33  ;;  %v3596_v16 = vpop.f32.mrb[77].mxu1 }
 0x42a   :  { %v2945_v2 = vpop.f32.mrb[80].mxu0  ;;  %v3108_v41 = vpop.f32.mrb[78].mxu1 }
 0x42b   :  { %v2946_v9 = vadd.f32 %v6862_v17, %v2945_v2  ;;  %v3192_v18 = vmax.f32 %v3106_v29, 0.0  ;;  %v3516_v15 = vpop.f32.mrb[81].mxu0  ;;  %v3109_v44 = vadd.f32 %v6862_v17, %v3108_v41  ;;  %v3597_v58 = vpop.f32.mrb[79].mxu1 }
 0x42c   :  { %v2948_v39 = vpop.f32.mrb[82].mxu0 }
 0x42d   :  { %v3152_v46 = vmax.f32 %v2946_v9, 0.0  ;;  %3274 = vst.msk [vmem:[#allocation10 + $0x280] sm:$0xff] %vm2056_vm9, %v3192_v18  ;;  %v2949_v47 = vadd.f32 %v6862_v17, %v2948_v39  ;;  %v3193_v13 = vmax.f32 %v3109_v44, 0.0  ;;  %v3517_v63 = vpop.f32.mrb[83].mxu0 }
 0x42f   :  { %3234 = vst.msk [vmem:[#allocation10 + $0x140] sm:$0xff] %vm2056_vm9, %v3152_v46  ;;  %v3153_v60 = vmax.f32 %v2949_v47, 0.0  ;;  %3275 = vst.msk [vmem:[#allocation10 + $0x288] sm:$0xff] %vm2056_vm9, %v3193_v13 }
 0x431   :  { %3235 = vst.msk [vmem:[#allocation10 + $0x148] sm:$0xff] %vm2056_vm9, %v3153_v60 }
 0x432   :  { %3842 = shalt.err (!%p3839_p10)
}
 0x433   :  { %s3843_s25 = scalar_lea.hbm %s7081_s4, 10496 }
 0x434   :  { %p3844_p11 = scmp.ne.s32.totalorder %s7081_s4, %s3843_s25  ;;  %p3847_p12 = scmp.lt.u32.totalorder %s3843_s25, %s7081_s4 }
 0x436   :  { %p3849_p13 = pnand %p3847_p12, %p3844_p11 }
 0x438   :  { %3852 = shalt.err (!%p3849_p13)
}
 0x439   :  { %s3877_s18 = smov 128  }
 0x43a   :  { %3287 = dma.vmem_to_hbm [thread:$0]  %s3282_s21, 10496, %s7081_s4, [#allocation4], %s3877_s18, %s3877_s18, %s3867_s3  }
 0x43b   :  { %3859 = dma.done.wait [#allocation4], 10496  }
 0x43c   :  { %3860 = vsyncadd [#allocation4], 4294956800 }
 0x43d   :  { %3291 = vsyncpa [#allocation3], 1 }
 0x43e   :  { %3292 = vsyncpa [#allocation6], 1 }
 0x43f   :  { %3293 = vsyncpa [#allocation9], 1 }
 0x440   :  { %3294 = vsyncpa [#allocation4], 1 }

// kernel: tpu_custom_call.1
= control target key start
LH: loop header
LB: loop body
LE: loop exit
PB: predicated region body
PF: predicated region fallthrough
CT: control target
= control target key end

     0   :  { %9 = vsyncpa [#allocation3], 0  ;;  %s7077_s0 = inlined_call_operand.hbm [shape: bf16[704,4], index: 0, kind: input, shape index: {}]   ;;  %s7078_s1 = inlined_call_operand.hbm [shape: bf16[1,48,4], index: 1, kind: input, shape index: {}]   ;;  %s7079_s2 = inlined_call_operand.hbm [shape: bf16[36,8], index: 2, kind: input, shape index: {}]   ;;  %s7080_s3 = inlined_call_operand.hbm [shape: f32[1,8], index: 3, kind: input, shape index: {}]   ;;  %s7081_s4 = inlined_call_operand.hbm [shape: f32[656,8], index: 4, kind: output, shape index: {}]  }
   0x1   :  { %10 = vsyncpa [#allocation6], 0 }
   0x2   :  { %11 = vsyncpa [#allocation9], 0 }
   0x3   :  { %12 = vsyncpa [#allocation4], 0  ;;  %s3861_s15 = smov [#allocation5]   ;;  %s3862_s17 = smov [#allocation2]  }
   0x4   :  { %s30_s16 = sshll.u32 %s3861_s15, 4  ;;  %s18_s18 = sshll.u32 %s3862_s17, 4  ;;  %s31_s16 = int_to_ptr.vmem [resolvable:$true] %s30_s16  ;;  %s3903_s18 = int_to_ptr.vmem [resolvable:$true] %s18_s18 }
   0x5   :  { %s3743_s21 = scalar_lea.hbm %s7078_s1, 384 }
   0x6   :  { %p3744_p0 = scmp.ne.s32.totalorder %s7078_s1, %s3743_s21  ;;  %p3747_p1 = scmp.lt.u32.totalorder %s3743_s21, %s7078_s1 }
   0x8   :  { %p3749_p2 = pnand %p3747_p1, %p3744_p0 }
   0xa   :  { %3752 = shalt.err (!%p3749_p2)
}
   0xb   :  { %s3753_s26 = scalar_lea.vmem %s31_s16, 384  ;;  %p3758_p4 = scmp.lt.s32.totalorder %s31_s16, %s31_s16 }
   0xc   :  { %p3754_p3 = scmp.ne.s32.totalorder %s31_s16, %s3753_s26  ;;  %p3759_p5 = scmp.lt.s32.totalorder %s3753_s26, %s3753_s26 }
   0xe   :  { %p3760_p6 = por %p3759_p5, %p3758_p4 }
  0x10   :  { %p3761_p7 = pnand %p3760_p6, %p3754_p3 }
  0x12   :  { %3764 = shalt.err (!%p3761_p7)
}
  0x13   :  { %s3863_s27 = smov 64   ;;  %s3864_s28 = smov 4  }
  0x14   :  { %36 = dma.hbm_to_vmem [thread:$0]  %s7078_s1, 384, %s31_s16, [#allocation6], %s3863_s27, %s3863_s27, %s3864_s28  }
  0x15   :  { %s3765_s7 = scalar_lea.hbm %s7077_s0, 5248  ;;  %s3767_s12 = scalar_lea.hbm %s7077_s0, 5632 }
  0x16   :  { %p3766_p8 = scmp.ne.s32.totalorder %s7077_s0, %s3765_s7  ;;  %p3768_p9 = scmp.lt.u32.totalorder %s3767_s12, %s3765_s7 }
  0x17   :  { %p3769_p10 = scmp.lt.u32.totalorder %s3765_s7, %s7077_s0 }
  0x19   :  { %p3770_p11 = por %p3769_p10, %p3768_p9 }
  0x1b   :  { %p3771_p12 = pnand %p3770_p11, %p3766_p8 }
  0x1d   :  { %3774 = shalt.err (!%p3771_p12)
}
  0x1e   :  { %s3775_s1 = scalar_lea.vmem %s3903_s18, 5248  ;;  %p3780_p0 = scmp.lt.s32.totalorder %s3903_s18, %s3903_s18 }
  0x1f   :  { %p3776_p13 = scmp.ne.s32.totalorder %s3903_s18, %s3775_s1  ;;  %p3781_p1 = scmp.lt.s32.totalorder %s3775_s1, %s3775_s1 }
  0x21   :  { %p3782_p2 = por %p3781_p1, %p3780_p0 }
  0x23   :  { %p3783_p3 = pnand %p3782_p2, %p3776_p13 }
  0x25   :  { %3786 = shalt.err (!%p3783_p3)
}
  0x26   :  { %24 = dma.hbm_to_vmem [thread:$0]  %s7077_s0, 5248, %s3903_s18, [#allocation3], %s3863_s27, %s3863_s27, %s3864_s28  }
  0x27   :  { %s3865_s17 = smov [#allocation7]   ;;  %s3866_s20 = smov [#allocation8]  }
  0x28   :  { %s42_s19 = sshll.u32 %s3865_s17, 4  ;;  %s55_s21 = sshll.u32 %s3866_s20, 4  ;;  %s43_s19 = int_to_ptr.vmem [resolvable:$true] %s42_s19  ;;  %s56_s21 = int_to_ptr.vmem [resolvable:$true] %s55_s21 }
  0x29   :  { %s3787_s24 = scalar_lea.hbm %s7079_s2, 320 }
  0x2a   :  { %p3788_p4 = scmp.ne.s32.totalorder %s7079_s2, %s3787_s24  ;;  %p3791_p5 = scmp.lt.u32.totalorder %s3787_s24, %s7079_s2 }
  0x2c   :  { %p3793_p6 = pnand %p3791_p5, %p3788_p4 }
  0x2e   :  { %3796 = shalt.err (!%p3793_p6)
}
  0x2f   :  { %s3797_s0 = scalar_lea.vmem %s43_s19, 320  ;;  %p3802_p8 = scmp.lt.s32.totalorder %s43_s19, %s43_s19 }
  0x30   :  { %p3798_p7 = scmp.ne.s32.totalorder %s43_s19, %s3797_s0  ;;  %p3803_p9 = scmp.lt.s32.totalorder %s3797_s0, %s3797_s0 }
  0x32   :  { %p3804_p10 = por %p3803_p9, %p3802_p8 }
  0x34   :  { %p3805_p11 = pnand %p3804_p10, %p3798_p7 }
  0x36   :  { %3808 = shalt.err (!%p3805_p11)
}
  0x37   :  { %48 = dma.hbm_to_vmem [thread:$0]  %s7079_s2, 320, %s43_s19, [#allocation6], %s3863_s27, %s3863_s27, %s3864_s28  }
  0x38   :  { %s3809_s8 = scalar_lea.hbm %s7080_s3, 16 }
  0x39   :  { %p3810_p12 = scmp.ne.s32.totalorder %s7080_s3, %s3809_s8  ;;  %p3813_p13 = scmp.lt.u32.totalorder %s3809_s8, %s7080_s3 }
  0x3b   :  { %p3815_p0 = pnand %p3813_p13, %p3810_p12 }
  0x3d   :  { %3818 = shalt.err (!%p3815_p0)
}
  0x3e   :  { %s3819_s13 = scalar_lea.vmem %s56_s21, 16  ;;  %s3823_s14 = scalar_lea.vmem %s56_s21, 32 }
  0x3f   :  { %p3820_p1 = scmp.ne.s32.totalorder %s56_s21, %s3819_s13  ;;  %p3824_p2 = scmp.lt.s32.totalorder %s56_s21, %s56_s21 }
  0x40   :  { %p3825_p3 = scmp.lt.s32.totalorder %s3823_s14, %s3819_s13 }
  0x42   :  { %p3826_p4 = por %p3825_p3, %p3824_p2 }
  0x44   :  { %p3827_p5 = pnand %p3826_p4, %p3820_p1 }
  0x46   :  { %3830 = shalt.err (!%p3827_p5)
}
  0x47   :  { %58 = dma.hbm_to_vmem [thread:$0]  %s7080_s3, 16, %s56_s21, [#allocation9]  }
  0x48   :  { %3853 = dma.done.wait [#allocation3], 5248  }
  0x49   :  { %3854 = vsyncadd [#allocation3], 4294962048 }
  0x4a   :  { %3855 = dma.done.wait [#allocation6], 704  }
  0x4b   :  { %3856 = vsyncadd [#allocation6], 4294966592 }
  0x4c   :  { %3857 = dma.done.wait [#allocation9], 16  }
  0x4d   :  { %3858 = vsyncadd [#allocation9], 4294967280  ;;  %v3970_v0 = vld [vmem:[#allocation2 + $0x10] sm:$0xff]   ;;  %v3972_v1 = vld [vmem:[#allocation2 + $0x18] sm:$0xff]   ;;  %vm380_vm0 = vsmask.f32 7424 }
  0x4e   :  { %v3975_v2 = vshll.u32 %v3970_v0, 16  ;;  %v3978_v3 = vshrl.u32 %v3970_v0, 16  ;;  %v3981_v4 = vshll.u32 %v3972_v1, 16  ;;  %v3983_v5 = vld [vmem:[#allocation2] sm:$0xff]   ;;  %v3985_v6 = vld [vmem:[#allocation2 + $0x8] sm:$0xff]   ;;  %v3988_v7 = vshrl.u32 %v3972_v1, 16 }
  0x4f   :  { %v382_v10 = vshrl.u32 %v3983_v5, 16  ;;  %v384_v11 = vshll.u32 %v3983_v5, 16  ;;  %v3994_v12 = vld [vmem:[#allocation2 + $0x20] sm:$0xff]   ;;  %v3996_v13 = vld [vmem:[#allocation2 + $0x28] sm:$0xff]   ;;  %v7083_v14 = vshll.u32 %v3985_v6, 16  ;;  %v7082_v15 = vshrl.u32 %v3985_v6, 16 }
  0x50   :  { %7266 = vst [vmem:[#allocation15_spill] sm:$0xff] %v3981_v4  ;;  %7267 = vst [vmem:[#allocation16_spill] sm:$0xff] %v3988_v7  ;;  %v399_v8 = vrot.slane %v3975_v2, 1  ;;  %v407_v9 = vrot.slane %v3981_v4, 1  ;;  %v4003_v19 = vshll.u32 %v3994_v12, 16  ;;  %v4007_v21 = vld [vmem:[#allocation2 + $0x30] sm:$0xff]  }
  0x51   :  { %v386_v17 = vrot.slane %v384_v11, 1  ;;  %v391_v20 = vrot.slane %v7083_v14, 1  ;;  %v4010_v22 = vshll.u32 %v3996_v13, 16  ;;  %v4012_v23 = vld [vmem:[#allocation2 + $0x38] sm:$0xff]   ;;  %v4017_v27 = vshrl.u32 %v3996_v13, 16  ;;  %v4029_v32 = vld [vmem:[#allocation2 + $0x40] sm:$0xff]  }
  0x52   :  { %v403_v16 = vor.u32 %v3978_v3, %v399_v8  ;;  %v411_v18 = vor.u32 %v3988_v7, %v407_v9  ;;  %7268 = vst [vmem:[#allocation17_spill] sm:$0xff] %v4003_v19  ;;  %v415_v26 = vrot.slane %v4003_v19, 1  ;;  %v4024_v30 = vshll.u32 %v4007_v21, 16  ;;  %v4043_v40 = vld [vmem:[#allocation2 + $0x48] sm:$0xff]   ;;  %v4053_v45 = vld [vmem:[#allocation2 + $0x50] sm:$0xff]   ;;  %v4070_v53 = vld [vmem:[#allocation2 + $0x58] sm:$0xff]  }
  0x53   :  { %7269 = vst [vmem:[#allocation18_spill] sm:$0xff] %v4010_v22  ;;  %v387_v25 = vor.u32 %v386_v17, %v382_v10  ;;  %7270 = vst [vmem:[#allocation19_spill] sm:$0xff] %v4017_v27  ;;  %v395_v28 = vor.u32 %v7082_v15, %v391_v20  ;;  %v423_v29 = vrot.slane %v4010_v22, 1  ;;  %v4027_v31 = vshrl.u32 %v3994_v12, 16  ;;  %v4072_v54 = vld [vmem:[#allocation2 + $0x60] sm:$0xff]   ;;  %v4074_v55 = vld [vmem:[#allocation2 + $0x68] sm:$0xff]  }
  0x54   :  { %v408_v24 = vsel %vm380_vm0, %v403_v16, %v407_v9  ;;  %7271 = vst [vmem:[#allocation20_spill] sm:$0xff] %v4024_v30  ;;  %v416_v34 = vsel %vm380_vm0, %v411_v18, %v415_v26  ;;  %v4034_v35 = vshll.u32 %v4012_v23, 16  ;;  %v4037_v36 = vshrl.u32 %v4012_v23, 16  ;;  %v4087_v62 = vld [vmem:[#allocation2 + $0x70] sm:$0xff]   ;;  %v4099_v11 = vld [vmem:[#allocation2 + $0x78] sm:$0xff]   ;;  %v4160_v14 = vld [vmem:[#allocation2 + $0xa0] sm:$0xff]  }
  0x55   :  { %717 = vrot.lane.b32.xlu1 %v408_v24, %s3864_s28  ;;  %7272 = vst [vmem:[#allocation21_spill] sm:$0xff] %v4027_v31  ;;  %v392_v33 = vsel %vm380_vm0, %v387_v25, %v391_v20  ;;  %v400_v37 = vsel %vm380_vm0, %v395_v28, %v399_v8  ;;  %v427_v38 = vor.u32 %v4017_v27, %v423_v29  ;;  %v431_v39 = vrot.slane %v4024_v30, 1  ;;  %v4111_v25 = vld [vmem:[#allocation2 + $0x80] sm:$0xff]   ;;  %v4282_v30 = vld [vmem:[#allocation2 + $0xf8] sm:$0xff]   ;;  %s3867_s3 = smov 8   ;;  %s3871_s1 = smov 16  }
  0x56   :  { %7273 = vst [vmem:[#allocation22_spill] sm:$0xff] %v4034_v35  ;;  %7274 = vst [vmem:[#allocation23_spill] sm:$0xff] %v4037_v36  ;;  %713 = vrot.lane.b32.xlu0 %v392_v33, %s3864_s28  ;;  %v419_v41 = vor.u32 %v4027_v31, %v415_v26  ;;  %v439_v42 = vrot.slane %v4034_v35, 1  ;;  %v4048_v43 = vshll.u32 %v4029_v32, 16  ;;  %v4051_v44 = vshrl.u32 %v4007_v21, 16  ;;  %v4332_v31 = vld [vmem:[#allocation2 + $0x110] sm:$0xff]  }
  0x57   :  { %v4057_v46 = vshll.u32 %v4043_v40, 16  ;;  %v4060_v47 = vshrl.u32 %v4043_v40, 16  ;;  %v432_v48 = vsel %vm380_vm0, %v427_v38, %v431_v39  ;;  %v4066_v51 = vshll.u32 %v4053_v45, 16  ;;  %s3872_s15 = smov 24   ;;  %s3873_s16 = smov 20  }
  0x58   :  { %7275 = vst [vmem:[#allocation24_spill] sm:$0xff] %v4048_v43  ;;  %7276 = vst [vmem:[#allocation25_spill] sm:$0xff] %v4051_v44  ;;  %v443_v49 = vor.u32 %v4037_v36, %v439_v42  ;;  %v447_v50 = vrot.slane %v4048_v43, 1  ;;  %v424_v56 = vsel %vm380_vm0, %v419_v41, %v423_v29  ;;  %v435_v57 = vor.u32 %v4051_v44, %v431_v39  ;;  %v4129_v41 = vld [vmem:[#allocation2 + $0x88] sm:$0xff]   ;;  %s3874_s17 = smov 32   ;;  %s3875_s19 = smov 28  }
  0x59   :  { %719 = vrot.lane.b32.xlu1 %v416_v34, %s3864_s28  ;;  %7277 = vst [vmem:[#allocation26_spill] sm:$0xff] %v4057_v46  ;;  %7278 = vst [vmem:[#allocation27_spill] sm:$0xff] %v4060_v47  ;;  %v455_v52 = vrot.slane %v4057_v46, 1  ;;  %v463_v58 = vrot.slane %v4066_v51, 1  ;;  %v4080_v59 = vshrl.u32 %v4029_v32, 16  ;;  %v4085_v61 = vshll.u32 %v4070_v53, 16 }
  0x5a   :  { %7279 = vst [vmem:[#allocation28_spill] sm:$0xff] %v4066_v51  ;;  %715 = vrot.lane.b32.xlu0 %v400_v37, %s3864_s28  ;;  %v448_v60 = vsel %vm380_vm0, %v443_v49, %v447_v50  ;;  %v4091_v8 = vshrl.u32 %v4070_v53, 16  ;;  %v4094_v9 = vshll.u32 %v4072_v54, 16  ;;  %v4097_v10 = vshll.u32 %v4074_v55, 16  ;;  %v4135_v49 = vld [vmem:[#allocation2 + $0x90] sm:$0xff]   ;;  %s3876_s20 = smov [#allocation10]  }
  0x5b   :  { %7280 = vst [vmem:[#allocation29_spill] sm:$0xff] %v4080_v59  ;;  %7281 = vst [vmem:[#allocation30_spill] sm:$0xff] %v4085_v61  ;;  %v459_v63 = vor.u32 %v4060_v47, %v455_v52  ;;  %v471_v16 = vrot.slane %v4085_v61, 1  ;;  %v4104_v17 = vshrl.u32 %v4053_v45, 16  ;;  %v440_v18 = vsel %vm380_vm0, %v435_v57, %v439_v42  ;;  %v4140_v57 = vld [vmem:[#allocation2 + $0x98] sm:$0xff]   ;;  %v4215_v61 = vld [vmem:[#allocation2 + $0xc8] sm:$0xff]  }
  0x5c   :  { %7282 = vst [vmem:[#allocation31_spill] sm:$0xff] %v4091_v8  ;;  %7283 = vst [vmem:[#allocation32_spill] sm:$0xff] %v4094_v9  ;;  %v451_v20 = vor.u32 %v4080_v59, %v447_v50  ;;  %v4109_v24 = vshrl.u32 %v4074_v55, 16  ;;  %v487_v26 = vrot.slane %v4097_v10, 1  ;;  %v4116_v28 = vshll.u32 %v4087_v62, 16  ;;  %s3281_s21 = sshll.u32 %s3876_s20, 4  ;;  %s3282_s21 = int_to_ptr.vmem [resolvable:$true] %s3281_s21 }
  0x5d   :  { %723 = vrot.lane.b32.xlu1 %v432_v48, %s3864_s28  ;;  %7284 = vst [vmem:[#allocation33_spill] sm:$0xff] %v4097_v10  ;;  %7285 = vst [vmem:[#allocation34_spill] sm:$0xff] %v4104_v17  ;;  %v464_v29 = vsel %vm380_vm0, %v459_v63, %v463_v58  ;;  %v475_v33 = vor.u32 %v4091_v8, %v471_v16  ;;  %v479_v34 = vrot.slane %v4094_v9, 1  ;;  %v4122_v37 = vshll.u32 %v4099_v11, 16  ;;  %v4231_v8 = vld [vmem:[#allocation2 + $0xd0] sm:$0xff]   ;;  %s3831_s22 = scalar_lea.vmem %s3282_s21, 10496  ;;  %p3836_p7 = scmp.lt.s32.totalorder %s3282_s21, %s3282_s21 }
  0x5e   :  { %721 = vrot.lane.b32.xlu0 %v424_v56, %s3864_s28  ;;  %7286 = vst [vmem:[#allocation35_spill] sm:$0xff] %v4109_v24  ;;  %7287 = vst [vmem:[#allocation36_spill] sm:$0xff] %v4116_v28  ;;  %v467_v38 = vor.u32 %v4104_v17, %v463_v58  ;;  %v4127_v39 = vshrl.u32 %v4072_v54, 16  ;;  %v456_v42 = vsel %vm380_vm0, %v451_v20, %v455_v52  ;;  %v4133_v48 = vshll.u32 %v4111_v25, 16  ;;  %p3832_p6 = scmp.ne.s32.totalorder %s3282_s21, %s3831_s22  ;;  %p3837_p8 = scmp.lt.s32.totalorder %s3831_s22, %s3831_s22 }
  0x5f   :  { %7288 = vst [vmem:[#allocation37_spill] sm:$0xff] %v4122_v37  ;;  %v491_v50 = vor.u32 %v4109_v24, %v487_v26  ;;  %v495_v56 = vrot.slane %v4116_v28, 1  ;;  %v480_v58 = vsel %vm380_vm0, %v475_v33, %v479_v34  ;;  %v4145_v63 = vshrl.u32 %v4099_v11, 16 }
  0x60   :  { %7289 = vst [vmem:[#allocation38_spill] sm:$0xff] %v4127_v39  ;;  %7290 = vst [vmem:[#allocation39_spill] sm:$0xff] %v4133_v48  ;;  %v4148_v52 = vshll.u32 %v4129_v41, 16  ;;  %v483_v20 = vor.u32 %v4127_v39, %v479_v34  ;;  %v4155_v15 = vshrl.u32 %v4087_v62, 16  ;;  %v4158_v33 = vshrl.u32 %v4129_v41, 16  ;;  %p3838_p9 = por %p3837_p8, %p3836_p7 }
  0x61   :  { %727 = vrot.lane.b32.xlu1 %v448_v60, %s3864_s28  ;;  %v503_v60 = vrot.slane %v4122_v37, 1  ;;  %7291 = vst [vmem:[#allocation40_spill] sm:$0xff] %v4145_v63  ;;  %v4164_v37 = vshll.u32 %v4135_v49, 16  ;;  %v4176_v28 = vshrl.u32 %v4111_v25, 16  ;;  %v4181_v24 = vshrl.u32 %v4140_v57, 16 }
  0x62   :  { %725 = vrot.lane.b32.xlu0 %v440_v18, %s3864_s28  ;;  %7292 = vst [vmem:[#allocation41_spill] sm:$0xff] %v4148_v52  ;;  %v472_v18 = vsel %vm380_vm0, %v467_v38, %v471_v16  ;;  %7293 = vst [vmem:[#allocation42_spill] sm:$0xff] %v4155_v15  ;;  %v496_v16 = vsel %vm380_vm0, %v491_v50, %v495_v56  ;;  %v519_v38 = vrot.slane %v4148_v52, 1  ;;  %v4184_v50 = vshll.u32 %v4160_v14, 16  ;;  %p3839_p10 = pnand %p3838_p9, %p3832_p6 }
  0x63   :  { %7294 = vst [vmem:[#allocation43_spill] sm:$0xff] %v4158_v33  ;;  %7295 = vst [vmem:[#allocation44_spill] sm:$0xff] %v4164_v37  ;;  %v507_v34 = vor.u32 %v4145_v63, %v503_v60  ;;  %v499_v10 = vor.u32 %v4155_v15, %v495_v56  ;;  %v4188_v63 = vld [vmem:[#allocation2 + $0xb0] sm:$0xff]   ;;  %v4200_v15 = vshrl.u32 %v4135_v49, 16  ;;  %v4254_v17 = vshrl.u32 %v4215_v61, 16 }
  0x64   :  { %7297 = vst [vmem:[#allocation46_spill] sm:$0xff] %v4176_v28  ;;  %7298 = vst [vmem:[#allocation47_spill] sm:$0xff] %v4181_v24  ;;  %v523_v9 = vor.u32 %v4158_v33, %v519_v38  ;;  %v4257_v46 = vshll.u32 %v4231_v8, 16  ;;  %v4298_v22 = vshrl.u32 %v4231_v8, 16  ;;  %vm795_vm1 = vcmask 1046528  }
  0x65   :  { %731 = vrot.lane.b32.xlu1 %v464_v29, %s3864_s28  ;;  %v511_v29 = vrot.slane %v4133_v48, 1  ;;  %v4172_v48 = vld [vmem:[#allocation2 + $0xa8] sm:$0xff]   ;;  %7299 = vst [vmem:[#allocation48_spill] sm:$0xff] %v4184_v50  ;;  %7300 = vst [vmem:[#allocation49_spill] sm:$0xff] %v4188_v63  ;;  %vm1045_vm2 = vsmask.f32 6400 }
  0x66   :  { %729 = vrot.lane.b32.xlu0 %v456_v42, %s3864_s28  ;;  %v4167_v42 = vshll.u32 %v4140_v57, 16  ;;  %v4194_v56 = vshll.u32 %v4172_v48, 16  ;;  %7303 = vst [vmem:[#allocation52_spill] sm:$0xff] %v4200_v15  ;;  %v4206_v33 = vshrl.u32 %v4172_v48, 16  ;;  %7312 = vst [vmem:[#allocation61_spill] sm:$0xff] %v4254_v17  ;;  %vm2747_vm3 = vcmask 1041408  }
  0x67   :  { %7313 = vst [vmem:[#allocation62_spill] sm:$0xff] %v4257_v46  ;;  %7319 = vst [vmem:[#allocation68_spill] sm:$0xff] %v4298_v22  ;;  %vm1302_vm4 = vcmask 1045504   ;;  %vm3870_vm5 = vmmov 0   ;;  %vm1807_vm6 = vcmask 1044480   ;;  %vm1973_vm8 = vcmask 31744  }
  0x68   :  { %7296 = vst [vmem:[#allocation45_spill] sm:$0xff] %v4167_v42  ;;  %v535_v52 = vrot.slane %v4167_v42, 1  ;;  %7301 = vst [vmem:[#allocation50_spill] sm:$0xff] %v4194_v56  ;;  %v515_v42 = vor.u32 %v4176_v28, %v511_v29  ;;  %vm1552_vm7 = vsmask.f32 5376  ;;  %vm2056_vm9 = vcmask 64512  }
  0x69   :  { %735 = vrot.lane.b32.xlu1 %v480_v58, %s3864_s28  ;;  %v488_v58 = vsel %vm380_vm0, %v483_v20, %v487_v26  ;;  %v527_v26 = vrot.slane %v4164_v37, 1  ;;  %v4196_v20 = vld [vmem:[#allocation2 + $0xb8] sm:$0xff]   ;;  %7304 = vst [vmem:[#allocation53_spill] sm:$0xff] %v4206_v33  ;;  %v4208_v37 = vld [vmem:[#allocation2 + $0xc0] sm:$0xff]   ;;  %vm2139_vm10 = vcmask 97280   ;;  %vm2222_vm11 = vcmask 130048  }
  0x6a   :  { %733 = vrot.lane.b32.xlu0 %v472_v18, %s3864_s28  ;;  %v512_v18 = vsel %vm380_vm0, %v507_v34, %v511_v29  ;;  %7302 = vst [vmem:[#allocation51_spill] sm:$0xff] %v4196_v20  ;;  %v543_v34 = vrot.slane %v4184_v50, 1  ;;  %v539_v39 = vor.u32 %v4181_v24, %v535_v52  ;;  %v4220_v29 = vshll.u32 %v4196_v20, 16 }
  0x6b   :  { %v531_v50 = vor.u32 %v4200_v15, %v527_v26  ;;  %v520_v24 = vsel %vm380_vm0, %v515_v42, %v519_v38  ;;  %v4229_v28 = vshll.u32 %v4208_v37, 16  ;;  %v4242_v42 = vshrl.u32 %v4196_v20, 16  ;;  %v4244_v38 = vld [vmem:[#allocation2 + $0xd8] sm:$0xff]  }
  0x6c   :  { %7306 = vst [vmem:[#allocation55_spill] sm:$0xff] %v4220_v29  ;;  %v567_v15 = vrot.slane %v4220_v29, 1  ;;  %v4275_v35 = vshrl.u32 %v4208_v37, 16  ;;  %v4375_v29 = vld [vmem:[#allocation2 + $0x130] sm:$0xff]   ;;  %vm2305_vm12 = vcmask 162816   ;;  %vm2388_vm13 = vcmask 195584  }
  0x6d   :  { %739 = vrot.lane.b32.xlu1 %v496_v16, %s3864_s28  ;;  %v504_v16 = vsel %vm380_vm0, %v499_v10, %v503_v60  ;;  %v528_v10 = vsel %vm380_vm0, %v523_v9, %v527_v26  ;;  %v551_v60 = vrot.slane %v4194_v56, 1  ;;  %7308 = vst [vmem:[#allocation57_spill] sm:$0xff] %v4229_v28  ;;  %v544_v9 = vsel %vm380_vm0, %v539_v39, %v543_v34 }
  0x6e   :  { %737 = vrot.lane.b32.xlu0 %v488_v58, %s3864_s28  ;;  %v4213_v58 = vshll.u32 %v4188_v63, 16  ;;  %v4236_v56 = vshll.u32 %v4215_v61, 16  ;;  %7310 = vst [vmem:[#allocation59_spill] sm:$0xff] %v4242_v42  ;;  %v4249_v39 = vshrl.u32 %v4188_v63, 16  ;;  %7315 = vst [vmem:[#allocation64_spill] sm:$0xff] %v4275_v35  ;;  %vm2471_vm14 = vcmask 228352  }
  0x6f   :  { %vm2554_vm15 = vcmask 261120  }
  0x70   :  { %7305 = vst [vmem:[#allocation54_spill] sm:$0xff] %v4213_v58  ;;  %7309 = vst [vmem:[#allocation58_spill] sm:$0xff] %v4236_v56  ;;  %v559_v26 = vrot.slane %v4213_v58, 1  ;;  %v583_v47 = vrot.slane %v4236_v56, 1  ;;  %v4306_v56 = vshll.u32 %v4282_v30, 16  ;;  %v4402_v58 = vshll.u32 %v4375_v29, 16 }
  0x71   :  { %743 = vrot.lane.b32.xlu1 %v512_v18, %s3864_s28  ;;  %v4225_v18 = vshrl.u32 %v4160_v14, 16  ;;  %7311 = vst [vmem:[#allocation60_spill] sm:$0xff] %v4249_v39 }
  0x72   :  { %741 = vrot.lane.b32.xlu0 %v504_v16, %s3864_s28  ;;  %v555_v16 = vor.u32 %v4206_v33, %v551_v60  ;;  %v575_v33 = vrot.slane %v4229_v28, 1  ;;  %v563_v59 = vor.u32 %v4249_v39, %v559_v26  ;;  %7320 = vst [vmem:[#allocation69_spill] sm:$0xff] %v4306_v56  ;;  %v631_v19 = vrot.slane %v4306_v56, 1  ;;  %7337 = vst [vmem:[#allocation86_spill] sm:$0xff] %v4402_v58 }
  0x73   :  { %7307 = vst [vmem:[#allocation56_spill] sm:$0xff] %v4225_v18  ;;  %v547_v51 = vor.u32 %v4225_v18, %v543_v34  ;;  %v4266_v34 = vshll.u32 %v4244_v38, 16  ;;  %v4268_v18 = vld [vmem:[#allocation2 + $0xe8] sm:$0xff]  }
  0x74   :  { %v4292_v44 = vshll.u32 %v4268_v18, 16 }
  0x75   :  { %747 = vrot.lane.b32.xlu1 %v528_v10, %s3864_s28  ;;  %v536_v10 = vsel %vm380_vm0, %v531_v50, %v535_v52  ;;  %v560_v52 = vsel %vm380_vm0, %v555_v16, %v559_v26  ;;  %v571_v50 = vor.u32 %v4242_v42, %v567_v15  ;;  %7314 = vst [vmem:[#allocation63_spill] sm:$0xff] %v4266_v34  ;;  %v4289_v26 = vld [vmem:[#allocation2 + $0xf0] sm:$0xff]  }
  0x76   :  { %745 = vrot.lane.b32.xlu0 %v520_v24, %s3864_s28  ;;  %v4261_v24 = vld [vmem:[#allocation2 + $0xe0] sm:$0xff]   ;;  %v552_v43 = vsel %vm380_vm0, %v547_v51, %v551_v60  ;;  %v587_v16 = vor.u32 %v4254_v17, %v583_v47  ;;  %v599_v51 = vrot.slane %v4266_v34, 1  ;;  %v4287_v60 = vshrl.u32 %v4244_v38, 16  ;;  %7318 = vst [vmem:[#allocation67_spill] sm:$0xff] %v4292_v44  ;;  %v4316_v17 = vld [vmem:[#allocation2 + $0x108] sm:$0xff]  }
  0x77   :  { %v4280_v36 = vshll.u32 %v4261_v24, 16  ;;  %v4346_v56 = vshrl.u32 %v4289_v26, 16 }
  0x78   :  { %7317 = vst [vmem:[#allocation66_spill] sm:$0xff] %v4287_v60 }
  0x79   :  { %751 = vrot.lane.b32.xlu1 %v544_v9, %s3864_s28  ;;  %v591_v9 = vrot.slane %v4257_v46, 1  ;;  %7316 = vst [vmem:[#allocation65_spill] sm:$0xff] %v4280_v36  ;;  %v579_v46 = vor.u32 %v4275_v35, %v575_v33  ;;  %v607_v27 = vrot.slane %v4280_v36, 1  ;;  %7327 = vst [vmem:[#allocation76_spill] sm:$0xff] %v4346_v56  ;;  %v4354_v35 = vld [vmem:[#allocation2 + $0x128] sm:$0xff]  }
  0x7a   :  { %749 = vrot.lane.b32.xlu0 %v536_v10, %s3864_s28  ;;  %v576_v10 = vsel %vm380_vm0, %v571_v50, %v575_v33  ;;  %v4300_v50 = vld [vmem:[#allocation2 + $0x100] sm:$0xff]   ;;  %v4314_v33 = vshll.u32 %v4289_v26, 16  ;;  %v4378_v42 = vshll.u32 %v4354_v35, 16 }
  0x7b   :  { %v592_v34 = vsel %vm380_vm0, %v587_v16, %v591_v9  ;;  %v4320_v16 = vshrl.u32 %v4261_v24, 16  ;;  %v595_v36 = vor.u32 %v4298_v22, %v591_v9  ;;  %v4340_v9 = vld [vmem:[#allocation2 + $0x118] sm:$0xff]  }
  0x7c   :  { %7322 = vst [vmem:[#allocation71_spill] sm:$0xff] %v4314_v33  ;;  %7332 = vst [vmem:[#allocation81_spill] sm:$0xff] %v4378_v42 }
  0x7d   :  { %755 = vrot.lane.b32.xlu1 %v560_v52, %s3864_s28  ;;  %v568_v52 = vsel %vm380_vm0, %v563_v59, %v567_v15  ;;  %v615_v15 = vrot.slane %v4292_v44, 1  ;;  %v4311_v59 = vshrl.u32 %v4268_v18, 16  ;;  %7323 = vst [vmem:[#allocation72_spill] sm:$0xff] %v4320_v16  ;;  %v4328_v44 = vshll.u32 %v4300_v50, 16 }
  0x7e   :  { %753 = vrot.lane.b32.xlu0 %v552_v43, %s3864_s28  ;;  %v603_v43 = vor.u32 %v4287_v60, %v599_v51  ;;  %v4325_v60 = vshrl.u32 %v4282_v30, 16  ;;  %v600_v22 = vsel %vm380_vm0, %v595_v36, %v599_v51  ;;  %v4361_v51 = vld [vmem:[#allocation2 + $0x120] sm:$0xff]  }
  0x7f   :  { %7321 = vst [vmem:[#allocation70_spill] sm:$0xff] %v4311_v59  ;;  %7325 = vst [vmem:[#allocation74_spill] sm:$0xff] %v4328_v44  ;;  %v619_v28 = vor.u32 %v4311_v59, %v615_v15  ;;  %v4352_v59 = vshll.u32 %v4332_v31, 16 }
  0x80   :  { %7324 = vst [vmem:[#allocation73_spill] sm:$0xff] %v4325_v60 }
  0x81   :  { %759 = vrot.lane.b32.xlu1 %v576_v10, %s3864_s28  ;;  %v584_v10 = vsel %vm380_vm0, %v579_v46, %v583_v47  ;;  %v623_v46 = vrot.slane %v4314_v33, 1  ;;  %v4338_v47 = vshll.u32 %v4316_v17, 16  ;;  %v639_v33 = vrot.slane %v4328_v44, 1  ;;  %7328 = vst [vmem:[#allocation77_spill] sm:$0xff] %v4352_v59 }
  0x82   :  { %757 = vrot.lane.b32.xlu0 %v568_v52, %s3864_s28  ;;  %v608_v52 = vsel %vm380_vm0, %v603_v43, %v607_v27  ;;  %v635_v43 = vor.u32 %v4325_v60, %v631_v19 }
  0x83   :  { %7326 = vst [vmem:[#allocation75_spill] sm:$0xff] %v4338_v47  ;;  %v647_v36 = vrot.slane %v4338_v47, 1  ;;  %v627_v60 = vor.u32 %v4346_v56, %v623_v46  ;;  %v655_v47 = vrot.slane %v4352_v59, 1  ;;  %v4394_v56 = vshrl.u32 %v4332_v31, 16 }
  0x85   :  { %763 = vrot.lane.b32.xlu1 %v592_v34, %s3864_s28  ;;  %v611_v34 = vor.u32 %v4320_v16, %v607_v27  ;;  %v4359_v27 = vshrl.u32 %v4316_v17, 16  ;;  %v4370_v16 = vshrl.u32 %v4300_v50, 16  ;;  %7335 = vst [vmem:[#allocation84_spill] sm:$0xff] %v4394_v56 }
  0x86   :  { %761 = vrot.lane.b32.xlu0 %v584_v10, %s3864_s28  ;;  %v624_v10 = vsel %vm380_vm0, %v619_v28, %v623_v46  ;;  %v640_v28 = vsel %vm380_vm0, %v635_v43, %v639_v33  ;;  %v4383_v46 = vshrl.u32 %v4340_v9, 16  ;;  %v632_v43 = vsel %vm380_vm0, %v627_v60, %v631_v19  ;;  %v4407_v60 = vld [vmem:[#allocation2 + $0x140] sm:$0xff]  }
  0x87   :  { %7329 = vst [vmem:[#allocation78_spill] sm:$0xff] %v4359_v27  ;;  %v616_v44 = vsel %vm380_vm0, %v611_v34, %v615_v15  ;;  %7331 = vst [vmem:[#allocation80_spill] sm:$0xff] %v4370_v16  ;;  %v4386_v34 = vshll.u32 %v4361_v51, 16  ;;  %v643_v59 = vor.u32 %v4370_v16, %v639_v33  ;;  %v4416_v16 = vshrl.u32 %v4361_v51, 16 }
  0x88   :  { %7333 = vst [vmem:[#allocation82_spill] sm:$0xff] %v4383_v46 }
  0x89   :  { %767 = vrot.lane.b32.xlu1 %v608_v52, %s3864_s28  ;;  %v4364_v52 = vshll.u32 %v4340_v9, 16  ;;  %7334 = vst [vmem:[#allocation83_spill] sm:$0xff] %v4386_v34  ;;  %v671_v19 = vrot.slane %v4386_v34, 1  ;;  %7339 = vst [vmem:[#allocation88_spill] sm:$0xff] %v4416_v16  ;;  %v687_v34 = vrot.slane %v4402_v58, 1 }
  0x8a   :  { %765 = vrot.lane.b32.xlu0 %v600_v22, %s3864_s28  ;;  %v651_v22 = vor.u32 %v4359_v27, %v647_v36  ;;  %v4399_v27 = vshrl.u32 %v4354_v35, 16 }
  0x8b   :  { %7330 = vst [vmem:[#allocation79_spill] sm:$0xff] %v4364_v52  ;;  %v663_v15 = vrot.slane %v4364_v52, 1  ;;  %v679_v52 = vrot.slane %v4378_v42, 1  ;;  %v659_v42 = vor.u32 %v4394_v56, %v655_v47 }
  0x8c   :  { %7336 = vst [vmem:[#allocation85_spill] sm:$0xff] %v4399_v27  ;;  %v656_v39 = vsel %vm380_vm0, %v651_v22, %v655_v47 }
  0x8d   :  { %771 = vrot.lane.b32.xlu1 %v624_v10, %s3864_s28  ;;  %v4388_v10 = vld [vmem:[#allocation2 + $0x138] sm:$0xff]   ;;  %v683_v22 = vor.u32 %v4399_v27, %v679_v52  ;;  %v664_v47 = vsel %vm380_vm0, %v659_v42, %v663_v15 }
  0x8e   :  { %769 = vrot.lane.b32.xlu0 %v616_v44, %s3864_s28  ;;  %v667_v44 = vor.u32 %v4383_v46, %v663_v15  ;;  %v4410_v33 = vshll.u32 %v4388_v10, 16  ;;  %v4424_v7 = vshrl.u32 %v4388_v10, 16  ;;  %v4445_v15 = vshrl.u32 %v4407_v60, 16 }
  0x90   :  { %7338 = vst [vmem:[#allocation87_spill] sm:$0xff] %v4410_v33  ;;  %v672_v46 = vsel %vm380_vm0, %v667_v44, %v671_v19  ;;  %v695_v4 = vrot.slane %v4410_v33, 1  ;;  %7340 = vst [vmem:[#allocation89_spill] sm:$0xff] %v4424_v7  ;;  %v688_v44 = vsel %vm380_vm0, %v683_v22, %v687_v34  ;;  %v796_v22 = vrot.slane %v3983_v5, 1 }
  0x91   :  { %775 = vrot.lane.b32.xlu1 %v640_v28, %s3864_s28  ;;  %v648_v28 = vsel %vm380_vm0, %v643_v59, %v647_v36  ;;  %v4427_v59 = vshll.u32 %v4407_v60, 16  ;;  %v4433_v36 = vshrl.u32 %v4375_v29, 16  ;;  %7344 = vst [vmem:[#allocation93_spill] sm:$0xff] %v4445_v15  ;;  %v7346_v5 = vshll.u32 %v3985_v6, 16 }
  0x92   :  { %773 = vrot.lane.b32.xlu0 %v632_v43, %s3864_s28  ;;  %v4435_v43 = vld [vmem:[#allocation5] sm:$0xff]   ;;  %v699_v33 = vor.u32 %v4424_v7, %v695_v4 }
  0x93   :  { %7341 = vst [vmem:[#allocation90_spill] sm:$0xff] %v4427_v59  ;;  %7342 = vst [vmem:[#allocation91_spill] sm:$0xff] %v4433_v36  ;;  %v703_v58 = vrot.slane %v4427_v59, 1  ;;  %v691_v42 = vor.u32 %v4433_v36, %v687_v34  ;;  %v797_v59 = vrot.slane %v3985_v6, 1 }
  0x94   :  { %7343 = vst [vmem:[#allocation92_spill] sm:$0xff] %v4435_v43 }
  0x95   :  { %779 = vrot.lane.b32.xlu1 %v656_v39, %s3864_s28  ;;  %v675_v39 = vor.u32 %v4416_v16, %v671_v19  ;;  %v4448_v19 = vshll.u32 %v4435_v43, 16  ;;  %v707_v34 = vor.u32 %v4445_v15, %v703_v58  ;;  %v847_v15 = vrot.slane %v4231_v8, 1 }
  0x96   :  { %777 = vrot.lane.b32.xlu0 %v648_v28, %s3864_s28  ;;  %v851_v8 = vrot.slane %v4261_v24, 1  ;;  %v855_v24 = vrot.slane %v4289_v26, 1  ;;  %v859_v26 = vrot.slane %v4300_v50, 1  ;;  %v863_v50 = vrot.slane %v4332_v31, 1 }
  0x97   :  { %v680_v28 = vsel %vm380_vm0, %v675_v39, %v679_v52  ;;  %7345 = vst [vmem:[#allocation94_spill] sm:$0xff] %v4448_v19  ;;  %v696_v52 = vsel %vm380_vm0, %v691_v42, %v695_v4  ;;  %v798_v39 = vsel %vm795_vm1, %v796_v22, %v797_v59  ;;  %v7347_v4 = vshrl.u32 %v3985_v6, 16 }
  0x98   :  { %v867_v31 = vrot.slane %v4361_v51, 1  ;;  %v871_v51 = vrot.slane %v4375_v29, 1  ;;  %v875_v29 = vrot.slane %v4407_v60, 1 }
  0x99   :  { %783 = vrot.lane.b32.xlu1 %v672_v46, %s3864_s28  ;;  %v704_v46 = vsel %vm380_vm0, %v699_v33, %v703_v58  ;;  %v801_v33 = vrot.slane %v3972_v1, 1  ;;  %v4469_v42 = vrot.slane %v7347_v4, 1  ;;  %v805_v1 = vrot.slane %v3996_v13, 1 }
  0x9a   :  { %781 = vrot.lane.b32.xlu0 %v664_v47, %s3864_s28  ;;  %v711_v47 = vrot.slane %v4448_v19, 1  ;;  %v821_v4 = vrot.slane %v4074_v55, 1 }
  0x9c   :  { %v712_v58 = vsel %vm380_vm0, %v707_v34, %v711_v47  ;;  %v807_v34 = vrot.slane %v4007_v21, 1  ;;  %v811_v47 = vrot.slane %v4029_v32, 1  ;;  %vm2664_vm0 = vcmask 293888  }
  0x9d   :  { %787 = vrot.lane.b32.xlu1 %v688_v44, %s3864_s28  ;;  %v799_v44 = vrot.slane %v3970_v0, 1  ;;  %v803_v0 = vrot.slane %v3994_v12, 1  ;;  %v809_v12 = vrot.slane %v4012_v23, 1 }
  0x9e   :  { %785 = vrot.lane.b32.xlu0 %v680_v28, %s3864_s28  ;;  %v4465_v28 = vrot.slane %v7346_v5, 2  ;;  %v4506_v21 = vsel %vm795_vm1, %v805_v1, %v807_v34  ;;  %v819_v5 = vrot.slane %v4072_v54, 1 }
  0x9f   :  { %v4480_v22 = vsel %vm795_vm1, %v797_v59, %v799_v44  ;;  %v4494_v13 = vsel %vm795_vm1, %v801_v33, %v803_v0  ;;  %v4499_v59 = vsel %vm795_vm1, %v807_v34, %v809_v12  ;;  %v4518_v32 = vsel %vm795_vm1, %v809_v12, %v811_v47 }
  0xa0   :  { %v829_v34 = vrot.slane %v4129_v41, 1  ;;  %v831_v12 = vrot.slane %v4135_v49, 1 }
  0xa1   :  { %791 = vrot.lane.b32.xlu1 %v704_v46, %s3864_s28  ;;  %v4474_v46 = vsel %vm795_vm1, %v799_v44, %v801_v33  ;;  %v815_v44 = vrot.slane %v4053_v45, 1  ;;  %v817_v33 = vrot.slane %v4070_v53, 1  ;;  %v4535_v53 = vsel %vm795_vm1, %v819_v5, %v821_v4 }
  0xa2   :  { %789 = vrot.lane.b32.xlu0 %v696_v52, %s3864_s28  ;;  %v4487_v52 = vsel %vm795_vm1, %v803_v0, %v805_v1  ;;  %v825_v0 = vrot.slane %v4099_v11, 1  ;;  %v827_v1 = vrot.slane %v4111_v25, 1 }
  0xa3   :  { %v4542_v54 = vsel %vm795_vm1, %v817_v33, %v819_v5 }
  0xa4   :  { %v4559_v11 = vsel %vm795_vm1, %v827_v1, %v829_v34  ;;  %v4566_v25 = vsel %vm795_vm1, %v825_v0, %v827_v1 }
  0xa5   :  { %879 = vrot.lane.b32.xlu1 %v798_v39, %s3867_s3  ;;  %v813_v39 = vrot.slane %v4043_v40, 1  ;;  %v4523_v40 = vsel %vm795_vm1, %v815_v44, %v817_v33 }
  0xa6   :  { %793 = vrot.lane.b32.xlu0 %v712_v58, %s3864_s28  ;;  %v823_v58 = vrot.slane %v4087_v62, 1  ;;  %s3868_s28 = smov 12  }
  0xa7   :  { %v4511_v23 = vsel %vm795_vm1, %v811_v47, %v813_v39  ;;  %v4530_v45 = vsel %vm795_vm1, %v813_v39, %v815_v44  ;;  %v833_v47 = vrot.slane %v4140_v57, 1  ;;  %v835_v39 = vrot.slane %v4160_v14, 1 }
  0xa8   :  { %v4547_v55 = vsel %vm795_vm1, %v823_v58, %v825_v0  ;;  %v4554_v62 = vsel %vm795_vm1, %v821_v4, %v823_v58  ;;  %v837_v44 = vrot.slane %v4172_v48, 1  ;;  %v4580_v57 = vsel %vm795_vm1, %v829_v34, %v831_v12 }
  0xa9   :  { %883 = vrot.lane.b32.xlu1 %v4474_v46, %s3867_s3  ;;  %v4571_v41 = vsel %vm795_vm1, %v831_v12, %v833_v47  ;;  %v839_v14 = vrot.slane %v4188_v63, 1  ;;  %v841_v48 = vrot.slane %v4196_v20, 1  ;;  %v4596_v58 = vsel %vm795_vm1, %v833_v47, %v835_v39 }
  0xaa   :  { %881 = vrot.lane.b32.xlu0 %v4480_v22, %s3867_s3  ;;  %v4587_v5 = vsel %vm795_vm1, %v835_v39, %v837_v44  ;;  %v843_v34 = vrot.slane %v4208_v37, 1  ;;  %v845_v12 = vrot.slane %v4215_v61, 1  ;;  %v849_v61 = vrot.slane %v4244_v38, 1 }
  0xab   :  { %v4603_v1 = vsel %vm795_vm1, %v839_v14, %v841_v48  ;;  %v4612_v47 = vsel %vm795_vm1, %v837_v44, %v839_v14  ;;  %v853_v38 = vrot.slane %v4268_v18, 1  ;;  %v857_v18 = vrot.slane %v4282_v30, 1 }
  0xac   :  { %v4619_v19 = vsel %vm795_vm1, %v843_v34, %v845_v12  ;;  %v4628_v44 = vsel %vm795_vm1, %v841_v48, %v843_v34  ;;  %v4635_v36 = vsel %vm795_vm1, %v847_v15, %v849_v61  ;;  %v4644_v48 = vsel %vm795_vm1, %v845_v12, %v847_v15 }
  0xad   :  { %887 = vrot.lane.b32.xlu1 %v4487_v52, %s3867_s3  ;;  %v4651_v16 = vsel %vm795_vm1, %v851_v8, %v853_v38  ;;  %v4660_v15 = vsel %vm795_vm1, %v849_v61, %v851_v8  ;;  %v861_v30 = vrot.slane %v4316_v17, 1  ;;  %v4676_v61 = vsel %vm795_vm1, %v853_v38, %v855_v24 }
  0xae   :  { %885 = vrot.lane.b32.xlu0 %v4494_v13, %s3867_s3  ;;  %v865_v17 = vrot.slane %v4340_v9, 1  ;;  %v4692_v38 = vsel %vm795_vm1, %v857_v18, %v859_v26  ;;  %v869_v9 = vrot.slane %v4354_v35, 1  ;;  %v873_v35 = vrot.slane %v4388_v10, 1 }
  0xaf   :  { %v7236_v10 = vrot.slane %v4435_v43, 1 }
  0xb1   :  { %891 = vrot.lane.b32.xlu1 %v4499_v59, %s3867_s3 }
  0xb2   :  { %889 = vrot.lane.b32.xlu0 %v4506_v21, %s3867_s3 }
  0xb5   :  { %895 = vrot.lane.b32.xlu1 %v4511_v23, %s3867_s3 }
  0xb6   :  { %893 = vrot.lane.b32.xlu0 %v4518_v32, %s3867_s3 }
  0xb9   :  { %899 = vrot.lane.b32.xlu1 %v4523_v40, %s3867_s3 }
  0xba   :  { %897 = vrot.lane.b32.xlu0 %v4530_v45, %s3867_s3 }
  0xbd   :  { %903 = vrot.lane.b32.xlu1 %v4535_v53, %s3867_s3 }
  0xbe   :  { %901 = vrot.lane.b32.xlu0 %v4542_v54, %s3867_s3 }
  0xc1   :  { %907 = vrot.lane.b32.xlu1 %v4547_v55, %s3867_s3 }
  0xc2   :  { %905 = vrot.lane.b32.xlu0 %v4554_v62, %s3867_s3 }
  0xc5   :  { %911 = vrot.lane.b32.xlu1 %v4559_v11, %s3867_s3 }
  0xc6   :  { %909 = vrot.lane.b32.xlu0 %v4566_v25, %s3867_s3 }
  0xc7   :  { %v4577_v49 = vpop.permute.xlu1 %717 }
  0xc8   :  { %v4582_v33 = vpop.permute.xlu0 %713 }
  0xc9   :  { %915 = vrot.lane.b32.xlu1 %v4571_v41, %s3867_s3 }
  0xca   :  { %913 = vrot.lane.b32.xlu0 %v4580_v57, %s3867_s3 }
  0xcb   :  { %v4593_v4 = vpop.permute.xlu1 %719 }
  0xcc   :  { %v4598_v0 = vpop.permute.xlu0 %715 }
  0xcd   :  { %919 = vrot.lane.b32.xlu1 %v4587_v5, %s3867_s3 }
  0xce   :  { %917 = vrot.lane.b32.xlu0 %v4596_v58, %s3867_s3 }
  0xcf   :  { %v4609_v6 = vpop.permute.xlu1 %723 }
  0xd0   :  { %v4614_v39 = vpop.permute.xlu0 %721 }
  0xd1   :  { %923 = vrot.lane.b32.xlu1 %v4603_v1, %s3867_s3 }
  0xd2   :  { %921 = vrot.lane.b32.xlu0 %v4612_v47, %s3867_s3 }
  0xd3   :  { %v4625_v7 = vpop.permute.xlu1 %727 }
  0xd4   :  { %7348 = vst [vmem:[#allocation95_spill] sm:$0xff] %v4625_v7  ;;  %v4630_v14 = vpop.permute.xlu0 %725 }
  0xd5   :  { %7349 = vst [vmem:[#allocation96_spill] sm:$0xff] %v4630_v14  ;;  %927 = vrot.lane.b32.xlu1 %v4619_v19, %s3867_s3 }
  0xd6   :  { %925 = vrot.lane.b32.xlu0 %v4628_v44, %s3867_s3 }
  0xd7   :  { %v4641_v27 = vpop.permute.xlu1 %731 }
  0xd8   :  { %7350 = vst [vmem:[#allocation97_spill] sm:$0xff] %v4641_v27  ;;  %v4646_v34 = vpop.permute.xlu0 %729  ;;  %v4667_v27 = vsel %vm795_vm1, %v855_v24, %v857_v18  ;;  %v4708_v18 = vsel %vm795_vm1, %v861_v30, %v863_v50 }
  0xd9   :  { %7351 = vst [vmem:[#allocation98_spill] sm:$0xff] %v4646_v34  ;;  %931 = vrot.lane.b32.xlu1 %v4635_v36, %s3867_s3  ;;  %7361 = vst [vmem:[#allocation108_spill] sm:$0xff] %v4708_v18 }
  0xda   :  { %929 = vrot.lane.b32.xlu0 %v4644_v48, %s3867_s3 }
  0xdb   :  { %v4657_v7 = vpop.permute.xlu1 %735 }
  0xdc   :  { %7352 = vst [vmem:[#allocation99_spill] sm:$0xff] %v4657_v7  ;;  %v4662_v12 = vpop.permute.xlu0 %733  ;;  %v4683_v7 = vsel %vm795_vm1, %v859_v26, %v861_v30  ;;  %v4724_v30 = vsel %vm795_vm1, %v865_v17, %v867_v31 }
  0xdd   :  { %7353 = vst [vmem:[#allocation100_spill] sm:$0xff] %v4662_v12  ;;  %935 = vrot.lane.b32.xlu1 %v4651_v16, %s3867_s3  ;;  %7356 = vst [vmem:[#allocation103_spill] sm:$0xff] %v4683_v7 }
  0xde   :  { %933 = vrot.lane.b32.xlu0 %v4660_v15, %s3867_s3  ;;  %7365 = vst [vmem:[#allocation112_spill] sm:$0xff] %v4724_v30 }
  0xdf   :  { %v4673_v34 = vpop.permute.xlu1 %739 }
  0xe0   :  { %7354 = vst [vmem:[#allocation101_spill] sm:$0xff] %v4673_v34  ;;  %v4678_v8 = vpop.permute.xlu0 %737  ;;  %v4699_v34 = vsel %vm795_vm1, %v863_v50, %v865_v17  ;;  %v4740_v17 = vsel %vm795_vm1, %v869_v9, %v871_v51 }
  0xe1   :  { %7355 = vst [vmem:[#allocation102_spill] sm:$0xff] %v4678_v8  ;;  %939 = vrot.lane.b32.xlu1 %v4667_v27, %s3867_s3  ;;  %7359 = vst [vmem:[#allocation106_spill] sm:$0xff] %v4699_v34 }
  0xe2   :  { %937 = vrot.lane.b32.xlu0 %v4676_v61, %s3867_s3  ;;  %7368 = vst [vmem:[#allocation115_spill] sm:$0xff] %v4740_v17 }
  0xe3   :  { %v4689_v12 = vpop.permute.xlu1 %743 }
  0xe4   :  { %7357 = vst [vmem:[#allocation104_spill] sm:$0xff] %v4689_v12  ;;  %v4694_v24 = vpop.permute.xlu0 %741  ;;  %v4715_v12 = vsel %vm795_vm1, %v867_v31, %v869_v9 }
  0xe5   :  { %7358 = vst [vmem:[#allocation105_spill] sm:$0xff] %v4694_v24  ;;  %943 = vrot.lane.b32.xlu1 %v4683_v7, %s3867_s3  ;;  %7363 = vst [vmem:[#allocation110_spill] sm:$0xff] %v4715_v12 }
  0xe6   :  { %941 = vrot.lane.b32.xlu0 %v4692_v38, %s3867_s3 }
  0xe7   :  { %v4705_v8 = vpop.permute.xlu1 %747 }
  0xe8   :  { %7360 = vst [vmem:[#allocation107_spill] sm:$0xff] %v4705_v8  ;;  %v4710_v26 = vpop.permute.xlu0 %745  ;;  %v4731_v8 = vsel %vm795_vm1, %v871_v51, %v873_v35 }
  0xe9   :  { %7362 = vst [vmem:[#allocation109_spill] sm:$0xff] %v4710_v26  ;;  %947 = vrot.lane.b32.xlu1 %v4699_v34, %s3867_s3  ;;  %7367 = vst [vmem:[#allocation114_spill] sm:$0xff] %v4731_v8 }
  0xea   :  { %945 = vrot.lane.b32.xlu0 %v4708_v18, %s3867_s3 }
  0xeb   :  { %v4721_v24 = vpop.permute.xlu1 %751 }
  0xec   :  { %7364 = vst [vmem:[#allocation111_spill] sm:$0xff] %v4721_v24  ;;  %v4726_v50 = vpop.permute.xlu0 %749  ;;  %v4749_v24 = vsel %vm795_vm1, %v875_v29, %v7236_v10 }
  0xed   :  { %7366 = vst [vmem:[#allocation113_spill] sm:$0xff] %v4726_v50  ;;  %951 = vrot.lane.b32.xlu1 %v4715_v12, %s3867_s3  ;;  %7370 = vst [vmem:[#allocation117_spill] sm:$0xff] %v4749_v24  ;;  %v4756_v50 = vsel %vm795_vm1, %v873_v35, %v875_v29 }
  0xee   :  { %949 = vrot.lane.b32.xlu0 %v4724_v30, %s3867_s3  ;;  %7371 = vst [vmem:[#allocation118_spill] sm:$0xff] %v4756_v50 }
  0xef   :  { %v4737_v26 = vpop.permute.xlu1 %755 }
  0xf0   :  { %v4742_v31 = vpop.permute.xlu0 %753 }
  0xf1   :  { %7369 = vst [vmem:[#allocation116_spill] sm:$0xff] %v4742_v31  ;;  %955 = vrot.lane.b32.xlu1 %v4731_v8, %s3867_s3 }
  0xf2   :  { %953 = vrot.lane.b32.xlu0 %v4740_v17, %s3867_s3 }
  0xf3   :  { %v4753_v60 = vpop.permute.xlu1 %759 }
  0xf4   :  { %v4758_v9 = vpop.permute.xlu0 %757 }
  0xf5   :  { %959 = vrot.lane.b32.xlu1 %v4749_v24, %s3867_s3 }
  0xf6   :  { %957 = vrot.lane.b32.xlu0 %v4756_v50, %s3867_s3 }
  0xf7   :  { %v4764_v51 = vpop.permute.xlu1 %763 }
  0xf8   :  { %7372 = vst [vmem:[#allocation119_spill] sm:$0xff] %v4764_v51  ;;  %v4766_v10 = vpop.permute.xlu0 %761 }
  0xf9   :  { %965 = vrot.lane.b32.xlu1 %v4474_v46, %s3868_s28 }
  0xfa   :  { %963 = vrot.lane.b32.xlu0 %v4480_v22, %s3868_s28 }
  0xfb   :  { %v4772_v35 = vpop.permute.xlu1 %767 }
  0xfc   :  { %7373 = vst [vmem:[#allocation120_spill] sm:$0xff] %v4772_v35  ;;  %v4774_v29 = vpop.permute.xlu0 %765 }
  0xfd   :  { %7374 = vst [vmem:[#allocation121_spill] sm:$0xff] %v4774_v29  ;;  %969 = vrot.lane.b32.xlu1 %v4487_v52, %s3868_s28 }
  0xfe   :  { %967 = vrot.lane.b32.xlu0 %v4494_v13, %s3868_s28 }
  0xff   :  { %v4780_v31 = vpop.permute.xlu1 %771 }
 0x100   :  { %7375 = vst [vmem:[#allocation122_spill] sm:$0xff] %v4780_v31  ;;  %v4782_v43 = vpop.permute.xlu0 %769  ;;  %v7400_v31 = vld [vmem:[#allocation55_spill] sm:$0xff] }
 0x101   :  { %7376 = vst [vmem:[#allocation123_spill] sm:$0xff] %v4782_v43  ;;  %973 = vrot.lane.b32.xlu1 %v4499_v59, %s3868_s28  ;;  %v1134_v30 = vrot.slane %v7400_v31, 2 }
 0x102   :  { %971 = vrot.lane.b32.xlu0 %v4506_v21, %s3868_s28 }
 0x103   :  { %v4788_v46 = vpop.permute.xlu1 %775 }
 0x104   :  { %7377 = vst [vmem:[#allocation124_spill] sm:$0xff] %v4788_v46  ;;  %v4790_v22 = vpop.permute.xlu0 %773  ;;  %v7398_v46 = vld [vmem:[#allocation54_spill] sm:$0xff] }
 0x105   :  { %7378 = vst [vmem:[#allocation125_spill] sm:$0xff] %v4790_v22  ;;  %977 = vrot.lane.b32.xlu1 %v4511_v23, %s3868_s28  ;;  %v1130_v17 = vrot.slane %v7398_v46, 2  ;;  %v7399_v22 = vld [vmem:[#allocation59_spill] sm:$0xff] }
 0x106   :  { %975 = vrot.lane.b32.xlu0 %v4518_v32, %s3868_s28  ;;  %v1133_v12 = vrot.slane %v7399_v22, 1 }
 0x107   :  { %v4796_v52 = vpop.permute.xlu1 %779 }
 0x108   :  { %7379 = vst [vmem:[#allocation126_spill] sm:$0xff] %v4796_v52  ;;  %v4798_v13 = vpop.permute.xlu0 %777 }
 0x109   :  { %7380 = vst [vmem:[#allocation127_spill] sm:$0xff] %v4798_v13  ;;  %981 = vrot.lane.b32.xlu1 %v4523_v40, %s3868_s28  ;;  %v7397_v13 = vld [vmem:[#allocation60_spill] sm:$0xff] }
 0x10a   :  { %979 = vrot.lane.b32.xlu0 %v4530_v45, %s3868_s28  ;;  %v1129_v8 = vrot.slane %v7397_v13, 1 }
 0x10b   :  { %v4804_v59 = vpop.permute.xlu1 %783 }
 0x10c   :  { %7381 = vst [vmem:[#allocation128_spill] sm:$0xff] %v4804_v59  ;;  %v4806_v21 = vpop.permute.xlu0 %781 }
 0x10d   :  { %7382 = vst [vmem:[#allocation129_spill] sm:$0xff] %v4806_v21  ;;  %985 = vrot.lane.b32.xlu1 %v4535_v53, %s3868_s28  ;;  %v1553_v21 = vrot.slane %v3978_v3, 2 }
 0x10e   :  { %983 = vrot.lane.b32.xlu0 %v4542_v54, %s3868_s28 }
 0x10f   :  { %v4812_v23 = vpop.permute.xlu1 %787 }
 0x110   :  { %7383 = vst [vmem:[#allocation130_spill] sm:$0xff] %v4812_v23  ;;  %v4814_v32 = vpop.permute.xlu0 %785  ;;  %v3665_v23 = vld [vmem:[#allocation7 + $0x10] ss:$0 sps:$4 sm:$0x33]  }
 0x111   :  { %7384 = vst [vmem:[#allocation131_spill] sm:$0xff] %v4814_v32  ;;  %989 = vrot.lane.b32.xlu1 %v4547_v55, %s3868_s28 }
 0x112   :  { %987 = vrot.lane.b32.xlu0 %v4554_v62, %s3868_s28  ;;  %v3663_v62 = vld [vmem:[#allocation7] sm:$0xff]  }
 0x113   :  { %v4820_v40 = vpop.permute.xlu1 %791 }
 0x114   :  { %7385 = vst [vmem:[#allocation132_spill] sm:$0xff] %v4820_v40  ;;  %v4822_v45 = vpop.permute.xlu0 %789  ;;  %v7238_v40 = vmov 0.0  }
 0x115   :  { %7386 = vst [vmem:[#allocation133_spill] sm:$0xff] %v4822_v45  ;;  %993 = vrot.lane.b32.xlu1 %v4559_v11, %s3868_s28  ;;  %3428 = vmatprep.subr.bf16.mxu0 %v7238_v40 }
 0x116   :  { %991 = vrot.lane.b32.xlu0 %v4566_v25, %s3868_s28  ;;  %3598 = vmatprep.subr.bf16.mxu1 %v7238_v40  ;;  %v1049_v25 = vrot.slane %v3978_v3, 1 }
 0x117   :  { %v4828_v53 = vpop.permute.xlu1 %879  ;;  %3429 = vmatpush3.bf16.msra.mxu0 %v3663_v62  ;;  %3601 = vmatpush3.bf16.msra.mxu1 %v3663_v62  ;;  %v2749_v62 = vsel %vm2747_vm3, %v3665_v23, 0 }
 0x118   :  { %v4830_v54 = vpop.permute.xlu0 %793  ;;  %3430 = vmatprep.subr.bf16.mxu0 %v7238_v40  ;;  %3599 = vmatprep.subr.bf16.mxu1 %v7238_v40 }
 0x119   :  { %7387 = vst [vmem:[#allocation134_spill] sm:$0xff] %v4830_v54  ;;  %997 = vrot.lane.b32.xlu1 %v4571_v41, %s3868_s28  ;;  %v1050_v41 = vrot.slane %v3975_v2, 2  ;;  %v3664_v54 = vld [vmem:[#allocation7 + $0x8] sm:$0xff]  }
 0x11a   :  { %995 = vrot.lane.b32.xlu0 %v4580_v57, %s3868_s28 }
 0x11b   :  { %v4836_v55 = vpop.permute.xlu1 %883  ;;  %3431 = vmatpush3.bf16.msra.mxu0 %v3664_v54  ;;  %3602 = vmatpush3.bf16.msra.mxu1 %v3664_v54  ;;  %v4871_v54 = vld [vmem:[#allocation2 + $0x18] sm:$0xff]  }
 0x11c   :  { %v4840_v11 = vpop.permute.xlu0 %881  ;;  %3432 = vmatprep.subr.bf16.mxu0 %v7238_v40  ;;  %3600 = vmatprep.subr.bf16.mxu1 %v7238_v40  ;;  %v4883_v40 = vld [vmem:[#allocation2 + $0x8] sm:$0xff]   ;;  %v7396_v52 = vrot.slane %v4871_v54, 2  ;;  %v7403_v46 = vrot.slane %v4871_v54, 3 }
 0x11d   :  { %1001 = vrot.lane.b32.xlu1 %v4587_v5, %s3868_s28  ;;  %v4856_v5 = vor.u32 %v1050_v41, %v1049_v25  ;;  %v7390_v41 = vor.u32 %v4465_v28, %v4469_v42  ;;  %v1303_v59 = vrot.slane %v4883_v40, 2  ;;  %v1554_v28 = vrot.slane %v3975_v2, 3  ;;  %v7393_v42 = vld [vmem:[#allocation16_spill] sm:$0xff] }
 0x11e   :  { %999 = vrot.lane.b32.xlu0 %v4596_v58, %s3868_s28  ;;  %v1053_v2 = vrot.slane %v7393_v42, 1 }
 0x11f   :  { %v4849_v57 = vpop.permute.xlu1 %887  ;;  %3433 = vmatpush3.bf16.msra.mxu0 %v2749_v62  ;;  %v1052_v23 = vsel %vm1045_vm2, %v7390_v41, %v4856_v5  ;;  %3603 = vmatpush3.bf16.msra.mxu1 %v2749_v62  ;;  %v1556_v41 = vrot.slane %v7393_v42, 2  ;;  %v7394_v62 = vld [vmem:[#allocation15_spill] sm:$0xff]  ;;  %v1637_v42 = vrot.slane %v7400_v31, 3  ;;  %v7413_v31 = vld [vmem:[#allocation21_spill] sm:$0xff] }
 0x120   :  { %v4852_v45 = vpop.permute.xlu0 %885  ;;  %v1557_v24 = vrot.slane %v7394_v62, 3  ;;  %v1054_v13 = vrot.slane %v7394_v62, 2 }
 0x121   :  { %1005 = vrot.lane.b32.xlu1 %v4603_v1, %s3868_s28  ;;  %v4868_v1 = vld [vmem:[#allocation2 + $0x10] sm:$0xff]  }
 0x122   :  { %1003 = vrot.lane.b32.xlu0 %v4612_v47, %s3868_s28  ;;  %v1304_v25 = vrot.slane %v4868_v1, 2  ;;  %v7392_v47 = vmov 0.0   ;;  %v1808_v3 = vrot.slane %v4868_v1, 3  ;;  %v1558_v43 = vor.u32 %v1557_v24, %v1556_v41  ;;  %v7409_v41 = vld [vmem:[#allocation64_spill] sm:$0xff] }
 0x123   :  { %v4861_v58 = vpop.permute.xlu1 %891  ;;  %3434 = vmatprep.mubr.msk.bf16.mxu0 %vm3870_vm5, %v7392_v47  ;;  %3518 = vmatprep.mubr.msk.bf16.mxu1 %vm3870_vm5, %v7392_v47  ;;  %v1640_v62 = vrot.slane %v7409_v41, 2 }
 0x124   :  { %7388 = vst [vmem:[#allocation135_spill] sm:$0xff] %v4861_v58  ;;  %v4864_v32 = vpop.permute.xlu0 %889  ;;  %v1307_v50 = vsel %vm1302_vm4, %v1304_v25, %v7396_v52  ;;  %v1555_v52 = vor.u32 %v1554_v28, %v1553_v21 }
 0x125   :  { %7389 = vst [vmem:[#allocation136_spill] sm:$0xff] %v4864_v32  ;;  %1009 = vrot.lane.b32.xlu1 %v4619_v19, %s3868_s28 }
 0x126   :  { %1007 = vrot.lane.b32.xlu0 %v4628_v44, %s3868_s28  ;;  %v1559_v21 = vsel %vm1552_vm7, %v1555_v52, %v1558_v43 }
 0x127   :  { %v4881_v19 = vpop.permute.xlu1 %895 }
 0x128   :  { %7391 = vst [vmem:[#allocation137_spill] sm:$0xff] %v4881_v19  ;;  %v4894_v44 = vpop.permute.xlu0 %893  ;;  %v1305_v19 = vsel %vm1302_vm4, %v1303_v59, %v1304_v25  ;;  %v4921_v59 = vor.u32 %v1134_v30, %v1133_v12  ;;  %v1055_v25 = vor.u32 %v1054_v13, %v1053_v2  ;;  %v7248_v12 = vrot.slane %v4188_v63, 2 }
 0x129   :  { %7395 = vst [vmem:[#allocation16_spill] sm:$0xff] %v4894_v44  ;;  %1220 = vrot.lane.b32.xlu1 %v1052_v23, %s3871_s1  ;;  %v1346_v30 = vrot.slane %v4196_v20, 2 }
 0x12a   :  { %1011 = vrot.lane.b32.xlu0 %v4644_v48, %s3868_s28  ;;  %v1810_v48 = vsel %vm1807_vm6, %v1808_v3, %v7403_v46  ;;  %v1056_v46 = vsel %vm1045_vm2, %v4856_v5, %v1055_v25  ;;  %v7410_v3 = vld [vmem:[#allocation57_spill] sm:$0xff] }
 0x12b   :  { %v4908_v23 = vpop.permute.xlu1 %899  ;;  %v1641_v2 = vrot.slane %v7410_v3, 3  ;;  %v4950_v52 = vsel %vm1302_vm4, %v7248_v12, %v1346_v30 }
 0x12c   :  { %7401 = vst [vmem:[#allocation15_spill] sm:$0xff] %v4908_v23  ;;  %v4913_v34 = vpop.permute.xlu0 %897  ;;  %v4919_v23 = vor.u32 %v1130_v17, %v1129_v8  ;;  %7411 = vst [vmem:[#allocation64_spill] sm:$0xff] %v4950_v52 }
 0x12d   :  { %7402 = vst [vmem:[#allocation59_spill] sm:$0xff] %v4913_v34  ;;  %1470 = vrot.lane.b32.xlu1 %v1307_v50, %s3872_s15  ;;  %v1642_v63 = vor.u32 %v1641_v2, %v1640_v62  ;;  %v1138_v62 = vrot.slane %v7410_v3, 2 }
 0x12e   :  { %7404 = vst [vmem:[#allocation55_spill] sm:$0xff] %v4919_v23  ;;  %1386 = vrot.lane.b32.xlu0 %v1305_v19, %s3873_s16  ;;  %v1136_v8 = vsel %vm1045_vm2, %v4919_v23, %v4921_v59  ;;  %v1636_v19 = vrot.slane %v7399_v22, 2  ;;  %v7414_v23 = vld [vmem:[#allocation17_spill] sm:$0xff] }
 0x12f   :  { %v4924_v24 = vpop.permute.xlu1 %903 }
 0x130   :  { %7405 = vst [vmem:[#allocation138_spill] sm:$0xff] %v4924_v24  ;;  %v4927_v28 = vpop.permute.xlu0 %901  ;;  %v4965_v12 = vor.u32 %v1637_v42, %v1636_v19  ;;  %v7418_v24 = vrot.slane %v4871_v54, 2  ;;  %v7250_v42 = vrot.slane %v4196_v20, 3 }
 0x131   :  { %7406 = vst [vmem:[#allocation139_spill] sm:$0xff] %v4927_v28  ;;  %1891 = vrot.lane.b32.xlu1 %v1810_v48, %s3874_s17  ;;  %v1348_v48 = vrot.slane %v4208_v37, 2 }
 0x132   :  { %1725 = vrot.lane.b32.xlu0 %v1559_v21, %s3875_s19  ;;  %v4956_v21 = vld [vmem:[#allocation2 + $0x20] sm:$0xff]   ;;  %7416 = vst [vmem:[#allocation17_spill] sm:$0xff] %v4965_v12  ;;  %v1643_v19 = vsel %vm1552_vm7, %v4965_v12, %v1642_v63 }
 0x133   :  { %v4936_v17 = vpop.permute.xlu1 %907  ;;  %v1308_v22 = vrot.slane %v4956_v21, 2  ;;  %v7429_v12 = vld [vmem:[#allocation18_spill] sm:$0xff] }
 0x134   :  { %7407 = vst [vmem:[#allocation140_spill] sm:$0xff] %v4936_v17  ;;  %v4940_v13 = vpop.permute.xlu0 %905  ;;  %v1561_v17 = vrot.slane %v7414_v23, 3 }
 0x135   :  { %7408 = vst [vmem:[#allocation141_spill] sm:$0xff] %v4940_v13  ;;  %1262 = vrot.lane.b32.xlu1 %v1136_v8, %s3871_s1  ;;  %v1560_v8 = vrot.slane %v7413_v31, 2  ;;  %v1309_v28 = vsel %vm1302_vm4, %v7418_v24, %v1308_v22 }
 0x136   :  { %1222 = vrot.lane.b32.xlu0 %v1056_v46, %s3871_s1  ;;  %v1349_v46 = vsel %vm1302_vm4, %v1346_v30, %v1348_v48  ;;  %v1851_v30 = vrot.slane %v4208_v37, 3 }
 0x137   :  { %v4954_v5 = vpop.permute.xlu1 %911  ;;  %v1562_v34 = vor.u32 %v1561_v17, %v1560_v8  ;;  %v1811_v17 = vrot.slane %v4956_v21, 3  ;;  %v1057_v8 = vrot.slane %v7413_v31, 1 }
 0x138   :  { %7412 = vst [vmem:[#allocation57_spill] sm:$0xff] %v4954_v5  ;;  %v4961_v13 = vpop.permute.xlu0 %909  ;;  %v1852_v37 = vsel %vm1807_vm6, %v7250_v42, %v1851_v30 }
 0x139   :  { %7415 = vst [vmem:[#allocation21_spill] sm:$0xff] %v4961_v13  ;;  %1428 = vrot.lane.b32.xlu1 %v4950_v52, %s3873_s16  ;;  %v1563_v24 = vsel %vm1552_vm7, %v1558_v43, %v1562_v34  ;;  %v7422_v43 = vrot.slane %v4871_v54, 3 }
 0x13a   :  { %1388 = vrot.lane.b32.xlu0 %v1307_v50, %s3873_s16  ;;  %v1137_v50 = vrot.slane %v7409_v41, 1 }
 0x13b   :  { %v4969_v5 = vpop.permute.xlu1 %915 }
 0x13c   :  { %7417 = vst [vmem:[#allocation142_spill] sm:$0xff] %v4969_v5  ;;  %v4974_v35 = vpop.permute.xlu0 %913  ;;  %v1058_v5 = vrot.slane %v7414_v23, 2  ;;  %v1139_v41 = vor.u32 %v1138_v62, %v1137_v50 }
 0x13d   :  { %7419 = vst [vmem:[#allocation143_spill] sm:$0xff] %v4974_v35  ;;  %1512 = vrot.lane.b32.xlu1 %v1349_v46, %s3872_s15 }
 0x13e   :  { %1472 = vrot.lane.b32.xlu0 %v1309_v28, %s3872_s15  ;;  %v1059_v31 = vor.u32 %v1058_v5, %v1057_v8  ;;  %v1140_v23 = vsel %vm1045_vm2, %v4921_v59, %v1139_v41  ;;  %v7424_v8 = vld [vmem:[#allocation61_spill] sm:$0xff] }
 0x13f   :  { %v4984_v2 = vpop.permute.xlu1 %919 }
 0x140   :  { %7420 = vst [vmem:[#allocation144_spill] sm:$0xff] %v4984_v2  ;;  %v4990_v35 = vpop.permute.xlu0 %917  ;;  %v1812_v2 = vsel %vm1807_vm6, %v7422_v43, %v1811_v17  ;;  %v1060_v50 = vsel %vm1045_vm2, %v1055_v25, %v1059_v31  ;;  %v1644_v43 = vrot.slane %v7424_v8, 2 }
 0x141   :  { %7421 = vst [vmem:[#allocation145_spill] sm:$0xff] %v4990_v35  ;;  %1767 = vrot.lane.b32.xlu1 %v1643_v19, %s3875_s19  ;;  %v7428_v35 = vld [vmem:[#allocation19_spill] sm:$0xff] }
 0x142   :  { %1727 = vrot.lane.b32.xlu0 %v1563_v24, %s3875_s19  ;;  %v5014_v24 = vld [vmem:[#allocation2 + $0xc8] sm:$0xff]   ;;  %v1564_v20 = vrot.slane %v7428_v35, 2 }
 0x143   :  { %v4997_v3 = vpop.permute.xlu1 %923  ;;  %7423 = vst [vmem:[#allocation146_spill] sm:$0xff] %v5014_v24  ;;  %v1350_v5 = vrot.slane %v5014_v24, 2  ;;  %v1853_v56 = vrot.slane %v5014_v24, 3 }
 0x144   :  { %v5002_v13 = vpop.permute.xlu0 %921 }
 0x145   :  { %1933 = vrot.lane.b32.xlu1 %v1852_v37, %s3874_s17  ;;  %v7425_v37 = vld [vmem:[#allocation58_spill] sm:$0xff]  ;;  %v1351_v44 = vsel %vm1302_vm4, %v1348_v48, %v1350_v5 }
 0x146   :  { %1893 = vrot.lane.b32.xlu0 %v1812_v2, %s3874_s17  ;;  %v1645_v42 = vrot.slane %v7425_v37, 3  ;;  %v5022_v2 = vld [vmem:[#allocation2 + $0x28] sm:$0xff]   ;;  %v1142_v48 = vrot.slane %v7425_v37, 2 }
 0x147   :  { %v5008_v19 = vpop.permute.xlu1 %927  ;;  %7427 = vst [vmem:[#allocation58_spill] sm:$0xff] %v5022_v2  ;;  %v1310_v25 = vrot.slane %v5022_v2, 2 }
 0x148   :  { %v5011_v62 = vpop.permute.xlu0 %925  ;;  %v1646_v18 = vor.u32 %v1645_v42, %v1644_v43  ;;  %v1062_v43 = vrot.slane %v7429_v12, 2 }
 0x149   :  { %1264 = vrot.lane.b32.xlu1 %v1140_v23, %s3871_s1  ;;  %v1565_v23 = vrot.slane %v7429_v12, 3  ;;  %v1311_v58 = vsel %vm1302_vm4, %v1308_v22, %v1310_v25  ;;  %v1061_v22 = vrot.slane %v7428_v35, 1 }
 0x14a   :  { %1224 = vrot.lane.b32.xlu0 %v1060_v50, %s3871_s1  ;;  %v1647_v29 = vsel %vm1552_vm7, %v1642_v63, %v1646_v18  ;;  %v1854_v63 = vsel %vm1807_vm6, %v1851_v30, %v1853_v56 }
 0x14b   :  { %v5020_v59 = vpop.permute.xlu1 %931  ;;  %v1566_v14 = vor.u32 %v1565_v23, %v1564_v20  ;;  %v1813_v20 = vrot.slane %v5022_v2, 3 }
 0x14c   :  { %7426 = vst [vmem:[#allocation61_spill] sm:$0xff] %v5020_v59  ;;  %v5027_v52 = vpop.permute.xlu0 %929 }
 0x14d   :  { %7430 = vst [vmem:[#allocation19_spill] sm:$0xff] %v5027_v52  ;;  %1430 = vrot.lane.b32.xlu1 %v1349_v46, %s3873_s16  ;;  %v1141_v46 = vrot.slane %v7424_v8, 1  ;;  %v1567_v42 = vsel %vm1552_vm7, %v1562_v34, %v1566_v14  ;;  %v1063_v34 = vor.u32 %v1062_v43, %v1061_v22  ;;  %v7440_v22 = vld [vmem:[#allocation62_spill] sm:$0xff] }
 0x14e   :  { %1390 = vrot.lane.b32.xlu0 %v1309_v28, %s3873_s16  ;;  %v1649_v43 = vrot.slane %v7440_v22, 3 }
 0x14f   :  { %v5032_v50 = vpop.permute.xlu1 %935  ;;  %v1143_v8 = vor.u32 %v1142_v48, %v1141_v46  ;;  %v5068_v46 = vld [vmem:[#allocation2 + $0xd0] sm:$0xff]  }
 0x150   :  { %7431 = vst [vmem:[#allocation18_spill] sm:$0xff] %v5032_v50  ;;  %v5035_v59 = vpop.permute.xlu0 %933  ;;  %v7439_v48 = vld [vmem:[#allocation68_spill] sm:$0xff] }
 0x151   :  { %7432 = vst [vmem:[#allocation147_spill] sm:$0xff] %v5035_v59  ;;  %1514 = vrot.lane.b32.xlu1 %v1351_v44, %s3872_s15  ;;  %v1144_v35 = vsel %vm1045_vm2, %v1139_v41, %v1143_v8 }
 0x152   :  { %1474 = vrot.lane.b32.xlu0 %v1311_v58, %s3872_s15 }
 0x153   :  { %v5043_v28 = vpop.permute.xlu1 %939 }
 0x154   :  { %7433 = vst [vmem:[#allocation148_spill] sm:$0xff] %v5043_v28  ;;  %v5049_v23 = vpop.permute.xlu0 %937  ;;  %v1814_v28 = vsel %vm1807_vm6, %v1811_v17, %v1813_v20  ;;  %v1352_v17 = vrot.slane %v5068_v46, 2 }
 0x155   :  { %7434 = vst [vmem:[#allocation149_spill] sm:$0xff] %v5049_v23  ;;  %1769 = vrot.lane.b32.xlu1 %v1647_v29, %s3875_s19  ;;  %v1064_v29 = vsel %vm1045_vm2, %v1059_v31, %v1063_v34 }
 0x156   :  { %1729 = vrot.lane.b32.xlu0 %v1567_v42, %s3875_s19  ;;  %v1648_v42 = vrot.slane %v7439_v48, 2 }
 0x157   :  { %v5054_v37 = vpop.permute.xlu1 %943 }
 0x158   :  { %7435 = vst [vmem:[#allocation150_spill] sm:$0xff] %v5054_v37  ;;  %v5057_v50 = vpop.permute.xlu0 %941  ;;  %v1650_v23 = vor.u32 %v1649_v43, %v1648_v42 }
 0x159   :  { %7436 = vst [vmem:[#allocation151_spill] sm:$0xff] %v5057_v50  ;;  %1935 = vrot.lane.b32.xlu1 %v1854_v63, %s3874_s17  ;;  %v7442_v63 = vld [vmem:[#allocation25_spill] sm:$0xff]  ;;  %v1353_v50 = vsel %vm1302_vm4, %v1350_v5, %v1352_v17  ;;  %v1146_v5 = vrot.slane %v7440_v22, 2 }
 0x15a   :  { %1895 = vrot.lane.b32.xlu0 %v1814_v28, %s3874_s17  ;;  %v5076_v28 = vld [vmem:[#allocation2 + $0x30] sm:$0xff]   ;;  %v1651_v52 = vsel %vm1552_vm7, %v1646_v18, %v1650_v23 }
 0x15b   :  { %v5062_v12 = vpop.permute.xlu1 %947  ;;  %v1312_v31 = vrot.slane %v5076_v28, 2 }
 0x15c   :  { %7437 = vst [vmem:[#allocation152_spill] sm:$0xff] %v5062_v12  ;;  %v5065_v30 = vpop.permute.xlu0 %945  ;;  %v1568_v12 = vrot.slane %v7442_v63, 2 }
 0x15d   :  { %7438 = vst [vmem:[#allocation153_spill] sm:$0xff] %v5065_v30  ;;  %1266 = vrot.lane.b32.xlu1 %v1144_v35, %s3871_s1  ;;  %v7443_v30 = vld [vmem:[#allocation20_spill] sm:$0xff] }
 0x15e   :  { %1226 = vrot.lane.b32.xlu0 %v1064_v29, %s3871_s1  ;;  %v1569_v35 = vrot.slane %v7443_v30, 3  ;;  %v1066_v43 = vrot.slane %v7443_v30, 2 }
 0x15f   :  { %v5074_v41 = vpop.permute.xlu1 %951 }
 0x160   :  { %7441 = vst [vmem:[#allocation68_spill] sm:$0xff] %v5074_v41  ;;  %v5081_v37 = vpop.permute.xlu0 %949  ;;  %v1313_v41 = vsel %vm1302_vm4, %v1310_v25, %v1312_v31  ;;  %v1570_v59 = vor.u32 %v1569_v35, %v1568_v12  ;;  %v1815_v25 = vrot.slane %v5076_v28, 3  ;;  %v1065_v12 = vrot.slane %v7442_v63, 1 }
 0x161   :  { %7444 = vst [vmem:[#allocation62_spill] sm:$0xff] %v5081_v37  ;;  %1432 = vrot.lane.b32.xlu1 %v1351_v44, %s3873_s16  ;;  %v1855_v37 = vrot.slane %v5068_v46, 3  ;;  %v1145_v44 = vrot.slane %v7439_v48, 1 }
 0x162   :  { %1392 = vrot.lane.b32.xlu0 %v1311_v58, %s3873_s16  ;;  %v1571_v42 = vsel %vm1552_vm7, %v1566_v14, %v1570_v59  ;;  %v1816_v14 = vsel %vm1807_vm6, %v1813_v20, %v1815_v25  ;;  %v1067_v22 = vor.u32 %v1066_v43, %v1065_v12  ;;  %v7450_v12 = vld [vmem:[#allocation63_spill] sm:$0xff] }
 0x163   :  { %v5086_v29 = vpop.permute.xlu1 %955  ;;  %v1856_v18 = vsel %vm1807_vm6, %v1853_v56, %v1855_v37  ;;  %v5107_v46 = vor.u32 %v1146_v5, %v1145_v44  ;;  %v5125_v44 = vld [vmem:[#allocation2 + $0xd8] sm:$0xff]   ;;  %v1653_v43 = vrot.slane %v7450_v12, 3 }
 0x164   :  { %7445 = vst [vmem:[#allocation25_spill] sm:$0xff] %v5086_v29  ;;  %v5089_v7 = vpop.permute.xlu0 %953  ;;  %v1068_v56 = vsel %vm1045_vm2, %v1063_v34, %v1067_v22  ;;  %v7260_v20 = vrot.slane %v5125_v44, 2  ;;  %v7449_v5 = vld [vmem:[#allocation66_spill] sm:$0xff]  ;;  %v7261_v2 = vrot.slane %v5125_v44, 3 }
 0x165   :  { %7446 = vst [vmem:[#allocation20_spill] sm:$0xff] %v5089_v7  ;;  %1516 = vrot.lane.b32.xlu1 %v1353_v50, %s3872_s15  ;;  %v1148_v30 = vsel %vm1045_vm2, %v1143_v8, %v5107_v46 }
 0x166   :  { %1476 = vrot.lane.b32.xlu0 %v1313_v41, %s3872_s15  ;;  %v1355_v7 = vsel %vm1302_vm4, %v1352_v17, %v7260_v20 }
 0x167   :  { %v5097_v58 = vpop.permute.xlu1 %959 }
 0x168   :  { %7447 = vst [vmem:[#allocation154_spill] sm:$0xff] %v5097_v58  ;;  %v5103_v35 = vpop.permute.xlu0 %957 }
 0x169   :  { %7448 = vst [vmem:[#allocation155_spill] sm:$0xff] %v5103_v35  ;;  %1771 = vrot.lane.b32.xlu1 %v1651_v52, %s3875_s19  ;;  %v7453_v35 = vld [vmem:[#allocation22_spill] sm:$0xff] }
 0x16a   :  { %1731 = vrot.lane.b32.xlu0 %v1571_v42, %s3875_s19  ;;  %v1652_v42 = vrot.slane %v7449_v5, 2 }
 0x16b   :  { %v5110_v48 = vpop.permute.xlu1 %965 }
 0x16c   :  { %v5113_v28 = vpop.permute.xlu0 %963  ;;  %v5144_v24 = vor.u32 %v1653_v43, %v1652_v42  ;;  %v1070_v42 = vrot.slane %v7453_v35, 2 }
 0x16d   :  { %1937 = vrot.lane.b32.xlu1 %v1856_v18, %s3874_s17  ;;  %v5133_v18 = vld [vmem:[#allocation2 + $0x38] sm:$0xff]  }
 0x16e   :  { %1897 = vrot.lane.b32.xlu0 %v1816_v14, %s3874_s17  ;;  %v1314_v34 = vrot.slane %v5133_v18, 2  ;;  %v7452_v14 = vld [vmem:[#allocation23_spill] sm:$0xff] }
 0x16f   :  { %v5119_v52 = vpop.permute.xlu1 %969  ;;  %v1572_v58 = vrot.slane %v7452_v14, 2  ;;  %v1069_v17 = vrot.slane %v7452_v14, 1 }
 0x170   :  { %v5122_v63 = vpop.permute.xlu0 %967  ;;  %v1315_v51 = vsel %vm1302_vm4, %v1312_v31, %v1314_v34 }
 0x171   :  { %1268 = vrot.lane.b32.xlu1 %v1148_v30, %s3871_s1  ;;  %v1573_v30 = vrot.slane %v7453_v35, 3 }
 0x172   :  { %1228 = vrot.lane.b32.xlu0 %v1068_v56, %s3871_s1 }
 0x173   :  { %v5131_v8 = vpop.permute.xlu1 %973 }
 0x174   :  { %7451 = vst [vmem:[#allocation66_spill] sm:$0xff] %v5131_v8  ;;  %v5138_v29 = vpop.permute.xlu0 %971  ;;  %v1574_v8 = vor.u32 %v1573_v30, %v1572_v58  ;;  %v1817_v58 = vrot.slane %v5133_v18, 3  ;;  %v5169_v30 = vor.u32 %v1070_v42, %v1069_v17  ;;  %v1150_v18 = vrot.slane %v7450_v12, 2  ;;  %v7461_v12 = vld [vmem:[#allocation29_spill] sm:$0xff] }
 0x175   :  { %1434 = vrot.lane.b32.xlu1 %v1353_v50, %s3873_s16  ;;  %v1655_v50 = vsel %vm1552_vm7, %v1650_v23, %v5144_v24  ;;  %v1858_v23 = vsel %vm1807_vm6, %v1855_v37, %v7261_v2  ;;  %v7462_v2 = vld [vmem:[#allocation24_spill] sm:$0xff] }
 0x176   :  { %1394 = vrot.lane.b32.xlu0 %v1313_v41, %s3873_s16  ;;  %v1575_v31 = vsel %vm1552_vm7, %v1570_v59, %v1574_v8  ;;  %v1818_v14 = vsel %vm1807_vm6, %v1815_v25, %v1817_v58  ;;  %v1149_v59 = vrot.slane %v7449_v5, 1  ;;  %v5188_v25 = vld [vmem:[#allocation2 + $0x40] sm:$0xff]  }
 0x177   :  { %v5147_v56 = vpop.permute.xlu1 %977  ;;  %v7262_v5 = vrot.slane %v5188_v25, 2 }
 0x178   :  { %7454 = vst [vmem:[#allocation63_spill] sm:$0xff] %v5147_v56  ;;  %v5150_v32 = vpop.permute.xlu0 %975  ;;  %v1151_v17 = vor.u32 %v1150_v18, %v1149_v59 }
 0x179   :  { %1518 = vrot.lane.b32.xlu1 %v1355_v7, %s3872_s15  ;;  %v5205_v18 = vsel %vm1302_vm4, %v1314_v34, %v7262_v5 }
 0x17a   :  { %1478 = vrot.lane.b32.xlu0 %v1315_v51, %s3872_s15 }
 0x17b   :  { %v5159_v41 = vpop.permute.xlu1 %981 }
 0x17c   :  { %7455 = vst [vmem:[#allocation23_spill] sm:$0xff] %v5159_v41  ;;  %v5163_v43 = vpop.permute.xlu0 %979  ;;  %v7477_v41 = vld [vmem:[#allocation26_spill] sm:$0xff] }
 0x17d   :  { %7456 = vst [vmem:[#allocation22_spill] sm:$0xff] %v5163_v43  ;;  %1773 = vrot.lane.b32.xlu1 %v1655_v50, %s3875_s19  ;;  %v1072_v50 = vsel %vm1045_vm2, %v1067_v22, %v5169_v30  ;;  %v1581_v43 = vrot.slane %v7477_v41, 3 }
 0x17e   :  { %1733 = vrot.lane.b32.xlu0 %v1575_v31, %s3875_s19  ;;  %v1576_v31 = vrot.slane %v7461_v12, 2 }
 0x17f   :  { %v5172_v35 = vpop.permute.xlu1 %985 }
 0x180   :  { %7457 = vst [vmem:[#allocation156_spill] sm:$0xff] %v5172_v35  ;;  %v5177_v20 = vpop.permute.xlu0 %983 }
 0x181   :  { %7458 = vst [vmem:[#allocation157_spill] sm:$0xff] %v5177_v20  ;;  %1939 = vrot.lane.b32.xlu1 %v1858_v23, %s3874_s17  ;;  %v1577_v23 = vrot.slane %v7462_v2, 3 }
 0x182   :  { %1899 = vrot.lane.b32.xlu0 %v1818_v14, %s3874_s17  ;;  %v1152_v14 = vsel %vm1045_vm2, %v5107_v46, %v1151_v17  ;;  %v7466_v46 = vld [vmem:[#allocation72_spill] sm:$0xff] }
 0x183   :  { %v5183_v37 = vpop.permute.xlu1 %989 }
 0x184   :  { %7459 = vst [vmem:[#allocation158_spill] sm:$0xff] %v5183_v37  ;;  %v5185_v42 = vpop.permute.xlu0 %987 }
 0x185   :  { %7460 = vst [vmem:[#allocation159_spill] sm:$0xff] %v5185_v42  ;;  %1230 = vrot.lane.b32.xlu1 %v1072_v50, %s3871_s1  ;;  %v5207_v50 = vor.u32 %v1577_v23, %v1576_v31  ;;  %v1656_v42 = vrot.slane %v7466_v46, 2  ;;  %v7264_v31 = vrot.slane %v5188_v25, 3 }
 0x186   :  { %1013 = vrot.lane.b32.xlu0 %v4635_v36, %s3868_s28  ;;  %v5212_v36 = vld [vmem:[#allocation2 + $0xe0] sm:$0xff]  }
 0x187   :  { %v5195_v22 = vpop.permute.xlu1 %993  ;;  %v1579_v34 = vsel %vm1552_vm7, %v1574_v8, %v5207_v50  ;;  %v1820_v8 = vsel %vm1807_vm6, %v1817_v58, %v7264_v31 }
 0x188   :  { %7463 = vst [vmem:[#allocation29_spill] sm:$0xff] %v5195_v22  ;;  %v5199_v59 = vpop.permute.xlu0 %991  ;;  %v7263_v22 = vrot.slane %v5212_v36, 2 }
 0x189   :  { %7464 = vst [vmem:[#allocation24_spill] sm:$0xff] %v5199_v59  ;;  %1396 = vrot.lane.b32.xlu1 %v1315_v51, %s3873_s16  ;;  %v7467_v59 = vld [vmem:[#allocation65_spill] sm:$0xff] }
 0x18a   :  { %1270 = vrot.lane.b32.xlu0 %v1152_v14, %s3871_s1  ;;  %v1657_v35 = vrot.slane %v7467_v59, 3  ;;  %v7470_v14 = vrot.slane %v5125_v44, 2 }
 0x18b   :  { %v5210_v37 = vpop.permute.xlu1 %997 }
 0x18c   :  { %7465 = vst [vmem:[#allocation160_spill] sm:$0xff] %v5210_v37  ;;  %v5217_v51 = vpop.permute.xlu0 %995  ;;  %v1357_v5 = vsel %vm1302_vm4, %v7470_v14, %v7263_v22  ;;  %v5232_v37 = vor.u32 %v1657_v35, %v1656_v42  ;;  %v7265_v42 = vrot.slane %v5212_v36, 3  ;;  %v1074_v14 = vrot.slane %v7462_v2, 2 }
 0x18d   :  { %7468 = vst [vmem:[#allocation72_spill] sm:$0xff] %v5217_v51  ;;  %1480 = vrot.lane.b32.xlu1 %v5205_v18, %s3872_s15 }
 0x18e   :  { %1436 = vrot.lane.b32.xlu0 %v1355_v7, %s3873_s16  ;;  %v1153_v7 = vrot.slane %v7466_v46, 1  ;;  %v1659_v35 = vsel %vm1552_vm7, %v5144_v24, %v5232_v37  ;;  %v7473_v24 = vrot.slane %v5125_v44, 3 }
 0x18f   :  { %v5225_v23 = vpop.permute.xlu1 %1001 }
 0x190   :  { %7469 = vst [vmem:[#allocation65_spill] sm:$0xff] %v5225_v23  ;;  %v5234_v51 = vpop.permute.xlu0 %999  ;;  %v1154_v23 = vrot.slane %v7467_v59, 2  ;;  %v1860_v46 = vsel %vm1807_vm6, %v7473_v24, %v7265_v42  ;;  %v5283_v24 = vld [vmem:[#allocation2 + $0xe8] sm:$0xff]  }
 0x191   :  { %7471 = vst [vmem:[#allocation161_spill] sm:$0xff] %v5234_v51  ;;  %1735 = vrot.lane.b32.xlu1 %v1579_v34, %s3875_s19  ;;  %v1073_v34 = vrot.slane %v7461_v12, 1 }
 0x192   :  { %1520 = vrot.lane.b32.xlu0 %v1357_v5, %s3872_s15  ;;  %v5254_v58 = vor.u32 %v1154_v23, %v1153_v7  ;;  %v7474_v7 = vld [vmem:[#allocation70_spill] sm:$0xff] }
 0x193   :  { %v5243_v20 = vpop.permute.xlu1 %1005  ;;  %v5264_v31 = vor.u32 %v1074_v14, %v1073_v34  ;;  %v3680_v14 = vld [vmem:[#allocation2] sm:$0xff]  }
 0x194   :  { %v5251_v22 = vpop.permute.xlu0 %1003  ;;  %v1156_v2 = vsel %vm1045_vm2, %v1151_v17, %v5254_v58  ;;  %v1975_v17 = vsel %vm1973_vm8, %v3680_v14, %v4582_v33  ;;  %v7476_v33 = vld [vmem:[#allocation27_spill] sm:$0xff] }
 0x195   :  { %7472 = vst [vmem:[#allocation162_spill] sm:$0xff] %v5251_v22  ;;  %1901 = vrot.lane.b32.xlu1 %v1820_v8, %s3874_s17  ;;  %v1076_v44 = vsel %vm1045_vm2, %v5169_v30, %v5264_v31  ;;  %v2058_v30 = vsel %vm2056_vm9, %v1975_v17, %v4828_v53  ;;  %v5291_v22 = vld [vmem:[#allocation2 + $0x48] sm:$0xff]   ;;  %v1580_v14 = vrot.slane %v7476_v33, 2  ;;  %v7479_v17 = vrot.slane %v5212_v36, 2 }
 0x196   :  { %1775 = vrot.lane.b32.xlu0 %v1659_v35, %s3875_s19  ;;  %v1660_v35 = vrot.slane %v7474_v7, 2 }
 0x197   :  { %v5257_v59 = vpop.permute.xlu1 %1009 }
 0x198   :  { %v5266_v12 = vpop.permute.xlu0 %1007 }
 0x199   :  { %1015 = vrot.lane.b32.xlu1 %v4660_v15, %s3868_s28  ;;  %v7475_v15 = vld [vmem:[#allocation67_spill] sm:$0xff] }
 0x19a   :  { %1941 = vrot.lane.b32.xlu0 %v1860_v46, %s3874_s17  ;;  %v1661_v34 = vrot.slane %v7475_v15, 3 }
 0x19b   :  { %v1221_v23 = vpop.permute.xlu1 %1220 }
 0x19c   :  { %v5276_v8 = vpop.permute.xlu0 %1011  ;;  %v5298_v53 = vor.u32 %v1661_v34, %v1660_v35 }
 0x19d   :  { %1272 = vrot.lane.b32.xlu1 %v1156_v2, %s3871_s1  ;;  %v2141_v2 = vsel %vm2139_vm10, %v2058_v30, %v5113_v28  ;;  %v7478_v28 = vrot.slane %v5283_v24, 2 }
 0x19e   :  { %1232 = vrot.lane.b32.xlu0 %v1076_v44, %s3871_s1  ;;  %v2224_v46 = vsel %vm2222_vm11, %v2141_v2, %v1221_v23  ;;  %v7480_v23 = vrot.slane %v5291_v22, 2 }
 0x19f   :  { %v1471_v42 = vpop.permute.xlu1 %1470  ;;  %v5306_v30 = vsel %vm1302_vm4, %v7479_v17, %v7478_v28  ;;  %v1861_v28 = vrot.slane %v5283_v24, 3  ;;  %v1077_v17 = vrot.slane %v7476_v33, 1 }
 0x1a0   :  { %v1387_v56 = vpop.permute.xlu0 %1386 }
 0x1a1   :  { %1438 = vrot.lane.b32.xlu1 %v1357_v5, %s3873_s16  ;;  %v2307_v44 = vsel %vm2305_vm12, %v2224_v46, %v1387_v56  ;;  %v7481_v5 = vrot.slane %v5188_v25, 2  ;;  %v5315_v56 = vor.u32 %v1581_v43, %v1580_v14  ;;  %v1078_v43 = vrot.slane %v7477_v41, 2 }
 0x1a2   :  { %1398 = vrot.lane.b32.xlu0 %v5205_v18, %s3873_s16  ;;  %v2390_v34 = vsel %vm2388_vm13, %v2307_v44, %v1471_v42  ;;  %v1663_v18 = vsel %vm1552_vm7, %v5232_v37, %v5298_v53  ;;  %v1821_v37 = vrot.slane %v5291_v22, 3  ;;  %v7482_v41 = vrot.slane %v5212_v36, 3 }
 0x1a3   :  { %v1892_v51 = vpop.permute.xlu1 %1891  ;;  %v1319_v35 = vsel %vm1302_vm4, %v7481_v5, %v7480_v23  ;;  %v1583_v44 = vsel %vm1552_vm7, %v5207_v50, %v5315_v56  ;;  %v5342_v33 = vor.u32 %v1078_v43, %v1077_v17  ;;  %v7483_v50 = vrot.slane %v5188_v25, 3 }
 0x1a4   :  { %v1726_v46 = vpop.permute.xlu0 %1725 }
 0x1a5   :  { %1522 = vrot.lane.b32.xlu1 %v5306_v30, %s3872_s15  ;;  %v2473_v2 = vsel %vm2471_vm14, %v2390_v34, %v1726_v46  ;;  %v1822_v34 = vsel %vm1807_vm6, %v7483_v50, %v1821_v37  ;;  %v1157_v46 = vrot.slane %v7474_v7, 1  ;;  %v1080_v36 = vsel %vm1045_vm2, %v5264_v31, %v5342_v33  ;;  %v7484_v31 = vld [vmem:[#allocation34_spill] sm:$0xff]  ;;  %v7485_v50 = vld [vmem:[#allocation28_spill] sm:$0xff] }
 0x1a6   :  { %1482 = vrot.lane.b32.xlu0 %v1319_v35, %s3872_s15  ;;  %v2556_v42 = vsel %vm2554_vm15, %v2473_v2, %v1892_v51  ;;  %v1862_v51 = vsel %vm1807_vm6, %v7482_v41, %v1861_v28 }
 0x1a7   :  { %v1263_v14 = vpop.permute.xlu1 %1262  ;;  %3435 = vmatmul.mubr.msk.bf16.vlgmr.msra.gmra.mrb[0].mxu0 %vm2664_vm0, %v2556_v42  ;;  %v3683_v42 = vld [vmem:[#allocation2 + $0xa8] sm:$0xff]  }
 0x1a8   :  { %v1223_v23 = vpop.permute.xlu0 %1222  ;;  %3438 = vmatprep.mubr.msk.bf16.mxu0 %vm3870_vm5, %v7392_v47  ;;  %v2017_v25 = vsel %vm1973_vm8, %v3683_v42, %v4737_v26 }
 0x1a9   :  { %1777 = vrot.lane.b32.xlu1 %v1663_v18, %s3875_s19  ;;  %v1158_v18 = vrot.slane %v7475_v15, 2  ;;  %v2100_v7 = vsel %vm2056_vm9, %v2017_v25, %v5002_v13  ;;  %v5364_v15 = vld [vmem:[#allocation2 + $0x50] sm:$0xff]  }
 0x1aa   :  { %1737 = vrot.lane.b32.xlu0 %v1583_v44, %s3875_s19  ;;  %v1320_v41 = vrot.slane %v5364_v15, 2  ;;  %v2183_v26 = vsel %vm2139_vm10, %v2100_v7, %v5243_v20  ;;  %v5400_v7 = vld [vmem:[#allocation2 + $0xf0] sm:$0xff]  }
 0x1ab   :  { %v1429_v5 = vpop.permute.xlu1 %1428  ;;  %v5357_v43 = vor.u32 %v1158_v18, %v1157_v46  ;;  %v1977_v46 = vsel %vm1973_vm8, %v4883_v40, %v4598_v0 }
 0x1ac   :  { %v1389_v2 = vpop.permute.xlu0 %1388  ;;  %v2060_v13 = vsel %vm2056_vm9, %v1977_v46, %v4840_v11  ;;  %v7486_v11 = vrot.slane %v5291_v22, 2 }
 0x1ad   :  { %1943 = vrot.lane.b32.xlu1 %v1862_v51, %s3874_s17  ;;  %v1584_v51 = vrot.slane %v7484_v31, 2  ;;  %v1160_v42 = vsel %vm1045_vm2, %v5254_v58, %v5357_v43  ;;  %v2143_v25 = vsel %vm2139_vm10, %v2060_v13, %v5110_v48 }
 0x1ae   :  { %1903 = vrot.lane.b32.xlu0 %v1822_v34, %s3874_s17  ;;  %v1585_v34 = vrot.slane %v7485_v50, 3 }
 0x1af   :  { %v1513_v17 = vpop.permute.xlu1 %1512 }
 0x1b0   :  { %v1473_v44 = vpop.permute.xlu0 %1472  ;;  %v5395_v58 = vor.u32 %v1585_v34, %v1584_v51 }
 0x1b1   :  { %1234 = vrot.lane.b32.xlu1 %v1080_v36, %s3871_s1  ;;  %v2266_v36 = vsel %vm2222_vm11, %v2183_v26, %v1263_v14  ;;  %v5393_v14 = vsel %vm1302_vm4, %v7486_v11, %v1320_v41  ;;  %v7487_v26 = vld [vmem:[#allocation76_spill] sm:$0xff] }
 0x1b2   :  { %1017 = vrot.lane.b32.xlu0 %v4651_v16, %s3868_s28  ;;  %v2349_v0 = vsel %vm2305_vm12, %v2266_v36, %v1429_v5  ;;  %v2226_v16 = vsel %vm2222_vm11, %v2143_v25, %v1223_v23  ;;  %v1360_v23 = vrot.slane %v5400_v7, 2  ;;  %v1664_v13 = vrot.slane %v7487_v26, 2  ;;  %v7488_v36 = vld [vmem:[#allocation71_spill] sm:$0xff] }
 0x1b3   :  { %v1768_v18 = vpop.permute.xlu1 %1767  ;;  %v2432_v20 = vsel %vm2388_vm13, %v2349_v0, %v1513_v17  ;;  %v2309_v48 = vsel %vm2305_vm12, %v2226_v16, %v1389_v2  ;;  %v1665_v51 = vrot.slane %v7488_v36, 3  ;;  %v7489_v0 = vrot.slane %v5283_v24, 2 }
 0x1b4   :  { %v1728_v40 = vpop.permute.xlu0 %1727  ;;  %v2515_v5 = vsel %vm2471_vm14, %v2432_v20, %v1768_v18  ;;  %v2392_v17 = vsel %vm2388_vm13, %v2309_v48, %v1473_v44  ;;  %v1587_v44 = vsel %vm1552_vm7, %v5315_v56, %v5395_v58  ;;  %v1161_v20 = vrot.slane %v7487_v26, 1 }
 0x1b5   :  { %1400 = vrot.lane.b32.xlu1 %v1319_v35, %s3873_s16  ;;  %v2475_v34 = vsel %vm2471_vm14, %v2392_v17, %v1728_v40  ;;  %v1361_v40 = vsel %vm1302_vm4, %v7489_v0, %v1360_v23  ;;  %v5426_v16 = vor.u32 %v1665_v51, %v1664_v13  ;;  %v1162_v11 = vrot.slane %v7488_v36, 2  ;;  %v3686_v36 = vld [vmem:[#allocation2 + $0xb0] sm:$0xff]  }
 0x1b6   :  { %1274 = vrot.lane.b32.xlu0 %v1160_v42, %s3871_s1  ;;  %v1823_v42 = vrot.slane %v5364_v15, 3  ;;  %v1081_v17 = vrot.slane %v7484_v31, 1  ;;  %v2019_v31 = vsel %vm1973_vm8, %v3686_v36, %v4758_v9  ;;  %v1979_v24 = vsel %vm1973_vm8, %v4868_v1, %v4577_v49 }
 0x1b7   :  { %v1934_v35 = vpop.permute.xlu1 %1933  ;;  %v2102_v51 = vsel %vm2056_vm9, %v2019_v31, %v4997_v3 }
 0x1b8   :  { %v2598_v46 = vsel %vm2554_vm15, %v2515_v5, %v1934_v35  ;;  %v1894_v2 = vpop.permute.xlu0 %1893  ;;  %v1667_v5 = vsel %vm1552_vm7, %v5298_v53, %v5426_v16  ;;  %v1863_v35 = vrot.slane %v5400_v7, 3 }
 0x1b9   :  { %1484 = vrot.lane.b32.xlu1 %v5393_v14, %s3872_s15  ;;  %3519 = vmatmul.mubr.msk.bf16.vlgmr.msra.gmra.mrb[0].mxu1 %vm2664_vm0, %v2598_v46  ;;  %v2558_v18 = vsel %vm2554_vm15, %v2475_v34, %v1894_v2  ;;  %v1082_v46 = vrot.slane %v7485_v50, 2 }
 0x1ba   :  { %3522 = vmatprep.mubr.msk.bf16.mxu1 %vm3870_vm5, %v7392_v47  ;;  %1440 = vrot.lane.b32.xlu0 %v5306_v30, %s3873_s16  ;;  %v1824_v30 = vsel %vm1807_vm6, %v1821_v37, %v1823_v42  ;;  %v5446_v37 = vor.u32 %v1162_v11, %v1161_v20  ;;  %v1864_v53 = vsel %vm1807_vm6, %v1861_v28, %v1863_v35 }
 0x1bb   :  { %3439 = vmatmul.mubr.msk.bf16.gmra.mrb[4].mxu0 %vm2664_vm0, %v2558_v18  ;;  %v1265_v25 = vpop.permute.xlu1 %1264  ;;  %v5454_v13 = vor.u32 %v1082_v46, %v1081_v17  ;;  %v2185_v28 = vsel %vm2139_vm10, %v2102_v51, %v5266_v12  ;;  %v5481_v12 = vld [vmem:[#allocation2 + $0xf8] sm:$0xff]   ;;  %v7492_v46 = vld [vmem:[#allocation31_spill] sm:$0xff] }
 0x1bc   :  { %3442 = vmatprep.mubr.msk.bf16.mxu0 %vm3870_vm5, %v7392_v47  ;;  %v1225_v56 = vpop.permute.xlu0 %1224  ;;  %v1164_v34 = vsel %vm1045_vm2, %v5357_v43, %v5446_v37  ;;  %v2268_v2 = vsel %vm2222_vm11, %v2185_v28, %v1265_v25  ;;  %v1362_v18 = vrot.slane %v5481_v12, 2  ;;  %v7490_v25 = vld [vmem:[#allocation73_spill] sm:$0xff] }
 0x1bd   :  { %1739 = vrot.lane.b32.xlu1 %v1587_v44, %s3875_s19  ;;  %v1084_v3 = vsel %vm1045_vm2, %v5342_v33, %v5454_v13  ;;  %v1668_v0 = vrot.slane %v7490_v25, 2 }
 0x1be   :  { %1524 = vrot.lane.b32.xlu0 %v1361_v40, %s3872_s15 }
 0x1bf   :  { %v1431_v48 = vpop.permute.xlu1 %1430 }
 0x1c0   :  { %v1391_v22 = vpop.permute.xlu0 %1390  ;;  %v2351_v49 = vsel %vm2305_vm12, %v2268_v2, %v1431_v48  ;;  %v5491_v48 = vld [vmem:[#allocation2 + $0x58] sm:$0xff]  }
 0x1c1   :  { %1905 = vrot.lane.b32.xlu1 %v1824_v30, %s3874_s17  ;;  %v7491_v30 = vld [vmem:[#allocation69_spill] sm:$0xff] }
 0x1c2   :  { %1779 = vrot.lane.b32.xlu0 %v1667_v5, %s3875_s19  ;;  %v1669_v33 = vrot.slane %v7491_v30, 3  ;;  %v1322_v5 = vrot.slane %v5491_v48, 2 }
 0x1c3   :  { %v1515_v26 = vpop.permute.xlu1 %1514 }
 0x1c4   :  { %v1475_v50 = vpop.permute.xlu0 %1474  ;;  %v2434_v44 = vsel %vm2388_vm13, %v2351_v49, %v1515_v26  ;;  %v1588_v26 = vrot.slane %v7492_v46, 2 }
 0x1c5   :  { %1019 = vrot.lane.b32.xlu1 %v4676_v61, %s3868_s28  ;;  %v2062_v61 = vsel %vm2056_vm9, %v1979_v24, %v4836_v55  ;;  %v1323_v24 = vsel %vm1302_vm4, %v1320_v41, %v1322_v5 }
 0x1c6   :  { %1945 = vrot.lane.b32.xlu0 %v1864_v53, %s3874_s17  ;;  %v2145_v43 = vsel %vm2139_vm10, %v2062_v61, %v5122_v63  ;;  %v7493_v53 = vld [vmem:[#allocation30_spill] sm:$0xff]  ;;  %v1085_v61 = vrot.slane %v7492_v46, 1 }
 0x1c7   :  { %v1770_v9 = vpop.permute.xlu1 %1769  ;;  %v2228_v55 = vsel %vm2222_vm11, %v2145_v43, %v1225_v56  ;;  %v1589_v36 = vrot.slane %v7493_v53, 3  ;;  %v1086_v2 = vrot.slane %v7493_v53, 2  ;;  %v1825_v43 = vrot.slane %v5491_v48, 3  ;;  %v3692_v48 = vld [vmem:[#allocation2 + $0xc0] sm:$0xff]  }
 0x1c8   :  { %v1730_v1 = vpop.permute.xlu0 %1729  ;;  %v2311_v20 = vsel %vm2305_vm12, %v2228_v55, %v1391_v22  ;;  %v2517_v63 = vsel %vm2471_vm14, %v2434_v44, %v1770_v9  ;;  %v1865_v9 = vrot.slane %v5481_v12, 3  ;;  %v1165_v44 = vrot.slane %v7490_v25, 1 }
 0x1c9   :  { %1276 = vrot.lane.b32.xlu1 %v1164_v34, %s3871_s1  ;;  %v2394_v17 = vsel %vm2388_vm13, %v2311_v20, %v1475_v50  ;;  %v5507_v50 = vsel %vm1302_vm4, %v1360_v23, %v1362_v18  ;;  %v5509_v34 = vor.u32 %v1669_v33, %v1668_v0  ;;  %v5521_v28 = vor.u32 %v1589_v36, %v1588_v26  ;;  %v3689_v33 = vld [vmem:[#allocation2 + $0xb8] sm:$0xff]   ;;  %v7495_v26 = vld [vmem:[#allocation32_spill] sm:$0xff] }
 0x1ca   :  { %1236 = vrot.lane.b32.xlu0 %v1084_v3, %s3871_s1  ;;  %v2477_v31 = vsel %vm2471_vm14, %v2394_v17, %v1730_v1  ;;  %v5544_v1 = vor.u32 %v1086_v2, %v1085_v61  ;;  %v1166_v0 = vrot.slane %v7491_v30, 2  ;;  %v2021_v7 = vsel %vm1973_vm8, %v3689_v33, %v4753_v60 }
 0x1cb   :  { %v1936_v11 = vpop.permute.xlu1 %1935  ;;  %v1591_v3 = vsel %vm1552_vm7, %v5395_v58, %v5521_v28  ;;  %v1826_v58 = vsel %vm1807_vm6, %v1823_v42, %v1825_v43  ;;  %v2104_v20 = vsel %vm2056_vm9, %v2021_v7, %v5011_v62  ;;  %v1981_v42 = vsel %vm1973_vm8, %v4871_v54, %v4593_v4  ;;  %v5577_v4 = vld [vmem:[#allocation2 + $0x60] sm:$0xff]  }
 0x1cc   :  { %v2600_v56 = vsel %vm2554_vm15, %v2517_v63, %v1936_v11  ;;  %v1896_v22 = vpop.permute.xlu0 %1895  ;;  %v1088_v15 = vsel %vm1045_vm2, %v5454_v13, %v5544_v1  ;;  %v2187_v25 = vsel %vm2139_vm10, %v2104_v20, %v5257_v59  ;;  %v2064_v30 = vsel %vm2056_vm9, %v1981_v42, %v4852_v45 }
 0x1cd   :  { %1442 = vrot.lane.b32.xlu1 %v1361_v40, %s3873_s16  ;;  %3523 = vmatmul.mubr.msk.bf16.gmra.mrb[4].mxu1 %vm2664_vm0, %v2600_v56  ;;  %v2560_v51 = vsel %vm2554_vm15, %v2477_v31, %v1896_v22  ;;  %v5571_v62 = vor.u32 %v1166_v0, %v1165_v44  ;;  %v2147_v13 = vsel %vm2139_vm10, %v2064_v30, %v5119_v52  ;;  %v1324_v54 = vrot.slane %v5577_v4, 2  ;;  %v7494_v56 = vld [vmem:[#allocation38_spill] sm:$0xff] }
 0x1ce   :  { %3526 = vmatprep.mubr.msk.bf16.mxu1 %vm3870_vm5, %v7392_v47  ;;  %1402 = vrot.lane.b32.xlu0 %v5393_v14, %s3873_s16  ;;  %v1671_v14 = vsel %vm1552_vm7, %v5426_v16, %v5509_v34  ;;  %v1866_v16 = vsel %vm1807_vm6, %v1863_v35, %v1865_v9  ;;  %v1592_v46 = vrot.slane %v7494_v56, 2  ;;  %v1593_v53 = vrot.slane %v7495_v26, 3 }
 0x1cf   :  { %3443 = vmatmul.mubr.msk.bf16.gmra.mrb[8].mxu0 %vm2664_vm0, %v2560_v51  ;;  %v1267_v40 = vpop.permute.xlu1 %1266  ;;  %v1827_v44 = vrot.slane %v5577_v4, 3 }
 0x1d0   :  { %3446 = vmatprep.mubr.msk.bf16.mxu0 %vm3870_vm5, %v7392_v47  ;;  %v1227_v23 = vpop.permute.xlu0 %1226  ;;  %v2270_v63 = vsel %vm2222_vm11, %v2187_v25, %v1267_v40  ;;  %v1168_v40 = vsel %vm1045_vm2, %v5446_v37, %v5571_v62  ;;  %v5604_v2 = vor.u32 %v1593_v53, %v1592_v46  ;;  %v1089_v25 = vrot.slane %v7494_v56, 1 }
 0x1d1   :  { %1526 = vrot.lane.b32.xlu1 %v5507_v50, %s3872_s15  ;;  %v2230_v59 = vsel %vm2222_vm11, %v2147_v13, %v1227_v23 }
 0x1d2   :  { %1486 = vrot.lane.b32.xlu0 %v1323_v24, %s3872_s15 }
 0x1d3   :  { %v1433_v41 = vpop.permute.xlu1 %1432 }
 0x1d4   :  { %v1393_v49 = vpop.permute.xlu0 %1392  ;;  %v2353_v11 = vsel %vm2305_vm12, %v2270_v63, %v1433_v41 }
 0x1d5   :  { %1781 = vrot.lane.b32.xlu1 %v1671_v14, %s3875_s19  ;;  %v2313_v36 = vsel %vm2305_vm12, %v2230_v59, %v1393_v49 }
 0x1d6   :  { %1741 = vrot.lane.b32.xlu0 %v1591_v3, %s3875_s19  ;;  %v7496_v3 = vld [vmem:[#allocation80_spill] sm:$0xff] }
 0x1d7   :  { %v1517_v55 = vpop.permute.xlu1 %1516  ;;  %v1672_v49 = vrot.slane %v7496_v3, 2 }
 0x1d8   :  { %v1477_v35 = vpop.permute.xlu0 %1476  ;;  %v2436_v45 = vsel %vm2388_vm13, %v2353_v11, %v1517_v55 }
 0x1d9   :  { %1947 = vrot.lane.b32.xlu1 %v1866_v16, %s3874_s17  ;;  %v2396_v22 = vsel %vm2388_vm13, %v2313_v36, %v1477_v35  ;;  %v7497_v16 = vld [vmem:[#allocation74_spill] sm:$0xff] }
 0x1da   :  { %1907 = vrot.lane.b32.xlu0 %v1826_v58, %s3874_s17  ;;  %v1673_v55 = vrot.slane %v7497_v16, 3  ;;  %v1595_v58 = vsel %vm1552_vm7, %v5521_v28, %v5604_v2  ;;  %v1828_v28 = vsel %vm1807_vm6, %v1825_v43, %v1827_v44  ;;  %v1170_v20 = vrot.slane %v7497_v16, 2  ;;  %v7501_v16 = vld [vmem:[#allocation33_spill] sm:$0xff] }
 0x1db   :  { %v1772_v60 = vpop.permute.xlu1 %1771  ;;  %v2023_v43 = vsel %vm1973_vm8, %v3692_v48, %v4766_v10 }
 0x1dc   :  { %v1732_v17 = vpop.permute.xlu0 %1731  ;;  %v2519_v52 = vsel %vm2471_vm14, %v2436_v45, %v1772_v60  ;;  %v5630_v7 = vor.u32 %v1673_v55, %v1672_v49  ;;  %v1090_v60 = vrot.slane %v7495_v26, 2  ;;  %v2106_v63 = vsel %vm2056_vm9, %v2023_v43, %v5008_v19  ;;  %v7503_v43 = vld [vmem:[#allocation136_spill] sm:$0xff] }
 0x1dd   :  { %1238 = vrot.lane.b32.xlu1 %v1088_v15, %s3871_s1  ;;  %v2479_v23 = vsel %vm2471_vm14, %v2396_v22, %v1732_v17  ;;  %v2189_v11 = vsel %vm2139_vm10, %v2106_v63, %v5276_v8  ;;  %v1597_v55 = vrot.slane %v7501_v16, 3 }
 0x1de   :  { %1021 = vrot.lane.b32.xlu0 %v4667_v27, %s3868_s28  ;;  %v5602_v27 = vsel %vm1302_vm4, %v1322_v5, %v1324_v54  ;;  %v5668_v45 = vor.u32 %v1090_v60, %v1089_v25  ;;  %v7502_v60 = vld [vmem:[#allocation58_spill] sm:$0xff] }
 0x1df   :  { %v1938_v31 = vpop.permute.xlu1 %1937  ;;  %v1985_v48 = vsel %vm1973_vm8, %v7502_v60, %v4609_v6 }
 0x1e0   :  { %v2602_v51 = vsel %vm2554_vm15, %v2519_v52, %v1938_v31  ;;  %v1898_v14 = vpop.permute.xlu0 %1897  ;;  %v5692_v31 = vld [vmem:[#allocation2 + $0x108] sm:$0xff]  }
 0x1e1   :  { %1404 = vrot.lane.b32.xlu1 %v1323_v24, %s3873_s16  ;;  %3527 = vmatmul.mubr.msk.bf16.gmra.mrb[8].mxu1 %vm2664_vm0, %v2602_v51  ;;  %v2562_v61 = vsel %vm2554_vm15, %v2479_v23, %v1898_v14  ;;  %v5610_v24 = vld [vmem:[#allocation2 + $0x100] sm:$0xff]   ;;  %v1366_v22 = vrot.slane %v5692_v31, 2 }
 0x1e2   :  { %3530 = vmatprep.mubr.msk.bf16.mxu1 %vm3870_vm5, %v7392_v47  ;;  %1278 = vrot.lane.b32.xlu0 %v1168_v40, %s3871_s1  ;;  %v1364_v41 = vrot.slane %v5610_v24, 2  ;;  %v1867_v42 = vrot.slane %v5610_v24, 3  ;;  %v7498_v51 = vld [vmem:[#allocation78_spill] sm:$0xff]  ;;  %v7499_v23 = vld [vmem:[#allocation75_spill] sm:$0xff] }
 0x1e3   :  { %3447 = vmatmul.mubr.msk.bf16.gmra.mrb[12].mxu0 %vm2664_vm0, %v2562_v61  ;;  %v1269_v37 = vpop.permute.xlu1 %1268  ;;  %v1676_v40 = vrot.slane %v7498_v51, 2  ;;  %v1677_v14 = vrot.slane %v7499_v23, 3  ;;  %v5701_v61 = vld [vmem:[#allocation2 + $0x68] sm:$0xff]   ;;  %v1173_v24 = vrot.slane %v7498_v51, 1 }
 0x1e4   :  { %3450 = vmatprep.mubr.msk.bf16.mxu0 %vm3870_vm5, %v7392_v47  ;;  %v1229_v5 = vpop.permute.xlu0 %1228  ;;  %v1365_v33 = vsel %vm1302_vm4, %v1362_v18, %v1364_v41  ;;  %v1675_v18 = vsel %vm1552_vm7, %v5509_v34, %v5630_v7  ;;  %v1983_v34 = vsel %vm1973_vm8, %v4956_v21, %v4614_v39  ;;  %v2272_v59 = vsel %vm2222_vm11, %v2189_v11, %v1269_v37  ;;  %v7509_v51 = vld [vmem:[#allocation36_spill] sm:$0xff] }
 0x1e5   :  { %1488 = vrot.lane.b32.xlu1 %v5602_v27, %s3872_s15  ;;  %v2066_v10 = vsel %vm2056_vm9, %v1983_v34, %v4849_v57  ;;  %v1868_v19 = vsel %vm1807_vm6, %v1865_v9, %v1867_v42  ;;  %v1326_v37 = vrot.slane %v5701_v61, 2  ;;  %v1829_v25 = vrot.slane %v5701_v61, 3  ;;  %v3697_v61 = vld [vmem:[#allocation2 + $0xd0] sm:$0xff]  }
 0x1e6   :  { %1444 = vrot.lane.b32.xlu0 %v5507_v50, %s3873_s16  ;;  %v1169_v50 = vrot.slane %v7496_v3, 1  ;;  %v2149_v39 = vsel %vm2139_vm10, %v2066_v10, %v5138_v29  ;;  %v7500_v3 = vld [vmem:[#allocation35_spill] sm:$0xff] }
 0x1e7   :  { %v1435_v0 = vpop.permute.xlu1 %1434  ;;  %v2232_v57 = vsel %vm2222_vm11, %v2149_v39, %v1229_v5  ;;  %v1596_v49 = vrot.slane %v7500_v3, 2  ;;  %v1830_v10 = vsel %vm1807_vm6, %v1827_v44, %v1829_v25 }
 0x1e8   :  { %v1395_v35 = vpop.permute.xlu0 %1394  ;;  %v5652_v13 = vor.u32 %v1170_v20, %v1169_v50  ;;  %v2355_v21 = vsel %vm2305_vm12, %v2272_v59, %v1435_v0  ;;  %v5716_v0 = vor.u32 %v1677_v14, %v1676_v40  ;;  %v1869_v20 = vrot.slane %v5692_v31, 3  ;;  %v7510_v14 = vld [vmem:[#allocation103_spill] sm:$0xff] }
 0x1e9   :  { %1743 = vrot.lane.b32.xlu1 %v1595_v58, %s3875_s19  ;;  %v2315_v9 = vsel %vm2305_vm12, %v2232_v57, %v1395_v35  ;;  %v5714_v58 = vsel %vm1302_vm4, %v1364_v41, %v1366_v22  ;;  %v7506_v57 = vld [vmem:[#allocation146_spill] sm:$0xff]  ;;  %v1601_v40 = vrot.slane %v7509_v51, 3 }
 0x1ea   :  { %1528 = vrot.lane.b32.xlu0 %v1365_v33, %s3872_s15  ;;  %v1172_v12 = vsel %vm1045_vm2, %v5571_v62, %v5652_v13  ;;  %v1679_v41 = vsel %vm1552_vm7, %v5630_v7, %v5716_v0  ;;  %v1870_v63 = vsel %vm1807_vm6, %v1867_v42, %v1869_v20  ;;  %v1174_v42 = vrot.slane %v7499_v23, 2 }
 0x1eb   :  { %v1519_v15 = vpop.permute.xlu1 %1518 }
 0x1ec   :  { %v1479_v30 = vpop.permute.xlu0 %1478  ;;  %v2438_v56 = vsel %vm2388_vm13, %v2355_v21, %v1519_v15  ;;  %v1094_v15 = vrot.slane %v7501_v16, 2 }
 0x1ed   :  { %1909 = vrot.lane.b32.xlu1 %v1828_v28, %s3874_s17  ;;  %v2398_v26 = vsel %vm2388_vm13, %v2315_v9, %v1479_v30  ;;  %v1327_v28 = vsel %vm1302_vm4, %v1324_v54, %v1326_v37  ;;  %v2068_v30 = vsel %vm2056_vm9, %v1985_v48, %v7503_v43 }
 0x1ee   :  { %1783 = vrot.lane.b32.xlu0 %v1675_v18, %s3875_s19 }
 0x1ef   :  { %v1774_v17 = vpop.permute.xlu1 %1773 }
 0x1f0   :  { %v1734_v8 = vpop.permute.xlu0 %1733  ;;  %v2521_v46 = vsel %vm2471_vm14, %v2438_v56, %v1774_v17 }
 0x1f1   :  { %1023 = vrot.lane.b32.xlu1 %v4692_v38, %s3868_s28  ;;  %v1092_v38 = vsel %vm1045_vm2, %v5544_v1, %v5668_v45  ;;  %v2481_v36 = vsel %vm2471_vm14, %v2398_v26, %v1734_v8  ;;  %v7505_v8 = vld [vmem:[#allocation119_spill] sm:$0xff] }
 0x1f2   :  { %1949 = vrot.lane.b32.xlu0 %v1868_v19, %s3874_s17  ;;  %v2025_v4 = vsel %vm1973_vm8, %v7506_v57, %v7505_v8 }
 0x1f3   :  { %v1940_v29 = vpop.permute.xlu1 %1939 }
 0x1f4   :  { %v2604_v53 = vsel %vm2554_vm15, %v2521_v46, %v1940_v29  ;;  %v1900_v52 = vpop.permute.xlu0 %1899  ;;  %v5778_v29 = vor.u32 %v1174_v42, %v1173_v24  ;;  %v7513_v24 = vld [vmem:[#allocation121_spill] sm:$0xff] }
 0x1f5   :  { %1280 = vrot.lane.b32.xlu1 %v1172_v12, %s3871_s1  ;;  %3531 = vmatmul.mubr.msk.bf16.gmra.mrb[12].mxu1 %vm2664_vm0, %v2604_v53  ;;  %v2564_v62 = vsel %vm2554_vm15, %v2481_v36, %v1900_v52  ;;  %v7507_v12 = vld [vmem:[#allocation19_spill] sm:$0xff]  ;;  %v7508_v52 = vld [vmem:[#allocation42_spill] sm:$0xff] }
 0x1f6   :  { %3534 = vmatprep.mubr.msk.bf16.mxu1 %vm3870_vm5, %v7392_v47  ;;  %1240 = vrot.lane.b32.xlu0 %v1092_v38, %s3871_s1  ;;  %v2108_v9 = vsel %vm2056_vm9, %v2025_v4, %v7507_v12  ;;  %v5784_v38 = vld [vmem:[#allocation2 + $0x70] sm:$0xff]  }
 0x1f7   :  { %3451 = vmatmul.mubr.msk.bf16.gmra.mrb[16].mxu0 %vm2664_vm0, %v2564_v62  ;;  %v1231_v1 = vpop.permute.xlu1 %1230  ;;  %v1328_v36 = vrot.slane %v5784_v38, 2  ;;  %v1600_v62 = vrot.slane %v7508_v52, 2  ;;  %v1831_v48 = vrot.slane %v5784_v38, 3 }
 0x1f8   :  { %3454 = vmatprep.mubr.msk.bf16.mxu0 %vm3870_vm5, %v7392_v47  ;;  %v1014_v5 = vpop.permute.xlu0 %1013 }
 0x1f9   :  { %1446 = vrot.lane.b32.xlu1 %v1365_v33, %s3873_s16  ;;  %v5725_v33 = vor.u32 %v1597_v55, %v1596_v49  ;;  %v2191_v26 = vsel %vm2139_vm10, %v2108_v9, %v1014_v5  ;;  %v1176_v49 = vsel %vm1045_vm2, %v5652_v13, %v5778_v29 }
 0x1fa   :  { %1406 = vrot.lane.b32.xlu0 %v5602_v27, %s3873_s16  ;;  %v1093_v27 = vrot.slane %v7500_v3, 1 }
 0x1fb   :  { %v1397_v35 = vpop.permute.xlu1 %1396  ;;  %v1599_v54 = vsel %vm1552_vm7, %v5604_v2, %v5725_v33  ;;  %v7504_v2 = vld [vmem:[#allocation66_spill] sm:$0xff] }
 0x1fc   :  { %v1271_v50 = vpop.permute.xlu0 %1270  ;;  %v5751_v34 = vor.u32 %v1094_v15, %v1093_v27  ;;  %v2151_v11 = vsel %vm2139_vm10, %v2068_v30, %v7504_v2  ;;  %v7511_v27 = vld [vmem:[#allocation84_spill] sm:$0xff] }
 0x1fd   :  { %1530 = vrot.lane.b32.xlu1 %v5714_v58, %s3872_s15  ;;  %v2234_v17 = vsel %vm2222_vm11, %v2151_v11, %v1231_v1  ;;  %v1680_v15 = vrot.slane %v7511_v27, 2 }
 0x1fe   :  { %1490 = vrot.lane.b32.xlu0 %v1327_v28, %s3872_s15  ;;  %v2317_v59 = vsel %vm2305_vm12, %v2234_v17, %v1397_v35  ;;  %v1096_v21 = vsel %vm1045_vm2, %v5668_v45, %v5751_v34  ;;  %v2274_v45 = vsel %vm2222_vm11, %v2191_v26, %v1271_v50  ;;  %v5806_v35 = vsel %vm1302_vm4, %v1326_v37, %v1328_v36 }
 0x1ff   :  { %v1481_v18 = vpop.permute.xlu1 %1480  ;;  %v5808_v50 = vor.u32 %v1601_v40, %v1600_v62  ;;  %v1097_v17 = vrot.slane %v7508_v52, 1  ;;  %v7517_v52 = vld [vmem:[#allocation108_spill] sm:$0xff] }
 0x200   :  { %v1437_v7 = vpop.permute.xlu0 %1436  ;;  %v2400_v39 = vsel %vm2388_vm13, %v2317_v59, %v1481_v18  ;;  %v7512_v18 = vld [vmem:[#allocation77_spill] sm:$0xff] }
 0x201   :  { %1785 = vrot.lane.b32.xlu1 %v1679_v41, %s3875_s19  ;;  %v2357_v23 = vsel %vm2305_vm12, %v2274_v45, %v1437_v7  ;;  %v5812_v41 = vld [vmem:[#allocation2 + $0x110] sm:$0xff]   ;;  %v1603_v60 = vsel %vm1552_vm7, %v5725_v33, %v5808_v50  ;;  %v1832_v33 = vsel %vm1807_vm6, %v1829_v25, %v1831_v48  ;;  %v1178_v2 = vrot.slane %v7512_v18, 2 }
 0x202   :  { %1745 = vrot.lane.b32.xlu0 %v1599_v54, %s3875_s19  ;;  %v1681_v54 = vrot.slane %v7512_v18, 3  ;;  %v2027_v25 = vsel %vm1973_vm8, %v3697_v61, %v7513_v24  ;;  %v7514_v59 = vld [vmem:[#allocation61_spill] sm:$0xff] }
 0x203   :  { %v1736_v6 = vpop.permute.xlu1 %1735  ;;  %v5901_v18 = vld [vmem:[#allocation2 + $0x78] sm:$0xff]  }
 0x204   :  { %v1521_v19 = vpop.permute.xlu0 %1520  ;;  %v2483_v44 = vsel %vm2471_vm14, %v2400_v39, %v1736_v6  ;;  %v5832_v30 = vor.u32 %v1681_v54, %v1680_v15  ;;  %v1871_v6 = vrot.slane %v5812_v41, 3  ;;  %v1330_v54 = vrot.slane %v5901_v18, 2 }
 0x205   :  { %1951 = vrot.lane.b32.xlu1 %v1870_v63, %s3874_s17  ;;  %v2440_v3 = vsel %vm2388_vm13, %v2357_v23, %v1521_v19  ;;  %v2110_v19 = vsel %vm2056_vm9, %v2027_v25, %v7514_v59  ;;  %v1833_v25 = vrot.slane %v5901_v18, 3  ;;  %v7522_v59 = vld [vmem:[#allocation95_spill] sm:$0xff] }
 0x206   :  { %1911 = vrot.lane.b32.xlu0 %v1830_v10, %s3874_s17  ;;  %v1098_v10 = vrot.slane %v7509_v51, 2  ;;  %v1872_v9 = vsel %vm1807_vm6, %v1869_v20, %v1871_v6  ;;  %v3705_v18 = vld [vmem:[#allocation2 + $0xe0] sm:$0xff]  }
 0x207   :  { %v1902_v56 = vpop.permute.xlu1 %1901 }
 0x208   :  { %v2566_v46 = vsel %vm2554_vm15, %v2483_v44, %v1902_v56  ;;  %v1776_v53 = vpop.permute.xlu0 %1775  ;;  %v7516_v44 = vld [vmem:[#allocation135_spill] sm:$0xff] }
 0x209   :  { %1242 = vrot.lane.b32.xlu1 %v1096_v21, %s3871_s1  ;;  %3455 = vmatmul.mubr.msk.bf16.gmra.mrb[20].mxu0 %vm2664_vm0, %v2566_v46  ;;  %v2523_v16 = vsel %vm2471_vm14, %v2440_v3, %v1776_v53  ;;  %v3698_v21 = vld [vmem:[#allocation2 + $0x30] sm:$0xff]   ;;  %v5868_v46 = vor.u32 %v1098_v10, %v1097_v17 }
 0x20a   :  { %3458 = vmatprep.mubr.msk.bf16.mxu0 %vm3870_vm5, %v7392_v47  ;;  %1025 = vrot.lane.b32.xlu0 %v7510_v14, %s3868_s28 }
 0x20b   :  { %v1016_v1 = vpop.permute.xlu1 %1015 }
 0x20c   :  { %v1942_v55 = vpop.permute.xlu0 %1941  ;;  %v2193_v57 = vsel %vm2139_vm10, %v2110_v19, %v1016_v1  ;;  %v1100_v1 = vsel %vm1045_vm2, %v5751_v34, %v5868_v46 }
 0x20d   :  { %1408 = vrot.lane.b32.xlu1 %v1327_v28, %s3873_s16  ;;  %v2606_v5 = vsel %vm2554_vm15, %v2523_v16, %v1942_v55  ;;  %v1368_v28 = vrot.slane %v5812_v41, 2  ;;  %v5892_v16 = vld [vmem:[#allocation2 + $0x118] sm:$0xff]  }
 0x20e   :  { %1282 = vrot.lane.b32.xlu0 %v1176_v49, %s3871_s1  ;;  %3535 = vmatmul.mubr.msk.bf16.gmra.mrb[16].mxu1 %vm2664_vm0, %v2606_v5  ;;  %v1370_v55 = vrot.slane %v5892_v16, 2  ;;  %v7518_v5 = vld [vmem:[#allocation82_spill] sm:$0xff]  ;;  %v1873_v10 = vrot.slane %v5892_v16, 3 }
 0x20f   :  { %v1273_v13 = vpop.permute.xlu1 %1272  ;;  %3538 = vmatprep.mubr.msk.bf16.mxu1 %vm3870_vm5, %v7392_v47  ;;  %v1369_v43 = vsel %vm1302_vm4, %v1366_v22, %v1368_v28  ;;  %v1683_v22 = vsel %vm1552_vm7, %v5716_v0, %v5832_v30  ;;  %v7515_v0 = vld [vmem:[#allocation96_spill] sm:$0xff]  ;;  %v1181_v41 = vrot.slane %v7518_v5, 1 }
 0x210   :  { %v1233_v37 = vpop.permute.xlu0 %1232  ;;  %v1987_v8 = vsel %vm1973_vm8, %v3698_v21, %v7515_v0  ;;  %v2276_v12 = vsel %vm2222_vm11, %v2193_v57, %v1273_v13  ;;  %v1684_v13 = vrot.slane %v7518_v5, 2  ;;  %v7523_v21 = vld [vmem:[#allocation16_spill] sm:$0xff]  ;;  %v7528_v5 = vld [vmem:[#allocation39_spill] sm:$0xff] }
 0x211   :  { %1492 = vrot.lane.b32.xlu1 %v5806_v35, %s3872_s15  ;;  %v2070_v56 = vsel %vm2056_vm9, %v1987_v8, %v7516_v44  ;;  %v1874_v8 = vsel %vm1807_vm6, %v1871_v6, %v1873_v10 }
 0x212   :  { %1448 = vrot.lane.b32.xlu0 %v5714_v58, %s3873_s16  ;;  %v1177_v58 = vrot.slane %v7511_v27, 1  ;;  %v2153_v26 = vsel %vm2139_vm10, %v2070_v56, %v5150_v32  ;;  %v7519_v27 = vld [vmem:[#allocation79_spill] sm:$0xff] }
 0x213   :  { %v1439_v7 = vpop.permute.xlu1 %1438  ;;  %v2236_v62 = vsel %vm2222_vm11, %v2153_v26, %v1233_v37  ;;  %v1685_v15 = vrot.slane %v7519_v27, 3  ;;  %v7520_v37 = vld [vmem:[#allocation40_spill] sm:$0xff]  ;;  %v1182_v6 = vrot.slane %v7519_v27, 2 }
 0x214   :  { %v1399_v63 = vpop.permute.xlu0 %1398  ;;  %v5854_v39 = vor.u32 %v1178_v2, %v1177_v58  ;;  %v2359_v53 = vsel %vm2305_vm12, %v2276_v12, %v1439_v7  ;;  %v7521_v7 = vld [vmem:[#allocation37_spill] sm:$0xff]  ;;  %v5914_v58 = vsel %vm1302_vm4, %v1368_v28, %v1370_v55  ;;  %v1834_v12 = vsel %vm1807_vm6, %v1831_v48, %v1833_v25 }
 0x215   :  { %1747 = vrot.lane.b32.xlu1 %v1603_v60, %s3875_s19  ;;  %v2319_v20 = vsel %vm2305_vm12, %v2236_v62, %v1399_v63  ;;  %v1604_v60 = vrot.slane %v7520_v37, 2  ;;  %v1605_v63 = vrot.slane %v7521_v7, 3  ;;  %v5916_v2 = vor.u32 %v1685_v15, %v1684_v13  ;;  %v7525_v62 = vld [vmem:[#allocation120_spill] sm:$0xff]  ;;  %v7529_v15 = vld [vmem:[#allocation106_spill] sm:$0xff] }
 0x216   :  { %1532 = vrot.lane.b32.xlu0 %v1369_v43, %s3872_s15  ;;  %v1180_v31 = vsel %vm1045_vm2, %v5778_v29, %v5854_v39  ;;  %v1102_v61 = vrot.slane %v7521_v7, 2  ;;  %v1609_v13 = vrot.slane %v7528_v5, 3 }
 0x217   :  { %v1523_v11 = vpop.permute.xlu1 %1522  ;;  %v1687_v28 = vsel %vm1552_vm7, %v5832_v30, %v5916_v2 }
 0x218   :  { %v1483_v42 = vpop.permute.xlu0 %1482  ;;  %v2442_v51 = vsel %vm2388_vm13, %v2359_v53, %v1523_v11 }
 0x219   :  { %1913 = vrot.lane.b32.xlu1 %v1832_v33, %s3874_s17  ;;  %v2402_v23 = vsel %vm2388_vm13, %v2319_v20, %v1483_v42  ;;  %v3701_v42 = vld [vmem:[#allocation2 + $0x38] sm:$0xff]  }
 0x21a   :  { %1787 = vrot.lane.b32.xlu0 %v1683_v22, %s3875_s19  ;;  %v1331_v22 = vsel %vm1302_vm4, %v1328_v36, %v1330_v54  ;;  %v1989_v19 = vsel %vm1973_vm8, %v3701_v42, %v7522_v59 }
 0x21b   :  { %v1778_v4 = vpop.permute.xlu1 %1777  ;;  %v2072_v0 = vsel %vm2056_vm9, %v1989_v19, %v7523_v21 }
 0x21c   :  { %v1738_v45 = vpop.permute.xlu0 %1737  ;;  %v2525_v40 = vsel %vm2471_vm14, %v2442_v51, %v1778_v4 }
 0x21d   :  { %1027 = vrot.lane.b32.xlu1 %v7517_v52, %s3868_s28  ;;  %v2485_v3 = vsel %vm2471_vm14, %v2402_v23, %v1738_v45  ;;  %v3702_v52 = vld [vmem:[#allocation2 + $0xd8] sm:$0xff]  }
 0x21e   :  { %1953 = vrot.lane.b32.xlu0 %v1872_v9, %s3874_s17  ;;  %v2029_v38 = vsel %vm1973_vm8, %v3702_v52, %v7525_v62 }
 0x21f   :  { %v1944_v32 = vpop.permute.xlu1 %1943 }
 0x220   :  { %v2608_v14 = vsel %vm2554_vm15, %v2525_v40, %v1944_v32  ;;  %v1904_v49 = vpop.permute.xlu0 %1903  ;;  %v5976_v32 = vor.u32 %v1182_v6, %v1181_v41  ;;  %v7533_v6 = vld [vmem:[#allocation18_spill] sm:$0xff] }
 0x221   :  { %1284 = vrot.lane.b32.xlu1 %v1180_v31, %s3871_s1  ;;  %3539 = vmatmul.mubr.msk.bf16.gmra.mrb[20].mxu1 %vm2664_vm0, %v2608_v14  ;;  %v2568_v29 = vsel %vm2554_vm15, %v2485_v3, %v1904_v49  ;;  %v7526_v31 = vld [vmem:[#allocation147_spill] sm:$0xff]  ;;  %v7527_v49 = vld [vmem:[#allocation46_spill] sm:$0xff] }
 0x222   :  { %3542 = vmatprep.mubr.msk.bf16.mxu1 %vm3870_vm5, %v7392_v47  ;;  %1244 = vrot.lane.b32.xlu0 %v1100_v1, %s3871_s1  ;;  %v2112_v20 = vsel %vm2056_vm9, %v2029_v38, %v7526_v31  ;;  %v5982_v1 = vld [vmem:[#allocation2 + $0x80] sm:$0xff]   ;;  %v7535_v38 = vld [vmem:[#allocation137_spill] sm:$0xff] }
 0x223   :  { %3459 = vmatmul.mubr.msk.bf16.gmra.mrb[24].mxu0 %vm2664_vm0, %v2568_v29  ;;  %v1235_v34 = vpop.permute.xlu1 %1234  ;;  %v1332_v3 = vrot.slane %v5982_v1, 2  ;;  %v1608_v29 = vrot.slane %v7527_v49, 2  ;;  %v1835_v59 = vrot.slane %v5982_v1, 3 }
 0x224   :  { %3462 = vmatprep.mubr.msk.bf16.mxu0 %vm3870_vm5, %v7392_v47  ;;  %v1018_v33 = vpop.permute.xlu0 %1017 }
 0x225   :  { %1450 = vrot.lane.b32.xlu1 %v1369_v43, %s3873_s16  ;;  %v5925_v43 = vor.u32 %v1605_v63, %v1604_v60  ;;  %v2195_v23 = vsel %vm2139_vm10, %v2112_v20, %v1018_v33  ;;  %v1184_v60 = vsel %vm1045_vm2, %v5854_v39, %v5976_v32 }
 0x226   :  { %1410 = vrot.lane.b32.xlu0 %v5806_v35, %s3873_s16  ;;  %v1101_v35 = vrot.slane %v7520_v37, 1 }
 0x227   :  { %v1401_v11 = vpop.permute.xlu1 %1400  ;;  %v1607_v36 = vsel %vm1552_vm7, %v5808_v50, %v5925_v43  ;;  %v7524_v50 = vld [vmem:[#allocation63_spill] sm:$0xff] }
 0x228   :  { %v1275_v17 = vpop.permute.xlu0 %1274  ;;  %v5950_v57 = vor.u32 %v1102_v61, %v1101_v35  ;;  %v2155_v4 = vsel %vm2139_vm10, %v2072_v0, %v7524_v50  ;;  %v7530_v35 = vld [vmem:[#allocation88_spill] sm:$0xff] }
 0x229   :  { %1534 = vrot.lane.b32.xlu1 %v5914_v58, %s3872_s15  ;;  %v2238_v56 = vsel %vm2222_vm11, %v2155_v4, %v1235_v34  ;;  %v1688_v61 = vrot.slane %v7530_v35, 2 }
 0x22a   :  { %1494 = vrot.lane.b32.xlu0 %v1331_v22, %s3872_s15  ;;  %v2321_v9 = vsel %vm2305_vm12, %v2238_v56, %v1401_v11  ;;  %v1104_v45 = vsel %vm1045_vm2, %v5868_v46, %v5950_v57  ;;  %v2278_v46 = vsel %vm2222_vm11, %v2195_v23, %v1275_v17  ;;  %v6004_v11 = vsel %vm1302_vm4, %v1330_v54, %v1332_v3 }
 0x22b   :  { %v1485_v24 = vpop.permute.xlu1 %1484  ;;  %v6006_v17 = vor.u32 %v1609_v13, %v1608_v29  ;;  %v1106_v56 = vrot.slane %v7528_v5, 2 }
 0x22c   :  { %v1441_v30 = vpop.permute.xlu0 %1440  ;;  %v2404_v53 = vsel %vm2388_vm13, %v2321_v9, %v1485_v24  ;;  %v7531_v24 = vld [vmem:[#allocation83_spill] sm:$0xff] }
 0x22d   :  { %1789 = vrot.lane.b32.xlu1 %v1687_v28, %s3875_s19  ;;  %v2361_v27 = vsel %vm2305_vm12, %v2278_v46, %v1441_v30  ;;  %v6010_v28 = vld [vmem:[#allocation2 + $0x120] sm:$0xff]   ;;  %v1611_v42 = vsel %vm1552_vm7, %v5925_v43, %v6006_v17  ;;  %v1836_v43 = vsel %vm1807_vm6, %v1833_v25, %v1835_v59 }
 0x22e   :  { %1749 = vrot.lane.b32.xlu0 %v1607_v36, %s3875_s19  ;;  %v1689_v36 = vrot.slane %v7531_v24, 3  ;;  %v1875_v4 = vrot.slane %v6010_v28, 3 }
 0x22f   :  { %v1740_v44 = vpop.permute.xlu1 %1739 }
 0x230   :  { %v1525_v26 = vpop.permute.xlu0 %1524  ;;  %v2487_v48 = vsel %vm2471_vm14, %v2404_v53, %v1740_v44  ;;  %v6030_v21 = vor.u32 %v1689_v36, %v1688_v61  ;;  %v1105_v44 = vrot.slane %v7527_v49, 1  ;;  %v3706_v53 = vld [vmem:[#allocation2 + $0x40] sm:$0xff]   ;;  %v1876_v31 = vsel %vm1807_vm6, %v1873_v10, %v1875_v4  ;;  %v7537_v49 = vld [vmem:[#allocation112_spill] sm:$0xff]  ;;  %v7539_v61 = vld [vmem:[#allocation81_spill] sm:$0xff] }
 0x231   :  { %1955 = vrot.lane.b32.xlu1 %v1874_v8, %s3874_s17  ;;  %v2444_v37 = vsel %vm2388_vm13, %v2361_v27, %v1525_v26  ;;  %v1186_v8 = vrot.slane %v7531_v24, 2  ;;  %v1693_v24 = vrot.slane %v7539_v61, 3  ;;  %v6099_v36 = vld [vmem:[#allocation2 + $0x88] sm:$0xff]  }
 0x232   :  { %1915 = vrot.lane.b32.xlu0 %v1834_v12, %s3874_s17  ;;  %v7532_v12 = vld [vmem:[#allocation123_spill] sm:$0xff]  ;;  %v6066_v20 = vor.u32 %v1106_v56, %v1105_v44 }
 0x233   :  { %v1906_v51 = vpop.permute.xlu1 %1905  ;;  %v2031_v25 = vsel %vm1973_vm8, %v3705_v18, %v7532_v12 }
 0x234   :  { %v2570_v40 = vsel %vm2554_vm15, %v2487_v48, %v1906_v51  ;;  %v1780_v14 = vpop.permute.xlu0 %1779  ;;  %v2114_v9 = vsel %vm2056_vm9, %v2031_v25, %v7533_v6  ;;  %v3709_v6 = vld [vmem:[#allocation2 + $0x48] sm:$0xff]  }
 0x235   :  { %1246 = vrot.lane.b32.xlu1 %v1104_v45, %s3871_s1  ;;  %3463 = vmatmul.mubr.msk.bf16.gmra.mrb[28].mxu0 %vm2664_vm0, %v2570_v40  ;;  %v2527_v7 = vsel %vm2471_vm14, %v2444_v37, %v1780_v14  ;;  %v7536_v40 = vld [vmem:[#allocation22_spill] sm:$0xff]  ;;  %v1108_v37 = vsel %vm1045_vm2, %v5950_v57, %v6066_v20 }
 0x236   :  { %3466 = vmatprep.mubr.msk.bf16.mxu0 %vm3870_vm5, %v7392_v47  ;;  %1029 = vrot.lane.b32.xlu0 %v7529_v15, %s3868_s28 }
 0x237   :  { %v1020_v34 = vpop.permute.xlu1 %1019 }
 0x238   :  { %v1946_v63 = vpop.permute.xlu0 %1945  ;;  %v2197_v52 = vsel %vm2139_vm10, %v2114_v9, %v1020_v34  ;;  %v7542_v9 = vld [vmem:[#allocation97_spill] sm:$0xff] }
 0x239   :  { %1412 = vrot.lane.b32.xlu1 %v1331_v22, %s3873_s16  ;;  %v2610_v33 = vsel %vm2554_vm15, %v2527_v7, %v1946_v63  ;;  %v1372_v22 = vrot.slane %v6010_v28, 2  ;;  %v6090_v63 = vld [vmem:[#allocation2 + $0x128] sm:$0xff]  }
 0x23a   :  { %1286 = vrot.lane.b32.xlu0 %v1184_v60, %s3871_s1  ;;  %3543 = vmatmul.mubr.msk.bf16.gmra.mrb[24].mxu1 %vm2664_vm0, %v2610_v33  ;;  %v1374_v33 = vrot.slane %v6090_v63, 2  ;;  %v1877_v18 = vrot.slane %v6090_v63, 3 }
 0x23b   :  { %v1277_v39 = vpop.permute.xlu1 %1276  ;;  %3546 = vmatprep.mubr.msk.bf16.mxu1 %vm3870_vm5, %v7392_v47  ;;  %v1373_v30 = vsel %vm1302_vm4, %v1370_v55, %v1372_v22  ;;  %v1691_v55 = vsel %vm1552_vm7, %v5916_v2, %v6030_v21  ;;  %v7534_v2 = vld [vmem:[#allocation98_spill] sm:$0xff] }
 0x23c   :  { %v1237_v54 = vpop.permute.xlu0 %1236  ;;  %v1991_v45 = vsel %vm1973_vm8, %v3706_v53, %v7534_v2  ;;  %v2280_v51 = vsel %vm2222_vm11, %v2197_v52, %v1277_v39  ;;  %v7538_v39 = vld [vmem:[#allocation85_spill] sm:$0xff]  ;;  %v1993_v53 = vsel %vm1973_vm8, %v3709_v6, %v7542_v9  ;;  %v7543_v2 = vld [vmem:[#allocation59_spill] sm:$0xff]  ;;  %v1878_v52 = vsel %vm1807_vm6, %v1875_v4, %v1877_v18 }
 0x23d   :  { %1496 = vrot.lane.b32.xlu1 %v6004_v11, %s3872_s15  ;;  %v2074_v48 = vsel %vm2056_vm9, %v1991_v45, %v7535_v38  ;;  %v2076_v45 = vsel %vm2056_vm9, %v1993_v53, %v7543_v2  ;;  %v1189_v28 = vrot.slane %v7538_v39, 1  ;;  %v1190_v4 = vrot.slane %v7539_v61, 2 }
 0x23e   :  { %1452 = vrot.lane.b32.xlu0 %v5914_v58, %s3873_s16  ;;  %v1185_v58 = vrot.slane %v7530_v35, 1  ;;  %v2157_v23 = vsel %vm2139_vm10, %v2074_v48, %v7536_v40  ;;  %v1692_v35 = vrot.slane %v7538_v39, 2  ;;  %v7548_v39 = vld [vmem:[#allocation44_spill] sm:$0xff] }
 0x23f   :  { %v1443_v19 = vpop.permute.xlu1 %1442  ;;  %v2240_v29 = vsel %vm2222_vm11, %v2157_v23, %v1237_v54  ;;  %v1334_v54 = vrot.slane %v6099_v36, 2 }
 0x240   :  { %v1403_v0 = vpop.permute.xlu0 %1402  ;;  %v6052_v26 = vor.u32 %v1186_v8, %v1185_v58  ;;  %v2363_v14 = vsel %vm2305_vm12, %v2280_v51, %v1443_v19  ;;  %v6112_v8 = vsel %vm1302_vm4, %v1372_v22, %v1374_v33 }
 0x241   :  { %1751 = vrot.lane.b32.xlu1 %v1611_v42, %s3875_s19  ;;  %v2323_v10 = vsel %vm2305_vm12, %v2240_v29, %v1403_v0  ;;  %v7540_v42 = vld [vmem:[#allocation43_spill] sm:$0xff]  ;;  %v7541_v0 = vld [vmem:[#allocation41_spill] sm:$0xff]  ;;  %v1335_v44 = vsel %vm1302_vm4, %v1332_v3, %v1334_v54  ;;  %v7545_v29 = vld [vmem:[#allocation122_spill] sm:$0xff] }
 0x242   :  { %1536 = vrot.lane.b32.xlu0 %v1373_v30, %s3872_s15  ;;  %v1188_v16 = vsel %vm1045_vm2, %v5976_v32, %v6052_v26  ;;  %v1612_v19 = vrot.slane %v7540_v42, 2  ;;  %v1110_v12 = vrot.slane %v7541_v0, 2 }
 0x243   :  { %v1527_v50 = vpop.permute.xlu1 %1526 }
 0x244   :  { %v1487_v41 = vpop.permute.xlu0 %1486  ;;  %v2446_v5 = vsel %vm2388_vm13, %v2363_v14, %v1527_v50  ;;  %v6114_v50 = vor.u32 %v1693_v24, %v1692_v35  ;;  %v1617_v35 = vrot.slane %v7548_v39, 3  ;;  %v7549_v24 = vld [vmem:[#allocation110_spill] sm:$0xff] }
 0x245   :  { %1917 = vrot.lane.b32.xlu1 %v1836_v43, %s3874_s17  ;;  %v2406_v15 = vsel %vm2388_vm13, %v2323_v10, %v1487_v41  ;;  %v1613_v43 = vrot.slane %v7541_v0, 3  ;;  %v1837_v41 = vrot.slane %v6099_v36, 3  ;;  %v1114_v36 = vrot.slane %v7548_v39, 2 }
 0x246   :  { %1791 = vrot.lane.b32.xlu0 %v1691_v55, %s3875_s19  ;;  %v1695_v22 = vsel %vm1552_vm7, %v6030_v21, %v6114_v50 }
 0x247   :  { %v1782_v62 = vpop.permute.xlu1 %1781 }
 0x248   :  { %v1742_v46 = vpop.permute.xlu0 %1741  ;;  %v2529_v13 = vsel %vm2471_vm14, %v2446_v5, %v1782_v62 }
 0x249   :  { %1031 = vrot.lane.b32.xlu1 %v7537_v49, %s3868_s28  ;;  %v2489_v60 = vsel %vm2471_vm14, %v2406_v15, %v1742_v46  ;;  %v3710_v49 = vld [vmem:[#allocation2 + $0xe8] sm:$0xff]  }
 0x24a   :  { %1957 = vrot.lane.b32.xlu0 %v1876_v31, %s3874_s17  ;;  %v1838_v31 = vsel %vm1807_vm6, %v1835_v59, %v1837_v41  ;;  %v2033_v1 = vsel %vm1973_vm8, %v3710_v49, %v7545_v29 }
 0x24b   :  { %v1948_v27 = vpop.permute.xlu1 %1947 }
 0x24c   :  { %v2612_v34 = vsel %vm2554_vm15, %v2529_v13, %v1948_v27  ;;  %v1908_v7 = vpop.permute.xlu0 %1907  ;;  %v6174_v27 = vor.u32 %v1190_v4, %v1189_v28  ;;  %v7553_v4 = vld [vmem:[#allocation148_spill] sm:$0xff] }
 0x24d   :  { %1288 = vrot.lane.b32.xlu1 %v1188_v16, %s3871_s1  ;;  %3547 = vmatmul.mubr.msk.bf16.gmra.mrb[28].mxu1 %vm2664_vm0, %v2612_v34  ;;  %v2572_v32 = vsel %vm2554_vm15, %v2489_v60, %v1908_v7  ;;  %v7546_v16 = vld [vmem:[#allocation149_spill] sm:$0xff]  ;;  %v7547_v7 = vld [vmem:[#allocation52_spill] sm:$0xff] }
 0x24e   :  { %3550 = vmatprep.mubr.msk.bf16.mxu1 %vm3870_vm5, %v7392_v47  ;;  %1248 = vrot.lane.b32.xlu0 %v1108_v37, %s3871_s1  ;;  %v2116_v10 = vsel %vm2056_vm9, %v2033_v1, %v7546_v16  ;;  %v6180_v37 = vld [vmem:[#allocation2 + $0x90] sm:$0xff]   ;;  %v7555_v1 = vld [vmem:[#allocation15_spill] sm:$0xff] }
 0x24f   :  { %3467 = vmatmul.mubr.msk.bf16.gmra.mrb[32].mxu0 %vm2664_vm0, %v2572_v32  ;;  %v1239_v57 = vpop.permute.xlu1 %1238  ;;  %v1336_v60 = vrot.slane %v6180_v37, 2  ;;  %v1616_v32 = vrot.slane %v7547_v7, 2  ;;  %v1839_v9 = vrot.slane %v6180_v37, 3 }
 0x250   :  { %3470 = vmatprep.mubr.msk.bf16.mxu0 %vm3870_vm5, %v7392_v47  ;;  %v1022_v58 = vpop.permute.xlu0 %1021 }
 0x251   :  { %1454 = vrot.lane.b32.xlu1 %v1373_v30, %s3873_s16  ;;  %v6123_v30 = vor.u32 %v1613_v43, %v1612_v19  ;;  %v2199_v15 = vsel %vm2139_vm10, %v2116_v10, %v1022_v58  ;;  %v1192_v19 = vsel %vm1045_vm2, %v6052_v26, %v6174_v27 }
 0x252   :  { %1414 = vrot.lane.b32.xlu0 %v6004_v11, %s3873_s16  ;;  %v1109_v11 = vrot.slane %v7540_v42, 1 }
 0x253   :  { %v1405_v55 = vpop.permute.xlu1 %1404  ;;  %v1615_v3 = vsel %vm1552_vm7, %v6006_v17, %v6123_v30  ;;  %v7544_v17 = vld [vmem:[#allocation23_spill] sm:$0xff] }
 0x254   :  { %v1279_v56 = vpop.permute.xlu0 %1278  ;;  %v6148_v62 = vor.u32 %v1110_v12, %v1109_v11  ;;  %v2159_v38 = vsel %vm2139_vm10, %v2076_v45, %v7544_v17  ;;  %v7550_v11 = vld [vmem:[#allocation91_spill] sm:$0xff] }
 0x255   :  { %1538 = vrot.lane.b32.xlu1 %v6112_v8, %s3872_s15  ;;  %v2242_v51 = vsel %vm2222_vm11, %v2159_v38, %v1239_v57  ;;  %v1696_v12 = vrot.slane %v7550_v11, 2 }
 0x256   :  { %1498 = vrot.lane.b32.xlu0 %v1335_v44, %s3872_s15  ;;  %v2325_v40 = vsel %vm2305_vm12, %v2242_v51, %v1405_v55  ;;  %v1112_v46 = vsel %vm1045_vm2, %v6066_v20, %v6148_v62  ;;  %v2282_v20 = vsel %vm2222_vm11, %v2199_v15, %v1279_v56  ;;  %v6202_v55 = vsel %vm1302_vm4, %v1334_v54, %v1336_v60  ;;  %v3713_v51 = vld [vmem:[#allocation2 + $0xf0] sm:$0xff]  }
 0x257   :  { %v1489_v25 = vpop.permute.xlu1 %1488  ;;  %v6204_v56 = vor.u32 %v1617_v35, %v1616_v32 }
 0x258   :  { %v1445_v21 = vpop.permute.xlu0 %1444  ;;  %v2408_v14 = vsel %vm2388_vm13, %v2325_v40, %v1489_v25  ;;  %v7551_v25 = vld [vmem:[#allocation86_spill] sm:$0xff] }
 0x259   :  { %1793 = vrot.lane.b32.xlu1 %v1695_v22, %s3875_s19  ;;  %v2365_v61 = vsel %vm2305_vm12, %v2282_v20, %v1445_v21  ;;  %v6208_v22 = vld [vmem:[#allocation2 + $0x130] sm:$0xff]   ;;  %v1619_v6 = vsel %vm1552_vm7, %v6123_v30, %v6204_v56  ;;  %v1840_v30 = vsel %vm1807_vm6, %v1837_v41, %v1839_v9 }
 0x25a   :  { %1753 = vrot.lane.b32.xlu0 %v1615_v3, %s3875_s19  ;;  %v1697_v3 = vrot.slane %v7551_v25, 3  ;;  %v1879_v38 = vrot.slane %v6208_v22, 3  ;;  %v7552_v41 = vld [vmem:[#allocation125_spill] sm:$0xff] }
 0x25b   :  { %v1744_v48 = vpop.permute.xlu1 %1743 }
 0x25c   :  { %v1529_v23 = vpop.permute.xlu0 %1528  ;;  %v2491_v59 = vsel %vm2471_vm14, %v2408_v14, %v1744_v48  ;;  %v6230_v2 = vor.u32 %v1697_v3, %v1696_v12  ;;  %v1113_v48 = vrot.slane %v7547_v7, 1  ;;  %v3714_v14 = vld [vmem:[#allocation2 + $0x50] sm:$0xff]   ;;  %v1880_v16 = vsel %vm1807_vm6, %v1877_v18, %v1879_v38  ;;  %v7557_v7 = vld [vmem:[#allocation115_spill] sm:$0xff] }
 0x25d   :  { %1959 = vrot.lane.b32.xlu1 %v1878_v52, %s3874_s17  ;;  %v2448_v42 = vsel %vm2388_vm13, %v2365_v61, %v1529_v23  ;;  %v1194_v52 = vrot.slane %v7551_v25, 2  ;;  %v7559_v25 = vld [vmem:[#allocation87_spill] sm:$0xff] }
 0x25e   :  { %1919 = vrot.lane.b32.xlu0 %v1838_v31, %s3874_s17  ;;  %v1699_v17 = vsel %vm1552_vm7, %v6114_v50, %v6230_v2  ;;  %v2035_v31 = vsel %vm1973_vm8, %v3713_v51, %v7552_v41  ;;  %v7554_v50 = vld [vmem:[#allocation100_spill] sm:$0xff]  ;;  %v6267_v10 = vor.u32 %v1114_v36, %v1113_v48  ;;  %v1701_v3 = vrot.slane %v7559_v25, 3 }
 0x25f   :  { %v1910_v5 = vpop.permute.xlu1 %1909  ;;  %v2118_v40 = vsel %vm2056_vm9, %v2035_v31, %v7553_v4 }
 0x260   :  { %v2574_v13 = vsel %vm2554_vm15, %v2491_v59, %v1910_v5  ;;  %v1784_v34 = vpop.permute.xlu0 %1783 }
 0x261   :  { %1250 = vrot.lane.b32.xlu1 %v1112_v46, %s3871_s1  ;;  %3471 = vmatmul.mubr.msk.bf16.gmra.mrb[36].mxu0 %vm2664_vm0, %v2574_v13  ;;  %v2531_v0 = vsel %vm2471_vm14, %v2448_v42, %v1784_v34  ;;  %v1995_v46 = vsel %vm1973_vm8, %v3714_v14, %v7554_v50  ;;  %v7556_v13 = vld [vmem:[#allocation157_spill] sm:$0xff]  ;;  %v1116_v42 = vsel %vm1045_vm2, %v6148_v62, %v6267_v10 }
 0x262   :  { %3474 = vmatprep.mubr.msk.bf16.mxu0 %vm3870_vm5, %v7392_v47  ;;  %1033 = vrot.lane.b32.xlu0 %v7549_v24, %s3868_s28  ;;  %v2078_v59 = vsel %vm2056_vm9, %v1995_v46, %v7555_v1 }
 0x263   :  { %v1024_v57 = vpop.permute.xlu1 %1023  ;;  %v2161_v15 = vsel %vm2139_vm10, %v2078_v59, %v7556_v13 }
 0x264   :  { %v1950_v43 = vpop.permute.xlu0 %1949  ;;  %v2201_v49 = vsel %vm2139_vm10, %v2118_v40, %v1024_v57 }
 0x265   :  { %1416 = vrot.lane.b32.xlu1 %v1335_v44, %s3873_s16  ;;  %v2614_v58 = vsel %vm2554_vm15, %v2531_v0, %v1950_v43  ;;  %v1376_v44 = vrot.slane %v6208_v22, 2 }
 0x266   :  { %1290 = vrot.lane.b32.xlu0 %v1192_v19, %s3871_s1  ;;  %3551 = vmatmul.mubr.msk.bf16.gmra.mrb[32].mxu1 %vm2664_vm0, %v2614_v58  ;;  %v6293_v58 = vld [vmem:[#allocation2 + $0x138] sm:$0xff]  }
 0x267   :  { %v1281_v26 = vpop.permute.xlu1 %1280  ;;  %3554 = vmatprep.mubr.msk.bf16.mxu1 %vm3870_vm5, %v7392_v47  ;;  %v6228_v21 = vsel %vm1302_vm4, %v1374_v33, %v1376_v44  ;;  %v1881_v46 = vrot.slane %v6293_v58, 3 }
 0x268   :  { %v1241_v54 = vpop.permute.xlu0 %1240  ;;  %v2284_v5 = vsel %vm2222_vm11, %v2201_v49, %v1281_v26  ;;  %v1378_v26 = vrot.slane %v6293_v58, 2 }
 0x269   :  { %1500 = vrot.lane.b32.xlu1 %v6202_v55, %s3872_s15  ;;  %v2244_v32 = vsel %vm2222_vm11, %v2161_v15, %v1241_v54  ;;  %v7563_v15 = vld [vmem:[#allocation139_spill] sm:$0xff] }
 0x26a   :  { %1456 = vrot.lane.b32.xlu0 %v6112_v8, %s3873_s16  ;;  %v1193_v8 = vrot.slane %v7550_v11, 1  ;;  %v7558_v11 = vld [vmem:[#allocation89_spill] sm:$0xff] }
 0x26b   :  { %v1447_v53 = vpop.permute.xlu1 %1446  ;;  %v1700_v12 = vrot.slane %v7558_v11, 2  ;;  %v1197_v22 = vrot.slane %v7558_v11, 1 }
 0x26c   :  { %v1407_v45 = vpop.permute.xlu0 %1406  ;;  %v6253_v23 = vor.u32 %v1194_v52, %v1193_v8  ;;  %v2367_v34 = vsel %vm2305_vm12, %v2284_v5, %v1447_v53  ;;  %v7560_v8 = vld [vmem:[#allocation47_spill] sm:$0xff]  ;;  %v3717_v5 = vld [vmem:[#allocation2 + $0x58] sm:$0xff]  }
 0x26d   :  { %1755 = vrot.lane.b32.xlu1 %v1619_v6, %s3875_s19  ;;  %v2327_v18 = vsel %vm2305_vm12, %v2244_v32, %v1407_v45  ;;  %v6303_v45 = vld [vmem:[#allocation2 + $0x98] sm:$0xff]   ;;  %v1620_v52 = vrot.slane %v7560_v8, 2  ;;  %v6320_v4 = vor.u32 %v1701_v3, %v1700_v12  ;;  %v1117_v49 = vrot.slane %v7560_v8, 1 }
 0x26e   :  { %1540 = vrot.lane.b32.xlu0 %v6228_v21, %s3872_s15  ;;  %v1196_v63 = vsel %vm1045_vm2, %v6174_v27, %v6253_v23  ;;  %v6289_v27 = vld [vmem:[#allocation8] ss:$0 sm:$0xff]  ;;  %v1841_v59 = vrot.slane %v6303_v45, 3 }
 0x26f   :  { %v1531_v33 = vpop.permute.xlu1 %1530 }
 0x270   :  { %v1491_v28 = vpop.permute.xlu0 %1490  ;;  %v2450_v39 = vsel %vm2388_vm13, %v2367_v34, %v1531_v33  ;;  %v7561_v33 = vld [vmem:[#allocation45_spill] sm:$0xff] }
 0x271   :  { %1921 = vrot.lane.b32.xlu1 %v1840_v30, %s3874_s17  ;;  %v2410_v24 = vsel %vm2388_vm13, %v2327_v18, %v1491_v28  ;;  %v1338_v30 = vrot.slane %v6303_v45, 2  ;;  %v6318_v28 = vsel %vm1302_vm4, %v1376_v44, %v1378_v26  ;;  %v1842_v18 = vsel %vm1807_vm6, %v1839_v9, %v1841_v59 }
 0x272   :  { %1795 = vrot.lane.b32.xlu0 %v1699_v17, %s3875_s19  ;;  %v1621_v17 = vrot.slane %v7561_v33, 3 }
 0x273   :  { %v1786_v29 = vpop.permute.xlu1 %1785  ;;  %v6330_v14 = vsel %vm1302_vm4, %v1336_v60, %v1338_v30 }
 0x274   :  { %v1746_v20 = vpop.permute.xlu0 %1745  ;;  %v2533_v35 = vsel %vm2471_vm14, %v2450_v39, %v1786_v29  ;;  %v6332_v50 = vor.u32 %v1621_v17, %v1620_v52  ;;  %v1118_v29 = vrot.slane %v7561_v33, 2  ;;  %v6392_v33 = vld [vmem:[#allocation2 + $0xa0] sm:$0xff]  }
 0x275   :  { %1035 = vrot.lane.b32.xlu1 %v7557_v7, %s3868_s28  ;;  %v2493_v19 = vsel %vm2471_vm14, %v2410_v24, %v1746_v20  ;;  %v1882_v20 = vsel %vm1807_vm6, %v1879_v38, %v1881_v46  ;;  %v1198_v38 = vrot.slane %v7559_v25, 2  ;;  %v1340_v17 = vrot.slane %v6392_v33, 2 }
 0x276   :  { %1961 = vrot.lane.b32.xlu0 %v1880_v16, %s3874_s17  ;;  %v1623_v1 = vsel %vm1552_vm7, %v6204_v56, %v6332_v50  ;;  %v7562_v16 = vld [vmem:[#allocation99_spill] sm:$0xff]  ;;  %v6359_v7 = vor.u32 %v1118_v29, %v1117_v49  ;;  %v7564_v56 = vld [vmem:[#allocation156_spill] sm:$0xff] }
 0x277   :  { %v1952_v61 = vpop.permute.xlu1 %1951  ;;  %v6385_v3 = vor.u32 %v1198_v38, %v1197_v22  ;;  %v7570_v38 = vld [vmem:[#allocation93_spill] sm:$0xff] }
 0x278   :  { %v2616_v57 = vsel %vm2554_vm15, %v2533_v35, %v1952_v61  ;;  %v1912_v0 = vpop.permute.xlu0 %1911 }
 0x279   :  { %1292 = vrot.lane.b32.xlu1 %v1196_v63, %s3871_s1  ;;  %3555 = vmatmul.mubr.msk.bf16.gmra.mrb[36].mxu1 %vm2664_vm0, %v2616_v57  ;;  %v2576_v43 = vsel %vm2554_vm15, %v2493_v19, %v1912_v0  ;;  %v1120_v57 = vsel %vm1045_vm2, %v6267_v10, %v6359_v7  ;;  %v7565_v19 = vld [vmem:[#allocation124_spill] sm:$0xff] }
 0x27a   :  { %3558 = vmatprep.mubr.msk.bf16.mxu1 %vm3870_vm5, %v7392_v47  ;;  %v2785_v62 = vpop.f32.mrb[0].mxu0  ;;  %1252 = vrot.lane.b32.xlu0 %v1116_v42, %s3871_s1  ;;  %v3718_v42 = vld [vmem:[#allocation2 + $0xf8] sm:$0xff]  }
 0x27b   :  { %3475 = vmatmul.mubr.msk.bf16.gmra.mrb[40].mxu0 %vm2664_vm0, %v2576_v43  ;;  %v1243_v54 = vpop.permute.xlu1 %1242  ;;  %v2786_v6 = vadd.f32 %v6289_v27, %v2785_v62  ;;  %v3436_v53 = vpop.f32.mrb[1].mxu0  ;;  %v2037_v37 = vsel %vm1973_vm8, %v3718_v42, %v7565_v19  ;;  %v7566_v43 = vld [vmem:[#allocation151_spill] sm:$0xff]  ;;  %v1843_v42 = vrot.slane %v6392_v33, 3 }
 0x27c   :  { %3478 = vmatprep.mubr.msk.bf16.mxu0 %vm3870_vm5, %v7392_v47  ;;  %v2788_v48 = vpop.f32.mrb[2].mxu0  ;;  %v1026_v36 = vpop.permute.xlu0 %1025  ;;  %v2120_v11 = vsel %vm2056_vm9, %v2037_v37, %v7566_v43 }
 0x27d   :  { %1458 = vrot.lane.b32.xlu1 %v6228_v21, %s3873_s16  ;;  %v3112_v51 = vmax.f32 %v2786_v6, 0.0  ;;  %v2789_v41 = vadd.f32 %v6289_v27, %v2788_v48  ;;  %v3437_v31 = vpop.f32.mrb[3].mxu0  ;;  %v2203_v62 = vsel %vm2139_vm10, %v2120_v11, %v1026_v36  ;;  %v7567_v48 = vld [vmem:[#allocation56_spill] sm:$0xff] }
 0x27e   :  { %1418 = vrot.lane.b32.xlu0 %v6202_v55, %s3873_s16  ;;  %v1703_v55 = vsel %vm1552_vm7, %v6230_v2, %v6320_v4  ;;  %v1997_v2 = vsel %vm1973_vm8, %v3717_v5, %v7562_v16  ;;  %v1200_v16 = vsel %vm1045_vm2, %v6253_v23, %v6385_v3  ;;  %v6419_v23 = vsel %vm1302_vm4, %v1338_v30, %v1340_v17  ;;  %v7571_v30 = vld [vmem:[#allocation90_spill] sm:$0xff] }
 0x27f   :  { %v1409_v40 = vpop.permute.xlu1 %1408  ;;  %3194 = vst.msk [vmem:[#allocation10] sm:$0xff] %vm2056_vm9, %v3112_v51  ;;  %v3113_v21 = vmax.f32 %v2789_v41, 0.0  ;;  %v2080_v34 = vsel %vm2056_vm9, %v1997_v2, %v7563_v15  ;;  %v1624_v51 = vrot.slane %v7567_v48, 2  ;;  %v7568_v41 = vld [vmem:[#allocation48_spill] sm:$0xff]  ;;  %v1202_v43 = vrot.slane %v7571_v30, 2 }
 0x280   :  { %v1283_v44 = vpop.permute.xlu0 %1282  ;;  %v2163_v32 = vsel %vm2139_vm10, %v2080_v34, %v7564_v56  ;;  %v1625_v36 = vrot.slane %v7568_v41, 3  ;;  %v1122_v45 = vrot.slane %v7568_v41, 2 }
 0x281   :  { %1542 = vrot.lane.b32.xlu1 %v6318_v28, %s3872_s15  ;;  %3195 = vst.msk [vmem:[#allocation10 + $0x8] sm:$0xff] %vm2056_vm9, %v3113_v21  ;;  %v2246_v63 = vsel %vm2222_vm11, %v2163_v32, %v1243_v54  ;;  %v2286_v53 = vsel %vm2222_vm11, %v2203_v62, %v1283_v44  ;;  %v7569_v44 = vld [vmem:[#allocation114_spill] sm:$0xff] }
 0x282   :  { %1502 = vrot.lane.b32.xlu0 %v6330_v14, %s3872_s15  ;;  %v2329_v35 = vsel %vm2305_vm12, %v2246_v63, %v1409_v40  ;;  %v3721_v62 = vld [vmem:[#allocation2 + $0x100] sm:$0xff]  }
 0x283   :  { %v1493_v60 = vpop.permute.xlu1 %1492 }
 0x284   :  { %v1449_v13 = vpop.permute.xlu0 %1448  ;;  %v2412_v24 = vsel %vm2388_vm13, %v2329_v35, %v1493_v60  ;;  %v1704_v35 = vrot.slane %v7570_v38, 2 }
 0x285   :  { %1797 = vrot.lane.b32.xlu1 %v1703_v55, %s3875_s19  ;;  %v2369_v31 = vsel %vm2305_vm12, %v2286_v53, %v1449_v13  ;;  %v7573_v53 = vld [vmem:[#allocation102_spill] sm:$0xff] }
 0x286   :  { %1757 = vrot.lane.b32.xlu0 %v1623_v1, %s3875_s19 }
 0x287   :  { %v1748_v39 = vpop.permute.xlu1 %1747 }
 0x288   :  { %v1533_v61 = vpop.permute.xlu0 %1532  ;;  %v2495_v9 = vsel %vm2471_vm14, %v2412_v24, %v1748_v39  ;;  %v6421_v39 = vor.u32 %v1625_v36, %v1624_v51  ;;  %v7575_v36 = vld [vmem:[#allocation138_spill] sm:$0xff] }
 0x289   :  { %1963 = vrot.lane.b32.xlu1 %v1882_v20, %s3874_s17  ;;  %v2452_v60 = vsel %vm2388_vm13, %v2369_v31, %v1533_v61  ;;  %v1705_v61 = vrot.slane %v7571_v30, 3 }
 0x28a   :  { %1923 = vrot.lane.b32.xlu0 %v1842_v18, %s3874_s17  ;;  %v6427_v18 = vld [vmem:[#allocation2 + $0x140] sm:$0xff]  }
 0x28b   :  { %v1914_v0 = vpop.permute.xlu1 %1913  ;;  %v1380_v22 = vrot.slane %v6427_v18, 2 }
 0x28c   :  { %v2578_v12 = vsel %vm2554_vm15, %v2495_v9, %v1914_v0  ;;  %v2953_v25 = vpop.f32.mrb[0].mxu1  ;;  %v1788_v10 = vpop.permute.xlu0 %1787  ;;  %v6450_v9 = vor.u32 %v1705_v61, %v1704_v35 }
 0x28d   :  { %v2954_v54 = vadd.f32 %v6289_v27, %v2953_v25  ;;  %1254 = vrot.lane.b32.xlu1 %v1120_v57, %s3871_s1  ;;  %v3520_v6 = vpop.f32.mrb[1].mxu1  ;;  %3479 = vmatmul.mubr.msk.bf16.gmra.mrb[44].mxu0 %vm2664_vm0, %v2578_v12  ;;  %v2535_v2 = vsel %vm2471_vm14, %v2452_v60, %v1788_v10  ;;  %v1627_v57 = vsel %vm1552_vm7, %v6332_v50, %v6421_v39  ;;  %v1883_v12 = vrot.slane %v6427_v18, 3 }
 0x28e   :  { %v2793_v8 = vpop.f32.mrb[4].mxu0  ;;  %v2956_v52 = vpop.f32.mrb[2].mxu1  ;;  %3482 = vmatprep.mubr.msk.bf16.mxu0 %vm3870_vm5, %v7392_v47  ;;  %1037 = vrot.lane.b32.xlu0 %v7569_v44, %s3868_s28  ;;  %v6448_v37 = vsel %vm1302_vm4, %v1378_v26, %v1380_v22  ;;  %v1844_v50 = vsel %vm1807_vm6, %v1841_v59, %v1843_v42  ;;  %v1707_v11 = vsel %vm1552_vm7, %v6320_v4, %v6450_v9  ;;  %v1121_v25 = vrot.slane %v7567_v48, 1  ;;  %v7572_v59 = vld [vmem:[#allocation127_spill] sm:$0xff] }
 0x28f   :  { %v2794_v40 = vadd.f32 %v6289_v27, %v2793_v8  ;;  %v3154_v21 = vmax.f32 %v2954_v54, 0.0  ;;  %v3440_v55 = vpop.f32.mrb[5].mxu0  ;;  %v2957_v49 = vadd.f32 %v6289_v27, %v2956_v52  ;;  %v1028_v29 = vpop.permute.xlu1 %1027  ;;  %v2039_v10 = vsel %vm1973_vm8, %v3721_v62, %v7572_v59  ;;  %v3722_v6 = vld [vmem:[#allocation2 + $0x60] sm:$0xff]  }
 0x290   :  { %v2796_v1 = vpop.f32.mrb[6].mxu0  ;;  %v3521_v5 = vpop.f32.mrb[3].mxu1  ;;  %v1999_v8 = vsel %vm1973_vm8, %v3722_v6, %v7573_v53  ;;  %v7574_v52 = vld [vmem:[#allocation150_spill] sm:$0xff]  ;;  %v6489_v60 = vor.u32 %v1122_v45, %v1121_v25  ;;  %v6529_v53 = vld [vmem:[#allocation2 + $0xa8] sm:$0xff]  }
 0x291   :  { %v3114_v13 = vmax.f32 %v2794_v40, 0.0  ;;  %3236 = vst.msk [vmem:[#allocation10 + $0x150] sm:$0xff] %vm2056_vm9, %v3154_v21  ;;  %v2797_v15 = vadd.f32 %v6289_v27, %v2796_v1  ;;  %v3155_v34 = vmax.f32 %v2957_v49, 0.0  ;;  %v3441_v20 = vpop.f32.mrb[7].mxu0  ;;  %v1954_v56 = vpop.permute.xlu0 %1953  ;;  %1420 = vrot.lane.b32.xlu1 %v6330_v14, %s3873_s16  ;;  %v2122_v4 = vsel %vm2056_vm9, %v2039_v10, %v7574_v52  ;;  %v7576_v40 = vld [vmem:[#allocation159_spill] sm:$0xff]  ;;  %v7578_v59 = vld [vmem:[#allocation94_spill] sm:$0xff] }
 0x292   :  { %v2618_v32 = vsel %vm2554_vm15, %v2535_v2, %v1954_v56  ;;  %1294 = vrot.lane.b32.xlu0 %v1200_v16, %s3871_s1  ;;  %v2082_v48 = vsel %vm2056_vm9, %v1999_v8, %v7575_v36  ;;  %v2205_v41 = vsel %vm2139_vm10, %v2122_v4, %v1028_v29  ;;  %v1884_v49 = vsel %vm1807_vm6, %v1881_v46, %v1883_v12  ;;  %v7577_v2 = vld [vmem:[#allocation118_spill] sm:$0xff]  ;;  %v6501_v56 = vld [vmem:[#allocation5] sm:$0xff]   ;;  %v7579_v52 = vld [vmem:[#allocation53_spill] sm:$0xff] }
 0x293   :  { %3196 = vst.msk [vmem:[#allocation10 + $0x10] sm:$0xff] %vm2056_vm9, %v3114_v13  ;;  %v3115_v63 = vmax.f32 %v2797_v15, 0.0  ;;  %3237 = vst.msk [vmem:[#allocation10 + $0x158] sm:$0xff] %vm2056_vm9, %v3155_v34  ;;  %3559 = vmatmul.mubr.msk.bf16.gmra.mrb[40].mxu1 %vm2664_vm0, %v2618_v32  ;;  %v1285_v14 = vpop.permute.xlu1 %1284  ;;  %v2165_v21 = vsel %vm2139_vm10, %v2082_v48, %v7576_v40  ;;  %v1205_v32 = vshrl.u32 %v6501_v56, 16  ;;  %v1382_v62 = vrot.slane %v6501_v56, 2  ;;  %v7580_v36 = vld [vmem:[#allocation50_spill] sm:$0xff] }
 0x294   :  { %3562 = vmatprep.mubr.msk.bf16.mxu1 %vm3870_vm5, %v7392_v47  ;;  %v2288_v55 = vsel %vm2222_vm11, %v2205_v41, %v1285_v14  ;;  %v1709_v10 = vrot.slane %v7578_v59, 3  ;;  %v1342_v8 = vrot.slane %v6529_v53, 2  ;;  %v1628_v4 = vrot.slane %v7579_v52, 2 }
 0x295   :  { %3197 = vst.msk [vmem:[#allocation10 + $0x18] sm:$0xff] %vm2056_vm9, %v3115_v63  ;;  %v1245_v24 = vpop.permute.xlu0 %1244  ;;  %1504 = vrot.lane.b32.xlu1 %v6419_v23, %s3872_s15  ;;  %v1629_v48 = vrot.slane %v7580_v36, 3  ;;  %v1207_v18 = vrot.slane %v1205_v32, 1 }
 0x296   :  { %1460 = vrot.lane.b32.xlu0 %v6318_v28, %s3873_s16  ;;  %v1201_v28 = vrot.slane %v7570_v38, 1  ;;  %v2248_v1 = vsel %vm2222_vm11, %v2165_v21, %v1245_v24 }
 0x297   :  { %v1451_v19 = vpop.permute.xlu1 %1450 }
 0x298   :  { %v6475_v51 = vor.u32 %v1202_v43, %v1201_v28  ;;  %v2371_v29 = vsel %vm2305_vm12, %v2288_v55, %v1451_v19  ;;  %v6555_v55 = vsel %vm1302_vm4, %v1340_v17, %v1342_v8 }
 0x299   :  { %v1411_v0 = vpop.permute.xlu0 %1410  ;;  %1759 = vrot.lane.b32.xlu1 %v1627_v57, %s3875_s19 }
 0x29a   :  { %1544 = vrot.lane.b32.xlu0 %v6448_v37, %s3872_s15  ;;  %v2331_v15 = vsel %vm2305_vm12, %v2248_v1, %v1411_v0  ;;  %v1204_v46 = vsel %vm1045_vm2, %v6385_v3, %v6475_v51  ;;  %v1124_v0 = vsel %vm1045_vm2, %v6359_v7, %v6489_v60  ;;  %v1708_v7 = vrot.slane %v1205_v32, 2 }
 0x29b   :  { %v1535_v26 = vpop.permute.xlu1 %1534  ;;  %v1126_v1 = vrot.slane %v7580_v36, 2 }
 0x29c   :  { %v2454_v34 = vsel %vm2388_vm13, %v2371_v29, %v1535_v26  ;;  %v6546_v40 = vor.u32 %v1709_v10, %v1708_v7  ;;  %v7585_v7 = vld [vmem:[#allocation153_spill] sm:$0xff] }
 0x29d   :  { %v1495_v54 = vpop.permute.xlu0 %1494  ;;  %1925 = vrot.lane.b32.xlu1 %v1844_v50, %s3874_s17 }
 0x29e   :  { %1799 = vrot.lane.b32.xlu0 %v1707_v11, %s3875_s19  ;;  %v2414_v24 = vsel %vm2388_vm13, %v2331_v15, %v1495_v54  ;;  %v7582_v15 = vld [vmem:[#allocation141_spill] sm:$0xff] }
 0x29f   :  { %v1790_v31 = vpop.permute.xlu1 %1789 }
 0x2a0   :  { %v2961_v44 = vpop.f32.mrb[4].mxu1  ;;  %v2537_v63 = vsel %vm2471_vm14, %v2454_v34, %v1790_v31  ;;  %v6544_v31 = vsel %vm1302_vm4, %v1380_v22, %v1382_v62  ;;  %v1711_v22 = vsel %vm1552_vm7, %v6450_v9, %v6546_v40 }
 0x2a1   :  { %v1750_v5 = vpop.permute.xlu0 %1749  ;;  %v2962_v16 = vadd.f32 %v6289_v27, %v2961_v44  ;;  %1039 = vrot.lane.b32.xlu1 %v7577_v2, %s3868_s28  ;;  %v3524_v13 = vpop.f32.mrb[5].mxu1  ;;  %v7581_v2 = vld [vmem:[#allocation101_spill] sm:$0xff] }
 0x2a2   :  { %v2801_v58 = vpop.f32.mrb[8].mxu0  ;;  %v2964_v20 = vpop.f32.mrb[6].mxu1  ;;  %1965 = vrot.lane.b32.xlu0 %v1884_v49, %s3874_s17  ;;  %v2497_v50 = vsel %vm2471_vm14, %v2414_v24, %v1750_v5  ;;  %v1125_v49 = vrot.slane %v7579_v52, 1  ;;  %v1845_v5 = vrot.slane %v6529_v53, 3 }
 0x2a3   :  { %v2802_v14 = vadd.f32 %v6289_v27, %v2801_v58  ;;  %v3156_v38 = vmax.f32 %v2962_v16, 0.0  ;;  %v3444_v35 = vpop.f32.mrb[9].mxu0  ;;  %v2965_v30 = vadd.f32 %v6289_v27, %v2964_v20  ;;  %v1956_v61 = vpop.permute.xlu1 %1955  ;;  %v3725_v16 = vld [vmem:[#allocation2 + $0x68] sm:$0xff]  }
 0x2a4   :  { %v2804_v57 = vpop.f32.mrb[10].mxu0  ;;  %v2620_v3 = vsel %vm2554_vm15, %v2537_v63, %v1956_v61  ;;  %v3525_v19 = vpop.f32.mrb[7].mxu1  ;;  %v2001_v9 = vsel %vm1973_vm8, %v3725_v16, %v7581_v2  ;;  %v6583_v20 = vor.u32 %v1126_v1, %v1125_v49  ;;  %v1846_v35 = vsel %vm1807_vm6, %v1843_v42, %v1845_v5  ;;  %v7587_v16 = vld [vmem:[#allocation54_spill] sm:$0xff] }
 0x2a5   :  { %v3116_v28 = vmax.f32 %v2802_v14, 0.0  ;;  %3238 = vst.msk [vmem:[#allocation10 + $0x160] sm:$0xff] %vm2056_vm9, %v3156_v38  ;;  %v2805_v43 = vadd.f32 %v6289_v27, %v2804_v57  ;;  %v3157_v26 = vmax.f32 %v2965_v30, 0.0  ;;  %v3445_v11 = vpop.f32.mrb[11].mxu0  ;;  %v1916_v25 = vpop.permute.xlu0 %1915  ;;  %1296 = vrot.lane.b32.xlu1 %v1204_v46, %s3871_s1  ;;  %3563 = vmatmul.mubr.msk.bf16.gmra.mrb[44].mxu1 %vm2664_vm0, %v2620_v3  ;;  %v2084_v34 = vsel %vm2056_vm9, %v2001_v9, %v7582_v15  ;;  %v3726_v3 = vld [vmem:[#allocation2 + $0x108] sm:$0xff]   ;;  %v7584_v19 = vld [vmem:[#allocation126_spill] sm:$0xff] }
 0x2a6   :  { %v2580_v45 = vsel %vm2554_vm15, %v2497_v50, %v1916_v25  ;;  %3566 = vmatprep.mubr.msk.bf16.mxu1 %vm3870_vm5, %v7392_v47  ;;  %1256 = vrot.lane.b32.xlu0 %v1124_v0, %s3871_s1  ;;  %v2041_v0 = vsel %vm1973_vm8, %v3726_v3, %v7584_v19  ;;  %v1128_v32 = vsel %vm1045_vm2, %v6489_v60, %v6583_v20  ;;  %v6615_v60 = vld [vmem:[#allocation5 + $0x8] sm:$0xff]   ;;  %v1633_v2 = vrot.slane %v7587_v16, 3 }
 0x2a7   :  { %3198 = vst.msk [vmem:[#allocation10 + $0x20] sm:$0xff] %vm2056_vm9, %v3116_v28  ;;  %v3117_v54 = vmax.f32 %v2805_v43, 0.0  ;;  %3239 = vst.msk [vmem:[#allocation10 + $0x168] sm:$0xff] %vm2056_vm9, %v3157_v26  ;;  %3483 = vmatmul.mubr.msk.bf16.gmra.mrb[48].mxu0 %vm2664_vm0, %v2580_v45  ;;  %v1247_v6 = vpop.permute.xlu1 %1246  ;;  %v7588_v15 = vld [vmem:[#allocation117_spill] sm:$0xff] }
 0x2a8   :  { %3486 = vmatprep.mubr.msk.bf16.mxu0 %vm3870_vm5, %v7392_v47 }
 0x2a9   :  { %3199 = vst.msk [vmem:[#allocation10 + $0x28] sm:$0xff] %vm2056_vm9, %v3117_v54  ;;  %v1030_v41 = vpop.permute.xlu0 %1029  ;;  %1462 = vrot.lane.b32.xlu1 %v6448_v37, %s3873_s16  ;;  %v6557_v37 = vor.u32 %v1629_v48, %v1628_v4 }
 0x2aa   :  { %1422 = vrot.lane.b32.xlu0 %v6419_v23, %s3873_s16  ;;  %v1885_v23 = vrot.slane %v6501_v56, 3 }
 0x2ab   :  { %v1413_v21 = vpop.permute.xlu1 %1412  ;;  %v1631_v29 = vsel %vm1552_vm7, %v6421_v39, %v6557_v37  ;;  %v7583_v39 = vld [vmem:[#allocation158_spill] sm:$0xff] }
 0x2ac   :  { %v1886_v58 = vsel %vm1807_vm6, %v1883_v12, %v1885_v23  ;;  %v2167_v46 = vsel %vm2139_vm10, %v2084_v34, %v7583_v39  ;;  %v1208_v12 = vrot.slane %v7578_v59, 2  ;;  %v2124_v59 = vsel %vm2056_vm9, %v2041_v0, %v7585_v7  ;;  %v3729_v7 = vld [vmem:[#allocation2 + $0x110] sm:$0xff]  }
 0x2ad   :  { %v1287_v44 = vpop.permute.xlu0 %1286  ;;  %1546 = vrot.lane.b32.xlu1 %v6544_v31, %s3872_s15  ;;  %v2250_v14 = vsel %vm2222_vm11, %v2167_v46, %v1247_v6  ;;  %v2207_v4 = vsel %vm2139_vm10, %v2124_v59, %v1030_v41  ;;  %v1212_v39 = vshrl.u32 %v6615_v60, 16  ;;  %v1215_v46 = vshll.u32 %v6615_v60, 16 }
 0x2ae   :  { %1506 = vrot.lane.b32.xlu0 %v6555_v55, %s3872_s15  ;;  %v2333_v30 = vsel %vm2305_vm12, %v2250_v14, %v1413_v21  ;;  %v6613_v52 = vor.u32 %v1208_v12, %v1207_v18  ;;  %v2290_v1 = vsel %vm2222_vm11, %v2207_v4, %v1287_v44  ;;  %v7593_v4 = vld [vmem:[#allocation140_spill] sm:$0xff] }
 0x2af   :  { %v1497_v17 = vpop.permute.xlu1 %1496 }
 0x2b0   :  { %v2416_v33 = vsel %vm2388_vm13, %v2333_v30, %v1497_v17  ;;  %v7586_v17 = vld [vmem:[#allocation60_spill] sm:$0xff]  ;;  %v1384_v30 = vrot.slane %v6615_v60, 2 }
 0x2b1   :  { %v1453_v13 = vpop.permute.xlu0 %1452  ;;  %1801 = vrot.lane.b32.xlu1 %v1711_v22, %s3875_s19 }
 0x2b2   :  { %1761 = vrot.lane.b32.xlu0 %v1631_v29, %s3875_s19  ;;  %v1632_v29 = vrot.slane %v7586_v17, 2  ;;  %v2373_v41 = vsel %vm2305_vm12, %v2290_v1, %v1453_v13  ;;  %v6672_v0 = vsel %vm1302_vm4, %v1382_v62, %v1384_v30 }
 0x2b3   :  { %v1752_v63 = vpop.permute.xlu1 %1751 }
 0x2b4   :  { %v2969_v38 = vpop.f32.mrb[8].mxu1  ;;  %v2499_v28 = vsel %vm2471_vm14, %v2416_v33, %v1752_v63  ;;  %v6650_v18 = vor.u32 %v1633_v2, %v1632_v29  ;;  %v6702_v29 = vld [vmem:[#allocation5 + $0x10] sm:$0xff]  }
 0x2b5   :  { %v1537_v61 = vpop.permute.xlu0 %1536  ;;  %v2970_v24 = vadd.f32 %v6289_v27, %v2969_v38  ;;  %1967 = vrot.lane.b32.xlu1 %v1886_v58, %s3874_s17  ;;  %v3528_v57 = vpop.f32.mrb[9].mxu1  ;;  %v1210_v58 = vsel %vm1045_vm2, %v6475_v51, %v6613_v52  ;;  %v7589_v38 = vld [vmem:[#allocation49_spill] sm:$0xff] }
 0x2b6   :  { %v2809_v42 = vpop.f32.mrb[12].mxu0  ;;  %v2972_v50 = vpop.f32.mrb[10].mxu1  ;;  %1927 = vrot.lane.b32.xlu0 %v1846_v35, %s3874_s17  ;;  %v2456_v44 = vsel %vm2388_vm13, %v2373_v41, %v1537_v61  ;;  %v7590_v35 = vrot.slane %v7589_v38, 2  ;;  %v1712_v61 = vrot.slane %v1212_v39, 2  ;;  %v6662_v57 = vld [vmem:[#allocation2 + $0xb0] sm:$0xff]  }
 0x2b7   :  { %v2810_v43 = vadd.f32 %v6289_v27, %v2809_v42  ;;  %v3158_v26 = vmax.f32 %v2970_v24, 0.0  ;;  %v3448_v11 = vpop.f32.mrb[13].mxu0  ;;  %v2973_v25 = vadd.f32 %v6289_v27, %v2972_v50  ;;  %v1918_v45 = vpop.permute.xlu1 %1917  ;;  %v1847_v3 = vrot.slane %v6662_v57, 3 }
 0x2b8   :  { %v2812_v10 = vpop.f32.mrb[14].mxu0  ;;  %v2582_v54 = vsel %vm2554_vm15, %v2499_v28, %v1918_v45  ;;  %v3529_v6 = vpop.f32.mrb[11].mxu1  ;;  %v6648_v51 = vsel %vm1302_vm4, %v1342_v8, %v7590_v35  ;;  %v1635_v8 = vsel %vm1552_vm7, %v6557_v37, %v6650_v18  ;;  %v1214_v42 = vrot.slane %v1212_v39, 1  ;;  %v7591_v45 = vld [vmem:[#allocation105_spill] sm:$0xff] }
 0x2b9   :  { %v3118_v36 = vmax.f32 %v2810_v43, 0.0  ;;  %3240 = vst.msk [vmem:[#allocation10 + $0x170] sm:$0xff] %vm2056_vm9, %v3158_v26  ;;  %v2813_v48 = vadd.f32 %v6289_v27, %v2812_v10  ;;  %v3159_v21 = vmax.f32 %v2973_v25, 0.0  ;;  %v3449_v22 = vpop.f32.mrb[15].mxu0  ;;  %v1792_v49 = vpop.permute.xlu0 %1791  ;;  %1258 = vrot.lane.b32.xlu1 %v1128_v32, %s3871_s1  ;;  %3487 = vmatmul.mubr.msk.bf16.gmra.mrb[52].mxu0 %vm2664_vm0, %v2582_v54  ;;  %v1217_v50 = vrot.slane %v1215_v46, 2  ;;  %v3728_v25 = vld [vmem:[#allocation2 + $0x70] sm:$0xff]  }
 0x2ba   :  { %3490 = vmatprep.mubr.msk.bf16.mxu0 %vm3870_vm5, %v7392_v47  ;;  %1041 = vrot.lane.b32.xlu0 %v7588_v15, %s3868_s28  ;;  %v2539_v13 = vsel %vm2471_vm14, %v2456_v44, %v1792_v49  ;;  %v961_v32 = vrot.slane %v6615_v60, 1  ;;  %v1887_v26 = vrot.slane %v6615_v60, 3  ;;  %v2003_v53 = vsel %vm1973_vm8, %v3728_v25, %v7591_v45  ;;  %v7595_v49 = vld [vmem:[#allocation92_spill] sm:$0xff] }
 0x2bb   :  { %3200 = vst.msk [vmem:[#allocation10 + $0x30] sm:$0xff] %vm2056_vm9, %v3118_v36  ;;  %v3119_v9 = vmax.f32 %v2813_v48, 0.0  ;;  %3241 = vst.msk [vmem:[#allocation10 + $0x178] sm:$0xff] %vm2056_vm9, %v3159_v21  ;;  %v1032_v34 = vpop.permute.xlu1 %1031  ;;  %v1218_v11 = vor.u32 %v1217_v50, %v1214_v42  ;;  %v7594_v36 = vld [vmem:[#allocation152_spill] sm:$0xff]  ;;  %v7596_v1 = vrot.slane %v7595_v49, 1  ;;  %v1468_v45 = vrot.slane %v6702_v29, 2 }
 0x2bd   :  { %3201 = vst.msk [vmem:[#allocation10 + $0x38] sm:$0xff] %vm2056_vm9, %v3119_v9  ;;  %v1958_v63 = vpop.permute.xlu0 %1957  ;;  %1424 = vrot.lane.b32.xlu1 %v6555_v55, %s3873_s16  ;;  %v1713_v55 = vrot.slane %v1215_v46, 3  ;;  %v962_v17 = vsel %vm795_vm1, %v7596_v1, %v961_v32 }
 0x2be   :  { %v2622_v14 = vsel %vm2554_vm15, %v2539_v13, %v1958_v63  ;;  %1298 = vrot.lane.b32.xlu0 %v1210_v58, %s3871_s1  ;;  %v7597_v58 = vld [vmem:[#allocation24_spill] sm:$0xff] }
 0x2bf   :  { %3567 = vmatmul.mubr.msk.bf16.gmra.mrb[48].mxu1 %vm2664_vm0, %v2622_v14  ;;  %v1289_v12 = vpop.permute.xlu1 %1288  ;;  %v6674_v33 = vor.u32 %v1713_v55, %v1712_v61  ;;  %v1219_v14 = vsel %vm1045_vm2, %v6613_v52, %v1218_v11  ;;  %v1720_v52 = vshll.u32 %v6702_v29, 16 }
 0x2c0   :  { %3570 = vmatprep.mubr.msk.bf16.mxu1 %vm3870_vm5, %v7392_v47 }
 0x2c1   :  { %v1249_v24 = vpop.permute.xlu0 %1248  ;;  %1508 = vrot.lane.b32.xlu1 %v6648_v51, %s3872_s15  ;;  %v1715_v43 = vsel %vm1552_vm7, %v6546_v40, %v6674_v33  ;;  %v2086_v40 = vsel %vm2056_vm9, %v2003_v53, %v7593_v4 }
 0x2c2   :  { %1464 = vrot.lane.b32.xlu0 %v6544_v31, %s3873_s16  ;;  %v1848_v31 = vsel %vm1807_vm6, %v1845_v5, %v1847_v3  ;;  %v7592_v5 = vld [vmem:[#allocation129_spill] sm:$0xff]  ;;  %v2169_v39 = vsel %vm2139_vm10, %v2086_v40, %v7597_v58  ;;  %v1889_v40 = vrot.slane %v6702_v29, 3 }
 0x2c3   :  { %v1455_v19 = vpop.permute.xlu1 %1454  ;;  %v2043_v59 = vsel %vm1973_vm8, %v3729_v7, %v7592_v5  ;;  %v2252_v42 = vsel %vm2222_vm11, %v2169_v39, %v1249_v24  ;;  %v1722_v7 = vrot.slane %v1720_v52, 3 }
 0x2c4   :  { %v2126_v48 = vsel %vm2056_vm9, %v2043_v59, %v7594_v36  ;;  %v1469_v59 = vsel %vm1302_vm4, %v1384_v30, %v1468_v45  ;;  %v7599_v36 = vld [vmem:[#allocation64_spill] sm:$0xff] }
 0x2c5   :  { %v1415_v37 = vpop.permute.xlu0 %1414  ;;  %1763 = vrot.lane.b32.xlu1 %v1635_v8, %s3875_s19  ;;  %v2209_v16 = vsel %vm2139_vm10, %v2126_v48, %v1032_v34  ;;  %v1888_v34 = vsel %vm1807_vm6, %v1885_v23, %v1887_v26  ;;  %v1717_v23 = vshrl.u32 %v6702_v29, 16  ;;  %v7602_v29 = vld [vmem:[#allocation21_spill] sm:$0xff] }
 0x2c6   :  { %1548 = vrot.lane.b32.xlu0 %v6672_v0, %s3872_s15  ;;  %v2292_v46 = vsel %vm2222_vm11, %v2209_v16, %v1289_v12 }
 0x2c7   :  { %v1539_v62 = vpop.permute.xlu1 %1538  ;;  %v2375_v38 = vsel %vm2305_vm12, %v2292_v46, %v1455_v19  ;;  %v2335_v19 = vsel %vm2305_vm12, %v2252_v42, %v1415_v37  ;;  %v1719_v53 = vrot.slane %v1717_v23, 2 }
 0x2c8   :  { %v2977_v28 = vpop.f32.mrb[12].mxu1  ;;  %v2458_v56 = vsel %vm2388_vm13, %v2375_v38, %v1539_v62 }
 0x2c9   :  { %v1499_v10 = vpop.permute.xlu0 %1498  ;;  %v2978_v54 = vadd.f32 %v6289_v27, %v2977_v28  ;;  %1929 = vrot.lane.b32.xlu1 %v1848_v31, %s3874_s17  ;;  %v3532_v6 = vpop.f32.mrb[13].mxu1  ;;  %v7598_v28 = vld [vmem:[#allocation55_spill] sm:$0xff] }
 0x2ca   :  { %v2817_v21 = vpop.f32.mrb[16].mxu0  ;;  %v2980_v22 = vpop.f32.mrb[14].mxu1  ;;  %1803 = vrot.lane.b32.xlu0 %v1715_v43, %s3875_s19  ;;  %v2418_v24 = vsel %vm2388_vm13, %v2335_v19, %v1499_v10  ;;  %v1132_v43 = vsel %vm1045_vm2, %v6583_v20, %v7598_v28  ;;  %v1723_v10 = vor.u32 %v1722_v7, %v1719_v53 }
 0x2cb   :  { %v2818_v2 = vadd.f32 %v6289_v27, %v2817_v21  ;;  %v3160_v41 = vmax.f32 %v2978_v54, 0.0  ;;  %v3452_v9 = vpop.f32.mrb[17].mxu0  ;;  %v2981_v15 = vadd.f32 %v6289_v27, %v2980_v22  ;;  %v1794_v44 = vpop.permute.xlu1 %1793  ;;  %v7600_v21 = vld [vmem:[#allocation17_spill] sm:$0xff] }
 0x2cc   :  { %v2820_v13 = vpop.f32.mrb[18].mxu0  ;;  %v3533_v63 = vpop.f32.mrb[15].mxu1  ;;  %v2541_v31 = vsel %vm2471_vm14, %v2458_v56, %v1794_v44  ;;  %v1724_v4 = vsel %vm1552_vm7, %v6674_v33, %v1723_v10  ;;  %v1639_v30 = vsel %vm1552_vm7, %v6650_v18, %v7600_v21  ;;  %v3730_v22 = vld [vmem:[#allocation2 + $0x78] sm:$0xff]  }
 0x2cd   :  { %v3120_v35 = vmax.f32 %v2818_v2, 0.0  ;;  %3242 = vst.msk [vmem:[#allocation10 + $0x180] sm:$0xff] %vm2056_vm9, %v3160_v41  ;;  %v2821_v61 = vadd.f32 %v6289_v27, %v2820_v13  ;;  %v3161_v55 = vmax.f32 %v2981_v15, 0.0  ;;  %v3453_v12 = vpop.f32.mrb[19].mxu0  ;;  %v1754_v8 = vpop.permute.xlu0 %1753  ;;  %1043 = vrot.lane.b32.xlu1 %v962_v17, %s3868_s28  ;;  %v1890_v41 = vsel %vm1807_vm6, %v1887_v26, %v1889_v40  ;;  %v7603_v9 = vld [vmem:[#allocation29_spill] sm:$0xff]  ;;  %v7604_v13 = vld [vmem:[#allocation51_spill] sm:$0xff] }
 0x2ce   :  { %1969 = vrot.lane.b32.xlu0 %v1888_v34, %s3874_s17  ;;  %v2501_v37 = vsel %vm2471_vm14, %v2418_v24, %v1754_v8  ;;  %v7605_v63 = vrot.slane %v7604_v13, 3  ;;  %v7607_v56 = vld [vmem:[#allocation62_spill] sm:$0xff]  ;;  %v7608_v40 = vld [vmem:[#allocation109_spill] sm:$0xff] }
 0x2cf   :  { %3202 = vst.msk [vmem:[#allocation10 + $0x40] sm:$0xff] %vm2056_vm9, %v3120_v35  ;;  %v3121_v50 = vmax.f32 %v2821_v61, 0.0  ;;  %3243 = vst.msk [vmem:[#allocation10 + $0x188] sm:$0xff] %vm2056_vm9, %v3161_v55  ;;  %v1960_v32 = vpop.permute.xlu1 %1959  ;;  %v3731_v61 = vld [vmem:[#allocation2 + $0x118] sm:$0xff]   ;;  %v7606_v55 = vld [vmem:[#allocation128_spill] sm:$0xff] }
 0x2d0   :  { %v2624_v62 = vsel %vm2554_vm15, %v2541_v31, %v1960_v32  ;;  %v1850_v60 = vsel %vm1807_vm6, %v1847_v3, %v7605_v63  ;;  %v2045_v12 = vsel %vm1973_vm8, %v3731_v61, %v7606_v55 }
 0x2d1   :  { %3203 = vst.msk [vmem:[#allocation10 + $0x48] sm:$0xff] %vm2056_vm9, %v3121_v50  ;;  %v1920_v11 = vpop.permute.xlu0 %1919  ;;  %1300 = vrot.lane.b32.xlu1 %v1219_v14, %s3871_s1  ;;  %3571 = vmatmul.mubr.msk.bf16.gmra.mrb[52].mxu1 %vm2664_vm0, %v2624_v62  ;;  %v2128_v23 = vsel %vm2056_vm9, %v2045_v12, %v7607_v56 }
 0x2d2   :  { %v2584_v25 = vsel %vm2554_vm15, %v2501_v37, %v1920_v11  ;;  %3574 = vmatprep.mubr.msk.bf16.mxu1 %vm3870_vm5, %v7392_v47  ;;  %1260 = vrot.lane.b32.xlu0 %v1132_v43, %s3871_s1 }
 0x2d3   :  { %3491 = vmatmul.mubr.msk.bf16.gmra.mrb[56].mxu0 %vm2664_vm0, %v2584_v25  ;;  %v1251_v20 = vpop.permute.xlu1 %1250 }
 0x2d4   :  { %3494 = vmatprep.mubr.msk.bf16.mxu0 %vm3870_vm5, %v7392_v47 }
 0x2d5   :  { %v1034_v5 = vpop.permute.xlu0 %1033  ;;  %1466 = vrot.lane.b32.xlu1 %v6672_v0, %s3873_s16 }
 0x2d6   :  { %1426 = vrot.lane.b32.xlu0 %v6648_v51, %s3873_s16  ;;  %v7601_v51 = vld [vmem:[#allocation104_spill] sm:$0xff]  ;;  %v2211_v50 = vsel %vm2139_vm10, %v2128_v23, %v1034_v5 }
 0x2d7   :  { %v1417_v54 = vpop.permute.xlu1 %1416  ;;  %v2005_v49 = vsel %vm1973_vm8, %v3730_v22, %v7601_v51 }
 0x2d8   :  { %v2088_v16 = vsel %vm2056_vm9, %v2005_v49, %v7602_v29  ;;  %v7610_v49 = vld [vmem:[#allocation57_spill] sm:$0xff] }
 0x2d9   :  { %v1291_v6 = vpop.permute.xlu0 %1290  ;;  %1550 = vrot.lane.b32.xlu1 %v1469_v59, %s3872_s15  ;;  %v2171_v18 = vsel %vm2139_vm10, %v2088_v16, %v7603_v9 }
 0x2da   :  { %1510 = vrot.lane.b32.xlu0 %v7599_v36, %s3872_s15  ;;  %v2254_v46 = vsel %vm2222_vm11, %v2171_v18, %v1251_v20  ;;  %v2294_v28 = vsel %vm2222_vm11, %v2211_v50, %v1291_v6 }
 0x2db   :  { %v1501_v0 = vpop.permute.xlu1 %1500  ;;  %v2337_v26 = vsel %vm2305_vm12, %v2254_v46, %v1417_v54 }
 0x2dc   :  { %v2825_v48 = vpop.f32.mrb[20].mxu0  ;;  %v2420_v38 = vsel %vm2388_vm13, %v2337_v26, %v1501_v0  ;;  %v3733_v0 = vld [vmem:[#allocation2 + $0x120] sm:$0xff]  }
 0x2dd   :  { %v1457_v1 = vpop.permute.xlu0 %1456  ;;  %v2826_v17 = vadd.f32 %v6289_v27, %v2825_v48  ;;  %1805 = vrot.lane.b32.xlu1 %v1724_v4, %s3875_s19  ;;  %v3456_v33 = vpop.f32.mrb[21].mxu0  ;;  %v3732_v4 = vld [vmem:[#allocation2 + $0x80] sm:$0xff]  }
 0x2de   :  { %v2828_v2 = vpop.f32.mrb[22].mxu0  ;;  %1765 = vrot.lane.b32.xlu0 %v1639_v30, %s3875_s19  ;;  %v2377_v43 = vsel %vm2305_vm12, %v2294_v28, %v1457_v1  ;;  %v2007_v36 = vsel %vm1973_vm8, %v3732_v4, %v7608_v40  ;;  %v7609_v48 = vld [vmem:[#allocation131_spill] sm:$0xff] }
 0x2df   :  { %v3122_v15 = vmax.f32 %v2826_v17, 0.0  ;;  %v2829_v44 = vadd.f32 %v6289_v27, %v2828_v2  ;;  %v1756_v58 = vpop.permute.xlu1 %1755  ;;  %v3457_v39 = vpop.f32.mrb[23].mxu0  ;;  %v2047_v21 = vsel %vm1973_vm8, %v3733_v0, %v7609_v48  ;;  %v2090_v1 = vsel %vm2056_vm9, %v2007_v36, %v7610_v49  ;;  %v7611_v17 = vld [vmem:[#allocation68_spill] sm:$0xff]  ;;  %v7616_v49 = vld [vmem:[#allocation130_spill] sm:$0xff] }
 0x2e0   :  { %v2503_v57 = vsel %vm2471_vm14, %v2420_v38, %v1756_v58  ;;  %v2130_v33 = vsel %vm2056_vm9, %v2047_v21, %v7611_v17  ;;  %v7612_v58 = vld [vmem:[#allocation72_spill] sm:$0xff] }
 0x2e1   :  { %3204 = vst.msk [vmem:[#allocation10 + $0x50] sm:$0xff] %vm2056_vm9, %v3122_v15  ;;  %v3123_v34 = vmax.f32 %v2829_v44, 0.0  ;;  %v1541_v14 = vpop.permute.xlu0 %1540  ;;  %1971 = vrot.lane.b32.xlu1 %v1890_v41, %s3874_s17  ;;  %v2985_v35 = vpop.f32.mrb[16].mxu1  ;;  %v2173_v39 = vsel %vm2139_vm10, %v2090_v1, %v7612_v58  ;;  %v6862_v17 = vld [vmem:[#allocation8] ss:$0 sm:$0xff] }
 0x2e2   :  { %v2986_v3 = vadd.f32 %v6289_v27, %v2985_v35  ;;  %v3536_v8 = vpop.f32.mrb[17].mxu1  ;;  %1931 = vrot.lane.b32.xlu0 %v1850_v60, %s3874_s17  ;;  %v2460_v25 = vsel %vm2388_vm13, %v2377_v43, %v1541_v14  ;;  %v3734_v43 = vld [vmem:[#allocation2 + $0x88] sm:$0xff]  }
 0x2e3   :  { %3205 = vst.msk [vmem:[#allocation10 + $0x58] sm:$0xff] %vm2056_vm9, %v3123_v34  ;;  %v1922_v42 = vpop.permute.xlu1 %1921  ;;  %v2988_v52 = vpop.f32.mrb[18].mxu1 }
 0x2e4   :  { %v2586_v19 = vsel %vm2554_vm15, %v2503_v57, %v1922_v42  ;;  %v3162_v31 = vmax.f32 %v2986_v3, 0.0  ;;  %v2989_v32 = vadd.f32 %v6289_v27, %v2988_v52  ;;  %v3537_v24 = vpop.f32.mrb[19].mxu1 }
 0x2e5   :  { %v1796_v62 = vpop.permute.xlu0 %1795  ;;  %3495 = vmatmul.mubr.msk.bf16.gmra.mrb[60].mxu0 %vm2664_vm0, %v2586_v19 }
 0x2e6   :  { %3498 = vmatprep.mubr.msk.bf16.mxu0 %vm3870_vm5, %v7392_v47  ;;  %3244 = vst.msk [vmem:[#allocation10 + $0x190] sm:$0xff] %vm2056_vm9, %v3162_v31  ;;  %v3163_v37 = vmax.f32 %v2989_v32, 0.0  ;;  %v2543_v45 = vsel %vm2471_vm14, %v2460_v25, %v1796_v62 }
 0x2e7   :  { %v1036_v11 = vpop.permute.xlu1 %1035 }
 0x2e8   :  { %3245 = vst.msk [vmem:[#allocation10 + $0x198] sm:$0xff] %vm2056_vm9, %v3163_v37  ;;  %v2213_v2 = vsel %vm2139_vm10, %v2130_v33, %v1036_v11  ;;  %v7613_v37 = vld [vmem:[#allocation107_spill] sm:$0xff] }
 0x2e9   :  { %v1962_v53 = vpop.permute.xlu0 %1961  ;;  %v2009_v11 = vsel %vm1973_vm8, %v3734_v43, %v7613_v37  ;;  %v7621_v43 = vld [vmem:[#allocation25_spill] sm:$0xff] }
 0x2ea   :  { %v2626_v7 = vsel %vm2554_vm15, %v2543_v45, %v1962_v53 }
 0x2eb   :  { %3575 = vmatmul.mubr.msk.bf16.gmra.mrb[56].mxu1 %vm2664_vm0, %v2626_v7  ;;  %v1293_v20 = vpop.permute.xlu1 %1292  ;;  %v7614_v7 = vld [vmem:[#allocation143_spill] sm:$0xff] }
 0x2ec   :  { %3578 = vmatprep.mubr.msk.bf16.mxu1 %vm3870_vm5, %v7392_v47  ;;  %v2296_v46 = vsel %vm2222_vm11, %v2213_v2, %v1293_v20  ;;  %v2092_v20 = vsel %vm2056_vm9, %v2009_v11, %v7614_v7  ;;  %v7617_v2 = vld [vmem:[#allocation20_spill] sm:$0xff] }
 0x2ed   :  { %v1253_v5 = vpop.permute.xlu0 %1252 }
 0x2ee   :  { %v2256_v61 = vsel %vm2222_vm11, %v2173_v39, %v1253_v5 }
 0x2ef   :  { %v1459_v59 = vpop.permute.xlu1 %1458 }
 0x2f0   :  { %v2379_v60 = vsel %vm2305_vm12, %v2296_v46, %v1459_v59  ;;  %v7615_v59 = vld [vmem:[#allocation160_spill] sm:$0xff] }
 0x2f1   :  { %v1419_v10 = vpop.permute.xlu0 %1418 }
 0x2f2   :  { %v2339_v12 = vsel %vm2305_vm12, %v2256_v61, %v1419_v10  ;;  %v2175_v10 = vsel %vm2139_vm10, %v2092_v20, %v7615_v59 }
 0x2f3   :  { %v1543_v54 = vpop.permute.xlu1 %1542 }
 0x2f4   :  { %v2993_v6 = vpop.f32.mrb[20].mxu1  ;;  %v2462_v55 = vsel %vm2388_vm13, %v2379_v60, %v1543_v54 }
 0x2f5   :  { %v1503_v30 = vpop.permute.xlu0 %1502  ;;  %v2994_v22 = vadd.f32 %v6289_v27, %v2993_v6  ;;  %v3540_v51 = vpop.f32.mrb[21].mxu1 }
 0x2f6   :  { %v2833_v29 = vpop.f32.mrb[24].mxu0  ;;  %v2996_v16 = vpop.f32.mrb[22].mxu1  ;;  %v2422_v42 = vsel %vm2388_vm13, %v2339_v12, %v1503_v30  ;;  %v3735_v51 = vld [vmem:[#allocation2 + $0x128] sm:$0xff]  }
 0x2f7   :  { %v2834_v41 = vadd.f32 %v6289_v27, %v2833_v29  ;;  %v3164_v9 = vmax.f32 %v2994_v22, 0.0  ;;  %v3460_v18 = vpop.f32.mrb[25].mxu0  ;;  %v2997_v15 = vadd.f32 %v6289_v27, %v2996_v16  ;;  %v1798_v44 = vpop.permute.xlu1 %1797  ;;  %v2049_v1 = vsel %vm1973_vm8, %v3735_v51, %v7616_v49 }
 0x2f8   :  { %v2836_v13 = vpop.f32.mrb[26].mxu0  ;;  %v3541_v63 = vpop.f32.mrb[23].mxu1  ;;  %v2545_v3 = vsel %vm2471_vm14, %v2462_v55, %v1798_v44 }
 0x2f9   :  { %v3124_v26 = vmax.f32 %v2834_v41, 0.0  ;;  %3246 = vst.msk [vmem:[#allocation10 + $0x1a0] sm:$0xff] %vm2056_vm9, %v3164_v9  ;;  %v2837_v34 = vadd.f32 %v6289_v27, %v2836_v13  ;;  %v3165_v14 = vmax.f32 %v2997_v15, 0.0  ;;  %v3461_v38 = vpop.f32.mrb[27].mxu0  ;;  %v1758_v35 = vpop.permute.xlu0 %1757  ;;  %v2132_v41 = vsel %vm2056_vm9, %v2049_v1, %v7617_v2 }
 0x2fa   :  { %v2505_v23 = vsel %vm2471_vm14, %v2422_v42, %v1758_v35  ;;  %v3737_v42 = vld [vmem:[#allocation2 + $0x90] sm:$0xff]  }
 0x2fb   :  { %3206 = vst.msk [vmem:[#allocation10 + $0x60] sm:$0xff] %vm2056_vm9, %v3124_v26  ;;  %v3125_v57 = vmax.f32 %v2837_v34, 0.0  ;;  %3247 = vst.msk [vmem:[#allocation10 + $0x1a8] sm:$0xff] %vm2056_vm9, %v3165_v14  ;;  %v1964_v8 = vpop.permute.xlu1 %1963 }
 0x2fc   :  { %v2628_v56 = vsel %vm2554_vm15, %v2545_v3, %v1964_v8 }
 0x2fd   :  { %3207 = vst.msk [vmem:[#allocation10 + $0x68] sm:$0xff] %vm2056_vm9, %v3125_v57  ;;  %v1924_v52 = vpop.permute.xlu0 %1923  ;;  %3579 = vmatmul.mubr.msk.bf16.gmra.mrb[60].mxu1 %vm2664_vm0, %v2628_v56  ;;  %v7618_v56 = vld [vmem:[#allocation113_spill] sm:$0xff] }
 0x2fe   :  { %v2588_v19 = vsel %vm2554_vm15, %v2505_v23, %v1924_v52  ;;  %3582 = vmatprep.mubr.msk.bf16.mxu1 %vm3870_vm5, %v7392_v47  ;;  %v2011_v23 = vsel %vm1973_vm8, %v3737_v42, %v7618_v56  ;;  %v3738_v52 = vld [vmem:[#allocation2 + $0x130] sm:$0xff]  }
 0x2ff   :  { %3499 = vmatmul.mubr.msk.bf16.gmra.mrb[64].mxu0 %vm2664_vm0, %v2588_v19  ;;  %v1255_v50 = vpop.permute.xlu1 %1254  ;;  %v7619_v19 = vld [vmem:[#allocation133_spill] sm:$0xff] }
 0x300   :  { %3502 = vmatprep.mubr.msk.bf16.mxu0 %vm3870_vm5, %v7392_v47  ;;  %v2258_v36 = vsel %vm2222_vm11, %v2175_v10, %v1255_v50  ;;  %v2051_v50 = vsel %vm1973_vm8, %v3738_v52, %v7619_v19  ;;  %v7622_v10 = vld [vmem:[#allocation161_spill] sm:$0xff] }
 0x301   :  { %v1038_v31 = vpop.permute.xlu0 %1037  ;;  %v2134_v37 = vsel %vm2056_vm9, %v2051_v50, %v7621_v43 }
 0x302   :  { %v2215_v15 = vsel %vm2139_vm10, %v2132_v41, %v1038_v31 }
 0x303   :  { %v1421_v32 = vpop.permute.xlu1 %1420 }
 0x304   :  { %v2341_v0 = vsel %vm2305_vm12, %v2258_v36, %v1421_v32 }
 0x305   :  { %v1295_v24 = vpop.permute.xlu0 %1294 }
 0x306   :  { %v2298_v13 = vsel %vm2222_vm11, %v2215_v15, %v1295_v24 }
 0x307   :  { %v1505_v62 = vpop.permute.xlu1 %1504 }
 0x308   :  { %v2841_v28 = vpop.f32.mrb[28].mxu0  ;;  %v2424_v30 = vsel %vm2388_vm13, %v2341_v0, %v1505_v62  ;;  %v7620_v62 = vld [vmem:[#allocation142_spill] sm:$0xff] }
 0x309   :  { %v1461_v25 = vpop.permute.xlu0 %1460  ;;  %v2842_v45 = vadd.f32 %v6289_v27, %v2841_v28  ;;  %v3464_v53 = vpop.f32.mrb[29].mxu0  ;;  %v2094_v28 = vsel %vm2056_vm9, %v2011_v23, %v7620_v62  ;;  %v7626_v62 = vld [vmem:[#allocation132_spill] sm:$0xff] }
 0x30a   :  { %v2844_v5 = vpop.f32.mrb[30].mxu0  ;;  %v2381_v63 = vsel %vm2305_vm12, %v2298_v13, %v1461_v25 }
 0x30b   :  { %v3126_v54 = vmax.f32 %v2842_v45, 0.0  ;;  %v2845_v6 = vadd.f32 %v6289_v27, %v2844_v5  ;;  %v1760_v4 = vpop.permute.xlu1 %1759  ;;  %v3465_v40 = vpop.f32.mrb[31].mxu0 }
 0x30c   :  { %v2507_v27 = vsel %vm2471_vm14, %v2424_v30, %v1760_v4 }
 0x30d   :  { %3208 = vst.msk [vmem:[#allocation10 + $0x70] sm:$0xff] %vm2056_vm9, %v3126_v54  ;;  %v3127_v48 = vmax.f32 %v2845_v6, 0.0  ;;  %v1545_v21 = vpop.permute.xlu0 %1544  ;;  %v3001_v22 = vpop.f32.mrb[24].mxu1  ;;  %v2177_v54 = vsel %vm2139_vm10, %v2094_v28, %v7622_v10 }
 0x30e   :  { %v3002_v33 = vadd.f32 %v6862_v17, %v3001_v22  ;;  %v3544_v29 = vpop.f32.mrb[25].mxu1  ;;  %v2464_v34 = vsel %vm2388_vm13, %v2381_v63, %v1545_v21  ;;  %v3739_v63 = vld [vmem:[#allocation2 + $0x98] sm:$0xff]  }
 0x30f   :  { %3209 = vst.msk [vmem:[#allocation10 + $0x78] sm:$0xff] %vm2056_vm9, %v3127_v48  ;;  %v1926_v16 = vpop.permute.xlu1 %1925  ;;  %v3004_v9 = vpop.f32.mrb[26].mxu1 }
 0x310   :  { %v2590_v18 = vsel %vm2554_vm15, %v2507_v27, %v1926_v16  ;;  %v3166_v44 = vmax.f32 %v3002_v33, 0.0  ;;  %v3005_v58 = vadd.f32 %v6862_v17, %v3004_v9  ;;  %v3545_v39 = vpop.f32.mrb[27].mxu1 }
 0x311   :  { %v1800_v46 = vpop.permute.xlu0 %1799  ;;  %3503 = vmatmul.mubr.msk.bf16.gmra.mrb[68].mxu0 %vm2664_vm0, %v2590_v18 }
 0x312   :  { %3506 = vmatprep.mubr.msk.bf16.mxu0 %vm3870_vm5, %v7392_v47  ;;  %3248 = vst.msk [vmem:[#allocation10 + $0x1b0] sm:$0xff] %vm2056_vm9, %v3166_v44  ;;  %v3167_v60 = vmax.f32 %v3005_v58, 0.0  ;;  %v2547_v14 = vsel %vm2471_vm14, %v2464_v34, %v1800_v46 }
 0x313   :  { %v1040_v26 = vpop.permute.xlu1 %1039 }
 0x314   :  { %3249 = vst.msk [vmem:[#allocation10 + $0x1b8] sm:$0xff] %vm2056_vm9, %v3167_v60  ;;  %v2217_v45 = vsel %vm2139_vm10, %v2134_v37, %v1040_v26  ;;  %v7623_v60 = vld [vmem:[#allocation111_spill] sm:$0xff] }
 0x315   :  { %v1966_v38 = vpop.permute.xlu0 %1965  ;;  %v2013_v26 = vsel %vm1973_vm8, %v3739_v63, %v7623_v60 }
 0x316   :  { %v2630_v35 = vsel %vm2554_vm15, %v2547_v14, %v1966_v38 }
 0x317   :  { %3583 = vmatmul.mubr.msk.bf16.gmra.mrb[64].mxu1 %vm2664_vm0, %v2630_v35  ;;  %v1297_v61 = vpop.permute.xlu1 %1296  ;;  %v7624_v35 = vld [vmem:[#allocation145_spill] sm:$0xff] }
 0x318   :  { %3586 = vmatprep.mubr.msk.bf16.mxu1 %vm3870_vm5, %v7392_v47  ;;  %v2300_v6 = vsel %vm2222_vm11, %v2217_v45, %v1297_v61  ;;  %v2096_v61 = vsel %vm2056_vm9, %v2013_v26, %v7624_v35  ;;  %v7627_v45 = vld [vmem:[#allocation155_spill] sm:$0xff] }
 0x319   :  { %v1257_v55 = vpop.permute.xlu0 %1256 }
 0x31a   :  { %v2260_v51 = vsel %vm2222_vm11, %v2177_v54, %v1257_v55 }
 0x31b   :  { %v1463_v12 = vpop.permute.xlu1 %1462 }
 0x31c   :  { %v2383_v36 = vsel %vm2305_vm12, %v2300_v6, %v1463_v12  ;;  %v7625_v12 = vld [vmem:[#allocation65_spill] sm:$0xff] }
 0x31d   :  { %v1423_v57 = vpop.permute.xlu0 %1422 }
 0x31e   :  { %v2343_v1 = vsel %vm2305_vm12, %v2260_v51, %v1423_v57  ;;  %v2179_v57 = vsel %vm2139_vm10, %v2096_v61, %v7625_v12  ;;  %v7632_v12 = vld [vmem:[#allocation162_spill] sm:$0xff] }
 0x31f   :  { %v1547_v3 = vpop.permute.xlu1 %1546 }
 0x320   :  { %v3009_v8 = vpop.f32.mrb[28].mxu1  ;;  %v2466_v49 = vsel %vm2388_vm13, %v2383_v36, %v1547_v3 }
 0x321   :  { %v1507_v31 = vpop.permute.xlu0 %1506  ;;  %v3010_v32 = vadd.f32 %v6862_v17, %v3009_v8  ;;  %v3548_v24 = vpop.f32.mrb[29].mxu1 }
 0x322   :  { %v2849_v11 = vpop.f32.mrb[32].mxu0  ;;  %v3012_v25 = vpop.f32.mrb[30].mxu1  ;;  %v2426_v16 = vsel %vm2388_vm13, %v2343_v1, %v1507_v31  ;;  %v3740_v24 = vld [vmem:[#allocation2 + $0x138] sm:$0xff]  }
 0x323   :  { %v2850_v53 = vadd.f32 %v6862_v17, %v2849_v11  ;;  %v3168_v7 = vmax.f32 %v3010_v32, 0.0  ;;  %v3468_v20 = vpop.f32.mrb[33].mxu0  ;;  %v3013_v5 = vadd.f32 %v6862_v17, %v3012_v25  ;;  %v1802_v59 = vpop.permute.xlu1 %1801  ;;  %v2053_v28 = vsel %vm1973_vm8, %v3740_v24, %v7626_v62 }
 0x324   :  { %v2852_v4 = vpop.f32.mrb[34].mxu0  ;;  %v3549_v40 = vpop.f32.mrb[31].mxu1  ;;  %v2549_v33 = vsel %vm2471_vm14, %v2466_v49, %v1802_v59 }
 0x325   :  { %v3128_v0 = vmax.f32 %v2850_v53, 0.0  ;;  %3250 = vst.msk [vmem:[#allocation10 + $0x1c0] sm:$0xff] %vm2056_vm9, %v3168_v7  ;;  %v2853_v48 = vadd.f32 %v6862_v17, %v2852_v4  ;;  %v3169_v21 = vmax.f32 %v3013_v5, 0.0  ;;  %v3469_v30 = vpop.f32.mrb[35].mxu0  ;;  %v1762_v22 = vpop.permute.xlu0 %1761  ;;  %v2136_v53 = vsel %vm2056_vm9, %v2053_v28, %v7627_v45 }
 0x326   :  { %v2509_v41 = vsel %vm2471_vm14, %v2426_v16, %v1762_v22  ;;  %v3741_v16 = vld [vmem:[#allocation2 + $0xa0] sm:$0xff]  }
 0x327   :  { %3210 = vst.msk [vmem:[#allocation10 + $0x80] sm:$0xff] %vm2056_vm9, %v3128_v0  ;;  %v3129_v27 = vmax.f32 %v2853_v48, 0.0  ;;  %3251 = vst.msk [vmem:[#allocation10 + $0x1c8] sm:$0xff] %vm2056_vm9, %v3169_v21  ;;  %v1968_v29 = vpop.permute.xlu1 %1967 }
 0x328   :  { %v2632_v2 = vsel %vm2554_vm15, %v2549_v33, %v1968_v29 }
 0x329   :  { %3211 = vst.msk [vmem:[#allocation10 + $0x88] sm:$0xff] %vm2056_vm9, %v3129_v27  ;;  %v1928_v9 = vpop.permute.xlu0 %1927  ;;  %3587 = vmatmul.mubr.msk.bf16.gmra.mrb[68].mxu1 %vm2664_vm0, %v2632_v2  ;;  %v7628_v2 = vld [vmem:[#allocation116_spill] sm:$0xff] }
 0x32a   :  { %v2592_v18 = vsel %vm2554_vm15, %v2509_v41, %v1928_v9  ;;  %3590 = vmatprep.mubr.msk.bf16.mxu1 %vm3870_vm5, %v7392_v47  ;;  %v2015_v41 = vsel %vm1973_vm8, %v3741_v16, %v7628_v2  ;;  %v3742_v9 = vld [vmem:[#allocation2 + $0x140] sm:$0xff]  }
 0x32b   :  { %3507 = vmatmul.mubr.msk.bf16.gmra.mrb[72].mxu0 %vm2664_vm0, %v2592_v18  ;;  %v1259_v15 = vpop.permute.xlu1 %1258  ;;  %v7629_v18 = vld [vmem:[#allocation134_spill] sm:$0xff] }
 0x32c   :  { %3510 = vmatprep.mubr.msk.bf16.mxu0 %vm3870_vm5, %v7392_v47  ;;  %v2262_v23 = vsel %vm2222_vm11, %v2179_v57, %v1259_v15  ;;  %v2055_v15 = vsel %vm1973_vm8, %v3742_v9, %v7629_v18 }
 0x32d   :  { %v1042_v44 = vpop.permute.xlu0 %1041 }
 0x32e   :  { %v2219_v5 = vsel %vm2139_vm10, %v2136_v53, %v1042_v44 }
 0x32f   :  { %v1425_v58 = vpop.permute.xlu1 %1424 }
 0x330   :  { %v2345_v52 = vsel %vm2305_vm12, %v2262_v23, %v1425_v58 }
 0x331   :  { %v1299_v39 = vpop.permute.xlu0 %1298 }
 0x332   :  { %v2302_v4 = vsel %vm2222_vm11, %v2219_v5, %v1299_v39 }
 0x333   :  { %v1509_v46 = vpop.permute.xlu1 %1508 }
 0x334   :  { %v2857_v13 = vpop.f32.mrb[36].mxu0  ;;  %v2428_v31 = vsel %vm2388_vm13, %v2345_v52, %v1509_v46  ;;  %v7630_v46 = vld [vmem:[#allocation144_spill] sm:$0xff] }
 0x335   :  { %v1465_v34 = vpop.permute.xlu0 %1464  ;;  %v2858_v14 = vadd.f32 %v6862_v17, %v2857_v13  ;;  %v3472_v38 = vpop.f32.mrb[37].mxu0  ;;  %v7631_v13 = vld [vmem:[#allocation154_spill] sm:$0xff] }
 0x336   :  { %v2860_v55 = vpop.f32.mrb[38].mxu0  ;;  %v2385_v40 = vsel %vm2305_vm12, %v2302_v4, %v1465_v34  ;;  %v2138_v63 = vsel %vm2056_vm9, %v2055_v15, %v7631_v13 }
 0x337   :  { %v3130_v3 = vmax.f32 %v2858_v14, 0.0  ;;  %v2861_v8 = vadd.f32 %v6862_v17, %v2860_v55  ;;  %v1764_v42 = vpop.permute.xlu1 %1763  ;;  %v3473_v56 = vpop.f32.mrb[39].mxu0 }
 0x338   :  { %v2511_v43 = vsel %vm2471_vm14, %v2428_v31, %v1764_v42 }
 0x339   :  { %3212 = vst.msk [vmem:[#allocation10 + $0x90] sm:$0xff] %vm2056_vm9, %v3130_v3  ;;  %v3131_v19 = vmax.f32 %v2861_v8, 0.0  ;;  %v1549_v50 = vpop.permute.xlu0 %1548  ;;  %v3017_v32 = vpop.f32.mrb[32].mxu1 }
 0x33a   :  { %v3018_v37 = vadd.f32 %v6862_v17, %v3017_v32  ;;  %v3552_v11 = vpop.f32.mrb[33].mxu1  ;;  %v2468_v48 = vsel %vm2388_vm13, %v2385_v40, %v1549_v50 }
 0x33b   :  { %3213 = vst.msk [vmem:[#allocation10 + $0x98] sm:$0xff] %vm2056_vm9, %v3131_v19  ;;  %v1930_v25 = vpop.permute.xlu1 %1929  ;;  %v3020_v7 = vpop.f32.mrb[34].mxu1 }
 0x33c   :  { %v2594_v20 = vsel %vm2554_vm15, %v2511_v43, %v1930_v25  ;;  %v3170_v59 = vmax.f32 %v3018_v37, 0.0  ;;  %v3021_v10 = vadd.f32 %v6862_v17, %v3020_v7  ;;  %v3553_v54 = vpop.f32.mrb[35].mxu1 }
 0x33d   :  { %v1804_v6 = vpop.permute.xlu0 %1803  ;;  %3511 = vmatmul.mubr.msk.bf16.gmra.mrb[76].mxu0 %vm2664_vm0, %v2594_v20 }
 0x33e   :  { %3514 = vmatprep.mubr.msk.bf16.mxu0 %vm3870_vm5, %v7392_v47  ;;  %3252 = vst.msk [vmem:[#allocation10 + $0x1d0] sm:$0xff] %vm2056_vm9, %v3170_v59  ;;  %v3171_v36 = vmax.f32 %v3021_v10, 0.0  ;;  %v2551_v21 = vsel %vm2471_vm14, %v2468_v48, %v1804_v6 }
 0x33f   :  { %v1044_v0 = vpop.permute.xlu1 %1043 }
 0x340   :  { %3253 = vst.msk [vmem:[#allocation10 + $0x1d8] sm:$0xff] %vm2056_vm9, %v3171_v36  ;;  %v2221_v34 = vsel %vm2139_vm10, %v2138_v63, %v1044_v0 }
 0x341   :  { %v1970_v30 = vpop.permute.xlu0 %1969 }
 0x342   :  { %v2634_v22 = vsel %vm2554_vm15, %v2551_v21, %v1970_v30 }
 0x343   :  { %3591 = vmatmul.mubr.msk.bf16.gmra.mrb[72].mxu1 %vm2664_vm0, %v2634_v22  ;;  %v1301_v51 = vpop.permute.xlu1 %1300 }
 0x344   :  { %3594 = vmatprep.mubr.msk.bf16.mxu1 %vm3870_vm5, %v7392_v47  ;;  %v2098_v47 = vsel %vm2056_vm9, %v2015_v41, %v7630_v46  ;;  %v2304_v3 = vsel %vm2222_vm11, %v2221_v34, %v1301_v51 }
 0x345   :  { %v1261_v49 = vpop.permute.xlu0 %1260  ;;  %v2181_v57 = vsel %vm2139_vm10, %v2098_v47, %v7632_v12 }
 0x346   :  { %v2264_v32 = vsel %vm2222_vm11, %v2181_v57, %v1261_v49 }
 0x347   :  { %v1467_v1 = vpop.permute.xlu1 %1466 }
 0x348   :  { %v2387_v56 = vsel %vm2305_vm12, %v2304_v3, %v1467_v1 }
 0x349   :  { %v1427_v27 = vpop.permute.xlu0 %1426 }
 0x34a   :  { %v2347_v62 = vsel %vm2305_vm12, %v2264_v32, %v1427_v27 }
 0x34b   :  { %v1551_v33 = vpop.permute.xlu1 %1550 }
 0x34c   :  { %v3025_v29 = vpop.f32.mrb[36].mxu1  ;;  %v2470_v24 = vsel %vm2388_vm13, %v2387_v56, %v1551_v33 }
 0x34d   :  { %v1511_v44 = vpop.permute.xlu0 %1510  ;;  %v3026_v58 = vadd.f32 %v6862_v17, %v3025_v29  ;;  %v3556_v39 = vpop.f32.mrb[37].mxu1 }
 0x34e   :  { %v2865_v60 = vpop.f32.mrb[40].mxu0  ;;  %v3028_v26 = vpop.f32.mrb[38].mxu1  ;;  %v2430_v11 = vsel %vm2388_vm13, %v2347_v62, %v1511_v44 }
 0x34f   :  { %v2866_v14 = vadd.f32 %v6862_v17, %v2865_v60  ;;  %v3172_v38 = vmax.f32 %v3026_v58, 0.0  ;;  %v3476_v35 = vpop.f32.mrb[41].mxu0  ;;  %v3029_v61 = vadd.f32 %v6862_v17, %v3028_v26  ;;  %v1806_v55 = vpop.permute.xlu1 %1805 }
 0x350   :  { %v2868_v8 = vpop.f32.mrb[42].mxu0  ;;  %v3557_v42 = vpop.f32.mrb[39].mxu1  ;;  %v2553_v43 = vsel %vm2471_vm14, %v2470_v24, %v1806_v55 }
 0x351   :  { %v3132_v23 = vmax.f32 %v2866_v14, 0.0  ;;  %3254 = vst.msk [vmem:[#allocation10 + $0x1e0] sm:$0xff] %vm2056_vm9, %v3172_v38  ;;  %v2869_v52 = vadd.f32 %v6862_v17, %v2868_v8  ;;  %v3173_v19 = vmax.f32 %v3029_v61, 0.0  ;;  %v3477_v50 = vpop.f32.mrb[43].mxu0  ;;  %v1766_v31 = vpop.permute.xlu0 %1765 }
 0x352   :  { %v2513_v45 = vsel %vm2471_vm14, %v2430_v11, %v1766_v31 }
 0x353   :  { %3214 = vst.msk [vmem:[#allocation10 + $0xa0] sm:$0xff] %vm2056_vm9, %v3132_v23  ;;  %v3133_v28 = vmax.f32 %v2869_v52, 0.0  ;;  %3255 = vst.msk [vmem:[#allocation10 + $0x1e8] sm:$0xff] %vm2056_vm9, %v3173_v19  ;;  %v1972_v37 = vpop.permute.xlu1 %1971 }
 0x354   :  { %v2636_v25 = vsel %vm2554_vm15, %v2553_v43, %v1972_v37 }
 0x355   :  { %3215 = vst.msk [vmem:[#allocation10 + $0xa8] sm:$0xff] %vm2056_vm9, %v3133_v28  ;;  %v1932_v53 = vpop.permute.xlu0 %1931  ;;  %3595 = vmatmul.mubr.msk.bf16.gmra.mrb[76].mxu1 %vm2664_vm0, %v2636_v25 }
 0x356   :  { %v2596_v7 = vsel %vm2554_vm15, %v2513_v45, %v1932_v53 }
 0x357   :  { %3515 = vmatmul.mubr.msk.bf16.gmra.mrb[80].mxu0 %vm2664_vm0, %v2596_v7 }
 0x360   :  { %v2873_v20 = vpop.f32.mrb[44].mxu0 }
 0x361   :  { %v2874_v5 = vadd.f32 %v6862_v17, %v2873_v20  ;;  %v3480_v59 = vpop.f32.mrb[45].mxu0 }
 0x362   :  { %v2876_v10 = vpop.f32.mrb[46].mxu0 }
 0x363   :  { %v3134_v54 = vmax.f32 %v2874_v5, 0.0  ;;  %v2877_v6 = vadd.f32 %v6862_v17, %v2876_v10  ;;  %v3481_v4 = vpop.f32.mrb[47].mxu0 }
 0x365   :  { %3216 = vst.msk [vmem:[#allocation10 + $0xb0] sm:$0xff] %vm2056_vm9, %v3134_v54  ;;  %v3135_v40 = vmax.f32 %v2877_v6, 0.0 }
 0x366   :  { %v3033_v36 = vpop.f32.mrb[40].mxu1 }
 0x367   :  { %3217 = vst.msk [vmem:[#allocation10 + $0xb8] sm:$0xff] %vm2056_vm9, %v3135_v40  ;;  %v3034_v0 = vadd.f32 %v6862_v17, %v3033_v36  ;;  %v3560_v48 = vpop.f32.mrb[41].mxu1 }
 0x368   :  { %v3036_v21 = vpop.f32.mrb[42].mxu1 }
 0x369   :  { %v3174_v30 = vmax.f32 %v3034_v0, 0.0  ;;  %v3037_v22 = vadd.f32 %v6862_v17, %v3036_v21  ;;  %v3561_v51 = vpop.f32.mrb[43].mxu1 }
 0x36b   :  { %3256 = vst.msk [vmem:[#allocation10 + $0x1f0] sm:$0xff] %vm2056_vm9, %v3174_v30  ;;  %v3175_v49 = vmax.f32 %v3037_v22, 0.0 }
 0x36d   :  { %3257 = vst.msk [vmem:[#allocation10 + $0x1f8] sm:$0xff] %vm2056_vm9, %v3175_v49 }
 0x378   :  { %v3041_v1 = vpop.f32.mrb[44].mxu1 }
 0x379   :  { %v3042_v27 = vadd.f32 %v6862_v17, %v3041_v1  ;;  %v3564_v33 = vpop.f32.mrb[45].mxu1 }
 0x37a   :  { %v2881_v29 = vpop.f32.mrb[48].mxu0  ;;  %v3044_v16 = vpop.f32.mrb[46].mxu1 }
 0x37b   :  { %v2882_v2 = vadd.f32 %v6862_v17, %v2881_v29  ;;  %v3176_v41 = vmax.f32 %v3042_v27, 0.0  ;;  %v3484_v9 = vpop.f32.mrb[49].mxu0  ;;  %v3045_v18 = vadd.f32 %v6862_v17, %v3044_v16  ;;  %v3565_v15 = vpop.f32.mrb[47].mxu1 }
 0x37c   :  { %v2884_v44 = vpop.f32.mrb[50].mxu0 }
 0x37d   :  { %v3136_v58 = vmax.f32 %v2882_v2, 0.0  ;;  %3258 = vst.msk [vmem:[#allocation10 + $0x200] sm:$0xff] %vm2056_vm9, %v3176_v41  ;;  %v2885_v39 = vadd.f32 %v6862_v17, %v2884_v44  ;;  %v3177_v46 = vmax.f32 %v3045_v18, 0.0  ;;  %v3485_v47 = vpop.f32.mrb[51].mxu0 }
 0x37f   :  { %3218 = vst.msk [vmem:[#allocation10 + $0xc0] sm:$0xff] %vm2056_vm9, %v3136_v58  ;;  %v3137_v13 = vmax.f32 %v2885_v39, 0.0  ;;  %3259 = vst.msk [vmem:[#allocation10 + $0x208] sm:$0xff] %vm2056_vm9, %v3177_v46 }
 0x381   :  { %3219 = vst.msk [vmem:[#allocation10 + $0xc8] sm:$0xff] %vm2056_vm9, %v3137_v13 }
 0x38c   :  { %v2889_v63 = vpop.f32.mrb[52].mxu0 }
 0x38d   :  { %v2890_v60 = vadd.f32 %v6862_v17, %v2889_v63  ;;  %v3488_v26 = vpop.f32.mrb[53].mxu0 }
 0x38e   :  { %v2892_v34 = vpop.f32.mrb[54].mxu0 }
 0x38f   :  { %v3138_v14 = vmax.f32 %v2890_v60, 0.0  ;;  %v2893_v38 = vadd.f32 %v6862_v17, %v2892_v34  ;;  %v3489_v35 = vpop.f32.mrb[55].mxu0 }
 0x391   :  { %3220 = vst.msk [vmem:[#allocation10 + $0xd0] sm:$0xff] %vm2056_vm9, %v3138_v14  ;;  %v3139_v61 = vmax.f32 %v2893_v38, 0.0 }
 0x392   :  { %v3049_v55 = vpop.f32.mrb[48].mxu1 }
 0x393   :  { %3221 = vst.msk [vmem:[#allocation10 + $0xd8] sm:$0xff] %vm2056_vm9, %v3139_v61  ;;  %v3050_v12 = vadd.f32 %v6862_v17, %v3049_v55  ;;  %v3568_v57 = vpop.f32.mrb[49].mxu1 }
 0x394   :  { %v3052_v3 = vpop.f32.mrb[50].mxu1 }
 0x395   :  { %v3178_v8 = vmax.f32 %v3050_v12, 0.0  ;;  %v3053_v42 = vadd.f32 %v6862_v17, %v3052_v3  ;;  %v3569_v56 = vpop.f32.mrb[51].mxu1 }
 0x397   :  { %3260 = vst.msk [vmem:[#allocation10 + $0x210] sm:$0xff] %vm2056_vm9, %v3178_v8  ;;  %v3179_v23 = vmax.f32 %v3053_v42, 0.0 }
 0x399   :  { %3261 = vst.msk [vmem:[#allocation10 + $0x218] sm:$0xff] %vm2056_vm9, %v3179_v23 }
 0x3a4   :  { %v3057_v52 = vpop.f32.mrb[52].mxu1 }
 0x3a5   :  { %v3058_v19 = vadd.f32 %v6862_v17, %v3057_v52  ;;  %v3572_v50 = vpop.f32.mrb[53].mxu1 }
 0x3a6   :  { %v2897_v31 = vpop.f32.mrb[56].mxu0  ;;  %v3060_v32 = vpop.f32.mrb[54].mxu1 }
 0x3a7   :  { %v2898_v24 = vadd.f32 %v6862_v17, %v2897_v31  ;;  %v3180_v62 = vmax.f32 %v3058_v19, 0.0  ;;  %v3492_v28 = vpop.f32.mrb[57].mxu0  ;;  %v3061_v43 = vadd.f32 %v6862_v17, %v3060_v32  ;;  %v3573_v37 = vpop.f32.mrb[55].mxu1 }
 0x3a8   :  { %v2900_v11 = vpop.f32.mrb[58].mxu0 }
 0x3a9   :  { %v3140_v25 = vmax.f32 %v2898_v24, 0.0  ;;  %3262 = vst.msk [vmem:[#allocation10 + $0x220] sm:$0xff] %vm2056_vm9, %v3180_v62  ;;  %v2901_v45 = vadd.f32 %v6862_v17, %v2900_v11  ;;  %v3181_v53 = vmax.f32 %v3061_v43, 0.0  ;;  %v3493_v7 = vpop.f32.mrb[59].mxu0 }
 0x3ab   :  { %3222 = vst.msk [vmem:[#allocation10 + $0xe0] sm:$0xff] %vm2056_vm9, %v3140_v25  ;;  %v3141_v20 = vmax.f32 %v2901_v45, 0.0  ;;  %3263 = vst.msk [vmem:[#allocation10 + $0x228] sm:$0xff] %vm2056_vm9, %v3181_v53 }
 0x3ad   :  { %3223 = vst.msk [vmem:[#allocation10 + $0xe8] sm:$0xff] %vm2056_vm9, %v3141_v20 }
 0x3b8   :  { %v2905_v5 = vpop.f32.mrb[60].mxu0 }
 0x3b9   :  { %v2906_v59 = vadd.f32 %v6862_v17, %v2905_v5  ;;  %v3496_v10 = vpop.f32.mrb[61].mxu0 }
 0x3ba   :  { %v2908_v54 = vpop.f32.mrb[62].mxu0 }
 0x3bb   :  { %v3142_v6 = vmax.f32 %v2906_v59, 0.0  ;;  %v2909_v4 = vadd.f32 %v6862_v17, %v2908_v54  ;;  %v3497_v40 = vpop.f32.mrb[63].mxu0 }
 0x3bd   :  { %3224 = vst.msk [vmem:[#allocation10 + $0xf0] sm:$0xff] %vm2056_vm9, %v3142_v6  ;;  %v3143_v36 = vmax.f32 %v2909_v4, 0.0 }
 0x3be   :  { %v3065_v0 = vpop.f32.mrb[56].mxu1 }
 0x3bf   :  { %3225 = vst.msk [vmem:[#allocation10 + $0xf8] sm:$0xff] %vm2056_vm9, %v3143_v36  ;;  %v3066_v48 = vadd.f32 %v6862_v17, %v3065_v0  ;;  %v3576_v21 = vpop.f32.mrb[57].mxu1 }
 0x3c0   :  { %v3068_v30 = vpop.f32.mrb[58].mxu1 }
 0x3c1   :  { %v3182_v22 = vmax.f32 %v3066_v48, 0.0  ;;  %v3069_v51 = vadd.f32 %v6862_v17, %v3068_v30  ;;  %v3577_v49 = vpop.f32.mrb[59].mxu1 }
 0x3c3   :  { %3264 = vst.msk [vmem:[#allocation10 + $0x230] sm:$0xff] %vm2056_vm9, %v3182_v22  ;;  %v3183_v1 = vmax.f32 %v3069_v51, 0.0 }
 0x3c5   :  { %3265 = vst.msk [vmem:[#allocation10 + $0x238] sm:$0xff] %vm2056_vm9, %v3183_v1 }
 0x3d0   :  { %v3073_v27 = vpop.f32.mrb[60].mxu1 }
 0x3d1   :  { %v3074_v33 = vadd.f32 %v6862_v17, %v3073_v27  ;;  %v3580_v29 = vpop.f32.mrb[61].mxu1 }
 0x3d2   :  { %v2913_v16 = vpop.f32.mrb[64].mxu0  ;;  %v3076_v2 = vpop.f32.mrb[62].mxu1 }
 0x3d3   :  { %v2914_v41 = vadd.f32 %v6862_v17, %v2913_v16  ;;  %v3184_v9 = vmax.f32 %v3074_v33, 0.0  ;;  %v3500_v18 = vpop.f32.mrb[65].mxu0  ;;  %v3077_v15 = vadd.f32 %v6862_v17, %v3076_v2  ;;  %v3581_v44 = vpop.f32.mrb[63].mxu1 }
 0x3d4   :  { %v2916_v58 = vpop.f32.mrb[66].mxu0 }
 0x3d5   :  { %v3144_v39 = vmax.f32 %v2914_v41, 0.0  ;;  %3266 = vst.msk [vmem:[#allocation10 + $0x240] sm:$0xff] %vm2056_vm9, %v3184_v9  ;;  %v2917_v46 = vadd.f32 %v6862_v17, %v2916_v58  ;;  %v3185_v47 = vmax.f32 %v3077_v15, 0.0  ;;  %v3501_v13 = vpop.f32.mrb[67].mxu0 }
 0x3d7   :  { %3226 = vst.msk [vmem:[#allocation10 + $0x100] sm:$0xff] %vm2056_vm9, %v3144_v39  ;;  %v3145_v63 = vmax.f32 %v2917_v46, 0.0  ;;  %3267 = vst.msk [vmem:[#allocation10 + $0x248] sm:$0xff] %vm2056_vm9, %v3185_v47 }
 0x3d9   :  { %3227 = vst.msk [vmem:[#allocation10 + $0x108] sm:$0xff] %vm2056_vm9, %v3145_v63 }
 0x3e4   :  { %v2921_v60 = vpop.f32.mrb[68].mxu0 }
 0x3e5   :  { %v2922_v26 = vadd.f32 %v6862_v17, %v2921_v60  ;;  %v3504_v34 = vpop.f32.mrb[69].mxu0 }
 0x3e6   :  { %v2924_v14 = vpop.f32.mrb[70].mxu0 }
 0x3e7   :  { %v3146_v38 = vmax.f32 %v2922_v26, 0.0  ;;  %v2925_v35 = vadd.f32 %v6862_v17, %v2924_v14  ;;  %v3505_v61 = vpop.f32.mrb[71].mxu0 }
 0x3e9   :  { %3228 = vst.msk [vmem:[#allocation10 + $0x110] sm:$0xff] %vm2056_vm9, %v3146_v38  ;;  %v3147_v55 = vmax.f32 %v2925_v35, 0.0 }
 0x3ea   :  { %v3081_v12 = vpop.f32.mrb[64].mxu1 }
 0x3eb   :  { %3229 = vst.msk [vmem:[#allocation10 + $0x118] sm:$0xff] %vm2056_vm9, %v3147_v55  ;;  %v3082_v57 = vadd.f32 %v6862_v17, %v3081_v12  ;;  %v3584_v3 = vpop.f32.mrb[65].mxu1 }
 0x3ec   :  { %v3084_v8 = vpop.f32.mrb[66].mxu1 }
 0x3ed   :  { %v3186_v42 = vmax.f32 %v3082_v57, 0.0  ;;  %v3085_v56 = vadd.f32 %v6862_v17, %v3084_v8  ;;  %v3585_v23 = vpop.f32.mrb[67].mxu1 }
 0x3ef   :  { %3268 = vst.msk [vmem:[#allocation10 + $0x250] sm:$0xff] %vm2056_vm9, %v3186_v42  ;;  %v3187_v52 = vmax.f32 %v3085_v56, 0.0 }
 0x3f1   :  { %3269 = vst.msk [vmem:[#allocation10 + $0x258] sm:$0xff] %vm2056_vm9, %v3187_v52 }
 0x3fc   :  { %v3089_v19 = vpop.f32.mrb[68].mxu1 }
 0x3fd   :  { %v3090_v50 = vadd.f32 %v6862_v17, %v3089_v19  ;;  %v3588_v31 = vpop.f32.mrb[69].mxu1 }
 0x3fe   :  { %v2929_v32 = vpop.f32.mrb[72].mxu0  ;;  %v3092_v24 = vpop.f32.mrb[70].mxu1 }
 0x3ff   :  { %v2930_v62 = vadd.f32 %v6862_v17, %v2929_v32  ;;  %v3188_v28 = vmax.f32 %v3090_v50, 0.0  ;;  %v3508_v43 = vpop.f32.mrb[73].mxu0  ;;  %v3093_v37 = vadd.f32 %v6862_v17, %v3092_v24  ;;  %v3589_v11 = vpop.f32.mrb[71].mxu1 }
 0x400   :  { %v2932_v25 = vpop.f32.mrb[74].mxu0 }
 0x401   :  { %v3148_v45 = vmax.f32 %v2930_v62, 0.0  ;;  %3270 = vst.msk [vmem:[#allocation10 + $0x260] sm:$0xff] %vm2056_vm9, %v3188_v28  ;;  %v2933_v53 = vadd.f32 %v6862_v17, %v2932_v25  ;;  %v3189_v7 = vmax.f32 %v3093_v37, 0.0  ;;  %v3509_v20 = vpop.f32.mrb[75].mxu0 }
 0x403   :  { %3230 = vst.msk [vmem:[#allocation10 + $0x120] sm:$0xff] %vm2056_vm9, %v3148_v45  ;;  %v3149_v5 = vmax.f32 %v2933_v53, 0.0  ;;  %3271 = vst.msk [vmem:[#allocation10 + $0x268] sm:$0xff] %vm2056_vm9, %v3189_v7 }
 0x405   :  { %3231 = vst.msk [vmem:[#allocation10 + $0x128] sm:$0xff] %vm2056_vm9, %v3149_v5 }
 0x410   :  { %v2937_v59 = vpop.f32.mrb[76].mxu0 }
 0x411   :  { %v2938_v10 = vadd.f32 %v6862_v17, %v2937_v59  ;;  %v3512_v54 = vpop.f32.mrb[77].mxu0 }
 0x412   :  { %v2940_v6 = vpop.f32.mrb[78].mxu0 }
 0x413   :  { %v3150_v4 = vmax.f32 %v2938_v10, 0.0  ;;  %v2941_v40 = vadd.f32 %v6862_v17, %v2940_v6  ;;  %v3513_v36 = vpop.f32.mrb[79].mxu0 }
 0x415   :  { %3232 = vst.msk [vmem:[#allocation10 + $0x130] sm:$0xff] %vm2056_vm9, %v3150_v4  ;;  %v3151_v0 = vmax.f32 %v2941_v40, 0.0 }
 0x416   :  { %v3097_v48 = vpop.f32.mrb[72].mxu1 }
 0x417   :  { %3233 = vst.msk [vmem:[#allocation10 + $0x138] sm:$0xff] %vm2056_vm9, %v3151_v0  ;;  %v3098_v21 = vadd.f32 %v6862_v17, %v3097_v48  ;;  %v3592_v30 = vpop.f32.mrb[73].mxu1 }
 0x418   :  { %v3100_v22 = vpop.f32.mrb[74].mxu1 }
 0x419   :  { %v3190_v51 = vmax.f32 %v3098_v21, 0.0  ;;  %v3101_v49 = vadd.f32 %v6862_v17, %v3100_v22  ;;  %v3593_v1 = vpop.f32.mrb[75].mxu1 }
 0x41b   :  { %3272 = vst.msk [vmem:[#allocation10 + $0x270] sm:$0xff] %vm2056_vm9, %v3190_v51  ;;  %v3191_v27 = vmax.f32 %v3101_v49, 0.0 }
 0x41d   :  { %3273 = vst.msk [vmem:[#allocation10 + $0x278] sm:$0xff] %vm2056_vm9, %v3191_v27 }
 0x428   :  { %v3105_v33 = vpop.f32.mrb[76].mxu1 }
 0x429   :  { %v3106_v29 = vadd.f32 %v6862_v17, %v3105_v33  ;;  %v3596_v16 = vpop.f32.mrb[77].mxu1 }
 0x42a   :  { %v2945_v2 = vpop.f32.mrb[80].mxu0  ;;  %v3108_v41 = vpop.f32.mrb[78].mxu1 }
 0x42b   :  { %v2946_v9 = vadd.f32 %v6862_v17, %v2945_v2  ;;  %v3192_v18 = vmax.f32 %v3106_v29, 0.0  ;;  %v3516_v15 = vpop.f32.mrb[81].mxu0  ;;  %v3109_v44 = vadd.f32 %v6862_v17, %v3108_v41  ;;  %v3597_v58 = vpop.f32.mrb[79].mxu1 }
 0x42c   :  { %v2948_v39 = vpop.f32.mrb[82].mxu0 }
 0x42d   :  { %v3152_v46 = vmax.f32 %v2946_v9, 0.0  ;;  %3274 = vst.msk [vmem:[#allocation10 + $0x280] sm:$0xff] %vm2056_vm9, %v3192_v18  ;;  %v2949_v47 = vadd.f32 %v6862_v17, %v2948_v39  ;;  %v3193_v13 = vmax.f32 %v3109_v44, 0.0  ;;  %v3517_v63 = vpop.f32.mrb[83].mxu0 }
 0x42f   :  { %3234 = vst.msk [vmem:[#allocation10 + $0x140] sm:$0xff] %vm2056_vm9, %v3152_v46  ;;  %v3153_v60 = vmax.f32 %v2949_v47, 0.0  ;;  %3275 = vst.msk [vmem:[#allocation10 + $0x288] sm:$0xff] %vm2056_vm9, %v3193_v13 }
 0x431   :  { %3235 = vst.msk [vmem:[#allocation10 + $0x148] sm:$0xff] %vm2056_vm9, %v3153_v60 }
 0x432   :  { %3842 = shalt.err (!%p3839_p10)
}
 0x433   :  { %s3843_s25 = scalar_lea.hbm %s7081_s4, 10496 }
 0x434   :  { %p3844_p11 = scmp.ne.s32.totalorder %s7081_s4, %s3843_s25  ;;  %p3847_p12 = scmp.lt.u32.totalorder %s3843_s25, %s7081_s4 }
 0x436   :  { %p3849_p13 = pnand %p3847_p12, %p3844_p11 }
 0x438   :  { %3852 = shalt.err (!%p3849_p13)
}
 0x439   :  { %s3877_s18 = smov 128  }
 0x43a   :  { %3287 = dma.vmem_to_hbm [thread:$0]  %s3282_s21, 10496, %s7081_s4, [#allocation4], %s3877_s18, %s3877_s18, %s3867_s3  }
 0x43b   :  { %3859 = dma.done.wait [#allocation4], 10496  }
 0x43c   :  { %3860 = vsyncadd [#allocation4], 4294956800 }
 0x43d   :  { %3291 = vsyncpa [#allocation3], 1 }
 0x43e   :  { %3292 = vsyncpa [#allocation6], 1 }
 0x43f   :  { %3293 = vsyncpa [#allocation9], 1 }
 0x440   :  { %3294 = vsyncpa [#allocation4], 1 }

</bundles_post_ra>
